<compile_context>
chip_gen: v6e
topology: v6e:2x2x1
jax: 0.10.0
libtpu: 0.0.40
codegen_flags: <defaults>
</compile_context>

<pallas_src>
from functools import partial

import numpy as np
import jax
import jax.numpy as jnp
from jax.experimental import pallas as pl
from jax.experimental.pallas import tpu as pltpu


# ----------------------------------------------------------------------------
# 2D sin-cos positional embedding (numpy, identical to MAE's get_2d_sincos_pos_embed)
# ----------------------------------------------------------------------------
def _get_1d_sincos(embed_dim, pos):
    omega = np.arange(embed_dim // 2, dtype=np.float32)
    omega /= embed_dim / 2.0
    omega = 1.0 / 10000 ** omega
    pos = pos.reshape(-1)
    out = np.einsum("m,d->md", pos, omega)
    return np.concatenate([np.sin(out), np.cos(out)], axis=1)


def get_2d_sincos_pos_embed(embed_dim, grid_size, cls_token=False):
    grid_h = np.arange(grid_size, dtype=np.float32)
    grid_w = np.arange(grid_size, dtype=np.float32)
    grid = np.meshgrid(grid_w, grid_h)
    grid = np.stack(grid, axis=0).reshape([2, 1, grid_size, grid_size])
    emb_h = _get_1d_sincos(embed_dim // 2, grid[0])
    emb_w = _get_1d_sincos(embed_dim // 2, grid[1])
    pos = np.concatenate([emb_h, emb_w], axis=1)
    if cls_token:
        pos = np.concatenate([np.zeros([1, embed_dim], dtype=np.float32), pos], axis=0)
    return pos.astype(np.float32)


# ----------------------------------------------------------------------------
# erf approximation (Abramowitz & Stegun 7.1.26, |err| <= 1.5e-7) -- uses only
# exp / mul / add / div, guaranteed to lower in Mosaic.
# ----------------------------------------------------------------------------
_ERF_A = (0.254829592, -0.284496736, 1.421413741, -1.453152027, 1.061405429)
_ERF_P = 0.3275911


def _erf_approx(z):
    a1, a2, a3, a4, a5 = _ERF_A
    az = jnp.abs(z)
    t = 1.0 / (1.0 + _ERF_P * az)
    poly = ((((a5 * t + a4) * t + a3) * t + a2) * t + a1) * t
    e = 1.0 - poly * jnp.exp(-(az * az))
    return jnp.where(z >= 0, e, -e)


# ----------------------------------------------------------------------------
# Fused encoder kernel factory
# ----------------------------------------------------------------------------
def make_fused_encoder_kernel(*, bb, S, D, Cpp, Hid, heads_per_block, eps=1e-5):
    """One grid step processes `bb` batch elements (folded into M = bb*S rows) and runs
    patch-embed + pos/cls fold + all transformer blocks, writing ONE lane-dense output
    tensor [M, nblk*D]."""
    nblk = len(heads_per_block)
    inv_sqrt2 = np.float32(1.0 / np.sqrt(2.0))
    bf16 = jnp.bfloat16
    f32 = jnp.float32

    def kernel(patches_ref, pw_ref, poscls_ref, wqkv_ref, wproj_ref,
               wfc1_ref, wfc2_ref, small_ref, out_ref):
        # ---- patch embedding (row 0 of every image slab is zeros -> cls slot) ----
        tok = jnp.dot(patches_ref[...].astype(bf16), pw_ref[...],
                      preferred_element_type=f32)                     # [M, D] f32

        # pos-embed + cls + patch-bias fold (poscls row0 = cls+pos0, rows1.. = pos+b)
        pos = poscls_ref[...]                                         # [S, D]
        if bb == 1:
            x = tok + pos
        else:
            x = tok + jnp.concatenate([pos] * bb, axis=0)             # [M, D]

        blk_outs = []

        # ---- transformer blocks (unrolled; weights stay resident in VMEM) ----
        for i in range(nblk):
            Hh = heads_per_block[i]
            hd = D // Hh

            sm = small_ref[i]                                         # [8, 128] f32 packed
            g1 = sm[0:1, 0:D]
            b1 = sm[1:2, 0:D]
            bqkv = sm[2:3, 0:3 * D]
            bproj = sm[3:4, 0:D]
            g2 = sm[4:5, 0:D]
            b2 = sm[5:6, 0:D]
            bfc1 = sm[6:7, 0:Hid]
            bfc2 = sm[7:8, 0:D]

            # --- LayerNorm 1 ---
            mu = jnp.mean(x, axis=-1, keepdims=True)
            xc = x - mu
            var = jnp.mean(xc * xc, axis=-1, keepdims=True)
            xn = xc * jax.lax.rsqrt(var + eps) * g1 + b1

            # --- fused qkv projection (bf16 MXU, f32 accumulate) ---
            # 1/sqrt(hd) is folded into the q columns of wqkv / bqkv at pack time.
            qkv = jnp.dot(xn.astype(bf16), wqkv_ref[i],
                          preferred_element_type=f32) + bqkv          # [M, 3D]

            # --- attention, per batch element (bb static & tiny) ---
            ctx_parts = []
            for b in range(bb):
                qkv_b = qkv if bb == 1 else qkv[b * S:(b + 1) * S]    # [S, 3D]
                q = qkv_b[:, 0:D]
                k = qkv_b[:, D:2 * D]
                v = qkv_b[:, 2 * D:3 * D]
                head_ctx = []
                for h in range(Hh):
                    sl = slice(h * hd, (h + 1) * hd)
                    # scores: contract dim 1 of q and k (no explicit .T materialized)
                    s_h = jax.lax.dot_general(
                        q[:, sl], k[:, sl],
                        dimension_numbers=(((1,), (1,)), ((), ())),
                        preferred_element_type=f32)                   # [S, S]
                    s_h = s_h - jnp.max(s_h, axis=-1, keepdims=True)
                    p_h = jnp.exp(s_h)
                    p_h = p_h * pl.reciprocal(
                        jnp.sum(p_h, axis=-1, keepdims=True), approx=True)
                    head_ctx.append(
                        jnp.dot(p_h, v[:, sl], preferred_element_type=f32))  # [S, hd]
                ctx_parts.append(jnp.concatenate(head_ctx, axis=-1))  # [S, D]
            ctx = ctx_parts[0] if bb == 1 else jnp.concatenate(ctx_parts, axis=0)

            # single output projection per block (bf16 MXU)
            att = jnp.dot(ctx.astype(bf16), wproj_ref[i],
                          preferred_element_type=f32)                 # [M, D]

            # residual 1 (drop_path = identity at inference)
            x1 = x + att + bproj

            # --- LayerNorm 2 + MLP (erf GELU, matching nn.GELU numerics) ---
            mu2 = jnp.mean(x1, axis=-1, keepdims=True)
            xc2 = x1 - mu2
            var2 = jnp.mean(xc2 * xc2, axis=-1, keepdims=True)
            xn2 = xc2 * jax.lax.rsqrt(var2 + eps) * g2 + b2

            h1 = jnp.dot(xn2.astype(bf16), wfc1_ref[i],
                         preferred_element_type=f32) + bfc1           # [M, Hid]
            h1 = 0.5 * h1 * (1.0 + _erf_approx(h1 * inv_sqrt2))
            h2 = jnp.dot(h1.astype(bf16), wfc2_ref[i],
                         preferred_element_type=f32) + bfc2           # [M, D]

            x = x1 + h2                                               # residual 2
            blk_outs.append(x)

        # ---- single lane-dense store: [M, nblk*D] (= 128 lanes here) ----
        out_ref[...] = (jnp.concatenate(blk_outs, axis=-1)
                        if nblk > 1 else blk_outs[0])

    return kernel


# ----------------------------------------------------------------------------
# Parameter init (raw, PyTorch-like format) and packing into kernel format
# ----------------------------------------------------------------------------
def xavier_uniform(key, fan_in, fan_out):
    bound = np.sqrt(6.0 / (fan_in + fan_out))
    return jax.random.uniform(key, (fan_in, fan_out), jnp.float32, -bound, bound)


def init_block_params(key, D, hidden):
    k = jax.random.split(key, 4)
    return {
        "g1": jnp.ones((1, D), jnp.float32),
        "b1": jnp.zeros((1, D), jnp.float32),
        "wqkv": xavier_uniform(k[0], D, 3 * D),          # stored [in, out]
        "bqkv": jnp.zeros((1, 3 * D), jnp.float32),
        "wproj": xavier_uniform(k[1], D, D),
        "bproj": jnp.zeros((1, D), jnp.float32),
        "g2": jnp.ones((1, D), jnp.float32),
        "b2": jnp.zeros((1, D), jnp.float32),
        "wfc1": xavier_uniform(k[2], D, hidden),
        "bfc1": jnp.zeros((1, hidden), jnp.float32),
        "wfc2": xavier_uniform(k[3], hidden, D),
        "bfc2": jnp.zeros((1, D), jnp.float32),
    }


def init_tinymim_params(key, img_size, patch_size, in_chans, embed_dim, depth, mlp_ratio):
    num_patches = (img_size // patch_size) ** 2
    cpp = in_chans * patch_size * patch_size
    hidden = int(embed_dim * mlp_ratio)
    keys = jax.random.split(key, depth + 3)
    return {
        "patch_w": xavier_uniform(keys[0], cpp, embed_dim),       # [Cpp, D]
        "patch_b": jnp.zeros((1, embed_dim), jnp.float32),
        "cls_token": 0.02 * jax.random.normal(keys[1], (1, 1, embed_dim), jnp.float32),
        "pos_embed": jnp.asarray(
            get_2d_sincos_pos_embed(embed_dim, int(num_patches ** 0.5), cls_token=True)
        )[None, :, :],                                            # [1, N+1, D]
        "blocks": [init_block_params(keys[3 + i], embed_dim, hidden) for i in range(depth)],
    }


def pack_params(raw, heads_per_block, D, Hid):
    """Stack per-block weights along a leading depth axis (bf16 for all MXU weights),
    fold the attention scale into the q columns of wqkv/bqkv, and pack the 8 tiny
    per-block 1-D params into one [nblk, 8, 128] f32 buffer."""
    assert D <= 128 and 3 * D <= 128 and Hid <= 128
    nblk = len(heads_per_block)
    blocks = raw["blocks"][:nblk]

    wqkv_list, small_list = [], []
    for i, b in enumerate(blocks):
        hd = D // heads_per_block[i]
        scale = np.float32(hd ** -0.5)
        wqkv = b["wqkv"].at[:, :D].multiply(scale)       # fold 1/sqrt(hd) into q cols
        wqkv_list.append(wqkv)
        bqkv = b["bqkv"][0].at[:D].multiply(scale)

        rows = jnp.zeros((8, 128), jnp.float32)
        rows = rows.at[0, :D].set(b["g1"][0])
        rows = rows.at[1, :D].set(b["b1"][0])
        rows = rows.at[2, :3 * D].set(bqkv)
        rows = rows.at[3, :D].set(b["bproj"][0])
        rows = rows.at[4, :D].set(b["g2"][0])
        rows = rows.at[5, :D].set(b["b2"][0])
        rows = rows.at[6, :Hid].set(b["bfc1"][0])
        rows = rows.at[7, :D].set(b["bfc2"][0])
        small_list.append(rows)

    pos = raw["pos_embed"][0]                                            # [S, D]
    pos_cls = jnp.concatenate(
        [pos[0:1] + raw["cls_token"][0],          # row 0: cls_token + pos[0]
         pos[1:] + raw["patch_b"]],               # rows 1..: pos + patch bias
        axis=0,
    )
    return {
        "patch_w": raw["patch_w"].astype(jnp.bfloat16),
        "pos_cls": pos_cls,
        "wqkv": jnp.stack(wqkv_list).astype(jnp.bfloat16),               # [n, D, 3D]
        "wproj": jnp.stack([b["wproj"] for b in blocks]).astype(jnp.bfloat16),
        "wfc1": jnp.stack([b["wfc1"] for b in blocks]).astype(jnp.bfloat16),
        "wfc2": jnp.stack([b["wfc2"] for b in blocks]).astype(jnp.bfloat16),
        "small": jnp.stack(small_list),                                  # [n, 8, 128]
    }


# ----------------------------------------------------------------------------
# Full forward (encoder path, gtimgs=None): returns (x_out list of 4, None, None)
# ----------------------------------------------------------------------------
def tinymim_forward(packed, pimgs, patch_size, heads_per_block):
    B, C, H, W = pimgs.shape
    p = patch_size
    gh, gw = H // p, W // p
    N = gh * gw
    S = N + 1
    Cpp = C * p * p
    D = packed["pos_cls"].shape[1]
    Hid = packed["wfc1"].shape[2]
    nblk = len(heads_per_block)
    Wout = nblk * D

    # im2col glue: [B, C, H, W] -> [B, N, C*p*p] with patch vector ordered (c, i, j),
    # plus one all-zero row per image in front (the cls slot: 0 @ W == 0).
    patches = pimgs.reshape(B, C, gh, p, gw, p)
    patches = jnp.transpose(patches, (0, 2, 4, 1, 3, 5)).reshape(B, N, Cpp)
    patches = jnp.concatenate([jnp.zeros((B, 1, Cpp), pimgs.dtype), patches], axis=1)

    # grid=(1,) for small B: fold the whole batch into M = B*S (single-TC chips pay
    # only per-step overhead for extra grid steps).  For large B, grid over batch
    # groups keeping M = bb*S around <= 256 rows (good MXU M fill).
    # TODO(synk): on v7x, benchmark an explicit 2-way core split vs this grid=(1,) path.
    num_bb = 1
    if B * S > 256:
        num_bb = B
        for cand in range(int(np.ceil((B * S) / 256)), B + 1):
            if B % cand == 0:
                num_bb = cand
                break
    bb = B // num_bb
    M = bb * S

    patches = patches.reshape(num_bb, M, Cpp)

    kernel = make_fused_encoder_kernel(
        bb=bb, S=S, D=D, Cpp=Cpp, Hid=Hid, heads_per_block=tuple(heads_per_block))

    in_specs = [
        pl.BlockSpec((None, M, Cpp), lambda g: (g, 0, 0)),          # patches (+cls slot)
        pl.BlockSpec(packed["patch_w"].shape, lambda g: (0, 0)),    # patch weight (bf16)
        pl.BlockSpec(packed["pos_cls"].shape, lambda g: (0, 0)),    # pos+cls+patch_b
        pl.BlockSpec(packed["wqkv"].shape, lambda g: (0, 0, 0)),
        pl.BlockSpec(packed["wproj"].shape, lambda g: (0, 0, 0)),
        pl.BlockSpec(packed["wfc1"].shape, lambda g: (0, 0, 0)),
        pl.BlockSpec(packed["wfc2"].shape, lambda g: (0, 0, 0)),
        pl.BlockSpec(packed["small"].shape, lambda g: (0, 0, 0)),
    ]
    out_shape = jax.ShapeDtypeStruct((num_bb, M, Wout), jnp.float32)
    out_specs = pl.BlockSpec((None, M, Wout), lambda g: (g, 0, 0))

    out = pl.pallas_call(
        kernel,
        out_shape=out_shape,
        grid=(num_bb,),
        in_specs=in_specs,
        out_specs=out_specs,
        compiler_params=pltpu.CompilerParams(dimension_semantics=("parallel",)),
    )(patches, packed["patch_w"], packed["pos_cls"], packed["wqkv"],
      packed["wproj"], packed["wfc1"], packed["wfc2"], packed["small"])

    # slice the lane-dense combined output back into the per-block tensors (host/XLA)
    out3 = out.reshape(B, S, Wout)
    x_out = [out3[:, :, i * D:(i + 1) * D] for i in range(nblk)]
    x_out = [x_out[0], x_out[1], x_out[2], x_out[-1]]   # mirrors the module's selection
    return x_out, None, None


# ----------------------------------------------------------------------------
# Pure-JAX f32 reference (mirrors the PyTorch module; used for a tolerance check)
# ----------------------------------------------------------------------------
def tinymim_reference(raw, pimgs, patch_size, heads_per_block, eps=1e-5):
    B, C, H, W = pimgs.shape
    p = patch_size
    gh, gw = H // p, W // p
    N = gh * gw
    D = raw["patch_w"].shape[1]
    patches = pimgs.reshape(B, C, gh, p, gw, p)
    patches = jnp.transpose(patches, (0, 2, 4, 1, 3, 5)).reshape(B, N, C * p * p)
    x = patches @ raw["patch_w"] + raw["patch_b"]
    x = x + raw["pos_embed"][:, 1:, :]
    cls_tok = raw["cls_token"] + raw["pos_embed"][:, :1, :]
    x = jnp.concatenate([jnp.broadcast_to(cls_tok, (B, 1, D)), x], axis=1)
    S = x.shape[1]

    def ln(z, g, b):
        mu = z.mean(-1, keepdims=True)
        var = ((z - mu) ** 2).mean(-1, keepdims=True)
        return (z - mu) / jnp.sqrt(var + eps) * g + b

    outs = []
    for i, Hh in enumerate(heads_per_block):
        bp = raw["blocks"][i]
        hd = D // Hh
        xn = ln(x, bp["g1"], bp["b1"])
        qkv = xn @ bp["wqkv"] + bp["bqkv"]
        q, k, v = jnp.split(qkv, 3, axis=-1)
        q = q.reshape(B, S, Hh, hd).transpose(0, 2, 1, 3) * (hd ** -0.5)
        k = k.reshape(B, S, Hh, hd).transpose(0, 2, 1, 3)
        v = v.reshape(B, S, Hh, hd).transpose(0, 2, 1, 3)
        att = jax.nn.softmax(q @ jnp.swapaxes(k, -1, -2), axis=-1)
        ctx = (att @ v).transpose(0, 2, 1, 3).reshape(B, S, D)
        x = x + ctx @ bp["wproj"] + bp["bproj"]
        xn2 = ln(x, bp["g2"], bp["b2"])
        h1 = xn2 @ bp["wfc1"] + bp["bfc1"]
        h1 = jax.nn.gelu(h1, approximate=False)
        x = x + h1 @ bp["wfc2"] + bp["bfc2"]
        outs.append(x)
    return [outs[0], outs[1], outs[2], outs[-1]]


# ----------------------------------------------------------------------------
if __name__ == "__main__":
    # small config
    IMG, PATCH, CIN = 16, 4, 3
    EMBED, DEPTH, HEADS, LAST_HEADS, MLP_RATIO = 32, 4, 4, 2, 4.0
    B = 2
    MAX_NUMBERS = 4                       # forward_encoder runs blocks[:4]

    key = jax.random.PRNGKey(0)
    kparam, kx = jax.random.split(key)
    raw = init_tinymim_params(kparam, IMG, PATCH, CIN, EMBED, DEPTH, MLP_RATIO)

    heads_full = [HEADS] * (DEPTH - 1) + [LAST_HEADS]
    heads_run = tuple(heads_full[:MAX_NUMBERS])
    packed = pack_params(raw, heads_run, EMBED, int(EMBED * MLP_RATIO))

    pimgs = jax.random.normal(kx, (B, CIN, IMG, IMG), jnp.float32)

    fwd = jax.jit(partial(tinymim_forward, patch_size=PATCH, heads_per_block=heads_run))
    platent, glatent, ids = fwd(packed, pimgs)
    platent = [jax.block_until_ready(t) for t in platent]

    S = (IMG // PATCH) ** 2 + 1
    assert len(platent) == 4
    assert all(t.shape == (B, S, EMBED) for t in platent)
    assert glatent is None and ids is None
    assert all(bool(jnp.all(jnp.isfinite(t))) for t in platent)

    # loose tolerance vs f32 reference (kernel uses bf16 weights + approx reciprocal)
    ref_outs = tinymim_reference(raw, pimgs, PATCH, heads_run)
    for got, ref in zip(platent, ref_outs):
        np.testing.assert_allclose(np.asarray(got), np.asarray(ref),
                                   atol=0.25, rtol=0.05)

    print("KERNEL_OK")
</pallas_src>

<mosaic_0001>
module attributes {stable_mosaic.version = 11 : i64} {
  func.func @kernel(%arg0: i32, %arg1: memref<1x34x48xf32, #tpu.memory_space<vmem>>, %arg2: memref<48x32xbf16, #tpu.memory_space<vmem>>, %arg3: memref<17x32xf32, #tpu.memory_space<vmem>>, %arg4: memref<4x32x96xbf16, #tpu.memory_space<vmem>>, %arg5: memref<4x32x32xbf16, #tpu.memory_space<vmem>>, %arg6: memref<4x32x128xbf16, #tpu.memory_space<vmem>>, %arg7: memref<4x128x32xbf16, #tpu.memory_space<vmem>>, %arg8: memref<4x8x128xf32, #tpu.memory_space<vmem>>, %arg9: memref<1x34x128xf32, #tpu.memory_space<vmem>>) attributes {dimension_semantics = [#tpu.dimension_semantics<parallel>], iteration_bounds = array<i64: 1>, scalar_prefetch = 0 : i64, scratch_operands = 0 : i64, tpu.core_type = #tpu.core_type<tc>, window_params = [{transform_indices = @transform_0, window_bounds = array<i64: 1, 34, 48>}, {pipeline_mode = #tpu.pipeline_mode<synchronous>, transform_indices = @transform_1, window_bounds = array<i64: 48, 32>}, {pipeline_mode = #tpu.pipeline_mode<synchronous>, transform_indices = @transform_2, window_bounds = array<i64: 17, 32>}, {pipeline_mode = #tpu.pipeline_mode<synchronous>, transform_indices = @transform_3, window_bounds = array<i64: 4, 32, 96>}, {pipeline_mode = #tpu.pipeline_mode<synchronous>, transform_indices = @transform_4, window_bounds = array<i64: 4, 32, 32>}, {pipeline_mode = #tpu.pipeline_mode<synchronous>, transform_indices = @transform_5, window_bounds = array<i64: 4, 32, 128>}, {pipeline_mode = #tpu.pipeline_mode<synchronous>, transform_indices = @transform_6, window_bounds = array<i64: 4, 128, 32>}, {pipeline_mode = #tpu.pipeline_mode<synchronous>, transform_indices = @transform_7, window_bounds = array<i64: 4, 8, 128>}, {transform_indices = @transform_8, window_bounds = array<i64: 1, 34, 128>}]} {
    %c0 = arith.constant 0 : index
    %c0_0 = arith.constant 0 : index
    %c0_1 = arith.constant 0 : index
    %0 = vector.load %arg1[%c0, %c0_0, %c0_1] : memref<1x34x48xf32, #tpu.memory_space<vmem>>, vector<1x34x48xf32>
    %1 = vector.shape_cast %0 : vector<1x34x48xf32> to vector<34x48xf32>
    %2 = arith.truncf %1 : vector<34x48xf32> to vector<34x48xbf16>
    %c0_2 = arith.constant 0 : index
    %c0_3 = arith.constant 0 : index
    %3 = vector.load %arg2[%c0_2, %c0_3] : memref<48x32xbf16, #tpu.memory_space<vmem>>, vector<48x32xbf16>
    %cst = arith.constant dense<0.000000e+00> : vector<34x32xf32>
    %4 = tpu.matmul %2, %3, %cst {dimension_numbers = #tpu.dot_dimension_numbers<[1], [0], [0], [1], [0, 0, 1, 1], [], []>} : vector<34x48xbf16>, vector<48x32xbf16>, vector<34x32xf32> -> vector<34x32xf32>
    %c0_4 = arith.constant 0 : index
    %c0_5 = arith.constant 0 : index
    %5 = vector.load %arg3[%c0_4, %c0_5] : memref<17x32xf32, #tpu.memory_space<vmem>>, vector<17x32xf32>
    %6 = tpu.concatenate %5, %5 in 0 : vector<17x32xf32>, vector<17x32xf32> -> vector<34x32xf32>
    %7 = arith.addf %4, %6 : vector<34x32xf32>
    %c0_6 = arith.constant 0 : index
    %c0_7 = arith.constant 0 : index
    %c0_8 = arith.constant 0 : index
    %8 = vector.load %arg8[%c0_6, %c0_7, %c0_8] : memref<4x8x128xf32, #tpu.memory_space<vmem>>, vector<1x8x128xf32>
    %9 = vector.shape_cast %8 : vector<1x8x128xf32> to vector<8x128xf32>
    %10 = vector.extract_strided_slice %9 {offsets = [0, 0], sizes = [1, 32], strides = [1, 1]} : vector<8x128xf32> to vector<1x32xf32>
    %11 = vector.extract_strided_slice %9 {offsets = [1, 0], sizes = [1, 32], strides = [1, 1]} : vector<8x128xf32> to vector<1x32xf32>
    %12 = vector.extract_strided_slice %9 {offsets = [2, 0], sizes = [1, 96], strides = [1, 1]} : vector<8x128xf32> to vector<1x96xf32>
    %13 = vector.extract_strided_slice %9 {offsets = [3, 0], sizes = [1, 32], strides = [1, 1]} : vector<8x128xf32> to vector<1x32xf32>
    %14 = vector.extract_strided_slice %9 {offsets = [4, 0], sizes = [1, 32], strides = [1, 1]} : vector<8x128xf32> to vector<1x32xf32>
    %15 = vector.extract_strided_slice %9 {offsets = [5, 0], sizes = [1, 32], strides = [1, 1]} : vector<8x128xf32> to vector<1x32xf32>
    %16 = vector.extract_strided_slice %9 {offsets = [6, 0], sizes = [1, 128], strides = [1, 1]} : vector<8x128xf32> to vector<1x128xf32>
    %17 = vector.extract_strided_slice %9 {offsets = [7, 0], sizes = [1, 32], strides = [1, 1]} : vector<8x128xf32> to vector<1x32xf32>
    %cst_9 = arith.constant dense<0.000000e+00> : vector<34xf32>
    %18 = vector.multi_reduction <add>, %7, %cst_9 [1] : vector<34x32xf32> to vector<34xf32>
    %19 = vector.shape_cast %18 : vector<34xf32> to vector<34x1xf32>
    %cst_10 = arith.constant 3.200000e+01 : f32
    %20 = vector.broadcast %cst_10 : f32 to vector<34x1xf32>
    %21 = arith.divf %19, %20 : vector<34x1xf32>
    %22 = vector.broadcast %21 : vector<34x1xf32> to vector<34x32xf32>
    %23 = arith.subf %7, %22 : vector<34x32xf32>
    %24 = arith.mulf %23, %23 : vector<34x32xf32>
    %cst_11 = arith.constant dense<0.000000e+00> : vector<34xf32>
    %25 = vector.multi_reduction <add>, %24, %cst_11 [1] : vector<34x32xf32> to vector<34xf32>
    %26 = vector.shape_cast %25 : vector<34xf32> to vector<34x1xf32>
    %cst_12 = arith.constant 3.200000e+01 : f32
    %27 = vector.broadcast %cst_12 : f32 to vector<34x1xf32>
    %28 = arith.divf %26, %27 : vector<34x1xf32>
    %cst_13 = arith.constant 9.99999974E-6 : f32
    %29 = vector.broadcast %cst_13 : f32 to vector<34x1xf32>
    %30 = arith.addf %28, %29 : vector<34x1xf32>
    %31 = math.rsqrt %30 : vector<34x1xf32>
    %32 = vector.broadcast %31 : vector<34x1xf32> to vector<34x32xf32>
    %33 = arith.mulf %23, %32 : vector<34x32xf32>
    %34 = vector.broadcast %10 : vector<1x32xf32> to vector<34x32xf32>
    %35 = arith.mulf %33, %34 : vector<34x32xf32>
    %36 = vector.broadcast %11 : vector<1x32xf32> to vector<34x32xf32>
    %37 = arith.addf %35, %36 : vector<34x32xf32>
    %38 = arith.truncf %37 : vector<34x32xf32> to vector<34x32xbf16>
    %c0_14 = arith.constant 0 : index
    %c0_15 = arith.constant 0 : index
    %c0_16 = arith.constant 0 : index
    %39 = vector.load %arg4[%c0_14, %c0_15, %c0_16] : memref<4x32x96xbf16, #tpu.memory_space<vmem>>, vector<1x32x96xbf16>
    %40 = vector.shape_cast %39 : vector<1x32x96xbf16> to vector<32x96xbf16>
    %cst_17 = arith.constant dense<0.000000e+00> : vector<34x96xf32>
    %41 = tpu.matmul %38, %40, %cst_17 {dimension_numbers = #tpu.dot_dimension_numbers<[1], [0], [0], [1], [0, 0, 1, 1], [], []>} : vector<34x32xbf16>, vector<32x96xbf16>, vector<34x96xf32> -> vector<34x96xf32>
    %42 = vector.broadcast %12 : vector<1x96xf32> to vector<34x96xf32>
    %43 = arith.addf %41, %42 : vector<34x96xf32>
    %44 = vector.extract_strided_slice %43 {offsets = [0, 0], sizes = [17, 96], strides = [1, 1]} : vector<34x96xf32> to vector<17x96xf32>
    %45 = vector.extract_strided_slice %44 {offsets = [0, 0], sizes = [17, 32], strides = [1, 1]} : vector<17x96xf32> to vector<17x32xf32>
    %46 = vector.extract_strided_slice %44 {offsets = [0, 32], sizes = [17, 32], strides = [1, 1]} : vector<17x96xf32> to vector<17x32xf32>
    %47 = vector.extract_strided_slice %44 {offsets = [0, 64], sizes = [17, 32], strides = [1, 1]} : vector<17x96xf32> to vector<17x32xf32>
    %48 = vector.extract_strided_slice %45 {offsets = [0, 0], sizes = [17, 8], strides = [1, 1]} : vector<17x32xf32> to vector<17x8xf32>
    %49 = vector.extract_strided_slice %46 {offsets = [0, 0], sizes = [17, 8], strides = [1, 1]} : vector<17x32xf32> to vector<17x8xf32>
    %cst_18 = arith.constant dense<0.000000e+00> : vector<17x17xf32>
    %50 = tpu.matmul %48, %49, %cst_18 {dimension_numbers = #tpu.dot_dimension_numbers<[1], [1], [0], [0], [0, 0, 1, 0], [], []>} : vector<17x8xf32>, vector<17x8xf32>, vector<17x17xf32> -> vector<17x17xf32>
    %cst_19 = arith.constant dense<0xFF800000> : vector<17xf32>
    %51 = vector.multi_reduction <maximumf>, %50, %cst_19 [1] : vector<17x17xf32> to vector<17xf32>
    %52 = vector.shape_cast %51 : vector<17xf32> to vector<17x1xf32>
    %53 = vector.broadcast %52 : vector<17x1xf32> to vector<17x17xf32>
    %54 = arith.subf %50, %53 : vector<17x17xf32>
    %55 = math.exp %54 : vector<17x17xf32>
    %cst_20 = arith.constant dense<0.000000e+00> : vector<17xf32>
    %56 = vector.multi_reduction <add>, %55, %cst_20 [1] : vector<17x17xf32> to vector<17xf32>
    %57 = vector.shape_cast %56 : vector<17xf32> to vector<17x1xf32>
    %58 = tpu.reciprocal %57 {approx = true} : vector<17x1xf32> -> vector<17x1xf32>
    %59 = vector.broadcast %58 : vector<17x1xf32> to vector<17x17xf32>
    %60 = arith.mulf %55, %59 : vector<17x17xf32>
    %61 = vector.extract_strided_slice %47 {offsets = [0, 0], sizes = [17, 8], strides = [1, 1]} : vector<17x32xf32> to vector<17x8xf32>
    %cst_21 = arith.constant dense<0.000000e+00> : vector<17x8xf32>
    %62 = tpu.matmul %60, %61, %cst_21 {dimension_numbers = #tpu.dot_dimension_numbers<[1], [0], [0], [1], [0, 0, 1, 1], [], []>} : vector<17x17xf32>, vector<17x8xf32>, vector<17x8xf32> -> vector<17x8xf32>
    %63 = vector.extract_strided_slice %45 {offsets = [0, 8], sizes = [17, 8], strides = [1, 1]} : vector<17x32xf32> to vector<17x8xf32>
    %64 = vector.extract_strided_slice %46 {offsets = [0, 8], sizes = [17, 8], strides = [1, 1]} : vector<17x32xf32> to vector<17x8xf32>
    %cst_22 = arith.constant dense<0.000000e+00> : vector<17x17xf32>
    %65 = tpu.matmul %63, %64, %cst_22 {dimension_numbers = #tpu.dot_dimension_numbers<[1], [1], [0], [0], [0, 0, 1, 0], [], []>} : vector<17x8xf32>, vector<17x8xf32>, vector<17x17xf32> -> vector<17x17xf32>
    %cst_23 = arith.constant dense<0xFF800000> : vector<17xf32>
    %66 = vector.multi_reduction <maximumf>, %65, %cst_23 [1] : vector<17x17xf32> to vector<17xf32>
    %67 = vector.shape_cast %66 : vector<17xf32> to vector<17x1xf32>
    %68 = vector.broadcast %67 : vector<17x1xf32> to vector<17x17xf32>
    %69 = arith.subf %65, %68 : vector<17x17xf32>
    %70 = math.exp %69 : vector<17x17xf32>
    %cst_24 = arith.constant dense<0.000000e+00> : vector<17xf32>
    %71 = vector.multi_reduction <add>, %70, %cst_24 [1] : vector<17x17xf32> to vector<17xf32>
    %72 = vector.shape_cast %71 : vector<17xf32> to vector<17x1xf32>
    %73 = tpu.reciprocal %72 {approx = true} : vector<17x1xf32> -> vector<17x1xf32>
    %74 = vector.broadcast %73 : vector<17x1xf32> to vector<17x17xf32>
    %75 = arith.mulf %70, %74 : vector<17x17xf32>
    %76 = vector.extract_strided_slice %47 {offsets = [0, 8], sizes = [17, 8], strides = [1, 1]} : vector<17x32xf32> to vector<17x8xf32>
    %cst_25 = arith.constant dense<0.000000e+00> : vector<17x8xf32>
    %77 = tpu.matmul %75, %76, %cst_25 {dimension_numbers = #tpu.dot_dimension_numbers<[1], [0], [0], [1], [0, 0, 1, 1], [], []>} : vector<17x17xf32>, vector<17x8xf32>, vector<17x8xf32> -> vector<17x8xf32>
    %78 = vector.extract_strided_slice %45 {offsets = [0, 16], sizes = [17, 8], strides = [1, 1]} : vector<17x32xf32> to vector<17x8xf32>
    %79 = vector.extract_strided_slice %46 {offsets = [0, 16], sizes = [17, 8], strides = [1, 1]} : vector<17x32xf32> to vector<17x8xf32>
    %cst_26 = arith.constant dense<0.000000e+00> : vector<17x17xf32>
    %80 = tpu.matmul %78, %79, %cst_26 {dimension_numbers = #tpu.dot_dimension_numbers<[1], [1], [0], [0], [0, 0, 1, 0], [], []>} : vector<17x8xf32>, vector<17x8xf32>, vector<17x17xf32> -> vector<17x17xf32>
    %cst_27 = arith.constant dense<0xFF800000> : vector<17xf32>
    %81 = vector.multi_reduction <maximumf>, %80, %cst_27 [1] : vector<17x17xf32> to vector<17xf32>
    %82 = vector.shape_cast %81 : vector<17xf32> to vector<17x1xf32>
    %83 = vector.broadcast %82 : vector<17x1xf32> to vector<17x17xf32>
    %84 = arith.subf %80, %83 : vector<17x17xf32>
    %85 = math.exp %84 : vector<17x17xf32>
    %cst_28 = arith.constant dense<0.000000e+00> : vector<17xf32>
    %86 = vector.multi_reduction <add>, %85, %cst_28 [1] : vector<17x17xf32> to vector<17xf32>
    %87 = vector.shape_cast %86 : vector<17xf32> to vector<17x1xf32>
    %88 = tpu.reciprocal %87 {approx = true} : vector<17x1xf32> -> vector<17x1xf32>
    %89 = vector.broadcast %88 : vector<17x1xf32> to vector<17x17xf32>
    %90 = arith.mulf %85, %89 : vector<17x17xf32>
    %91 = vector.extract_strided_slice %47 {offsets = [0, 16], sizes = [17, 8], strides = [1, 1]} : vector<17x32xf32> to vector<17x8xf32>
    %cst_29 = arith.constant dense<0.000000e+00> : vector<17x8xf32>
    %92 = tpu.matmul %90, %91, %cst_29 {dimension_numbers = #tpu.dot_dimension_numbers<[1], [0], [0], [1], [0, 0, 1, 1], [], []>} : vector<17x17xf32>, vector<17x8xf32>, vector<17x8xf32> -> vector<17x8xf32>
    %93 = vector.extract_strided_slice %45 {offsets = [0, 24], sizes = [17, 8], strides = [1, 1]} : vector<17x32xf32> to vector<17x8xf32>
    %94 = vector.extract_strided_slice %46 {offsets = [0, 24], sizes = [17, 8], strides = [1, 1]} : vector<17x32xf32> to vector<17x8xf32>
    %cst_30 = arith.constant dense<0.000000e+00> : vector<17x17xf32>
    %95 = tpu.matmul %93, %94, %cst_30 {dimension_numbers = #tpu.dot_dimension_numbers<[1], [1], [0], [0], [0, 0, 1, 0], [], []>} : vector<17x8xf32>, vector<17x8xf32>, vector<17x17xf32> -> vector<17x17xf32>
    %cst_31 = arith.constant dense<0xFF800000> : vector<17xf32>
    %96 = vector.multi_reduction <maximumf>, %95, %cst_31 [1] : vector<17x17xf32> to vector<17xf32>
    %97 = vector.shape_cast %96 : vector<17xf32> to vector<17x1xf32>
    %98 = vector.broadcast %97 : vector<17x1xf32> to vector<17x17xf32>
    %99 = arith.subf %95, %98 : vector<17x17xf32>
    %100 = math.exp %99 : vector<17x17xf32>
    %cst_32 = arith.constant dense<0.000000e+00> : vector<17xf32>
    %101 = vector.multi_reduction <add>, %100, %cst_32 [1] : vector<17x17xf32> to vector<17xf32>
    %102 = vector.shape_cast %101 : vector<17xf32> to vector<17x1xf32>
    %103 = tpu.reciprocal %102 {approx = true} : vector<17x1xf32> -> vector<17x1xf32>
    %104 = vector.broadcast %103 : vector<17x1xf32> to vector<17x17xf32>
    %105 = arith.mulf %100, %104 : vector<17x17xf32>
    %106 = vector.extract_strided_slice %47 {offsets = [0, 24], sizes = [17, 8], strides = [1, 1]} : vector<17x32xf32> to vector<17x8xf32>
    %cst_33 = arith.constant dense<0.000000e+00> : vector<17x8xf32>
    %107 = tpu.matmul %105, %106, %cst_33 {dimension_numbers = #tpu.dot_dimension_numbers<[1], [0], [0], [1], [0, 0, 1, 1], [], []>} : vector<17x17xf32>, vector<17x8xf32>, vector<17x8xf32> -> vector<17x8xf32>
    %108 = tpu.concatenate %62, %77, %92, %107 in 1 : vector<17x8xf32>, vector<17x8xf32>, vector<17x8xf32>, vector<17x8xf32> -> vector<17x32xf32>
    %109 = vector.extract_strided_slice %43 {offsets = [17, 0], sizes = [17, 96], strides = [1, 1]} : vector<34x96xf32> to vector<17x96xf32>
    %110 = vector.extract_strided_slice %109 {offsets = [0, 0], sizes = [17, 32], strides = [1, 1]} : vector<17x96xf32> to vector<17x32xf32>
    %111 = vector.extract_strided_slice %109 {offsets = [0, 32], sizes = [17, 32], strides = [1, 1]} : vector<17x96xf32> to vector<17x32xf32>
    %112 = vector.extract_strided_slice %109 {offsets = [0, 64], sizes = [17, 32], strides = [1, 1]} : vector<17x96xf32> to vector<17x32xf32>
    %113 = vector.extract_strided_slice %110 {offsets = [0, 0], sizes = [17, 8], strides = [1, 1]} : vector<17x32xf32> to vector<17x8xf32>
    %114 = vector.extract_strided_slice %111 {offsets = [0, 0], sizes = [17, 8], strides = [1, 1]} : vector<17x32xf32> to vector<17x8xf32>
    %cst_34 = arith.constant dense<0.000000e+00> : vector<17x17xf32>
    %115 = tpu.matmul %113, %114, %cst_34 {dimension_numbers = #tpu.dot_dimension_numbers<[1], [1], [0], [0], [0, 0, 1, 0], [], []>} : vector<17x8xf32>, vector<17x8xf32>, vector<17x17xf32> -> vector<17x17xf32>
    %cst_35 = arith.constant dense<0xFF800000> : vector<17xf32>
    %116 = vector.multi_reduction <maximumf>, %115, %cst_35 [1] : vector<17x17xf32> to vector<17xf32>
    %117 = vector.shape_cast %116 : vector<17xf32> to vector<17x1xf32>
    %118 = vector.broadcast %117 : vector<17x1xf32> to vector<17x17xf32>
    %119 = arith.subf %115, %118 : vector<17x17xf32>
    %120 = math.exp %119 : vector<17x17xf32>
    %cst_36 = arith.constant dense<0.000000e+00> : vector<17xf32>
    %121 = vector.multi_reduction <add>, %120, %cst_36 [1] : vector<17x17xf32> to vector<17xf32>
    %122 = vector.shape_cast %121 : vector<17xf32> to vector<17x1xf32>
    %123 = tpu.reciprocal %122 {approx = true} : vector<17x1xf32> -> vector<17x1xf32>
    %124 = vector.broadcast %123 : vector<17x1xf32> to vector<17x17xf32>
    %125 = arith.mulf %120, %124 : vector<17x17xf32>
    %126 = vector.extract_strided_slice %112 {offsets = [0, 0], sizes = [17, 8], strides = [1, 1]} : vector<17x32xf32> to vector<17x8xf32>
    %cst_37 = arith.constant dense<0.000000e+00> : vector<17x8xf32>
    %127 = tpu.matmul %125, %126, %cst_37 {dimension_numbers = #tpu.dot_dimension_numbers<[1], [0], [0], [1], [0, 0, 1, 1], [], []>} : vector<17x17xf32>, vector<17x8xf32>, vector<17x8xf32> -> vector<17x8xf32>
    %128 = vector.extract_strided_slice %110 {offsets = [0, 8], sizes = [17, 8], strides = [1, 1]} : vector<17x32xf32> to vector<17x8xf32>
    %129 = vector.extract_strided_slice %111 {offsets = [0, 8], sizes = [17, 8], strides = [1, 1]} : vector<17x32xf32> to vector<17x8xf32>
    %cst_38 = arith.constant dense<0.000000e+00> : vector<17x17xf32>
    %130 = tpu.matmul %128, %129, %cst_38 {dimension_numbers = #tpu.dot_dimension_numbers<[1], [1], [0], [0], [0, 0, 1, 0], [], []>} : vector<17x8xf32>, vector<17x8xf32>, vector<17x17xf32> -> vector<17x17xf32>
    %cst_39 = arith.constant dense<0xFF800000> : vector<17xf32>
    %131 = vector.multi_reduction <maximumf>, %130, %cst_39 [1] : vector<17x17xf32> to vector<17xf32>
    %132 = vector.shape_cast %131 : vector<17xf32> to vector<17x1xf32>
    %133 = vector.broadcast %132 : vector<17x1xf32> to vector<17x17xf32>
    %134 = arith.subf %130, %133 : vector<17x17xf32>
    %135 = math.exp %134 : vector<17x17xf32>
    %cst_40 = arith.constant dense<0.000000e+00> : vector<17xf32>
    %136 = vector.multi_reduction <add>, %135, %cst_40 [1] : vector<17x17xf32> to vector<17xf32>
    %137 = vector.shape_cast %136 : vector<17xf32> to vector<17x1xf32>
    %138 = tpu.reciprocal %137 {approx = true} : vector<17x1xf32> -> vector<17x1xf32>
    %139 = vector.broadcast %138 : vector<17x1xf32> to vector<17x17xf32>
    %140 = arith.mulf %135, %139 : vector<17x17xf32>
    %141 = vector.extract_strided_slice %112 {offsets = [0, 8], sizes = [17, 8], strides = [1, 1]} : vector<17x32xf32> to vector<17x8xf32>
    %cst_41 = arith.constant dense<0.000000e+00> : vector<17x8xf32>
    %142 = tpu.matmul %140, %141, %cst_41 {dimension_numbers = #tpu.dot_dimension_numbers<[1], [0], [0], [1], [0, 0, 1, 1], [], []>} : vector<17x17xf32>, vector<17x8xf32>, vector<17x8xf32> -> vector<17x8xf32>
    %143 = vector.extract_strided_slice %110 {offsets = [0, 16], sizes = [17, 8], strides = [1, 1]} : vector<17x32xf32> to vector<17x8xf32>
    %144 = vector.extract_strided_slice %111 {offsets = [0, 16], sizes = [17, 8], strides = [1, 1]} : vector<17x32xf32> to vector<17x8xf32>
    %cst_42 = arith.constant dense<0.000000e+00> : vector<17x17xf32>
    %145 = tpu.matmul %143, %144, %cst_42 {dimension_numbers = #tpu.dot_dimension_numbers<[1], [1], [0], [0], [0, 0, 1, 0], [], []>} : vector<17x8xf32>, vector<17x8xf32>, vector<17x17xf32> -> vector<17x17xf32>
    %cst_43 = arith.constant dense<0xFF800000> : vector<17xf32>
    %146 = vector.multi_reduction <maximumf>, %145, %cst_43 [1] : vector<17x17xf32> to vector<17xf32>
    %147 = vector.shape_cast %146 : vector<17xf32> to vector<17x1xf32>
    %148 = vector.broadcast %147 : vector<17x1xf32> to vector<17x17xf32>
    %149 = arith.subf %145, %148 : vector<17x17xf32>
    %150 = math.exp %149 : vector<17x17xf32>
    %cst_44 = arith.constant dense<0.000000e+00> : vector<17xf32>
    %151 = vector.multi_reduction <add>, %150, %cst_44 [1] : vector<17x17xf32> to vector<17xf32>
    %152 = vector.shape_cast %151 : vector<17xf32> to vector<17x1xf32>
    %153 = tpu.reciprocal %152 {approx = true} : vector<17x1xf32> -> vector<17x1xf32>
    %154 = vector.broadcast %153 : vector<17x1xf32> to vector<17x17xf32>
    %155 = arith.mulf %150, %154 : vector<17x17xf32>
    %156 = vector.extract_strided_slice %112 {offsets = [0, 16], sizes = [17, 8], strides = [1, 1]} : vector<17x32xf32> to vector<17x8xf32>
    %cst_45 = arith.constant dense<0.000000e+00> : vector<17x8xf32>
    %157 = tpu.matmul %155, %156, %cst_45 {dimension_numbers = #tpu.dot_dimension_numbers<[1], [0], [0], [1], [0, 0, 1, 1], [], []>} : vector<17x17xf32>, vector<17x8xf32>, vector<17x8xf32> -> vector<17x8xf32>
    %158 = vector.extract_strided_slice %110 {offsets = [0, 24], sizes = [17, 8], strides = [1, 1]} : vector<17x32xf32> to vector<17x8xf32>
    %159 = vector.extract_strided_slice %111 {offsets = [0, 24], sizes = [17, 8], strides = [1, 1]} : vector<17x32xf32> to vector<17x8xf32>
    %cst_46 = arith.constant dense<0.000000e+00> : vector<17x17xf32>
    %160 = tpu.matmul %158, %159, %cst_46 {dimension_numbers = #tpu.dot_dimension_numbers<[1], [1], [0], [0], [0, 0, 1, 0], [], []>} : vector<17x8xf32>, vector<17x8xf32>, vector<17x17xf32> -> vector<17x17xf32>
    %cst_47 = arith.constant dense<0xFF800000> : vector<17xf32>
    %161 = vector.multi_reduction <maximumf>, %160, %cst_47 [1] : vector<17x17xf32> to vector<17xf32>
    %162 = vector.shape_cast %161 : vector<17xf32> to vector<17x1xf32>
    %163 = vector.broadcast %162 : vector<17x1xf32> to vector<17x17xf32>
    %164 = arith.subf %160, %163 : vector<17x17xf32>
    %165 = math.exp %164 : vector<17x17xf32>
    %cst_48 = arith.constant dense<0.000000e+00> : vector<17xf32>
    %166 = vector.multi_reduction <add>, %165, %cst_48 [1] : vector<17x17xf32> to vector<17xf32>
    %167 = vector.shape_cast %166 : vector<17xf32> to vector<17x1xf32>
    %168 = tpu.reciprocal %167 {approx = true} : vector<17x1xf32> -> vector<17x1xf32>
    %169 = vector.broadcast %168 : vector<17x1xf32> to vector<17x17xf32>
    %170 = arith.mulf %165, %169 : vector<17x17xf32>
    %171 = vector.extract_strided_slice %112 {offsets = [0, 24], sizes = [17, 8], strides = [1, 1]} : vector<17x32xf32> to vector<17x8xf32>
    %cst_49 = arith.constant dense<0.000000e+00> : vector<17x8xf32>
    %172 = tpu.matmul %170, %171, %cst_49 {dimension_numbers = #tpu.dot_dimension_numbers<[1], [0], [0], [1], [0, 0, 1, 1], [], []>} : vector<17x17xf32>, vector<17x8xf32>, vector<17x8xf32> -> vector<17x8xf32>
    %173 = tpu.concatenate %127, %142, %157, %172 in 1 : vector<17x8xf32>, vector<17x8xf32>, vector<17x8xf32>, vector<17x8xf32> -> vector<17x32xf32>
    %174 = tpu.concatenate %108, %173 in 0 : vector<17x32xf32>, vector<17x32xf32> -> vector<34x32xf32>
    %175 = arith.truncf %174 : vector<34x32xf32> to vector<34x32xbf16>
    %c0_50 = arith.constant 0 : index
    %c0_51 = arith.constant 0 : index
    %c0_52 = arith.constant 0 : index
    %176 = vector.load %arg5[%c0_50, %c0_51, %c0_52] : memref<4x32x32xbf16, #tpu.memory_space<vmem>>, vector<1x32x32xbf16>
    %177 = vector.shape_cast %176 : vector<1x32x32xbf16> to vector<32x32xbf16>
    %cst_53 = arith.constant dense<0.000000e+00> : vector<34x32xf32>
    %178 = tpu.matmul %175, %177, %cst_53 {dimension_numbers = #tpu.dot_dimension_numbers<[1], [0], [0], [1], [0, 0, 1, 1], [], []>} : vector<34x32xbf16>, vector<32x32xbf16>, vector<34x32xf32> -> vector<34x32xf32>
    %179 = arith.addf %7, %178 : vector<34x32xf32>
    %180 = vector.broadcast %13 : vector<1x32xf32> to vector<34x32xf32>
    %181 = arith.addf %179, %180 : vector<34x32xf32>
    %cst_54 = arith.constant dense<0.000000e+00> : vector<34xf32>
    %182 = vector.multi_reduction <add>, %181, %cst_54 [1] : vector<34x32xf32> to vector<34xf32>
    %183 = vector.shape_cast %182 : vector<34xf32> to vector<34x1xf32>
    %cst_55 = arith.constant 3.200000e+01 : f32
    %184 = vector.broadcast %cst_55 : f32 to vector<34x1xf32>
    %185 = arith.divf %183, %184 : vector<34x1xf32>
    %186 = vector.broadcast %185 : vector<34x1xf32> to vector<34x32xf32>
    %187 = arith.subf %181, %186 : vector<34x32xf32>
    %188 = arith.mulf %187, %187 : vector<34x32xf32>
    %cst_56 = arith.constant dense<0.000000e+00> : vector<34xf32>
    %189 = vector.multi_reduction <add>, %188, %cst_56 [1] : vector<34x32xf32> to vector<34xf32>
    %190 = vector.shape_cast %189 : vector<34xf32> to vector<34x1xf32>
    %cst_57 = arith.constant 3.200000e+01 : f32
    %191 = vector.broadcast %cst_57 : f32 to vector<34x1xf32>
    %192 = arith.divf %190, %191 : vector<34x1xf32>
    %cst_58 = arith.constant 9.99999974E-6 : f32
    %193 = vector.broadcast %cst_58 : f32 to vector<34x1xf32>
    %194 = arith.addf %192, %193 : vector<34x1xf32>
    %195 = math.rsqrt %194 : vector<34x1xf32>
    %196 = vector.broadcast %195 : vector<34x1xf32> to vector<34x32xf32>
    %197 = arith.mulf %187, %196 : vector<34x32xf32>
    %198 = vector.broadcast %14 : vector<1x32xf32> to vector<34x32xf32>
    %199 = arith.mulf %197, %198 : vector<34x32xf32>
    %200 = vector.broadcast %15 : vector<1x32xf32> to vector<34x32xf32>
    %201 = arith.addf %199, %200 : vector<34x32xf32>
    %202 = arith.truncf %201 : vector<34x32xf32> to vector<34x32xbf16>
    %c0_59 = arith.constant 0 : index
    %c0_60 = arith.constant 0 : index
    %c0_61 = arith.constant 0 : index
    %203 = vector.load %arg6[%c0_59, %c0_60, %c0_61] : memref<4x32x128xbf16, #tpu.memory_space<vmem>>, vector<1x32x128xbf16>
    %204 = vector.shape_cast %203 : vector<1x32x128xbf16> to vector<32x128xbf16>
    %cst_62 = arith.constant dense<0.000000e+00> : vector<34x128xf32>
    %205 = tpu.matmul %202, %204, %cst_62 {dimension_numbers = #tpu.dot_dimension_numbers<[1], [0], [0], [1], [0, 0, 1, 1], [], []>} : vector<34x32xbf16>, vector<32x128xbf16>, vector<34x128xf32> -> vector<34x128xf32>
    %206 = vector.broadcast %16 : vector<1x128xf32> to vector<34x128xf32>
    %207 = arith.addf %205, %206 : vector<34x128xf32>
    %cst_63 = arith.constant 5.000000e-01 : f32
    %208 = vector.broadcast %cst_63 : f32 to vector<34x128xf32>
    %209 = arith.mulf %208, %207 : vector<34x128xf32>
    %cst_64 = arith.constant 0.707106769 : f32
    %210 = vector.broadcast %cst_64 : f32 to vector<34x128xf32>
    %211 = arith.mulf %207, %210 : vector<34x128xf32>
    %212 = math.absf %211 : vector<34x128xf32>
    %cst_65 = arith.constant 0.327591091 : f32
    %213 = vector.broadcast %cst_65 : f32 to vector<34x128xf32>
    %214 = arith.mulf %213, %212 : vector<34x128xf32>
    %cst_66 = arith.constant 1.000000e+00 : f32
    %215 = vector.broadcast %cst_66 : f32 to vector<34x128xf32>
    %216 = arith.addf %215, %214 : vector<34x128xf32>
    %cst_67 = arith.constant 1.000000e+00 : f32
    %217 = vector.broadcast %cst_67 : f32 to vector<34x128xf32>
    %218 = arith.divf %217, %216 : vector<34x128xf32>
    %cst_68 = arith.constant 1.06140542 : f32
    %219 = vector.broadcast %cst_68 : f32 to vector<34x128xf32>
    %220 = arith.mulf %219, %218 : vector<34x128xf32>
    %cst_69 = arith.constant -1.45315206 : f32
    %221 = vector.broadcast %cst_69 : f32 to vector<34x128xf32>
    %222 = arith.addf %220, %221 : vector<34x128xf32>
    %223 = arith.mulf %222, %218 : vector<34x128xf32>
    %cst_70 = arith.constant 1.42141378 : f32
    %224 = vector.broadcast %cst_70 : f32 to vector<34x128xf32>
    %225 = arith.addf %223, %224 : vector<34x128xf32>
    %226 = arith.mulf %225, %218 : vector<34x128xf32>
    %cst_71 = arith.constant -0.284496725 : f32
    %227 = vector.broadcast %cst_71 : f32 to vector<34x128xf32>
    %228 = arith.addf %226, %227 : vector<34x128xf32>
    %229 = arith.mulf %228, %218 : vector<34x128xf32>
    %cst_72 = arith.constant 0.254829586 : f32
    %230 = vector.broadcast %cst_72 : f32 to vector<34x128xf32>
    %231 = arith.addf %229, %230 : vector<34x128xf32>
    %232 = arith.mulf %231, %218 : vector<34x128xf32>
    %233 = arith.mulf %212, %212 : vector<34x128xf32>
    %cst_73 = arith.constant 0.000000e+00 : f32
    %234 = vector.broadcast %cst_73 : f32 to vector<34x128xf32>
    %235 = arith.subf %234, %233 : vector<34x128xf32>
    %236 = math.exp %235 : vector<34x128xf32>
    %237 = arith.mulf %232, %236 : vector<34x128xf32>
    %cst_74 = arith.constant 1.000000e+00 : f32
    %238 = vector.broadcast %cst_74 : f32 to vector<34x128xf32>
    %239 = arith.subf %238, %237 : vector<34x128xf32>
    %cst_75 = arith.constant 0.000000e+00 : f32
    %240 = vector.broadcast %cst_75 : f32 to vector<34x128xf32>
    %241 = arith.cmpf oge, %211, %240 : vector<34x128xf32>
    %cst_76 = arith.constant 0.000000e+00 : f32
    %242 = vector.broadcast %cst_76 : f32 to vector<34x128xf32>
    %243 = arith.subf %242, %239 : vector<34x128xf32>
    %244 = arith.select %241, %239, %243 : vector<34x128xi1>, vector<34x128xf32>
    %cst_77 = arith.constant 1.000000e+00 : f32
    %245 = vector.broadcast %cst_77 : f32 to vector<34x128xf32>
    %246 = arith.addf %245, %244 : vector<34x128xf32>
    %247 = arith.mulf %209, %246 : vector<34x128xf32>
    %248 = arith.truncf %247 : vector<34x128xf32> to vector<34x128xbf16>
    %c0_78 = arith.constant 0 : index
    %c0_79 = arith.constant 0 : index
    %c0_80 = arith.constant 0 : index
    %249 = vector.load %arg7[%c0_78, %c0_79, %c0_80] : memref<4x128x32xbf16, #tpu.memory_space<vmem>>, vector<1x128x32xbf16>
    %250 = vector.shape_cast %249 : vector<1x128x32xbf16> to vector<128x32xbf16>
    %cst_81 = arith.constant dense<0.000000e+00> : vector<34x32xf32>
    %251 = tpu.matmul %248, %250, %cst_81 {dimension_numbers = #tpu.dot_dimension_numbers<[1], [0], [0], [1], [0, 0, 1, 1], [], []>} : vector<34x128xbf16>, vector<128x32xbf16>, vector<34x32xf32> -> vector<34x32xf32>
    %252 = vector.broadcast %17 : vector<1x32xf32> to vector<34x32xf32>
    %253 = arith.addf %251, %252 : vector<34x32xf32>
    %254 = arith.addf %181, %253 : vector<34x32xf32>
    %c1 = arith.constant 1 : index
    %c0_82 = arith.constant 0 : index
    %c0_83 = arith.constant 0 : index
    %255 = vector.load %arg8[%c1, %c0_82, %c0_83] : memref<4x8x128xf32, #tpu.memory_space<vmem>>, vector<1x8x128xf32>
    %256 = vector.shape_cast %255 : vector<1x8x128xf32> to vector<8x128xf32>
    %257 = vector.extract_strided_slice %256 {offsets = [0, 0], sizes = [1, 32], strides = [1, 1]} : vector<8x128xf32> to vector<1x32xf32>
    %258 = vector.extract_strided_slice %256 {offsets = [1, 0], sizes = [1, 32], strides = [1, 1]} : vector<8x128xf32> to vector<1x32xf32>
    %259 = vector.extract_strided_slice %256 {offsets = [2, 0], sizes = [1, 96], strides = [1, 1]} : vector<8x128xf32> to vector<1x96xf32>
    %260 = vector.extract_strided_slice %256 {offsets = [3, 0], sizes = [1, 32], strides = [1, 1]} : vector<8x128xf32> to vector<1x32xf32>
    %261 = vector.extract_strided_slice %256 {offsets = [4, 0], sizes = [1, 32], strides = [1, 1]} : vector<8x128xf32> to vector<1x32xf32>
    %262 = vector.extract_strided_slice %256 {offsets = [5, 0], sizes = [1, 32], strides = [1, 1]} : vector<8x128xf32> to vector<1x32xf32>
    %263 = vector.extract_strided_slice %256 {offsets = [6, 0], sizes = [1, 128], strides = [1, 1]} : vector<8x128xf32> to vector<1x128xf32>
    %264 = vector.extract_strided_slice %256 {offsets = [7, 0], sizes = [1, 32], strides = [1, 1]} : vector<8x128xf32> to vector<1x32xf32>
    %cst_84 = arith.constant dense<0.000000e+00> : vector<34xf32>
    %265 = vector.multi_reduction <add>, %254, %cst_84 [1] : vector<34x32xf32> to vector<34xf32>
    %266 = vector.shape_cast %265 : vector<34xf32> to vector<34x1xf32>
    %cst_85 = arith.constant 3.200000e+01 : f32
    %267 = vector.broadcast %cst_85 : f32 to vector<34x1xf32>
    %268 = arith.divf %266, %267 : vector<34x1xf32>
    %269 = vector.broadcast %268 : vector<34x1xf32> to vector<34x32xf32>
    %270 = arith.subf %254, %269 : vector<34x32xf32>
    %271 = arith.mulf %270, %270 : vector<34x32xf32>
    %cst_86 = arith.constant dense<0.000000e+00> : vector<34xf32>
    %272 = vector.multi_reduction <add>, %271, %cst_86 [1] : vector<34x32xf32> to vector<34xf32>
    %273 = vector.shape_cast %272 : vector<34xf32> to vector<34x1xf32>
    %cst_87 = arith.constant 3.200000e+01 : f32
    %274 = vector.broadcast %cst_87 : f32 to vector<34x1xf32>
    %275 = arith.divf %273, %274 : vector<34x1xf32>
    %cst_88 = arith.constant 9.99999974E-6 : f32
    %276 = vector.broadcast %cst_88 : f32 to vector<34x1xf32>
    %277 = arith.addf %275, %276 : vector<34x1xf32>
    %278 = math.rsqrt %277 : vector<34x1xf32>
    %279 = vector.broadcast %278 : vector<34x1xf32> to vector<34x32xf32>
    %280 = arith.mulf %270, %279 : vector<34x32xf32>
    %281 = vector.broadcast %257 : vector<1x32xf32> to vector<34x32xf32>
    %282 = arith.mulf %280, %281 : vector<34x32xf32>
    %283 = vector.broadcast %258 : vector<1x32xf32> to vector<34x32xf32>
    %284 = arith.addf %282, %283 : vector<34x32xf32>
    %285 = arith.truncf %284 : vector<34x32xf32> to vector<34x32xbf16>
    %c1_89 = arith.constant 1 : index
    %c0_90 = arith.constant 0 : index
    %c0_91 = arith.constant 0 : index
    %286 = vector.load %arg4[%c1_89, %c0_90, %c0_91] : memref<4x32x96xbf16, #tpu.memory_space<vmem>>, vector<1x32x96xbf16>
    %287 = vector.shape_cast %286 : vector<1x32x96xbf16> to vector<32x96xbf16>
    %cst_92 = arith.constant dense<0.000000e+00> : vector<34x96xf32>
    %288 = tpu.matmul %285, %287, %cst_92 {dimension_numbers = #tpu.dot_dimension_numbers<[1], [0], [0], [1], [0, 0, 1, 1], [], []>} : vector<34x32xbf16>, vector<32x96xbf16>, vector<34x96xf32> -> vector<34x96xf32>
    %289 = vector.broadcast %259 : vector<1x96xf32> to vector<34x96xf32>
    %290 = arith.addf %288, %289 : vector<34x96xf32>
    %291 = vector.extract_strided_slice %290 {offsets = [0, 0], sizes = [17, 96], strides = [1, 1]} : vector<34x96xf32> to vector<17x96xf32>
    %292 = vector.extract_strided_slice %291 {offsets = [0, 0], sizes = [17, 32], strides = [1, 1]} : vector<17x96xf32> to vector<17x32xf32>
    %293 = vector.extract_strided_slice %291 {offsets = [0, 32], sizes = [17, 32], strides = [1, 1]} : vector<17x96xf32> to vector<17x32xf32>
    %294 = vector.extract_strided_slice %291 {offsets = [0, 64], sizes = [17, 32], strides = [1, 1]} : vector<17x96xf32> to vector<17x32xf32>
    %295 = vector.extract_strided_slice %292 {offsets = [0, 0], sizes = [17, 8], strides = [1, 1]} : vector<17x32xf32> to vector<17x8xf32>
    %296 = vector.extract_strided_slice %293 {offsets = [0, 0], sizes = [17, 8], strides = [1, 1]} : vector<17x32xf32> to vector<17x8xf32>
    %cst_93 = arith.constant dense<0.000000e+00> : vector<17x17xf32>
    %297 = tpu.matmul %295, %296, %cst_93 {dimension_numbers = #tpu.dot_dimension_numbers<[1], [1], [0], [0], [0, 0, 1, 0], [], []>} : vector<17x8xf32>, vector<17x8xf32>, vector<17x17xf32> -> vector<17x17xf32>
    %cst_94 = arith.constant dense<0xFF800000> : vector<17xf32>
    %298 = vector.multi_reduction <maximumf>, %297, %cst_94 [1] : vector<17x17xf32> to vector<17xf32>
    %299 = vector.shape_cast %298 : vector<17xf32> to vector<17x1xf32>
    %300 = vector.broadcast %299 : vector<17x1xf32> to vector<17x17xf32>
    %301 = arith.subf %297, %300 : vector<17x17xf32>
    %302 = math.exp %301 : vector<17x17xf32>
    %cst_95 = arith.constant dense<0.000000e+00> : vector<17xf32>
    %303 = vector.multi_reduction <add>, %302, %cst_95 [1] : vector<17x17xf32> to vector<17xf32>
    %304 = vector.shape_cast %303 : vector<17xf32> to vector<17x1xf32>
    %305 = tpu.reciprocal %304 {approx = true} : vector<17x1xf32> -> vector<17x1xf32>
    %306 = vector.broadcast %305 : vector<17x1xf32> to vector<17x17xf32>
    %307 = arith.mulf %302, %306 : vector<17x17xf32>
    %308 = vector.extract_strided_slice %294 {offsets = [0, 0], sizes = [17, 8], strides = [1, 1]} : vector<17x32xf32> to vector<17x8xf32>
    %cst_96 = arith.constant dense<0.000000e+00> : vector<17x8xf32>
    %309 = tpu.matmul %307, %308, %cst_96 {dimension_numbers = #tpu.dot_dimension_numbers<[1], [0], [0], [1], [0, 0, 1, 1], [], []>} : vector<17x17xf32>, vector<17x8xf32>, vector<17x8xf32> -> vector<17x8xf32>
    %310 = vector.extract_strided_slice %292 {offsets = [0, 8], sizes = [17, 8], strides = [1, 1]} : vector<17x32xf32> to vector<17x8xf32>
    %311 = vector.extract_strided_slice %293 {offsets = [0, 8], sizes = [17, 8], strides = [1, 1]} : vector<17x32xf32> to vector<17x8xf32>
    %cst_97 = arith.constant dense<0.000000e+00> : vector<17x17xf32>
    %312 = tpu.matmul %310, %311, %cst_97 {dimension_numbers = #tpu.dot_dimension_numbers<[1], [1], [0], [0], [0, 0, 1, 0], [], []>} : vector<17x8xf32>, vector<17x8xf32>, vector<17x17xf32> -> vector<17x17xf32>
    %cst_98 = arith.constant dense<0xFF800000> : vector<17xf32>
    %313 = vector.multi_reduction <maximumf>, %312, %cst_98 [1] : vector<17x17xf32> to vector<17xf32>
    %314 = vector.shape_cast %313 : vector<17xf32> to vector<17x1xf32>
    %315 = vector.broadcast %314 : vector<17x1xf32> to vector<17x17xf32>
    %316 = arith.subf %312, %315 : vector<17x17xf32>
    %317 = math.exp %316 : vector<17x17xf32>
    %cst_99 = arith.constant dense<0.000000e+00> : vector<17xf32>
    %318 = vector.multi_reduction <add>, %317, %cst_99 [1] : vector<17x17xf32> to vector<17xf32>
    %319 = vector.shape_cast %318 : vector<17xf32> to vector<17x1xf32>
    %320 = tpu.reciprocal %319 {approx = true} : vector<17x1xf32> -> vector<17x1xf32>
    %321 = vector.broadcast %320 : vector<17x1xf32> to vector<17x17xf32>
    %322 = arith.mulf %317, %321 : vector<17x17xf32>
    %323 = vector.extract_strided_slice %294 {offsets = [0, 8], sizes = [17, 8], strides = [1, 1]} : vector<17x32xf32> to vector<17x8xf32>
    %cst_100 = arith.constant dense<0.000000e+00> : vector<17x8xf32>
    %324 = tpu.matmul %322, %323, %cst_100 {dimension_numbers = #tpu.dot_dimension_numbers<[1], [0], [0], [1], [0, 0, 1, 1], [], []>} : vector<17x17xf32>, vector<17x8xf32>, vector<17x8xf32> -> vector<17x8xf32>
    %325 = vector.extract_strided_slice %292 {offsets = [0, 16], sizes = [17, 8], strides = [1, 1]} : vector<17x32xf32> to vector<17x8xf32>
    %326 = vector.extract_strided_slice %293 {offsets = [0, 16], sizes = [17, 8], strides = [1, 1]} : vector<17x32xf32> to vector<17x8xf32>
    %cst_101 = arith.constant dense<0.000000e+00> : vector<17x17xf32>
    %327 = tpu.matmul %325, %326, %cst_101 {dimension_numbers = #tpu.dot_dimension_numbers<[1], [1], [0], [0], [0, 0, 1, 0], [], []>} : vector<17x8xf32>, vector<17x8xf32>, vector<17x17xf32> -> vector<17x17xf32>
    %cst_102 = arith.constant dense<0xFF800000> : vector<17xf32>
    %328 = vector.multi_reduction <maximumf>, %327, %cst_102 [1] : vector<17x17xf32> to vector<17xf32>
    %329 = vector.shape_cast %328 : vector<17xf32> to vector<17x1xf32>
    %330 = vector.broadcast %329 : vector<17x1xf32> to vector<17x17xf32>
    %331 = arith.subf %327, %330 : vector<17x17xf32>
    %332 = math.exp %331 : vector<17x17xf32>
    %cst_103 = arith.constant dense<0.000000e+00> : vector<17xf32>
    %333 = vector.multi_reduction <add>, %332, %cst_103 [1] : vector<17x17xf32> to vector<17xf32>
    %334 = vector.shape_cast %333 : vector<17xf32> to vector<17x1xf32>
    %335 = tpu.reciprocal %334 {approx = true} : vector<17x1xf32> -> vector<17x1xf32>
    %336 = vector.broadcast %335 : vector<17x1xf32> to vector<17x17xf32>
    %337 = arith.mulf %332, %336 : vector<17x17xf32>
    %338 = vector.extract_strided_slice %294 {offsets = [0, 16], sizes = [17, 8], strides = [1, 1]} : vector<17x32xf32> to vector<17x8xf32>
    %cst_104 = arith.constant dense<0.000000e+00> : vector<17x8xf32>
    %339 = tpu.matmul %337, %338, %cst_104 {dimension_numbers = #tpu.dot_dimension_numbers<[1], [0], [0], [1], [0, 0, 1, 1], [], []>} : vector<17x17xf32>, vector<17x8xf32>, vector<17x8xf32> -> vector<17x8xf32>
    %340 = vector.extract_strided_slice %292 {offsets = [0, 24], sizes = [17, 8], strides = [1, 1]} : vector<17x32xf32> to vector<17x8xf32>
    %341 = vector.extract_strided_slice %293 {offsets = [0, 24], sizes = [17, 8], strides = [1, 1]} : vector<17x32xf32> to vector<17x8xf32>
    %cst_105 = arith.constant dense<0.000000e+00> : vector<17x17xf32>
    %342 = tpu.matmul %340, %341, %cst_105 {dimension_numbers = #tpu.dot_dimension_numbers<[1], [1], [0], [0], [0, 0, 1, 0], [], []>} : vector<17x8xf32>, vector<17x8xf32>, vector<17x17xf32> -> vector<17x17xf32>
    %cst_106 = arith.constant dense<0xFF800000> : vector<17xf32>
    %343 = vector.multi_reduction <maximumf>, %342, %cst_106 [1] : vector<17x17xf32> to vector<17xf32>
    %344 = vector.shape_cast %343 : vector<17xf32> to vector<17x1xf32>
    %345 = vector.broadcast %344 : vector<17x1xf32> to vector<17x17xf32>
    %346 = arith.subf %342, %345 : vector<17x17xf32>
    %347 = math.exp %346 : vector<17x17xf32>
    %cst_107 = arith.constant dense<0.000000e+00> : vector<17xf32>
    %348 = vector.multi_reduction <add>, %347, %cst_107 [1] : vector<17x17xf32> to vector<17xf32>
    %349 = vector.shape_cast %348 : vector<17xf32> to vector<17x1xf32>
    %350 = tpu.reciprocal %349 {approx = true} : vector<17x1xf32> -> vector<17x1xf32>
    %351 = vector.broadcast %350 : vector<17x1xf32> to vector<17x17xf32>
    %352 = arith.mulf %347, %351 : vector<17x17xf32>
    %353 = vector.extract_strided_slice %294 {offsets = [0, 24], sizes = [17, 8], strides = [1, 1]} : vector<17x32xf32> to vector<17x8xf32>
    %cst_108 = arith.constant dense<0.000000e+00> : vector<17x8xf32>
    %354 = tpu.matmul %352, %353, %cst_108 {dimension_numbers = #tpu.dot_dimension_numbers<[1], [0], [0], [1], [0, 0, 1, 1], [], []>} : vector<17x17xf32>, vector<17x8xf32>, vector<17x8xf32> -> vector<17x8xf32>
    %355 = tpu.concatenate %309, %324, %339, %354 in 1 : vector<17x8xf32>, vector<17x8xf32>, vector<17x8xf32>, vector<17x8xf32> -> vector<17x32xf32>
    %356 = vector.extract_strided_slice %290 {offsets = [17, 0], sizes = [17, 96], strides = [1, 1]} : vector<34x96xf32> to vector<17x96xf32>
    %357 = vector.extract_strided_slice %356 {offsets = [0, 0], sizes = [17, 32], strides = [1, 1]} : vector<17x96xf32> to vector<17x32xf32>
    %358 = vector.extract_strided_slice %356 {offsets = [0, 32], sizes = [17, 32], strides = [1, 1]} : vector<17x96xf32> to vector<17x32xf32>
    %359 = vector.extract_strided_slice %356 {offsets = [0, 64], sizes = [17, 32], strides = [1, 1]} : vector<17x96xf32> to vector<17x32xf32>
    %360 = vector.extract_strided_slice %357 {offsets = [0, 0], sizes = [17, 8], strides = [1, 1]} : vector<17x32xf32> to vector<17x8xf32>
    %361 = vector.extract_strided_slice %358 {offsets = [0, 0], sizes = [17, 8], strides = [1, 1]} : vector<17x32xf32> to vector<17x8xf32>
    %cst_109 = arith.constant dense<0.000000e+00> : vector<17x17xf32>
    %362 = tpu.matmul %360, %361, %cst_109 {dimension_numbers = #tpu.dot_dimension_numbers<[1], [1], [0], [0], [0, 0, 1, 0], [], []>} : vector<17x8xf32>, vector<17x8xf32>, vector<17x17xf32> -> vector<17x17xf32>
    %cst_110 = arith.constant dense<0xFF800000> : vector<17xf32>
    %363 = vector.multi_reduction <maximumf>, %362, %cst_110 [1] : vector<17x17xf32> to vector<17xf32>
    %364 = vector.shape_cast %363 : vector<17xf32> to vector<17x1xf32>
    %365 = vector.broadcast %364 : vector<17x1xf32> to vector<17x17xf32>
    %366 = arith.subf %362, %365 : vector<17x17xf32>
    %367 = math.exp %366 : vector<17x17xf32>
    %cst_111 = arith.constant dense<0.000000e+00> : vector<17xf32>
    %368 = vector.multi_reduction <add>, %367, %cst_111 [1] : vector<17x17xf32> to vector<17xf32>
    %369 = vector.shape_cast %368 : vector<17xf32> to vector<17x1xf32>
    %370 = tpu.reciprocal %369 {approx = true} : vector<17x1xf32> -> vector<17x1xf32>
    %371 = vector.broadcast %370 : vector<17x1xf32> to vector<17x17xf32>
    %372 = arith.mulf %367, %371 : vector<17x17xf32>
    %373 = vector.extract_strided_slice %359 {offsets = [0, 0], sizes = [17, 8], strides = [1, 1]} : vector<17x32xf32> to vector<17x8xf32>
    %cst_112 = arith.constant dense<0.000000e+00> : vector<17x8xf32>
    %374 = tpu.matmul %372, %373, %cst_112 {dimension_numbers = #tpu.dot_dimension_numbers<[1], [0], [0], [1], [0, 0, 1, 1], [], []>} : vector<17x17xf32>, vector<17x8xf32>, vector<17x8xf32> -> vector<17x8xf32>
    %375 = vector.extract_strided_slice %357 {offsets = [0, 8], sizes = [17, 8], strides = [1, 1]} : vector<17x32xf32> to vector<17x8xf32>
    %376 = vector.extract_strided_slice %358 {offsets = [0, 8], sizes = [17, 8], strides = [1, 1]} : vector<17x32xf32> to vector<17x8xf32>
    %cst_113 = arith.constant dense<0.000000e+00> : vector<17x17xf32>
    %377 = tpu.matmul %375, %376, %cst_113 {dimension_numbers = #tpu.dot_dimension_numbers<[1], [1], [0], [0], [0, 0, 1, 0], [], []>} : vector<17x8xf32>, vector<17x8xf32>, vector<17x17xf32> -> vector<17x17xf32>
    %cst_114 = arith.constant dense<0xFF800000> : vector<17xf32>
    %378 = vector.multi_reduction <maximumf>, %377, %cst_114 [1] : vector<17x17xf32> to vector<17xf32>
    %379 = vector.shape_cast %378 : vector<17xf32> to vector<17x1xf32>
    %380 = vector.broadcast %379 : vector<17x1xf32> to vector<17x17xf32>
    %381 = arith.subf %377, %380 : vector<17x17xf32>
    %382 = math.exp %381 : vector<17x17xf32>
    %cst_115 = arith.constant dense<0.000000e+00> : vector<17xf32>
    %383 = vector.multi_reduction <add>, %382, %cst_115 [1] : vector<17x17xf32> to vector<17xf32>
    %384 = vector.shape_cast %383 : vector<17xf32> to vector<17x1xf32>
    %385 = tpu.reciprocal %384 {approx = true} : vector<17x1xf32> -> vector<17x1xf32>
    %386 = vector.broadcast %385 : vector<17x1xf32> to vector<17x17xf32>
    %387 = arith.mulf %382, %386 : vector<17x17xf32>
    %388 = vector.extract_strided_slice %359 {offsets = [0, 8], sizes = [17, 8], strides = [1, 1]} : vector<17x32xf32> to vector<17x8xf32>
    %cst_116 = arith.constant dense<0.000000e+00> : vector<17x8xf32>
    %389 = tpu.matmul %387, %388, %cst_116 {dimension_numbers = #tpu.dot_dimension_numbers<[1], [0], [0], [1], [0, 0, 1, 1], [], []>} : vector<17x17xf32>, vector<17x8xf32>, vector<17x8xf32> -> vector<17x8xf32>
    %390 = vector.extract_strided_slice %357 {offsets = [0, 16], sizes = [17, 8], strides = [1, 1]} : vector<17x32xf32> to vector<17x8xf32>
    %391 = vector.extract_strided_slice %358 {offsets = [0, 16], sizes = [17, 8], strides = [1, 1]} : vector<17x32xf32> to vector<17x8xf32>
    %cst_117 = arith.constant dense<0.000000e+00> : vector<17x17xf32>
    %392 = tpu.matmul %390, %391, %cst_117 {dimension_numbers = #tpu.dot_dimension_numbers<[1], [1], [0], [0], [0, 0, 1, 0], [], []>} : vector<17x8xf32>, vector<17x8xf32>, vector<17x17xf32> -> vector<17x17xf32>
    %cst_118 = arith.constant dense<0xFF800000> : vector<17xf32>
    %393 = vector.multi_reduction <maximumf>, %392, %cst_118 [1] : vector<17x17xf32> to vector<17xf32>
    %394 = vector.shape_cast %393 : vector<17xf32> to vector<17x1xf32>
    %395 = vector.broadcast %394 : vector<17x1xf32> to vector<17x17xf32>
    %396 = arith.subf %392, %395 : vector<17x17xf32>
    %397 = math.exp %396 : vector<17x17xf32>
    %cst_119 = arith.constant dense<0.000000e+00> : vector<17xf32>
    %398 = vector.multi_reduction <add>, %397, %cst_119 [1] : vector<17x17xf32> to vector<17xf32>
    %399 = vector.shape_cast %398 : vector<17xf32> to vector<17x1xf32>
    %400 = tpu.reciprocal %399 {approx = true} : vector<17x1xf32> -> vector<17x1xf32>
    %401 = vector.broadcast %400 : vector<17x1xf32> to vector<17x17xf32>
    %402 = arith.mulf %397, %401 : vector<17x17xf32>
    %403 = vector.extract_strided_slice %359 {offsets = [0, 16], sizes = [17, 8], strides = [1, 1]} : vector<17x32xf32> to vector<17x8xf32>
    %cst_120 = arith.constant dense<0.000000e+00> : vector<17x8xf32>
    %404 = tpu.matmul %402, %403, %cst_120 {dimension_numbers = #tpu.dot_dimension_numbers<[1], [0], [0], [1], [0, 0, 1, 1], [], []>} : vector<17x17xf32>, vector<17x8xf32>, vector<17x8xf32> -> vector<17x8xf32>
    %405 = vector.extract_strided_slice %357 {offsets = [0, 24], sizes = [17, 8], strides = [1, 1]} : vector<17x32xf32> to vector<17x8xf32>
    %406 = vector.extract_strided_slice %358 {offsets = [0, 24], sizes = [17, 8], strides = [1, 1]} : vector<17x32xf32> to vector<17x8xf32>
    %cst_121 = arith.constant dense<0.000000e+00> : vector<17x17xf32>
    %407 = tpu.matmul %405, %406, %cst_121 {dimension_numbers = #tpu.dot_dimension_numbers<[1], [1], [0], [0], [0, 0, 1, 0], [], []>} : vector<17x8xf32>, vector<17x8xf32>, vector<17x17xf32> -> vector<17x17xf32>
    %cst_122 = arith.constant dense<0xFF800000> : vector<17xf32>
    %408 = vector.multi_reduction <maximumf>, %407, %cst_122 [1] : vector<17x17xf32> to vector<17xf32>
    %409 = vector.shape_cast %408 : vector<17xf32> to vector<17x1xf32>
    %410 = vector.broadcast %409 : vector<17x1xf32> to vector<17x17xf32>
    %411 = arith.subf %407, %410 : vector<17x17xf32>
    %412 = math.exp %411 : vector<17x17xf32>
    %cst_123 = arith.constant dense<0.000000e+00> : vector<17xf32>
    %413 = vector.multi_reduction <add>, %412, %cst_123 [1] : vector<17x17xf32> to vector<17xf32>
    %414 = vector.shape_cast %413 : vector<17xf32> to vector<17x1xf32>
    %415 = tpu.reciprocal %414 {approx = true} : vector<17x1xf32> -> vector<17x1xf32>
    %416 = vector.broadcast %415 : vector<17x1xf32> to vector<17x17xf32>
    %417 = arith.mulf %412, %416 : vector<17x17xf32>
    %418 = vector.extract_strided_slice %359 {offsets = [0, 24], sizes = [17, 8], strides = [1, 1]} : vector<17x32xf32> to vector<17x8xf32>
    %cst_124 = arith.constant dense<0.000000e+00> : vector<17x8xf32>
    %419 = tpu.matmul %417, %418, %cst_124 {dimension_numbers = #tpu.dot_dimension_numbers<[1], [0], [0], [1], [0, 0, 1, 1], [], []>} : vector<17x17xf32>, vector<17x8xf32>, vector<17x8xf32> -> vector<17x8xf32>
    %420 = tpu.concatenate %374, %389, %404, %419 in 1 : vector<17x8xf32>, vector<17x8xf32>, vector<17x8xf32>, vector<17x8xf32> -> vector<17x32xf32>
    %421 = tpu.concatenate %355, %420 in 0 : vector<17x32xf32>, vector<17x32xf32> -> vector<34x32xf32>
    %422 = arith.truncf %421 : vector<34x32xf32> to vector<34x32xbf16>
    %c1_125 = arith.constant 1 : index
    %c0_126 = arith.constant 0 : index
    %c0_127 = arith.constant 0 : index
    %423 = vector.load %arg5[%c1_125, %c0_126, %c0_127] : memref<4x32x32xbf16, #tpu.memory_space<vmem>>, vector<1x32x32xbf16>
    %424 = vector.shape_cast %423 : vector<1x32x32xbf16> to vector<32x32xbf16>
    %cst_128 = arith.constant dense<0.000000e+00> : vector<34x32xf32>
    %425 = tpu.matmul %422, %424, %cst_128 {dimension_numbers = #tpu.dot_dimension_numbers<[1], [0], [0], [1], [0, 0, 1, 1], [], []>} : vector<34x32xbf16>, vector<32x32xbf16>, vector<34x32xf32> -> vector<34x32xf32>
    %426 = arith.addf %254, %425 : vector<34x32xf32>
    %427 = vector.broadcast %260 : vector<1x32xf32> to vector<34x32xf32>
    %428 = arith.addf %426, %427 : vector<34x32xf32>
    %cst_129 = arith.constant dense<0.000000e+00> : vector<34xf32>
    %429 = vector.multi_reduction <add>, %428, %cst_129 [1] : vector<34x32xf32> to vector<34xf32>
    %430 = vector.shape_cast %429 : vector<34xf32> to vector<34x1xf32>
    %cst_130 = arith.constant 3.200000e+01 : f32
    %431 = vector.broadcast %cst_130 : f32 to vector<34x1xf32>
    %432 = arith.divf %430, %431 : vector<34x1xf32>
    %433 = vector.broadcast %432 : vector<34x1xf32> to vector<34x32xf32>
    %434 = arith.subf %428, %433 : vector<34x32xf32>
    %435 = arith.mulf %434, %434 : vector<34x32xf32>
    %cst_131 = arith.constant dense<0.000000e+00> : vector<34xf32>
    %436 = vector.multi_reduction <add>, %435, %cst_131 [1] : vector<34x32xf32> to vector<34xf32>
    %437 = vector.shape_cast %436 : vector<34xf32> to vector<34x1xf32>
    %cst_132 = arith.constant 3.200000e+01 : f32
    %438 = vector.broadcast %cst_132 : f32 to vector<34x1xf32>
    %439 = arith.divf %437, %438 : vector<34x1xf32>
    %cst_133 = arith.constant 9.99999974E-6 : f32
    %440 = vector.broadcast %cst_133 : f32 to vector<34x1xf32>
    %441 = arith.addf %439, %440 : vector<34x1xf32>
    %442 = math.rsqrt %441 : vector<34x1xf32>
    %443 = vector.broadcast %442 : vector<34x1xf32> to vector<34x32xf32>
    %444 = arith.mulf %434, %443 : vector<34x32xf32>
    %445 = vector.broadcast %261 : vector<1x32xf32> to vector<34x32xf32>
    %446 = arith.mulf %444, %445 : vector<34x32xf32>
    %447 = vector.broadcast %262 : vector<1x32xf32> to vector<34x32xf32>
    %448 = arith.addf %446, %447 : vector<34x32xf32>
    %449 = arith.truncf %448 : vector<34x32xf32> to vector<34x32xbf16>
    %c1_134 = arith.constant 1 : index
    %c0_135 = arith.constant 0 : index
    %c0_136 = arith.constant 0 : index
    %450 = vector.load %arg6[%c1_134, %c0_135, %c0_136] : memref<4x32x128xbf16, #tpu.memory_space<vmem>>, vector<1x32x128xbf16>
    %451 = vector.shape_cast %450 : vector<1x32x128xbf16> to vector<32x128xbf16>
    %cst_137 = arith.constant dense<0.000000e+00> : vector<34x128xf32>
    %452 = tpu.matmul %449, %451, %cst_137 {dimension_numbers = #tpu.dot_dimension_numbers<[1], [0], [0], [1], [0, 0, 1, 1], [], []>} : vector<34x32xbf16>, vector<32x128xbf16>, vector<34x128xf32> -> vector<34x128xf32>
    %453 = vector.broadcast %263 : vector<1x128xf32> to vector<34x128xf32>
    %454 = arith.addf %452, %453 : vector<34x128xf32>
    %cst_138 = arith.constant 5.000000e-01 : f32
    %455 = vector.broadcast %cst_138 : f32 to vector<34x128xf32>
    %456 = arith.mulf %455, %454 : vector<34x128xf32>
    %cst_139 = arith.constant 0.707106769 : f32
    %457 = vector.broadcast %cst_139 : f32 to vector<34x128xf32>
    %458 = arith.mulf %454, %457 : vector<34x128xf32>
    %459 = math.absf %458 : vector<34x128xf32>
    %cst_140 = arith.constant 0.327591091 : f32
    %460 = vector.broadcast %cst_140 : f32 to vector<34x128xf32>
    %461 = arith.mulf %460, %459 : vector<34x128xf32>
    %cst_141 = arith.constant 1.000000e+00 : f32
    %462 = vector.broadcast %cst_141 : f32 to vector<34x128xf32>
    %463 = arith.addf %462, %461 : vector<34x128xf32>
    %cst_142 = arith.constant 1.000000e+00 : f32
    %464 = vector.broadcast %cst_142 : f32 to vector<34x128xf32>
    %465 = arith.divf %464, %463 : vector<34x128xf32>
    %cst_143 = arith.constant 1.06140542 : f32
    %466 = vector.broadcast %cst_143 : f32 to vector<34x128xf32>
    %467 = arith.mulf %466, %465 : vector<34x128xf32>
    %cst_144 = arith.constant -1.45315206 : f32
    %468 = vector.broadcast %cst_144 : f32 to vector<34x128xf32>
    %469 = arith.addf %467, %468 : vector<34x128xf32>
    %470 = arith.mulf %469, %465 : vector<34x128xf32>
    %cst_145 = arith.constant 1.42141378 : f32
    %471 = vector.broadcast %cst_145 : f32 to vector<34x128xf32>
    %472 = arith.addf %470, %471 : vector<34x128xf32>
    %473 = arith.mulf %472, %465 : vector<34x128xf32>
    %cst_146 = arith.constant -0.284496725 : f32
    %474 = vector.broadcast %cst_146 : f32 to vector<34x128xf32>
    %475 = arith.addf %473, %474 : vector<34x128xf32>
    %476 = arith.mulf %475, %465 : vector<34x128xf32>
    %cst_147 = arith.constant 0.254829586 : f32
    %477 = vector.broadcast %cst_147 : f32 to vector<34x128xf32>
    %478 = arith.addf %476, %477 : vector<34x128xf32>
    %479 = arith.mulf %478, %465 : vector<34x128xf32>
    %480 = arith.mulf %459, %459 : vector<34x128xf32>
    %cst_148 = arith.constant 0.000000e+00 : f32
    %481 = vector.broadcast %cst_148 : f32 to vector<34x128xf32>
    %482 = arith.subf %481, %480 : vector<34x128xf32>
    %483 = math.exp %482 : vector<34x128xf32>
    %484 = arith.mulf %479, %483 : vector<34x128xf32>
    %cst_149 = arith.constant 1.000000e+00 : f32
    %485 = vector.broadcast %cst_149 : f32 to vector<34x128xf32>
    %486 = arith.subf %485, %484 : vector<34x128xf32>
    %cst_150 = arith.constant 0.000000e+00 : f32
    %487 = vector.broadcast %cst_150 : f32 to vector<34x128xf32>
    %488 = arith.cmpf oge, %458, %487 : vector<34x128xf32>
    %cst_151 = arith.constant 0.000000e+00 : f32
    %489 = vector.broadcast %cst_151 : f32 to vector<34x128xf32>
    %490 = arith.subf %489, %486 : vector<34x128xf32>
    %491 = arith.select %488, %486, %490 : vector<34x128xi1>, vector<34x128xf32>
    %cst_152 = arith.constant 1.000000e+00 : f32
    %492 = vector.broadcast %cst_152 : f32 to vector<34x128xf32>
    %493 = arith.addf %492, %491 : vector<34x128xf32>
    %494 = arith.mulf %456, %493 : vector<34x128xf32>
    %495 = arith.truncf %494 : vector<34x128xf32> to vector<34x128xbf16>
    %c1_153 = arith.constant 1 : index
    %c0_154 = arith.constant 0 : index
    %c0_155 = arith.constant 0 : index
    %496 = vector.load %arg7[%c1_153, %c0_154, %c0_155] : memref<4x128x32xbf16, #tpu.memory_space<vmem>>, vector<1x128x32xbf16>
    %497 = vector.shape_cast %496 : vector<1x128x32xbf16> to vector<128x32xbf16>
    %cst_156 = arith.constant dense<0.000000e+00> : vector<34x32xf32>
    %498 = tpu.matmul %495, %497, %cst_156 {dimension_numbers = #tpu.dot_dimension_numbers<[1], [0], [0], [1], [0, 0, 1, 1], [], []>} : vector<34x128xbf16>, vector<128x32xbf16>, vector<34x32xf32> -> vector<34x32xf32>
    %499 = vector.broadcast %264 : vector<1x32xf32> to vector<34x32xf32>
    %500 = arith.addf %498, %499 : vector<34x32xf32>
    %501 = arith.addf %428, %500 : vector<34x32xf32>
    %c2 = arith.constant 2 : index
    %c0_157 = arith.constant 0 : index
    %c0_158 = arith.constant 0 : index
    %502 = vector.load %arg8[%c2, %c0_157, %c0_158] : memref<4x8x128xf32, #tpu.memory_space<vmem>>, vector<1x8x128xf32>
    %503 = vector.shape_cast %502 : vector<1x8x128xf32> to vector<8x128xf32>
    %504 = vector.extract_strided_slice %503 {offsets = [0, 0], sizes = [1, 32], strides = [1, 1]} : vector<8x128xf32> to vector<1x32xf32>
    %505 = vector.extract_strided_slice %503 {offsets = [1, 0], sizes = [1, 32], strides = [1, 1]} : vector<8x128xf32> to vector<1x32xf32>
    %506 = vector.extract_strided_slice %503 {offsets = [2, 0], sizes = [1, 96], strides = [1, 1]} : vector<8x128xf32> to vector<1x96xf32>
    %507 = vector.extract_strided_slice %503 {offsets = [3, 0], sizes = [1, 32], strides = [1, 1]} : vector<8x128xf32> to vector<1x32xf32>
    %508 = vector.extract_strided_slice %503 {offsets = [4, 0], sizes = [1, 32], strides = [1, 1]} : vector<8x128xf32> to vector<1x32xf32>
    %509 = vector.extract_strided_slice %503 {offsets = [5, 0], sizes = [1, 32], strides = [1, 1]} : vector<8x128xf32> to vector<1x32xf32>
    %510 = vector.extract_strided_slice %503 {offsets = [6, 0], sizes = [1, 128], strides = [1, 1]} : vector<8x128xf32> to vector<1x128xf32>
    %511 = vector.extract_strided_slice %503 {offsets = [7, 0], sizes = [1, 32], strides = [1, 1]} : vector<8x128xf32> to vector<1x32xf32>
    %cst_159 = arith.constant dense<0.000000e+00> : vector<34xf32>
    %512 = vector.multi_reduction <add>, %501, %cst_159 [1] : vector<34x32xf32> to vector<34xf32>
    %513 = vector.shape_cast %512 : vector<34xf32> to vector<34x1xf32>
    %cst_160 = arith.constant 3.200000e+01 : f32
    %514 = vector.broadcast %cst_160 : f32 to vector<34x1xf32>
    %515 = arith.divf %513, %514 : vector<34x1xf32>
    %516 = vector.broadcast %515 : vector<34x1xf32> to vector<34x32xf32>
    %517 = arith.subf %501, %516 : vector<34x32xf32>
    %518 = arith.mulf %517, %517 : vector<34x32xf32>
    %cst_161 = arith.constant dense<0.000000e+00> : vector<34xf32>
    %519 = vector.multi_reduction <add>, %518, %cst_161 [1] : vector<34x32xf32> to vector<34xf32>
    %520 = vector.shape_cast %519 : vector<34xf32> to vector<34x1xf32>
    %cst_162 = arith.constant 3.200000e+01 : f32
    %521 = vector.broadcast %cst_162 : f32 to vector<34x1xf32>
    %522 = arith.divf %520, %521 : vector<34x1xf32>
    %cst_163 = arith.constant 9.99999974E-6 : f32
    %523 = vector.broadcast %cst_163 : f32 to vector<34x1xf32>
    %524 = arith.addf %522, %523 : vector<34x1xf32>
    %525 = math.rsqrt %524 : vector<34x1xf32>
    %526 = vector.broadcast %525 : vector<34x1xf32> to vector<34x32xf32>
    %527 = arith.mulf %517, %526 : vector<34x32xf32>
    %528 = vector.broadcast %504 : vector<1x32xf32> to vector<34x32xf32>
    %529 = arith.mulf %527, %528 : vector<34x32xf32>
    %530 = vector.broadcast %505 : vector<1x32xf32> to vector<34x32xf32>
    %531 = arith.addf %529, %530 : vector<34x32xf32>
    %532 = arith.truncf %531 : vector<34x32xf32> to vector<34x32xbf16>
    %c2_164 = arith.constant 2 : index
    %c0_165 = arith.constant 0 : index
    %c0_166 = arith.constant 0 : index
    %533 = vector.load %arg4[%c2_164, %c0_165, %c0_166] : memref<4x32x96xbf16, #tpu.memory_space<vmem>>, vector<1x32x96xbf16>
    %534 = vector.shape_cast %533 : vector<1x32x96xbf16> to vector<32x96xbf16>
    %cst_167 = arith.constant dense<0.000000e+00> : vector<34x96xf32>
    %535 = tpu.matmul %532, %534, %cst_167 {dimension_numbers = #tpu.dot_dimension_numbers<[1], [0], [0], [1], [0, 0, 1, 1], [], []>} : vector<34x32xbf16>, vector<32x96xbf16>, vector<34x96xf32> -> vector<34x96xf32>
    %536 = vector.broadcast %506 : vector<1x96xf32> to vector<34x96xf32>
    %537 = arith.addf %535, %536 : vector<34x96xf32>
    %538 = vector.extract_strided_slice %537 {offsets = [0, 0], sizes = [17, 96], strides = [1, 1]} : vector<34x96xf32> to vector<17x96xf32>
    %539 = vector.extract_strided_slice %538 {offsets = [0, 0], sizes = [17, 32], strides = [1, 1]} : vector<17x96xf32> to vector<17x32xf32>
    %540 = vector.extract_strided_slice %538 {offsets = [0, 32], sizes = [17, 32], strides = [1, 1]} : vector<17x96xf32> to vector<17x32xf32>
    %541 = vector.extract_strided_slice %538 {offsets = [0, 64], sizes = [17, 32], strides = [1, 1]} : vector<17x96xf32> to vector<17x32xf32>
    %542 = vector.extract_strided_slice %539 {offsets = [0, 0], sizes = [17, 8], strides = [1, 1]} : vector<17x32xf32> to vector<17x8xf32>
    %543 = vector.extract_strided_slice %540 {offsets = [0, 0], sizes = [17, 8], strides = [1, 1]} : vector<17x32xf32> to vector<17x8xf32>
    %cst_168 = arith.constant dense<0.000000e+00> : vector<17x17xf32>
    %544 = tpu.matmul %542, %543, %cst_168 {dimension_numbers = #tpu.dot_dimension_numbers<[1], [1], [0], [0], [0, 0, 1, 0], [], []>} : vector<17x8xf32>, vector<17x8xf32>, vector<17x17xf32> -> vector<17x17xf32>
    %cst_169 = arith.constant dense<0xFF800000> : vector<17xf32>
    %545 = vector.multi_reduction <maximumf>, %544, %cst_169 [1] : vector<17x17xf32> to vector<17xf32>
    %546 = vector.shape_cast %545 : vector<17xf32> to vector<17x1xf32>
    %547 = vector.broadcast %546 : vector<17x1xf32> to vector<17x17xf32>
    %548 = arith.subf %544, %547 : vector<17x17xf32>
    %549 = math.exp %548 : vector<17x17xf32>
    %cst_170 = arith.constant dense<0.000000e+00> : vector<17xf32>
    %550 = vector.multi_reduction <add>, %549, %cst_170 [1] : vector<17x17xf32> to vector<17xf32>
    %551 = vector.shape_cast %550 : vector<17xf32> to vector<17x1xf32>
    %552 = tpu.reciprocal %551 {approx = true} : vector<17x1xf32> -> vector<17x1xf32>
    %553 = vector.broadcast %552 : vector<17x1xf32> to vector<17x17xf32>
    %554 = arith.mulf %549, %553 : vector<17x17xf32>
    %555 = vector.extract_strided_slice %541 {offsets = [0, 0], sizes = [17, 8], strides = [1, 1]} : vector<17x32xf32> to vector<17x8xf32>
    %cst_171 = arith.constant dense<0.000000e+00> : vector<17x8xf32>
    %556 = tpu.matmul %554, %555, %cst_171 {dimension_numbers = #tpu.dot_dimension_numbers<[1], [0], [0], [1], [0, 0, 1, 1], [], []>} : vector<17x17xf32>, vector<17x8xf32>, vector<17x8xf32> -> vector<17x8xf32>
    %557 = vector.extract_strided_slice %539 {offsets = [0, 8], sizes = [17, 8], strides = [1, 1]} : vector<17x32xf32> to vector<17x8xf32>
    %558 = vector.extract_strided_slice %540 {offsets = [0, 8], sizes = [17, 8], strides = [1, 1]} : vector<17x32xf32> to vector<17x8xf32>
    %cst_172 = arith.constant dense<0.000000e+00> : vector<17x17xf32>
    %559 = tpu.matmul %557, %558, %cst_172 {dimension_numbers = #tpu.dot_dimension_numbers<[1], [1], [0], [0], [0, 0, 1, 0], [], []>} : vector<17x8xf32>, vector<17x8xf32>, vector<17x17xf32> -> vector<17x17xf32>
    %cst_173 = arith.constant dense<0xFF800000> : vector<17xf32>
    %560 = vector.multi_reduction <maximumf>, %559, %cst_173 [1] : vector<17x17xf32> to vector<17xf32>
    %561 = vector.shape_cast %560 : vector<17xf32> to vector<17x1xf32>
    %562 = vector.broadcast %561 : vector<17x1xf32> to vector<17x17xf32>
    %563 = arith.subf %559, %562 : vector<17x17xf32>
    %564 = math.exp %563 : vector<17x17xf32>
    %cst_174 = arith.constant dense<0.000000e+00> : vector<17xf32>
    %565 = vector.multi_reduction <add>, %564, %cst_174 [1] : vector<17x17xf32> to vector<17xf32>
    %566 = vector.shape_cast %565 : vector<17xf32> to vector<17x1xf32>
    %567 = tpu.reciprocal %566 {approx = true} : vector<17x1xf32> -> vector<17x1xf32>
    %568 = vector.broadcast %567 : vector<17x1xf32> to vector<17x17xf32>
    %569 = arith.mulf %564, %568 : vector<17x17xf32>
    %570 = vector.extract_strided_slice %541 {offsets = [0, 8], sizes = [17, 8], strides = [1, 1]} : vector<17x32xf32> to vector<17x8xf32>
    %cst_175 = arith.constant dense<0.000000e+00> : vector<17x8xf32>
    %571 = tpu.matmul %569, %570, %cst_175 {dimension_numbers = #tpu.dot_dimension_numbers<[1], [0], [0], [1], [0, 0, 1, 1], [], []>} : vector<17x17xf32>, vector<17x8xf32>, vector<17x8xf32> -> vector<17x8xf32>
    %572 = vector.extract_strided_slice %539 {offsets = [0, 16], sizes = [17, 8], strides = [1, 1]} : vector<17x32xf32> to vector<17x8xf32>
    %573 = vector.extract_strided_slice %540 {offsets = [0, 16], sizes = [17, 8], strides = [1, 1]} : vector<17x32xf32> to vector<17x8xf32>
    %cst_176 = arith.constant dense<0.000000e+00> : vector<17x17xf32>
    %574 = tpu.matmul %572, %573, %cst_176 {dimension_numbers = #tpu.dot_dimension_numbers<[1], [1], [0], [0], [0, 0, 1, 0], [], []>} : vector<17x8xf32>, vector<17x8xf32>, vector<17x17xf32> -> vector<17x17xf32>
    %cst_177 = arith.constant dense<0xFF800000> : vector<17xf32>
    %575 = vector.multi_reduction <maximumf>, %574, %cst_177 [1] : vector<17x17xf32> to vector<17xf32>
    %576 = vector.shape_cast %575 : vector<17xf32> to vector<17x1xf32>
    %577 = vector.broadcast %576 : vector<17x1xf32> to vector<17x17xf32>
    %578 = arith.subf %574, %577 : vector<17x17xf32>
    %579 = math.exp %578 : vector<17x17xf32>
    %cst_178 = arith.constant dense<0.000000e+00> : vector<17xf32>
    %580 = vector.multi_reduction <add>, %579, %cst_178 [1] : vector<17x17xf32> to vector<17xf32>
    %581 = vector.shape_cast %580 : vector<17xf32> to vector<17x1xf32>
    %582 = tpu.reciprocal %581 {approx = true} : vector<17x1xf32> -> vector<17x1xf32>
    %583 = vector.broadcast %582 : vector<17x1xf32> to vector<17x17xf32>
    %584 = arith.mulf %579, %583 : vector<17x17xf32>
    %585 = vector.extract_strided_slice %541 {offsets = [0, 16], sizes = [17, 8], strides = [1, 1]} : vector<17x32xf32> to vector<17x8xf32>
    %cst_179 = arith.constant dense<0.000000e+00> : vector<17x8xf32>
    %586 = tpu.matmul %584, %585, %cst_179 {dimension_numbers = #tpu.dot_dimension_numbers<[1], [0], [0], [1], [0, 0, 1, 1], [], []>} : vector<17x17xf32>, vector<17x8xf32>, vector<17x8xf32> -> vector<17x8xf32>
    %587 = vector.extract_strided_slice %539 {offsets = [0, 24], sizes = [17, 8], strides = [1, 1]} : vector<17x32xf32> to vector<17x8xf32>
    %588 = vector.extract_strided_slice %540 {offsets = [0, 24], sizes = [17, 8], strides = [1, 1]} : vector<17x32xf32> to vector<17x8xf32>
    %cst_180 = arith.constant dense<0.000000e+00> : vector<17x17xf32>
    %589 = tpu.matmul %587, %588, %cst_180 {dimension_numbers = #tpu.dot_dimension_numbers<[1], [1], [0], [0], [0, 0, 1, 0], [], []>} : vector<17x8xf32>, vector<17x8xf32>, vector<17x17xf32> -> vector<17x17xf32>
    %cst_181 = arith.constant dense<0xFF800000> : vector<17xf32>
    %590 = vector.multi_reduction <maximumf>, %589, %cst_181 [1] : vector<17x17xf32> to vector<17xf32>
    %591 = vector.shape_cast %590 : vector<17xf32> to vector<17x1xf32>
    %592 = vector.broadcast %591 : vector<17x1xf32> to vector<17x17xf32>
    %593 = arith.subf %589, %592 : vector<17x17xf32>
    %594 = math.exp %593 : vector<17x17xf32>
    %cst_182 = arith.constant dense<0.000000e+00> : vector<17xf32>
    %595 = vector.multi_reduction <add>, %594, %cst_182 [1] : vector<17x17xf32> to vector<17xf32>
    %596 = vector.shape_cast %595 : vector<17xf32> to vector<17x1xf32>
    %597 = tpu.reciprocal %596 {approx = true} : vector<17x1xf32> -> vector<17x1xf32>
    %598 = vector.broadcast %597 : vector<17x1xf32> to vector<17x17xf32>
    %599 = arith.mulf %594, %598 : vector<17x17xf32>
    %600 = vector.extract_strided_slice %541 {offsets = [0, 24], sizes = [17, 8], strides = [1, 1]} : vector<17x32xf32> to vector<17x8xf32>
    %cst_183 = arith.constant dense<0.000000e+00> : vector<17x8xf32>
    %601 = tpu.matmul %599, %600, %cst_183 {dimension_numbers = #tpu.dot_dimension_numbers<[1], [0], [0], [1], [0, 0, 1, 1], [], []>} : vector<17x17xf32>, vector<17x8xf32>, vector<17x8xf32> -> vector<17x8xf32>
    %602 = tpu.concatenate %556, %571, %586, %601 in 1 : vector<17x8xf32>, vector<17x8xf32>, vector<17x8xf32>, vector<17x8xf32> -> vector<17x32xf32>
    %603 = vector.extract_strided_slice %537 {offsets = [17, 0], sizes = [17, 96], strides = [1, 1]} : vector<34x96xf32> to vector<17x96xf32>
    %604 = vector.extract_strided_slice %603 {offsets = [0, 0], sizes = [17, 32], strides = [1, 1]} : vector<17x96xf32> to vector<17x32xf32>
    %605 = vector.extract_strided_slice %603 {offsets = [0, 32], sizes = [17, 32], strides = [1, 1]} : vector<17x96xf32> to vector<17x32xf32>
    %606 = vector.extract_strided_slice %603 {offsets = [0, 64], sizes = [17, 32], strides = [1, 1]} : vector<17x96xf32> to vector<17x32xf32>
    %607 = vector.extract_strided_slice %604 {offsets = [0, 0], sizes = [17, 8], strides = [1, 1]} : vector<17x32xf32> to vector<17x8xf32>
    %608 = vector.extract_strided_slice %605 {offsets = [0, 0], sizes = [17, 8], strides = [1, 1]} : vector<17x32xf32> to vector<17x8xf32>
    %cst_184 = arith.constant dense<0.000000e+00> : vector<17x17xf32>
    %609 = tpu.matmul %607, %608, %cst_184 {dimension_numbers = #tpu.dot_dimension_numbers<[1], [1], [0], [0], [0, 0, 1, 0], [], []>} : vector<17x8xf32>, vector<17x8xf32>, vector<17x17xf32> -> vector<17x17xf32>
    %cst_185 = arith.constant dense<0xFF800000> : vector<17xf32>
    %610 = vector.multi_reduction <maximumf>, %609, %cst_185 [1] : vector<17x17xf32> to vector<17xf32>
    %611 = vector.shape_cast %610 : vector<17xf32> to vector<17x1xf32>
    %612 = vector.broadcast %611 : vector<17x1xf32> to vector<17x17xf32>
    %613 = arith.subf %609, %612 : vector<17x17xf32>
    %614 = math.exp %613 : vector<17x17xf32>
    %cst_186 = arith.constant dense<0.000000e+00> : vector<17xf32>
    %615 = vector.multi_reduction <add>, %614, %cst_186 [1] : vector<17x17xf32> to vector<17xf32>
    %616 = vector.shape_cast %615 : vector<17xf32> to vector<17x1xf32>
    %617 = tpu.reciprocal %616 {approx = true} : vector<17x1xf32> -> vector<17x1xf32>
    %618 = vector.broadcast %617 : vector<17x1xf32> to vector<17x17xf32>
    %619 = arith.mulf %614, %618 : vector<17x17xf32>
    %620 = vector.extract_strided_slice %606 {offsets = [0, 0], sizes = [17, 8], strides = [1, 1]} : vector<17x32xf32> to vector<17x8xf32>
    %cst_187 = arith.constant dense<0.000000e+00> : vector<17x8xf32>
    %621 = tpu.matmul %619, %620, %cst_187 {dimension_numbers = #tpu.dot_dimension_numbers<[1], [0], [0], [1], [0, 0, 1, 1], [], []>} : vector<17x17xf32>, vector<17x8xf32>, vector<17x8xf32> -> vector<17x8xf32>
    %622 = vector.extract_strided_slice %604 {offsets = [0, 8], sizes = [17, 8], strides = [1, 1]} : vector<17x32xf32> to vector<17x8xf32>
    %623 = vector.extract_strided_slice %605 {offsets = [0, 8], sizes = [17, 8], strides = [1, 1]} : vector<17x32xf32> to vector<17x8xf32>
    %cst_188 = arith.constant dense<0.000000e+00> : vector<17x17xf32>
    %624 = tpu.matmul %622, %623, %cst_188 {dimension_numbers = #tpu.dot_dimension_numbers<[1], [1], [0], [0], [0, 0, 1, 0], [], []>} : vector<17x8xf32>, vector<17x8xf32>, vector<17x17xf32> -> vector<17x17xf32>
    %cst_189 = arith.constant dense<0xFF800000> : vector<17xf32>
    %625 = vector.multi_reduction <maximumf>, %624, %cst_189 [1] : vector<17x17xf32> to vector<17xf32>
    %626 = vector.shape_cast %625 : vector<17xf32> to vector<17x1xf32>
    %627 = vector.broadcast %626 : vector<17x1xf32> to vector<17x17xf32>
    %628 = arith.subf %624, %627 : vector<17x17xf32>
    %629 = math.exp %628 : vector<17x17xf32>
    %cst_190 = arith.constant dense<0.000000e+00> : vector<17xf32>
    %630 = vector.multi_reduction <add>, %629, %cst_190 [1] : vector<17x17xf32> to vector<17xf32>
    %631 = vector.shape_cast %630 : vector<17xf32> to vector<17x1xf32>
    %632 = tpu.reciprocal %631 {approx = true} : vector<17x1xf32> -> vector<17x1xf32>
    %633 = vector.broadcast %632 : vector<17x1xf32> to vector<17x17xf32>
    %634 = arith.mulf %629, %633 : vector<17x17xf32>
    %635 = vector.extract_strided_slice %606 {offsets = [0, 8], sizes = [17, 8], strides = [1, 1]} : vector<17x32xf32> to vector<17x8xf32>
    %cst_191 = arith.constant dense<0.000000e+00> : vector<17x8xf32>
    %636 = tpu.matmul %634, %635, %cst_191 {dimension_numbers = #tpu.dot_dimension_numbers<[1], [0], [0], [1], [0, 0, 1, 1], [], []>} : vector<17x17xf32>, vector<17x8xf32>, vector<17x8xf32> -> vector<17x8xf32>
    %637 = vector.extract_strided_slice %604 {offsets = [0, 16], sizes = [17, 8], strides = [1, 1]} : vector<17x32xf32> to vector<17x8xf32>
    %638 = vector.extract_strided_slice %605 {offsets = [0, 16], sizes = [17, 8], strides = [1, 1]} : vector<17x32xf32> to vector<17x8xf32>
    %cst_192 = arith.constant dense<0.000000e+00> : vector<17x17xf32>
    %639 = tpu.matmul %637, %638, %cst_192 {dimension_numbers = #tpu.dot_dimension_numbers<[1], [1], [0], [0], [0, 0, 1, 0], [], []>} : vector<17x8xf32>, vector<17x8xf32>, vector<17x17xf32> -> vector<17x17xf32>
    %cst_193 = arith.constant dense<0xFF800000> : vector<17xf32>
    %640 = vector.multi_reduction <maximumf>, %639, %cst_193 [1] : vector<17x17xf32> to vector<17xf32>
    %641 = vector.shape_cast %640 : vector<17xf32> to vector<17x1xf32>
    %642 = vector.broadcast %641 : vector<17x1xf32> to vector<17x17xf32>
    %643 = arith.subf %639, %642 : vector<17x17xf32>
    %644 = math.exp %643 : vector<17x17xf32>
    %cst_194 = arith.constant dense<0.000000e+00> : vector<17xf32>
    %645 = vector.multi_reduction <add>, %644, %cst_194 [1] : vector<17x17xf32> to vector<17xf32>
    %646 = vector.shape_cast %645 : vector<17xf32> to vector<17x1xf32>
    %647 = tpu.reciprocal %646 {approx = true} : vector<17x1xf32> -> vector<17x1xf32>
    %648 = vector.broadcast %647 : vector<17x1xf32> to vector<17x17xf32>
    %649 = arith.mulf %644, %648 : vector<17x17xf32>
    %650 = vector.extract_strided_slice %606 {offsets = [0, 16], sizes = [17, 8], strides = [1, 1]} : vector<17x32xf32> to vector<17x8xf32>
    %cst_195 = arith.constant dense<0.000000e+00> : vector<17x8xf32>
    %651 = tpu.matmul %649, %650, %cst_195 {dimension_numbers = #tpu.dot_dimension_numbers<[1], [0], [0], [1], [0, 0, 1, 1], [], []>} : vector<17x17xf32>, vector<17x8xf32>, vector<17x8xf32> -> vector<17x8xf32>
    %652 = vector.extract_strided_slice %604 {offsets = [0, 24], sizes = [17, 8], strides = [1, 1]} : vector<17x32xf32> to vector<17x8xf32>
    %653 = vector.extract_strided_slice %605 {offsets = [0, 24], sizes = [17, 8], strides = [1, 1]} : vector<17x32xf32> to vector<17x8xf32>
    %cst_196 = arith.constant dense<0.000000e+00> : vector<17x17xf32>
    %654 = tpu.matmul %652, %653, %cst_196 {dimension_numbers = #tpu.dot_dimension_numbers<[1], [1], [0], [0], [0, 0, 1, 0], [], []>} : vector<17x8xf32>, vector<17x8xf32>, vector<17x17xf32> -> vector<17x17xf32>
    %cst_197 = arith.constant dense<0xFF800000> : vector<17xf32>
    %655 = vector.multi_reduction <maximumf>, %654, %cst_197 [1] : vector<17x17xf32> to vector<17xf32>
    %656 = vector.shape_cast %655 : vector<17xf32> to vector<17x1xf32>
    %657 = vector.broadcast %656 : vector<17x1xf32> to vector<17x17xf32>
    %658 = arith.subf %654, %657 : vector<17x17xf32>
    %659 = math.exp %658 : vector<17x17xf32>
    %cst_198 = arith.constant dense<0.000000e+00> : vector<17xf32>
    %660 = vector.multi_reduction <add>, %659, %cst_198 [1] : vector<17x17xf32> to vector<17xf32>
    %661 = vector.shape_cast %660 : vector<17xf32> to vector<17x1xf32>
    %662 = tpu.reciprocal %661 {approx = true} : vector<17x1xf32> -> vector<17x1xf32>
    %663 = vector.broadcast %662 : vector<17x1xf32> to vector<17x17xf32>
    %664 = arith.mulf %659, %663 : vector<17x17xf32>
    %665 = vector.extract_strided_slice %606 {offsets = [0, 24], sizes = [17, 8], strides = [1, 1]} : vector<17x32xf32> to vector<17x8xf32>
    %cst_199 = arith.constant dense<0.000000e+00> : vector<17x8xf32>
    %666 = tpu.matmul %664, %665, %cst_199 {dimension_numbers = #tpu.dot_dimension_numbers<[1], [0], [0], [1], [0, 0, 1, 1], [], []>} : vector<17x17xf32>, vector<17x8xf32>, vector<17x8xf32> -> vector<17x8xf32>
    %667 = tpu.concatenate %621, %636, %651, %666 in 1 : vector<17x8xf32>, vector<17x8xf32>, vector<17x8xf32>, vector<17x8xf32> -> vector<17x32xf32>
    %668 = tpu.concatenate %602, %667 in 0 : vector<17x32xf32>, vector<17x32xf32> -> vector<34x32xf32>
    %669 = arith.truncf %668 : vector<34x32xf32> to vector<34x32xbf16>
    %c2_200 = arith.constant 2 : index
    %c0_201 = arith.constant 0 : index
    %c0_202 = arith.constant 0 : index
    %670 = vector.load %arg5[%c2_200, %c0_201, %c0_202] : memref<4x32x32xbf16, #tpu.memory_space<vmem>>, vector<1x32x32xbf16>
    %671 = vector.shape_cast %670 : vector<1x32x32xbf16> to vector<32x32xbf16>
    %cst_203 = arith.constant dense<0.000000e+00> : vector<34x32xf32>
    %672 = tpu.matmul %669, %671, %cst_203 {dimension_numbers = #tpu.dot_dimension_numbers<[1], [0], [0], [1], [0, 0, 1, 1], [], []>} : vector<34x32xbf16>, vector<32x32xbf16>, vector<34x32xf32> -> vector<34x32xf32>
    %673 = arith.addf %501, %672 : vector<34x32xf32>
    %674 = vector.broadcast %507 : vector<1x32xf32> to vector<34x32xf32>
    %675 = arith.addf %673, %674 : vector<34x32xf32>
    %cst_204 = arith.constant dense<0.000000e+00> : vector<34xf32>
    %676 = vector.multi_reduction <add>, %675, %cst_204 [1] : vector<34x32xf32> to vector<34xf32>
    %677 = vector.shape_cast %676 : vector<34xf32> to vector<34x1xf32>
    %cst_205 = arith.constant 3.200000e+01 : f32
    %678 = vector.broadcast %cst_205 : f32 to vector<34x1xf32>
    %679 = arith.divf %677, %678 : vector<34x1xf32>
    %680 = vector.broadcast %679 : vector<34x1xf32> to vector<34x32xf32>
    %681 = arith.subf %675, %680 : vector<34x32xf32>
    %682 = arith.mulf %681, %681 : vector<34x32xf32>
    %cst_206 = arith.constant dense<0.000000e+00> : vector<34xf32>
    %683 = vector.multi_reduction <add>, %682, %cst_206 [1] : vector<34x32xf32> to vector<34xf32>
    %684 = vector.shape_cast %683 : vector<34xf32> to vector<34x1xf32>
    %cst_207 = arith.constant 3.200000e+01 : f32
    %685 = vector.broadcast %cst_207 : f32 to vector<34x1xf32>
    %686 = arith.divf %684, %685 : vector<34x1xf32>
    %cst_208 = arith.constant 9.99999974E-6 : f32
    %687 = vector.broadcast %cst_208 : f32 to vector<34x1xf32>
    %688 = arith.addf %686, %687 : vector<34x1xf32>
    %689 = math.rsqrt %688 : vector<34x1xf32>
    %690 = vector.broadcast %689 : vector<34x1xf32> to vector<34x32xf32>
    %691 = arith.mulf %681, %690 : vector<34x32xf32>
    %692 = vector.broadcast %508 : vector<1x32xf32> to vector<34x32xf32>
    %693 = arith.mulf %691, %692 : vector<34x32xf32>
    %694 = vector.broadcast %509 : vector<1x32xf32> to vector<34x32xf32>
    %695 = arith.addf %693, %694 : vector<34x32xf32>
    %696 = arith.truncf %695 : vector<34x32xf32> to vector<34x32xbf16>
    %c2_209 = arith.constant 2 : index
    %c0_210 = arith.constant 0 : index
    %c0_211 = arith.constant 0 : index
    %697 = vector.load %arg6[%c2_209, %c0_210, %c0_211] : memref<4x32x128xbf16, #tpu.memory_space<vmem>>, vector<1x32x128xbf16>
    %698 = vector.shape_cast %697 : vector<1x32x128xbf16> to vector<32x128xbf16>
    %cst_212 = arith.constant dense<0.000000e+00> : vector<34x128xf32>
    %699 = tpu.matmul %696, %698, %cst_212 {dimension_numbers = #tpu.dot_dimension_numbers<[1], [0], [0], [1], [0, 0, 1, 1], [], []>} : vector<34x32xbf16>, vector<32x128xbf16>, vector<34x128xf32> -> vector<34x128xf32>
    %700 = vector.broadcast %510 : vector<1x128xf32> to vector<34x128xf32>
    %701 = arith.addf %699, %700 : vector<34x128xf32>
    %cst_213 = arith.constant 5.000000e-01 : f32
    %702 = vector.broadcast %cst_213 : f32 to vector<34x128xf32>
    %703 = arith.mulf %702, %701 : vector<34x128xf32>
    %cst_214 = arith.constant 0.707106769 : f32
    %704 = vector.broadcast %cst_214 : f32 to vector<34x128xf32>
    %705 = arith.mulf %701, %704 : vector<34x128xf32>
    %706 = math.absf %705 : vector<34x128xf32>
    %cst_215 = arith.constant 0.327591091 : f32
    %707 = vector.broadcast %cst_215 : f32 to vector<34x128xf32>
    %708 = arith.mulf %707, %706 : vector<34x128xf32>
    %cst_216 = arith.constant 1.000000e+00 : f32
    %709 = vector.broadcast %cst_216 : f32 to vector<34x128xf32>
    %710 = arith.addf %709, %708 : vector<34x128xf32>
    %cst_217 = arith.constant 1.000000e+00 : f32
    %711 = vector.broadcast %cst_217 : f32 to vector<34x128xf32>
    %712 = arith.divf %711, %710 : vector<34x128xf32>
    %cst_218 = arith.constant 1.06140542 : f32
    %713 = vector.broadcast %cst_218 : f32 to vector<34x128xf32>
    %714 = arith.mulf %713, %712 : vector<34x128xf32>
    %cst_219 = arith.constant -1.45315206 : f32
    %715 = vector.broadcast %cst_219 : f32 to vector<34x128xf32>
    %716 = arith.addf %714, %715 : vector<34x128xf32>
    %717 = arith.mulf %716, %712 : vector<34x128xf32>
    %cst_220 = arith.constant 1.42141378 : f32
    %718 = vector.broadcast %cst_220 : f32 to vector<34x128xf32>
    %719 = arith.addf %717, %718 : vector<34x128xf32>
    %720 = arith.mulf %719, %712 : vector<34x128xf32>
    %cst_221 = arith.constant -0.284496725 : f32
    %721 = vector.broadcast %cst_221 : f32 to vector<34x128xf32>
    %722 = arith.addf %720, %721 : vector<34x128xf32>
    %723 = arith.mulf %722, %712 : vector<34x128xf32>
    %cst_222 = arith.constant 0.254829586 : f32
    %724 = vector.broadcast %cst_222 : f32 to vector<34x128xf32>
    %725 = arith.addf %723, %724 : vector<34x128xf32>
    %726 = arith.mulf %725, %712 : vector<34x128xf32>
    %727 = arith.mulf %706, %706 : vector<34x128xf32>
    %cst_223 = arith.constant 0.000000e+00 : f32
    %728 = vector.broadcast %cst_223 : f32 to vector<34x128xf32>
    %729 = arith.subf %728, %727 : vector<34x128xf32>
    %730 = math.exp %729 : vector<34x128xf32>
    %731 = arith.mulf %726, %730 : vector<34x128xf32>
    %cst_224 = arith.constant 1.000000e+00 : f32
    %732 = vector.broadcast %cst_224 : f32 to vector<34x128xf32>
    %733 = arith.subf %732, %731 : vector<34x128xf32>
    %cst_225 = arith.constant 0.000000e+00 : f32
    %734 = vector.broadcast %cst_225 : f32 to vector<34x128xf32>
    %735 = arith.cmpf oge, %705, %734 : vector<34x128xf32>
    %cst_226 = arith.constant 0.000000e+00 : f32
    %736 = vector.broadcast %cst_226 : f32 to vector<34x128xf32>
    %737 = arith.subf %736, %733 : vector<34x128xf32>
    %738 = arith.select %735, %733, %737 : vector<34x128xi1>, vector<34x128xf32>
    %cst_227 = arith.constant 1.000000e+00 : f32
    %739 = vector.broadcast %cst_227 : f32 to vector<34x128xf32>
    %740 = arith.addf %739, %738 : vector<34x128xf32>
    %741 = arith.mulf %703, %740 : vector<34x128xf32>
    %742 = arith.truncf %741 : vector<34x128xf32> to vector<34x128xbf16>
    %c2_228 = arith.constant 2 : index
    %c0_229 = arith.constant 0 : index
    %c0_230 = arith.constant 0 : index
    %743 = vector.load %arg7[%c2_228, %c0_229, %c0_230] : memref<4x128x32xbf16, #tpu.memory_space<vmem>>, vector<1x128x32xbf16>
    %744 = vector.shape_cast %743 : vector<1x128x32xbf16> to vector<128x32xbf16>
    %cst_231 = arith.constant dense<0.000000e+00> : vector<34x32xf32>
    %745 = tpu.matmul %742, %744, %cst_231 {dimension_numbers = #tpu.dot_dimension_numbers<[1], [0], [0], [1], [0, 0, 1, 1], [], []>} : vector<34x128xbf16>, vector<128x32xbf16>, vector<34x32xf32> -> vector<34x32xf32>
    %746 = vector.broadcast %511 : vector<1x32xf32> to vector<34x32xf32>
    %747 = arith.addf %745, %746 : vector<34x32xf32>
    %748 = arith.addf %675, %747 : vector<34x32xf32>
    %c3 = arith.constant 3 : index
    %c0_232 = arith.constant 0 : index
    %c0_233 = arith.constant 0 : index
    %749 = vector.load %arg8[%c3, %c0_232, %c0_233] : memref<4x8x128xf32, #tpu.memory_space<vmem>>, vector<1x8x128xf32>
    %750 = vector.shape_cast %749 : vector<1x8x128xf32> to vector<8x128xf32>
    %751 = vector.extract_strided_slice %750 {offsets = [0, 0], sizes = [1, 32], strides = [1, 1]} : vector<8x128xf32> to vector<1x32xf32>
    %752 = vector.extract_strided_slice %750 {offsets = [1, 0], sizes = [1, 32], strides = [1, 1]} : vector<8x128xf32> to vector<1x32xf32>
    %753 = vector.extract_strided_slice %750 {offsets = [2, 0], sizes = [1, 96], strides = [1, 1]} : vector<8x128xf32> to vector<1x96xf32>
    %754 = vector.extract_strided_slice %750 {offsets = [3, 0], sizes = [1, 32], strides = [1, 1]} : vector<8x128xf32> to vector<1x32xf32>
    %755 = vector.extract_strided_slice %750 {offsets = [4, 0], sizes = [1, 32], strides = [1, 1]} : vector<8x128xf32> to vector<1x32xf32>
    %756 = vector.extract_strided_slice %750 {offsets = [5, 0], sizes = [1, 32], strides = [1, 1]} : vector<8x128xf32> to vector<1x32xf32>
    %757 = vector.extract_strided_slice %750 {offsets = [6, 0], sizes = [1, 128], strides = [1, 1]} : vector<8x128xf32> to vector<1x128xf32>
    %758 = vector.extract_strided_slice %750 {offsets = [7, 0], sizes = [1, 32], strides = [1, 1]} : vector<8x128xf32> to vector<1x32xf32>
    %cst_234 = arith.constant dense<0.000000e+00> : vector<34xf32>
    %759 = vector.multi_reduction <add>, %748, %cst_234 [1] : vector<34x32xf32> to vector<34xf32>
    %760 = vector.shape_cast %759 : vector<34xf32> to vector<34x1xf32>
    %cst_235 = arith.constant 3.200000e+01 : f32
    %761 = vector.broadcast %cst_235 : f32 to vector<34x1xf32>
    %762 = arith.divf %760, %761 : vector<34x1xf32>
    %763 = vector.broadcast %762 : vector<34x1xf32> to vector<34x32xf32>
    %764 = arith.subf %748, %763 : vector<34x32xf32>
    %765 = arith.mulf %764, %764 : vector<34x32xf32>
    %cst_236 = arith.constant dense<0.000000e+00> : vector<34xf32>
    %766 = vector.multi_reduction <add>, %765, %cst_236 [1] : vector<34x32xf32> to vector<34xf32>
    %767 = vector.shape_cast %766 : vector<34xf32> to vector<34x1xf32>
    %cst_237 = arith.constant 3.200000e+01 : f32
    %768 = vector.broadcast %cst_237 : f32 to vector<34x1xf32>
    %769 = arith.divf %767, %768 : vector<34x1xf32>
    %cst_238 = arith.constant 9.99999974E-6 : f32
    %770 = vector.broadcast %cst_238 : f32 to vector<34x1xf32>
    %771 = arith.addf %769, %770 : vector<34x1xf32>
    %772 = math.rsqrt %771 : vector<34x1xf32>
    %773 = vector.broadcast %772 : vector<34x1xf32> to vector<34x32xf32>
    %774 = arith.mulf %764, %773 : vector<34x32xf32>
    %775 = vector.broadcast %751 : vector<1x32xf32> to vector<34x32xf32>
    %776 = arith.mulf %774, %775 : vector<34x32xf32>
    %777 = vector.broadcast %752 : vector<1x32xf32> to vector<34x32xf32>
    %778 = arith.addf %776, %777 : vector<34x32xf32>
    %779 = arith.truncf %778 : vector<34x32xf32> to vector<34x32xbf16>
    %c3_239 = arith.constant 3 : index
    %c0_240 = arith.constant 0 : index
    %c0_241 = arith.constant 0 : index
    %780 = vector.load %arg4[%c3_239, %c0_240, %c0_241] : memref<4x32x96xbf16, #tpu.memory_space<vmem>>, vector<1x32x96xbf16>
    %781 = vector.shape_cast %780 : vector<1x32x96xbf16> to vector<32x96xbf16>
    %cst_242 = arith.constant dense<0.000000e+00> : vector<34x96xf32>
    %782 = tpu.matmul %779, %781, %cst_242 {dimension_numbers = #tpu.dot_dimension_numbers<[1], [0], [0], [1], [0, 0, 1, 1], [], []>} : vector<34x32xbf16>, vector<32x96xbf16>, vector<34x96xf32> -> vector<34x96xf32>
    %783 = vector.broadcast %753 : vector<1x96xf32> to vector<34x96xf32>
    %784 = arith.addf %782, %783 : vector<34x96xf32>
    %785 = vector.extract_strided_slice %784 {offsets = [0, 0], sizes = [17, 96], strides = [1, 1]} : vector<34x96xf32> to vector<17x96xf32>
    %786 = vector.extract_strided_slice %785 {offsets = [0, 0], sizes = [17, 32], strides = [1, 1]} : vector<17x96xf32> to vector<17x32xf32>
    %787 = vector.extract_strided_slice %785 {offsets = [0, 32], sizes = [17, 32], strides = [1, 1]} : vector<17x96xf32> to vector<17x32xf32>
    %788 = vector.extract_strided_slice %785 {offsets = [0, 64], sizes = [17, 32], strides = [1, 1]} : vector<17x96xf32> to vector<17x32xf32>
    %789 = vector.extract_strided_slice %786 {offsets = [0, 0], sizes = [17, 16], strides = [1, 1]} : vector<17x32xf32> to vector<17x16xf32>
    %790 = vector.extract_strided_slice %787 {offsets = [0, 0], sizes = [17, 16], strides = [1, 1]} : vector<17x32xf32> to vector<17x16xf32>
    %cst_243 = arith.constant dense<0.000000e+00> : vector<17x17xf32>
    %791 = tpu.matmul %789, %790, %cst_243 {dimension_numbers = #tpu.dot_dimension_numbers<[1], [1], [0], [0], [0, 0, 1, 0], [], []>} : vector<17x16xf32>, vector<17x16xf32>, vector<17x17xf32> -> vector<17x17xf32>
    %cst_244 = arith.constant dense<0xFF800000> : vector<17xf32>
    %792 = vector.multi_reduction <maximumf>, %791, %cst_244 [1] : vector<17x17xf32> to vector<17xf32>
    %793 = vector.shape_cast %792 : vector<17xf32> to vector<17x1xf32>
    %794 = vector.broadcast %793 : vector<17x1xf32> to vector<17x17xf32>
    %795 = arith.subf %791, %794 : vector<17x17xf32>
    %796 = math.exp %795 : vector<17x17xf32>
    %cst_245 = arith.constant dense<0.000000e+00> : vector<17xf32>
    %797 = vector.multi_reduction <add>, %796, %cst_245 [1] : vector<17x17xf32> to vector<17xf32>
    %798 = vector.shape_cast %797 : vector<17xf32> to vector<17x1xf32>
    %799 = tpu.reciprocal %798 {approx = true} : vector<17x1xf32> -> vector<17x1xf32>
    %800 = vector.broadcast %799 : vector<17x1xf32> to vector<17x17xf32>
    %801 = arith.mulf %796, %800 : vector<17x17xf32>
    %802 = vector.extract_strided_slice %788 {offsets = [0, 0], sizes = [17, 16], strides = [1, 1]} : vector<17x32xf32> to vector<17x16xf32>
    %cst_246 = arith.constant dense<0.000000e+00> : vector<17x16xf32>
    %803 = tpu.matmul %801, %802, %cst_246 {dimension_numbers = #tpu.dot_dimension_numbers<[1], [0], [0], [1], [0, 0, 1, 1], [], []>} : vector<17x17xf32>, vector<17x16xf32>, vector<17x16xf32> -> vector<17x16xf32>
    %804 = vector.extract_strided_slice %786 {offsets = [0, 16], sizes = [17, 16], strides = [1, 1]} : vector<17x32xf32> to vector<17x16xf32>
    %805 = vector.extract_strided_slice %787 {offsets = [0, 16], sizes = [17, 16], strides = [1, 1]} : vector<17x32xf32> to vector<17x16xf32>
    %cst_247 = arith.constant dense<0.000000e+00> : vector<17x17xf32>
    %806 = tpu.matmul %804, %805, %cst_247 {dimension_numbers = #tpu.dot_dimension_numbers<[1], [1], [0], [0], [0, 0, 1, 0], [], []>} : vector<17x16xf32>, vector<17x16xf32>, vector<17x17xf32> -> vector<17x17xf32>
    %cst_248 = arith.constant dense<0xFF800000> : vector<17xf32>
    %807 = vector.multi_reduction <maximumf>, %806, %cst_248 [1] : vector<17x17xf32> to vector<17xf32>
    %808 = vector.shape_cast %807 : vector<17xf32> to vector<17x1xf32>
    %809 = vector.broadcast %808 : vector<17x1xf32> to vector<17x17xf32>
    %810 = arith.subf %806, %809 : vector<17x17xf32>
    %811 = math.exp %810 : vector<17x17xf32>
    %cst_249 = arith.constant dense<0.000000e+00> : vector<17xf32>
    %812 = vector.multi_reduction <add>, %811, %cst_249 [1] : vector<17x17xf32> to vector<17xf32>
    %813 = vector.shape_cast %812 : vector<17xf32> to vector<17x1xf32>
    %814 = tpu.reciprocal %813 {approx = true} : vector<17x1xf32> -> vector<17x1xf32>
    %815 = vector.broadcast %814 : vector<17x1xf32> to vector<17x17xf32>
    %816 = arith.mulf %811, %815 : vector<17x17xf32>
    %817 = vector.extract_strided_slice %788 {offsets = [0, 16], sizes = [17, 16], strides = [1, 1]} : vector<17x32xf32> to vector<17x16xf32>
    %cst_250 = arith.constant dense<0.000000e+00> : vector<17x16xf32>
    %818 = tpu.matmul %816, %817, %cst_250 {dimension_numbers = #tpu.dot_dimension_numbers<[1], [0], [0], [1], [0, 0, 1, 1], [], []>} : vector<17x17xf32>, vector<17x16xf32>, vector<17x16xf32> -> vector<17x16xf32>
    %819 = tpu.concatenate %803, %818 in 1 : vector<17x16xf32>, vector<17x16xf32> -> vector<17x32xf32>
    %820 = vector.extract_strided_slice %784 {offsets = [17, 0], sizes = [17, 96], strides = [1, 1]} : vector<34x96xf32> to vector<17x96xf32>
    %821 = vector.extract_strided_slice %820 {offsets = [0, 0], sizes = [17, 32], strides = [1, 1]} : vector<17x96xf32> to vector<17x32xf32>
    %822 = vector.extract_strided_slice %820 {offsets = [0, 32], sizes = [17, 32], strides = [1, 1]} : vector<17x96xf32> to vector<17x32xf32>
    %823 = vector.extract_strided_slice %820 {offsets = [0, 64], sizes = [17, 32], strides = [1, 1]} : vector<17x96xf32> to vector<17x32xf32>
    %824 = vector.extract_strided_slice %821 {offsets = [0, 0], sizes = [17, 16], strides = [1, 1]} : vector<17x32xf32> to vector<17x16xf32>
    %825 = vector.extract_strided_slice %822 {offsets = [0, 0], sizes = [17, 16], strides = [1, 1]} : vector<17x32xf32> to vector<17x16xf32>
    %cst_251 = arith.constant dense<0.000000e+00> : vector<17x17xf32>
    %826 = tpu.matmul %824, %825, %cst_251 {dimension_numbers = #tpu.dot_dimension_numbers<[1], [1], [0], [0], [0, 0, 1, 0], [], []>} : vector<17x16xf32>, vector<17x16xf32>, vector<17x17xf32> -> vector<17x17xf32>
    %cst_252 = arith.constant dense<0xFF800000> : vector<17xf32>
    %827 = vector.multi_reduction <maximumf>, %826, %cst_252 [1] : vector<17x17xf32> to vector<17xf32>
    %828 = vector.shape_cast %827 : vector<17xf32> to vector<17x1xf32>
    %829 = vector.broadcast %828 : vector<17x1xf32> to vector<17x17xf32>
    %830 = arith.subf %826, %829 : vector<17x17xf32>
    %831 = math.exp %830 : vector<17x17xf32>
    %cst_253 = arith.constant dense<0.000000e+00> : vector<17xf32>
    %832 = vector.multi_reduction <add>, %831, %cst_253 [1] : vector<17x17xf32> to vector<17xf32>
    %833 = vector.shape_cast %832 : vector<17xf32> to vector<17x1xf32>
    %834 = tpu.reciprocal %833 {approx = true} : vector<17x1xf32> -> vector<17x1xf32>
    %835 = vector.broadcast %834 : vector<17x1xf32> to vector<17x17xf32>
    %836 = arith.mulf %831, %835 : vector<17x17xf32>
    %837 = vector.extract_strided_slice %823 {offsets = [0, 0], sizes = [17, 16], strides = [1, 1]} : vector<17x32xf32> to vector<17x16xf32>
    %cst_254 = arith.constant dense<0.000000e+00> : vector<17x16xf32>
    %838 = tpu.matmul %836, %837, %cst_254 {dimension_numbers = #tpu.dot_dimension_numbers<[1], [0], [0], [1], [0, 0, 1, 1], [], []>} : vector<17x17xf32>, vector<17x16xf32>, vector<17x16xf32> -> vector<17x16xf32>
    %839 = vector.extract_strided_slice %821 {offsets = [0, 16], sizes = [17, 16], strides = [1, 1]} : vector<17x32xf32> to vector<17x16xf32>
    %840 = vector.extract_strided_slice %822 {offsets = [0, 16], sizes = [17, 16], strides = [1, 1]} : vector<17x32xf32> to vector<17x16xf32>
    %cst_255 = arith.constant dense<0.000000e+00> : vector<17x17xf32>
    %841 = tpu.matmul %839, %840, %cst_255 {dimension_numbers = #tpu.dot_dimension_numbers<[1], [1], [0], [0], [0, 0, 1, 0], [], []>} : vector<17x16xf32>, vector<17x16xf32>, vector<17x17xf32> -> vector<17x17xf32>
    %cst_256 = arith.constant dense<0xFF800000> : vector<17xf32>
    %842 = vector.multi_reduction <maximumf>, %841, %cst_256 [1] : vector<17x17xf32> to vector<17xf32>
    %843 = vector.shape_cast %842 : vector<17xf32> to vector<17x1xf32>
    %844 = vector.broadcast %843 : vector<17x1xf32> to vector<17x17xf32>
    %845 = arith.subf %841, %844 : vector<17x17xf32>
    %846 = math.exp %845 : vector<17x17xf32>
    %cst_257 = arith.constant dense<0.000000e+00> : vector<17xf32>
    %847 = vector.multi_reduction <add>, %846, %cst_257 [1] : vector<17x17xf32> to vector<17xf32>
    %848 = vector.shape_cast %847 : vector<17xf32> to vector<17x1xf32>
    %849 = tpu.reciprocal %848 {approx = true} : vector<17x1xf32> -> vector<17x1xf32>
    %850 = vector.broadcast %849 : vector<17x1xf32> to vector<17x17xf32>
    %851 = arith.mulf %846, %850 : vector<17x17xf32>
    %852 = vector.extract_strided_slice %823 {offsets = [0, 16], sizes = [17, 16], strides = [1, 1]} : vector<17x32xf32> to vector<17x16xf32>
    %cst_258 = arith.constant dense<0.000000e+00> : vector<17x16xf32>
    %853 = tpu.matmul %851, %852, %cst_258 {dimension_numbers = #tpu.dot_dimension_numbers<[1], [0], [0], [1], [0, 0, 1, 1], [], []>} : vector<17x17xf32>, vector<17x16xf32>, vector<17x16xf32> -> vector<17x16xf32>
    %854 = tpu.concatenate %838, %853 in 1 : vector<17x16xf32>, vector<17x16xf32> -> vector<17x32xf32>
    %855 = tpu.concatenate %819, %854 in 0 : vector<17x32xf32>, vector<17x32xf32> -> vector<34x32xf32>
    %856 = arith.truncf %855 : vector<34x32xf32> to vector<34x32xbf16>
    %c3_259 = arith.constant 3 : index
    %c0_260 = arith.constant 0 : index
    %c0_261 = arith.constant 0 : index
    %857 = vector.load %arg5[%c3_259, %c0_260, %c0_261] : memref<4x32x32xbf16, #tpu.memory_space<vmem>>, vector<1x32x32xbf16>
    %858 = vector.shape_cast %857 : vector<1x32x32xbf16> to vector<32x32xbf16>
    %cst_262 = arith.constant dense<0.000000e+00> : vector<34x32xf32>
    %859 = tpu.matmul %856, %858, %cst_262 {dimension_numbers = #tpu.dot_dimension_numbers<[1], [0], [0], [1], [0, 0, 1, 1], [], []>} : vector<34x32xbf16>, vector<32x32xbf16>, vector<34x32xf32> -> vector<34x32xf32>
    %860 = arith.addf %748, %859 : vector<34x32xf32>
    %861 = vector.broadcast %754 : vector<1x32xf32> to vector<34x32xf32>
    %862 = arith.addf %860, %861 : vector<34x32xf32>
    %cst_263 = arith.constant dense<0.000000e+00> : vector<34xf32>
    %863 = vector.multi_reduction <add>, %862, %cst_263 [1] : vector<34x32xf32> to vector<34xf32>
    %864 = vector.shape_cast %863 : vector<34xf32> to vector<34x1xf32>
    %cst_264 = arith.constant 3.200000e+01 : f32
    %865 = vector.broadcast %cst_264 : f32 to vector<34x1xf32>
    %866 = arith.divf %864, %865 : vector<34x1xf32>
    %867 = vector.broadcast %866 : vector<34x1xf32> to vector<34x32xf32>
    %868 = arith.subf %862, %867 : vector<34x32xf32>
    %869 = arith.mulf %868, %868 : vector<34x32xf32>
    %cst_265 = arith.constant dense<0.000000e+00> : vector<34xf32>
    %870 = vector.multi_reduction <add>, %869, %cst_265 [1] : vector<34x32xf32> to vector<34xf32>
    %871 = vector.shape_cast %870 : vector<34xf32> to vector<34x1xf32>
    %cst_266 = arith.constant 3.200000e+01 : f32
    %872 = vector.broadcast %cst_266 : f32 to vector<34x1xf32>
    %873 = arith.divf %871, %872 : vector<34x1xf32>
    %cst_267 = arith.constant 9.99999974E-6 : f32
    %874 = vector.broadcast %cst_267 : f32 to vector<34x1xf32>
    %875 = arith.addf %873, %874 : vector<34x1xf32>
    %876 = math.rsqrt %875 : vector<34x1xf32>
    %877 = vector.broadcast %876 : vector<34x1xf32> to vector<34x32xf32>
    %878 = arith.mulf %868, %877 : vector<34x32xf32>
    %879 = vector.broadcast %755 : vector<1x32xf32> to vector<34x32xf32>
    %880 = arith.mulf %878, %879 : vector<34x32xf32>
    %881 = vector.broadcast %756 : vector<1x32xf32> to vector<34x32xf32>
    %882 = arith.addf %880, %881 : vector<34x32xf32>
    %883 = arith.truncf %882 : vector<34x32xf32> to vector<34x32xbf16>
    %c3_268 = arith.constant 3 : index
    %c0_269 = arith.constant 0 : index
    %c0_270 = arith.constant 0 : index
    %884 = vector.load %arg6[%c3_268, %c0_269, %c0_270] : memref<4x32x128xbf16, #tpu.memory_space<vmem>>, vector<1x32x128xbf16>
    %885 = vector.shape_cast %884 : vector<1x32x128xbf16> to vector<32x128xbf16>
    %cst_271 = arith.constant dense<0.000000e+00> : vector<34x128xf32>
    %886 = tpu.matmul %883, %885, %cst_271 {dimension_numbers = #tpu.dot_dimension_numbers<[1], [0], [0], [1], [0, 0, 1, 1], [], []>} : vector<34x32xbf16>, vector<32x128xbf16>, vector<34x128xf32> -> vector<34x128xf32>
    %887 = vector.broadcast %757 : vector<1x128xf32> to vector<34x128xf32>
    %888 = arith.addf %886, %887 : vector<34x128xf32>
    %cst_272 = arith.constant 5.000000e-01 : f32
    %889 = vector.broadcast %cst_272 : f32 to vector<34x128xf32>
    %890 = arith.mulf %889, %888 : vector<34x128xf32>
    %cst_273 = arith.constant 0.707106769 : f32
    %891 = vector.broadcast %cst_273 : f32 to vector<34x128xf32>
    %892 = arith.mulf %888, %891 : vector<34x128xf32>
    %893 = math.absf %892 : vector<34x128xf32>
    %cst_274 = arith.constant 0.327591091 : f32
    %894 = vector.broadcast %cst_274 : f32 to vector<34x128xf32>
    %895 = arith.mulf %894, %893 : vector<34x128xf32>
    %cst_275 = arith.constant 1.000000e+00 : f32
    %896 = vector.broadcast %cst_275 : f32 to vector<34x128xf32>
    %897 = arith.addf %896, %895 : vector<34x128xf32>
    %cst_276 = arith.constant 1.000000e+00 : f32
    %898 = vector.broadcast %cst_276 : f32 to vector<34x128xf32>
    %899 = arith.divf %898, %897 : vector<34x128xf32>
    %cst_277 = arith.constant 1.06140542 : f32
    %900 = vector.broadcast %cst_277 : f32 to vector<34x128xf32>
    %901 = arith.mulf %900, %899 : vector<34x128xf32>
    %cst_278 = arith.constant -1.45315206 : f32
    %902 = vector.broadcast %cst_278 : f32 to vector<34x128xf32>
    %903 = arith.addf %901, %902 : vector<34x128xf32>
    %904 = arith.mulf %903, %899 : vector<34x128xf32>
    %cst_279 = arith.constant 1.42141378 : f32
    %905 = vector.broadcast %cst_279 : f32 to vector<34x128xf32>
    %906 = arith.addf %904, %905 : vector<34x128xf32>
    %907 = arith.mulf %906, %899 : vector<34x128xf32>
    %cst_280 = arith.constant -0.284496725 : f32
    %908 = vector.broadcast %cst_280 : f32 to vector<34x128xf32>
    %909 = arith.addf %907, %908 : vector<34x128xf32>
    %910 = arith.mulf %909, %899 : vector<34x128xf32>
    %cst_281 = arith.constant 0.254829586 : f32
    %911 = vector.broadcast %cst_281 : f32 to vector<34x128xf32>
    %912 = arith.addf %910, %911 : vector<34x128xf32>
    %913 = arith.mulf %912, %899 : vector<34x128xf32>
    %914 = arith.mulf %893, %893 : vector<34x128xf32>
    %cst_282 = arith.constant 0.000000e+00 : f32
    %915 = vector.broadcast %cst_282 : f32 to vector<34x128xf32>
    %916 = arith.subf %915, %914 : vector<34x128xf32>
    %917 = math.exp %916 : vector<34x128xf32>
    %918 = arith.mulf %913, %917 : vector<34x128xf32>
    %cst_283 = arith.constant 1.000000e+00 : f32
    %919 = vector.broadcast %cst_283 : f32 to vector<34x128xf32>
    %920 = arith.subf %919, %918 : vector<34x128xf32>
    %cst_284 = arith.constant 0.000000e+00 : f32
    %921 = vector.broadcast %cst_284 : f32 to vector<34x128xf32>
    %922 = arith.cmpf oge, %892, %921 : vector<34x128xf32>
    %cst_285 = arith.constant 0.000000e+00 : f32
    %923 = vector.broadcast %cst_285 : f32 to vector<34x128xf32>
    %924 = arith.subf %923, %920 : vector<34x128xf32>
    %925 = arith.select %922, %920, %924 : vector<34x128xi1>, vector<34x128xf32>
    %cst_286 = arith.constant 1.000000e+00 : f32
    %926 = vector.broadcast %cst_286 : f32 to vector<34x128xf32>
    %927 = arith.addf %926, %925 : vector<34x128xf32>
    %928 = arith.mulf %890, %927 : vector<34x128xf32>
    %929 = arith.truncf %928 : vector<34x128xf32> to vector<34x128xbf16>
    %c3_287 = arith.constant 3 : index
    %c0_288 = arith.constant 0 : index
    %c0_289 = arith.constant 0 : index
    %930 = vector.load %arg7[%c3_287, %c0_288, %c0_289] : memref<4x128x32xbf16, #tpu.memory_space<vmem>>, vector<1x128x32xbf16>
    %931 = vector.shape_cast %930 : vector<1x128x32xbf16> to vector<128x32xbf16>
    %cst_290 = arith.constant dense<0.000000e+00> : vector<34x32xf32>
    %932 = tpu.matmul %929, %931, %cst_290 {dimension_numbers = #tpu.dot_dimension_numbers<[1], [0], [0], [1], [0, 0, 1, 1], [], []>} : vector<34x128xbf16>, vector<128x32xbf16>, vector<34x32xf32> -> vector<34x32xf32>
    %933 = vector.broadcast %758 : vector<1x32xf32> to vector<34x32xf32>
    %934 = arith.addf %932, %933 : vector<34x32xf32>
    %935 = arith.addf %862, %934 : vector<34x32xf32>
    %936 = tpu.concatenate %254, %501, %748, %935 in 1 : vector<34x32xf32>, vector<34x32xf32>, vector<34x32xf32>, vector<34x32xf32> -> vector<34x128xf32>
    %c0_291 = arith.constant 0 : index
    %c0_292 = arith.constant 0 : index
    %c0_293 = arith.constant 0 : index
    %937 = vector.load %arg9[%c0_291, %c0_292, %c0_293] : memref<1x34x128xf32, #tpu.memory_space<vmem>>, vector<1x34x128xf32>
    %938 = vector.shape_cast %937 : vector<1x34x128xf32> to vector<34x128xf32>
    %939 = vector.shape_cast %936 : vector<34x128xf32> to vector<1x34x128xf32>
    tpu.vector_store %arg9[%c0_291, %c0_292, %c0_293], %939 {strides = array<i32>} : memref<1x34x128xf32, #tpu.memory_space<vmem>>, vector<1x34x128xf32>,
    return
  }
  func.func @transform_0(%arg0: i32) -> (i32, i32, i32) {
    %c0_i32 = arith.constant 0 : i32
    %c0_i32_0 = arith.constant 0 : i32
    %c0_i32_1 = arith.constant 0 : i32
    return %arg0, %c0_i32, %c0_i32_0 : i32, i32, i32
  }
  func.func @transform_1(%arg0: i32) -> (i32, i32) {
    %c0_i32 = arith.constant 0 : i32
    %c0_i32_0 = arith.constant 0 : i32
    %c0_i32_1 = arith.constant 0 : i32
    return %c0_i32, %c0_i32_0 : i32, i32
  }
  func.func @transform_2(%arg0: i32) -> (i32, i32) {
    %c0_i32 = arith.constant 0 : i32
    %c0_i32_0 = arith.constant 0 : i32
    %c0_i32_1 = arith.constant 0 : i32
    return %c0_i32, %c0_i32_0 : i32, i32
  }
  func.func @transform_3(%arg0: i32) -> (i32, i32, i32) {
    %c0_i32 = arith.constant 0 : i32
    %c0_i32_0 = arith.constant 0 : i32
    %c0_i32_1 = arith.constant 0 : i32
    %c0_i32_2 = arith.constant 0 : i32
    return %c0_i32, %c0_i32_0, %c0_i32_1 : i32, i32, i32
  }
  func.func @transform_4(%arg0: i32) -> (i32, i32, i32) {
    %c0_i32 = arith.constant 0 : i32
    %c0_i32_0 = arith.constant 0 : i32
    %c0_i32_1 = arith.constant 0 : i32
    %c0_i32_2 = arith.constant 0 : i32
    return %c0_i32, %c0_i32_0, %c0_i32_1 : i32, i32, i32
  }
  func.func @transform_5(%arg0: i32) -> (i32, i32, i32) {
    %c0_i32 = arith.constant 0 : i32
    %c0_i32_0 = arith.constant 0 : i32
    %c0_i32_1 = arith.constant 0 : i32
    %c0_i32_2 = arith.constant 0 : i32
    return %c0_i32, %c0_i32_0, %c0_i32_1 : i32, i32, i32
  }
  func.func @transform_6(%arg0: i32) -> (i32, i32, i32) {
    %c0_i32 = arith.constant 0 : i32
    %c0_i32_0 = arith.constant 0 : i32
    %c0_i32_1 = arith.constant 0 : i32
    %c0_i32_2 = arith.constant 0 : i32
    return %c0_i32, %c0_i32_0, %c0_i32_1 : i32, i32, i32
  }
  func.func @transform_7(%arg0: i32) -> (i32, i32, i32) {
    %c0_i32 = arith.constant 0 : i32
    %c0_i32_0 = arith.constant 0 : i32
    %c0_i32_1 = arith.constant 0 : i32
    %c0_i32_2 = arith.constant 0 : i32
    return %c0_i32, %c0_i32_0, %c0_i32_1 : i32, i32, i32
  }
  func.func @transform_8(%arg0: i32) -> (i32, i32, i32) {
    %c0_i32 = arith.constant 0 : i32
    %c0_i32_0 = arith.constant 0 : i32
    %c0_i32_1 = arith.constant 0 : i32
    return %arg0, %c0_i32, %c0_i32_0 : i32, i32, i32
  }
}

</mosaic_0001>

<bundles_post_ra>
// kernel: tinymim_forward.1
= control target key start
LH: loop header
LB: loop body
LE: loop exit
PB: predicated region body
PF: predicated region fallthrough
CT: control target
= control target key end

     0   :  { %v16290_v0 = vmov 0.0   ;;  %vm12784_vm0 = vmmov 0   ;;  %vm78_vm1 = vcmask 392192   ;;  %vm145_vm2 = vcmask 261120   ;;  %s12785_s30 = smov 96   ;;  %s12786_s9 = smov 64   ;;  %s16281_s1 = inlined_call_operand.vmem [shape: bf16[48,32], index: 1, kind: input, shape index: {}]   ;;  %s16282_s0 = inlined_call_operand.vmem [shape: f32[1,34,48], index: 0, kind: input, shape index: {}]   ;;  %s16283_s2 = inlined_call_operand.vmem [shape: f32[17,32], index: 2, kind: input, shape index: {}]   ;;  %s16284_s3 = inlined_call_operand.vmem [shape: bf16[4,32,96], index: 3, kind: input, shape index: {}]   ;;  %s16285_s7 = inlined_call_operand.vmem [shape: f32[4,8,128], index: 7, kind: input, shape index: {}]   ;;  %s16286_s4 = inlined_call_operand.vmem [shape: bf16[4,32,32], index: 4, kind: input, shape index: {}]   ;;  %s16287_s5 = inlined_call_operand.vmem [shape: bf16[4,32,128], index: 5, kind: input, shape index: {}]   ;;  %s16288_s6 = inlined_call_operand.vmem [shape: bf16[4,128,32], index: 6, kind: input, shape index: {}]   ;;  %s16289_s8 = inlined_call_operand.vmem [shape: f32[1,34,128], index: 8, kind: output, shape index: {}]  }
   0x1   :  { %10945 = vmatprep.subr.bf16.mxu0 %v16290_v0  ;;  %v12224_v1 = vld [vmem:[%s16281_s1 + $0x10] sm:$0xff]   ;;  %10951 = vmatprep.mubr.msk.bf16.mxu0 %vm12784_vm0, %v16290_v0  ;;  %v12225_v2 = vld [vmem:[%s16281_s1 + $0x8] sm:$0xff]   ;;  %v12226_v3 = vld [vmem:[%s16281_s1] sm:$0xff]   ;;  %vm50_vm3 = vcmask 1040384   ;;  %vm158_vm4 = vcmask 254976   ;;  %vm328_vm5 = vcmask 64512  }
   0x2   :  { %10963 = vmatprep.subr.bf16.mxu1 %v16290_v0  ;;  %10967 = vmatprep.mubr.msk.bf16.mxu1 %vm12784_vm0, %v16290_v0  ;;  %v30_v4 = vld [vmem:[%s16282_s0] sm:$0xff]  ;;  %v31_v5 = vld [vmem:[%s16282_s0 + $0x8] sm:$0xff]  ;;  %v32_v7 = vld [vmem:[%s16282_s0 + $0x10] sm:$0xff]  ;;  %vm421_vm6 = vcmask 138240   ;;  %vm428_vm7 = vcmask 131072   ;;  %s12787_s10 = smov 88  }
   0x3   :  { %10946 = vmatpush3.bf16.msra.mxu0 %v12224_v1  ;;  %v35_v6 = vpack.c.bf16 %v31_v5, %v30_v4  ;;  %v33_v8 = vld [vmem:[%s16282_s0 + $0x18] sm:$0xff]  ;;  %v34_v10 = vld [vmem:[%s16282_s0 + $0x20] sm:$0x3]  ;;  %v45_v17 = vld [vmem:[%s16283_s2 + $0x8] sm:$0xff]  ;;  %s12788_s11 = smov 120   ;;  %s12789_s12 = smov 112  }
   0x4   :  { %10947 = vmatprep.subr.bf16.mxu0 %v16290_v0  ;;  %v36_v9 = vpack.c.bf16 %v33_v8, %v32_v7  ;;  %v37_v11 = vpack.c.bf16 %v34_v10, %v34_v10  ;;  %v44_v12 = vld [vmem:[%s16283_s2] sm:$0xff]  ;;  %v46_v19 = vld [vmem:[%s16283_s2 + $0x10] sm:$0x1]  ;;  %v52_v22 = vrot.slane %v45_v17, 7  ;;  %v12227_v63 = vld [vmem:[%s16284_s3 + $0x8] sm:$0xff]   ;;  %v213_v8 = vlaneseq  ;;  %s12790_s13 = smov 104  }
   0x5   :  { %v51_v15 = vrot.slane %v44_v12, 7  ;;  %v54_v35 = vrot.slane %v46_v19, 7  ;;  %v12228_v1 = vld [vmem:[%s16284_s3] sm:$0xff]   ;;  %10964 = vmatpush3.bf16.msra.mxu1 %v12227_v63  ;;  %vm1312_vm8 = vcmask 1046528   ;;  %s12791_s14 = smov 80   ;;  %s12792_s1 = smov 72  }
   0x6   :  { %10965 = vmatprep.subr.bf16.mxu1 %v16290_v0  ;;  %s12793_s15 = smov 56   ;;  %s12794_s16 = smov 48   ;;  %vm1302_vm9 = vcmask 130048   ;;  %vm1306_vm10 = vcmask 195584  }
   0x7   :  { %10948 = vmatpush3.bf16.msra.mxu0 %v12225_v2  ;;  %v59_v24 = vsel %vm50_vm3, %v46_v19, %v51_v15  ;;  %v53_v29 = vsel %vm50_vm3, %v51_v15, %v52_v22  ;;  %v55_v36 = vsel %vm50_vm3, %v52_v22, %v54_v35  ;;  %v144_v22 = vld [vmem:[%s16285_s7] sm:$0xff]  ;;  %s12795_s17 = smov 40   ;;  %s12796_s18 = smov 8  }
   0x8   :  { %10949 = vmatprep.subr.bf16.mxu0 %v16290_v0  ;;  %s12797_s21 = smov 16   ;;  %s12798_s0 = smov 24  }
   0x9   :  { %10966 = vmatpush3.bf16.msra.mxu1 %v12228_v1 }
   0xa   :  { %10979 = vmatprep.subr.mxu1 %v16290_v0 }
   0xb   :  { %10950 = vmatpush3.bf16.msra.mxu0 %v12226_v3 }
   0xc   :  { %11024 = vmatprep.subr.mxu0 %v16290_v0 }
   0xe   :  { %10952 = vmatmul.mubr.msk.bf16.vlgmr.msra.gmra.mxu0 %vm78_vm1, %v35_v6 }
   0xf   :  { %10955 = vmatprep.mubr.msk.bf16.mxu0 %vm12784_vm0, %v16290_v0 }
  0x16   :  { %10956 = vmatmul.mubr.msk.bf16.gmra.mxu0 %vm78_vm1, %v36_v9 }
  0x17   :  { %10959 = vmatprep.mubr.msk.bf16.mxu0 %vm12784_vm0, %v16290_v0 }
  0x1e   :  { %10960 = vmatmul.mubr.msk.bf16.gmra.mxu0 %vm78_vm1, %v37_v11 }
  0x1f   :  { %11030 = vmatprep.mubr.msk.f32.mxu0 %vm12784_vm0, %v16290_v0 }
  0xce   :  { %v122_v13 = vpop.f32.mrf.mxu0 }
  0xcf   :  { %v12887_v14 = vadd.f32 %v122_v13, %v44_v12  ;;  %v12932_v12 = vshrl.u32 %v213_v8, 7 }
  0xd0   :  { %v10953_v16 = vpop.f32.mrf.mxu0 }
  0xd1   :  { %v146_v18 = vsel %vm145_vm2, %v12887_v14, 0.0 }
  0xd2   :  { %147 = vadd.xlane.f32.xlu0 %v146_v18  ;;  %v125_v20 = vpop.f32.mrf.mxu0 }
  0xd3   :  { %v12897_v21 = vadd.f32 %v125_v20, %v45_v17  ;;  %v12936_v20 = vsub.s32 0, %v12932_v12 }
  0xd4   :  { %v10954_v23 = vpop.f32.mrf.mxu0 }
  0xd5   :  { %v149_v25 = vsel %vm145_vm2, %v12897_v21, 0.0  ;;  %16302 = vst [vmem:[#allocation2_spill] sm:$0xff] %v12936_v20 }
  0xd6   :  { %150 = vadd.xlane.f32.xlu0 %v149_v25  ;;  %v130_v26 = vpop.f32.mrf.mxu0 }
  0xd7   :  { %v12902_v27 = vadd.f32 %v130_v26, %v59_v24 }
  0xd8   :  { %v10957_v28 = vpop.f32.mrf.mxu0 }
  0xd9   :  { %v152_v30 = vsel %vm145_vm2, %v12902_v27, 0.0  ;;  %v216_v28 = vrot.slane %v144_v22, %v12936_v20 }
  0xda   :  { %153 = vadd.xlane.f32.xlu1 %v152_v30  ;;  %v133_v31 = vpop.f32.mrf.mxu0 }
  0xdb   :  { %v12907_v32 = vadd.f32 %v133_v31, %v53_v29  ;;  %v12944_v29 = vsub.s32 1, %v12932_v12 }
  0xdc   :  { %v10958_v33 = vpop.f32.mrf.mxu0 }
  0xdd   :  { %v155_v34 = vsel %vm145_vm2, %v12907_v32, 0.0  ;;  %16303 = vst [vmem:[#allocation3_spill] sm:$0xff] %v12944_v29 }
  0xde   :  { %156 = vadd.xlane.f32.xlu1 %v155_v34  ;;  %v138_v37 = vpop.f32.mrf.mxu0  ;;  %v225_v34 = vrot.slane %v144_v22, %v12944_v29 }
  0xdf   :  { %v12912_v38 = vadd.f32 %v138_v37, %v55_v36 }
  0xe0   :  { %v10961_v39 = vpop.f32.mrf.mxu0 }
  0xe1   :  { %v159_v61 = vsel %vm158_vm4, %v12912_v38, 0.0 }
  0xe2   :  { %v141_v40 = vpop.f32.mrf.mxu0 }
  0xe4   :  { %v10962_v41 = vpop.f32.mrf.mxu0 }
 0x15b   :  { %v148_v42 = vpop.xlane.xlu0 %147 }
 0x15c   :  { %v163_v43 = vmul.f32 0.03125, %v148_v42 }
 0x15e   :  { %v168_v44 = vsub.f32 %v12887_v14, %v163_v43 }
 0x15f   :  { %v151_v45 = vpop.xlane.xlu0 %150 }
 0x160   :  { %v164_v46 = vmul.f32 0.03125, %v151_v45  ;;  %v173_v47 = vmul.f32 %v168_v44, %v168_v44 }
 0x162   :  { %v169_v48 = vsub.f32 %v12897_v21, %v164_v46  ;;  %v178_v49 = vsel %vm145_vm2, %v173_v47, 0.0 }
 0x163   :  { %179 = vadd.xlane.f32.xlu0 %v178_v49  ;;  %v154_v50 = vpop.xlane.xlu1 %153 }
 0x164   :  { %v165_v51 = vmul.f32 0.03125, %v154_v50  ;;  %v174_v52 = vmul.f32 %v169_v48, %v169_v48 }
 0x166   :  { %v170_v53 = vsub.f32 %v12902_v27, %v165_v51  ;;  %v181_v54 = vsel %vm145_vm2, %v174_v52, 0.0 }
 0x167   :  { %182 = vadd.xlane.f32.xlu1 %v181_v54  ;;  %v157_v55 = vpop.xlane.xlu1 %156 }
 0x168   :  { %v166_v56 = vmul.f32 0.03125, %v157_v55  ;;  %v175_v57 = vmul.f32 %v170_v53, %v170_v53 }
 0x16a   :  { %v171_v58 = vsub.f32 %v12907_v32, %v166_v56  ;;  %v184_v59 = vsel %vm145_vm2, %v175_v57, 0.0  ;;  %v12957_v57 = vsub.s32 2, %v12932_v12 }
 0x16b   :  { %185 = vadd.xlane.f32.xlu0 %v184_v59 }
 0x16c   :  { %v176_v60 = vmul.f32 %v171_v58, %v171_v58  ;;  %16304 = vst [vmem:[#allocation4_spill] sm:$0xff] %v12957_v57 }
 0x16e   :  { %v187_v62 = vsel %vm145_vm2, %v176_v60, 0.0  ;;  %v12960_v60 = vrot.slane %v144_v22, %v12957_v57 }
 0x16f   :  { %188 = vadd.xlane.f32.xlu1 %v187_v62  ;;  %160 = vadd.xlane.f32.xlu0 %v159_v61 }
 0x1ec   :  { %v180_v2 = vpop.xlane.xlu0 %179 }
 0x1ed   :  { %v193_v3 = vmul.f32 0.03125, %v180_v2 }
 0x1ef   :  { %v198_v4 = vadd.f32 1e-05, %v193_v3 }
 0x1f0   :  { %v183_v5 = vpop.xlane.xlu1 %182 }
 0x1f1   :  { %12283 = vrsqrt.f32 %v198_v4  ;;  %v194_v6 = vmul.f32 0.03125, %v183_v5 }
 0x1f3   :  { %v199_v7 = vadd.f32 1e-05, %v194_v6 }
 0x1f4   :  { %v186_v9 = vpop.xlane.xlu0 %185 }
 0x1f5   :  { %12285 = vrsqrt.f32 %v199_v7  ;;  %v195_v10 = vmul.f32 0.03125, %v186_v9 }
 0x1f7   :  { %v200_v11 = vadd.f32 1e-05, %v195_v10 }
 0x1f8   :  { %v189_v13 = vpop.xlane.xlu1 %188  ;;  %v161_v15 = vpop.xlane.xlu0 %160 }
 0x1f9   :  { %12287 = vrsqrt.f32 %v200_v11  ;;  %v196_v16 = vmul.f32 0.03125, %v189_v13  ;;  %v167_v17 = vmul.f32 0.03125, %v161_v15 }
 0x1fb   :  { %v201_v18 = vadd.f32 1e-05, %v196_v16  ;;  %v172_v19 = vsub.f32 %v12912_v38, %v167_v17 }
 0x1fd   :  { %12289 = vrsqrt.f32 %v201_v18  ;;  %v177_v23 = vmul.f32 %v172_v19, %v172_v19 }
 0x1fe   :  { %v12284_v24 = vpop.eup %12283 }
 0x1ff   :  { %v190_v25 = vsel %vm158_vm4, %v177_v23, 0.0  ;;  %v208_v26 = vmul.f32 %v12284_v24, %v168_v44 }
 0x200   :  { %191 = vadd.xlane.f32.xlu1 %v190_v25 }
 0x201   :  { %v217_v33 = vmul.f32 %v216_v28, %v208_v26 }
 0x202   :  { %v12286_v30 = vpop.eup %12285 }
 0x203   :  { %v209_v31 = vmul.f32 %v12286_v30, %v169_v48  ;;  %v226_v37 = vadd.f32 %v225_v34, %v217_v33 }
 0x205   :  { %v218_v35 = vmul.f32 %v216_v28, %v209_v31 }
 0x206   :  { %v12288_v36 = vpop.eup %12287 }
 0x207   :  { %v227_v39 = vadd.f32 %v225_v34, %v218_v35  ;;  %v210_v40 = vmul.f32 %v12288_v36, %v170_v53 }
 0x209   :  { %v231_v41 = vpack.c.bf16 %v227_v39, %v226_v37  ;;  %v219_v44 = vmul.f32 %v216_v28, %v210_v40 }
 0x20a   :  { %v12290_v42 = vpop.eup %12289 }
 0x20b   :  { %10968 = vmatmul.mubr.msk.bf16.vlgmr.msra.gmra.mxu1 %vm145_vm2, %v231_v41  ;;  %v211_v43 = vmul.f32 %v12290_v42, %v171_v58  ;;  %v228_v46 = vadd.f32 %v225_v34, %v219_v44 }
 0x20c   :  { %10971 = vmatprep.mubr.msk.bf16.mxu1 %vm12784_vm0, %v16290_v0 }
 0x20d   :  { %v220_v45 = vmul.f32 %v216_v28, %v211_v43 }
 0x20f   :  { %v229_v47 = vadd.f32 %v225_v34, %v220_v45 }
 0x211   :  { %v232_v48 = vpack.c.bf16 %v229_v47, %v228_v46 }
 0x213   :  { %10972 = vmatmul.mubr.msk.bf16.gmra.mxu1 %vm145_vm2, %v232_v48 }
 0x214   :  { %10975 = vmatprep.mubr.msk.bf16.mxu1 %vm12784_vm0, %v16290_v0 }
 0x289   :  { %v192_v49 = vpop.xlane.xlu1 %191 }
 0x28a   :  { %v197_v50 = vmul.f32 0.03125, %v192_v49 }
 0x28c   :  { %v202_v51 = vadd.f32 1e-05, %v197_v50 }
 0x28e   :  { %12291 = vrsqrt.f32 %v202_v51 }
 0x29b   :  { %v12292_v52 = vpop.eup %12291 }
 0x29c   :  { %v212_v53 = vmul.f32 %v12292_v52, %v172_v19 }
 0x29e   :  { %v221_v54 = vmul.f32 %v216_v28, %v212_v53 }
 0x2a0   :  { %v230_v55 = vadd.f32 %v225_v34, %v221_v54 }
 0x2a2   :  { %v233_v56 = vpack.c.bf16 %v230_v55, %v230_v55 }
 0x2a4   :  { %10976 = vmatmul.mubr.msk.bf16.gmra.mxu1 %vm145_vm2, %v233_v56 }
 0x2a5   :  { %10985 = vmatprep.mubr.msk.f32.mxu1 %vm12784_vm0, %v16290_v0 }
 0x2cb   :  { %v297_v58 = vpop.f32.mrf.mxu1 }
 0x2cc   :  { %v12968_v2 = vadd.f32 %v297_v58, %v12960_v60 }
 0x2cd   :  { %v10969_v59 = vpop.f32.mrf.mxu1 }
 0x2cf   :  { %v300_v61 = vpop.f32.mrf.mxu1 }
 0x2d0   :  { %v12963_v62 = vadd.f32 %v300_v61, %v12960_v60 }
 0x2d1   :  { %v10970_v63 = vpop.f32.mrf.mxu1 }
 0x2d2   :  { %324 = vrot.lane.b32.xlu1 %v12963_v62, %s12785_s30 }
 0x2d3   :  { %v305_v1 = vpop.f32.mrf.mxu1 }
 0x2d4   :  { %v12971_v3 = vadd.f32 %v305_v1, %v12960_v60 }
 0x2d5   :  { %v10973_v4 = vpop.f32.mrf.mxu1 }
 0x2d6   :  { %326 = vrot.lane.b32.xlu0 %v12971_v3, %s12785_s30  ;;  %322 = vrot.lane.b32.xlu1 %v12968_v2, %s12785_s30  ;;  %v1313_v51 = vrot.slane %v12971_v3, 1 }
 0x2d7   :  { %v12977_v5 = vpop.f32.mrf.mxu1 }
 0x2d8   :  { %v309_v47 = vadd.f32 %v12977_v5, %v12960_v60 }
 0x2d9   :  { %v10974_v6 = vpop.f32.mrf.mxu1 }
 0x2da   :  { %v1314_v50 = vrot.slane %v309_v47, 1 }
 0x2dc   :  { %v13051_v52 = vsel %vm1312_vm8, %v1313_v51, %v1314_v50 }
 0x344   :  { %v325_v8 = vpop.permute.xlu1 %324 }
 0x348   :  { %v327_v7 = vpop.permute.xlu0 %326  ;;  %v323_v9 = vpop.permute.xlu1 %322 }
 0x349   :  { %10980 = vmatpush3.xpose.msk.msra.mxu1 %vm328_vm5, %v327_v7 }
 0x34a   :  { %10981 = vmatprep.subr.mxu1 %v16290_v0 }
 0x34d   :  { %10982 = vmatpush3.xpose.msk.msra.mxu1 %vm328_vm5, %v325_v8 }
 0x34e   :  { %10983 = vmatprep.subr.mxu1 %v16290_v0 }
 0x351   :  { %10984 = vmatpush3.xpose.msk.msra.mxu1 %vm328_vm5, %v323_v9 }
 0x352   :  { %10994 = vmatprep.subr.mxu1 %v16290_v0 }
 0x354   :  { %10986 = vmatmul.mubr.msk.f32.vlgmr.msra.gmra.mxu1 %vm328_vm5, %v12968_v2 }
 0x355   :  { %10988 = vmatprep.mubr.msk.f32.mxu1 %vm12784_vm0, %v16290_v0 }
 0x358   :  { %10989 = vmatmul.mubr.msk.f32.gmra.mxu1 %vm328_vm5, %v12963_v62 }
 0x359   :  { %10991 = vmatprep.mubr.msk.f32.mxu1 %vm12784_vm0, %v16290_v0 }
 0x35c   :  { %10992 = vmatmul.mubr.msk.f32.gmra.mxu1 %vm328_vm5, %v12971_v3 }
 0x35d   :  { %11000 = vmatprep.mubr.msk.f32.mxu1 %vm12784_vm0, %v16290_v0 }
 0x364   :  { %v313_v10 = vpop.f32.mrf.mxu1 }
 0x365   :  { %v314_v46 = vadd.f32 %v313_v10, %v12960_v60 }
 0x366   :  { %v10977_v11 = vpop.f32.mrf.mxu1 }
 0x367   :  { %v13045_v49 = vrot.slane %v314_v46, 1 }
 0x368   :  { %v316_v13 = vpop.f32.mrf.mxu1 }
 0x369   :  { %v13059_v53 = vsel %vm1312_vm8, %v1314_v50, %v13045_v49 }
 0x36a   :  { %v10978_v15 = vpop.f32.mrf.mxu1 }
 0x414   :  { %v407_v16 = vpop.f32.mrf.mxu1 }
 0x415   :  { %v422_v17 = vsel %vm421_vm6, %v407_v16, -inf }
 0x416   :  { %423 = vmax.xlane.f32.xlu1 %v422_v17  ;;  %v10987_v18 = vpop.f32.mrf.mxu1 }
 0x418   :  { %v412_v19 = vpop.f32.mrf.mxu1 }
 0x419   :  { %v425_v22 = vsel %vm421_vm6, %v412_v19, -inf }
 0x41a   :  { %426 = vmax.xlane.f32.xlu0 %v425_v22  ;;  %v10990_v23 = vpop.f32.mrf.mxu1 }
 0x41c   :  { %v417_v24 = vpop.f32.mrf.mxu1 }
 0x41d   :  { %v429_v25 = vsel %vm428_vm7, %v417_v24, -inf }
 0x41e   :  { %430 = vmax.xlane.f32.xlu0 %v429_v25  ;;  %v10993_v26 = vpop.f32.mrf.mxu1 }
 0x427   :  { %460 = vrot.lane.b32.xlu1 %v12971_v3, %s12786_s9 }
 0x42b   :  { %456 = vrot.lane.b32.xlu1 %v12968_v2, %s12786_s9 }
 0x42f   :  { %565 = vrot.lane.b32.xlu1 %v12971_v3, %s12787_s10 }
 0x433   :  { %563 = vrot.lane.b32.xlu1 %v12963_v62, %s12787_s10 }
 0x49f   :  { %v424_v28 = vpop.xlane.xlu1 %423 }
 0x4a0   :  { %v432_v30 = vsub.f32 %v407_v16, %v424_v28 }
 0x4a2   :  { %v435_v31 = vmul.f32 1.442695, %v432_v30 }
 0x4a3   :  { %v461_v33 = vpop.permute.xlu1 %460  ;;  %v427_v34 = vpop.xlane.xlu0 %426 }
 0x4a4   :  { %12293 = vpow2.f32 %v435_v31  ;;  %v433_v35 = vsub.f32 %v412_v19, %v427_v34  ;;  %10995 = vmatpush3.msk.msra.mxu1 %vm50_vm3, %v461_v33 }
 0x4a5   :  { %10996 = vmatprep.subr.mxu1 %v16290_v0 }
 0x4a6   :  { %v437_v36 = vmul.f32 1.442695, %v433_v35 }
 0x4a7   :  { %v431_v42 = vpop.xlane.xlu0 %430  ;;  %v457_v54 = vpop.permute.xlu1 %456 }
 0x4a8   :  { %12295 = vpow2.f32 %v437_v36  ;;  %v434_v43 = vsub.f32 %v417_v24, %v431_v42 }
 0x4aa   :  { %v439_v44 = vmul.f32 1.442695, %v434_v43 }
 0x4ab   :  { %v566_v55 = vpop.permute.xlu1 %565 }
 0x4ac   :  { %12297 = vpow2.f32 %v439_v44 }
 0x4af   :  { %v564_v56 = vpop.permute.xlu1 %563 }
 0x4b1   :  { %v13010_v37 = vpop.eup %12293 }
 0x4b2   :  { %v441_v39 = vsel %vm421_vm6, %v13010_v37, 0.0 }
 0x4b3   :  { %442 = vadd.xlane.f32.xlu0 %v441_v39 }
 0x4b5   :  { %v13014_v40 = vpop.eup %12295 }
 0x4b6   :  { %v444_v41 = vsel %vm421_vm6, %v13014_v40, 0.0 }
 0x4b7   :  { %445 = vadd.xlane.f32.xlu1 %v444_v41 }
 0x4b9   :  { %v13034_v45 = vpop.eup %12297 }
 0x4ba   :  { %v447_v48 = vsel %vm428_vm7, %v13034_v45, 0.0 }
 0x4c8   :  { %555 = vrot.lane.b32.xlu1 %v12968_v2, %s12788_s11 }
 0x4c9   :  { %458 = vrot.lane.b32.xlu0 %v12963_v62, %s12786_s9 }
 0x4cc   :  { %557 = vrot.lane.b32.xlu1 %v12963_v62, %s12788_s11 }
 0x4d0   :  { %559 = vrot.lane.b32.xlu1 %v12971_v3, %s12788_s11 }
 0x4d4   :  { %791 = vrot.lane.b32.xlu1 %v12968_v2, %s12789_s12 }
 0x4d8   :  { %793 = vrot.lane.b32.xlu1 %v12963_v62, %s12789_s12 }
 0x4dc   :  { %795 = vrot.lane.b32.xlu1 %v12971_v3, %s12789_s12 }
 0x4e0   :  { %1027 = vrot.lane.b32.xlu1 %v12968_v2, %s12790_s13 }
 0x4e4   :  { %1029 = vrot.lane.b32.xlu1 %v12963_v62, %s12790_s13 }
 0x4e8   :  { %1031 = vrot.lane.b32.xlu1 %v12971_v3, %s12790_s13  ;;  %448 = vadd.xlane.f32.xlu0 %v447_v48 }
 0x4ec   :  { %1558 = vrot.lane.b32.xlu1 %v13045_v49, %s12787_s10 }
 0x4f0   :  { %1554 = vrot.lane.b32.xlu1 %v13051_v52, %s12787_s10 }
 0x4f4   :  { %1794 = vrot.lane.b32.xlu1 %v13045_v49, %s12791_s14 }
 0x4f8   :  { %1792 = vrot.lane.b32.xlu1 %v13059_v53, %s12791_s14 }
 0x4fc   :  { %1790 = vrot.lane.b32.xlu1 %v13051_v52, %s12791_s14 }
 0x4fe   :  { %561 = vrot.lane.b32.xlu0 %v12968_v2, %s12787_s10 }
 0x500   :  { %2030 = vrot.lane.b32.xlu1 %v13045_v49, %s12792_s1 }
 0x502   :  { %801 = vrot.lane.b32.xlu0 %v12971_v3, %s12791_s14 }
 0x504   :  { %2028 = vrot.lane.b32.xlu1 %v13059_v53, %s12792_s1 }
 0x506   :  { %799 = vrot.lane.b32.xlu0 %v12963_v62, %s12791_s14 }
 0x508   :  { %2026 = vrot.lane.b32.xlu1 %v13051_v52, %s12792_s1 }
 0x50a   :  { %797 = vrot.lane.b32.xlu0 %v12968_v2, %s12791_s14 }
 0x50c   :  { %2022 = vrot.lane.b32.xlu1 %v13059_v53, %s12790_s13 }
 0x50e   :  { %1037 = vrot.lane.b32.xlu0 %v12971_v3, %s12792_s1 }
 0x510   :  { %696 = vrot.lane.b32.xlu1 %v12971_v3, %s12793_s15 }
 0x512   :  { %1035 = vrot.lane.b32.xlu0 %v12963_v62, %s12792_s1 }
 0x514   :  { %692 = vrot.lane.b32.xlu1 %v12968_v2, %s12793_s15 }
 0x516   :  { %1033 = vrot.lane.b32.xlu0 %v12968_v2, %s12792_s1 }
 0x518   :  { %932 = vrot.lane.b32.xlu1 %v12971_v3, %s12794_s16 }
 0x51a   :  { %1322 = vrot.lane.b32.xlu0 %v13045_v49, %s12785_s30 }
 0x51c   :  { %928 = vrot.lane.b32.xlu1 %v12968_v2, %s12794_s16 }
 0x51e   :  { %1320 = vrot.lane.b32.xlu0 %v13059_v53, %s12785_s30 }
 0x520   :  { %1166 = vrot.lane.b32.xlu1 %v12963_v62, %s12795_s17 }
 0x522   :  { %1318 = vrot.lane.b32.xlu0 %v13051_v52, %s12785_s30 }
 0x524   :  { %1164 = vrot.lane.b32.xlu1 %v12968_v2, %s12795_s17 }
 0x526   :  { %1556 = vrot.lane.b32.xlu0 %v13059_v53, %s12787_s10 }
 0x52a   :  { %1548 = vrot.lane.b32.xlu0 %v13051_v52, %s12788_s11 }
 0x52e   :  { %1550 = vrot.lane.b32.xlu0 %v13059_v53, %s12788_s11 }
 0x532   :  { %1552 = vrot.lane.b32.xlu0 %v13045_v49, %s12788_s11 }
 0x536   :  { %1784 = vrot.lane.b32.xlu0 %v13051_v52, %s12789_s12 }
 0x53a   :  { %1786 = vrot.lane.b32.xlu0 %v13059_v53, %s12789_s12 }
 0x53c   :  { %v443_v58 = vpop.xlane.xlu0 %442 }
 0x53d   :  { %12299 = vrcp.f32 %v443_v58 }
 0x53e   :  { %1788 = vrot.lane.b32.xlu0 %v13045_v49, %s12789_s12 }
 0x540   :  { %v446_v59 = vpop.xlane.xlu1 %445  ;;  %v459_v60 = vpop.permute.xlu0 %458 }
 0x541   :  { %12301 = vrcp.f32 %v446_v59  ;;  %10997 = vmatpush3.msra.mxu1 %v459_v60 }
 0x542   :  { %2020 = vrot.lane.b32.xlu0 %v13051_v52, %s12790_s13  ;;  %10998 = vmatprep.subr.mxu1 %v16290_v0 }
 0x543   :  { %10999 = vmatpush3.msra.mxu1 %v457_v54 }
 0x544   :  { %v556_v61 = vpop.permute.xlu1 %555  ;;  %11009 = vmatprep.subr.mxu1 %v16290_v0 }
 0x546   :  { %2024 = vrot.lane.b32.xlu0 %v13045_v49, %s12790_s13 }
 0x548   :  { %v558_v63 = vpop.permute.xlu1 %557 }
 0x54a   :  { %v12300_v1 = vpop.eup %12299  ;;  %694 = vrot.lane.b32.xlu0 %v12963_v62, %s12793_s15 }
 0x54b   :  { %v453_v2 = vmul.f32 %v12300_v1, %v13010_v37 }
 0x54c   :  { %v560_v4 = vpop.permute.xlu1 %559 }
 0x54d   :  { %11001 = vmatmul.mubr.msk.f32.vlgmr.msra.gmra.mxu1 %vm421_vm6, %v453_v2 }
 0x54e   :  { %v12302_v5 = vpop.eup %12301  ;;  %11010 = vmatpush3.xpose.msk.msra.mxu1 %vm328_vm5, %v566_v55  ;;  %930 = vrot.lane.b32.xlu0 %v12963_v62, %s12794_s16 }
 0x54f   :  { %11003 = vmatprep.mubr.msk.f32.mxu1 %vm12784_vm0, %v16290_v0  ;;  %11011 = vmatprep.subr.mxu1 %v16290_v0  ;;  %v454_v6 = vmul.f32 %v12302_v5, %v13014_v40 }
 0x550   :  { %v792_v7 = vpop.permute.xlu1 %791 }
 0x551   :  { %11004 = vmatmul.mubr.msk.f32.gmra.mxu1 %vm421_vm6, %v454_v6 }
 0x552   :  { %11012 = vmatpush3.xpose.msk.msra.mxu1 %vm328_vm5, %v564_v56  ;;  %1168 = vrot.lane.b32.xlu0 %v12971_v3, %s12795_s17 }
 0x553   :  { %11013 = vmatprep.subr.mxu1 %v16290_v0  ;;  %11006 = vmatprep.mubr.msk.f32.mxu1 %vm12784_vm0, %v16290_v0 }
 0x554   :  { %v794_v62 = vpop.permute.xlu1 %793 }
 0x556   :  { %1453 = vrot.lane.b32.xlu0 %v13045_v49, %s12786_s9 }
 0x558   :  { %v796_v8 = vpop.permute.xlu1 %795 }
 0x55a   :  { %1449 = vrot.lane.b32.xlu0 %v13051_v52, %s12786_s9 }
 0x55c   :  { %v1028_v9 = vpop.permute.xlu1 %1027 }
 0x560   :  { %v1030_v10 = vpop.permute.xlu1 %1029 }
 0x564   :  { %v13147_v11 = vpop.permute.xlu1 %1031 }
 0x568   :  { %v13149_v13 = vpop.permute.xlu1 %1558 }
 0x56c   :  { %v13151_v3 = vpop.permute.xlu1 %1554 }
 0x570   :  { %v13153_v15 = vpop.permute.xlu1 %1794 }
 0x571   :  { %v449_v16 = vpop.xlane.xlu0 %448 }
 0x572   :  { %12303 = vrcp.f32 %v449_v16 }
 0x574   :  { %v13155_v17 = vpop.permute.xlu1 %1792 }
 0x575   :  { %v562_v18 = vpop.permute.xlu0 %561 }
 0x576   :  { %11014 = vmatpush3.xpose.msk.msra.mxu1 %vm328_vm5, %v562_v18 }
 0x577   :  { %11039 = vmatprep.subr.mxu1 %v16290_v0 }
 0x578   :  { %v13159_v19 = vpop.permute.xlu1 %1790 }
 0x579   :  { %v802_v22 = vpop.permute.xlu0 %801 }
 0x57c   :  { %v13161_v23 = vpop.permute.xlu1 %2030 }
 0x57d   :  { %v800_v24 = vpop.permute.xlu0 %799 }
 0x57f   :  { %v12304_v25 = vpop.eup %12303 }
 0x580   :  { %v13163_v26 = vpop.permute.xlu1 %2028  ;;  %v455_v28 = vmul.f32 %v12304_v25, %v13034_v45 }
 0x581   :  { %v798_v30 = vpop.permute.xlu0 %797 }
 0x582   :  { %11007 = vmatmul.mubr.msk.f32.gmra.mxu1 %vm421_vm6, %v455_v28 }
 0x583   :  { %11015 = vmatprep.mubr.msk.f32.mxu1 %vm12784_vm0, %v16290_v0 }
 0x584   :  { %v13169_v31 = vpop.permute.xlu1 %2026 }
 0x585   :  { %v1038_v33 = vpop.permute.xlu0 %1037 }
 0x586   :  { %11016 = vmatmul.mubr.msk.f32.vlgmr.msra.gmra.mxu1 %vm328_vm5, %v556_v61 }
 0x587   :  { %11040 = vmatpush3.xpose.msk.msra.mxu1 %vm328_vm5, %v802_v22  ;;  %11018 = vmatprep.mubr.msk.f32.mxu1 %vm12784_vm0, %v16290_v0 }
 0x588   :  { %v13175_v34 = vpop.permute.xlu1 %2022  ;;  %11041 = vmatprep.subr.mxu1 %v16290_v0 }
 0x589   :  { %v1036_v35 = vpop.permute.xlu0 %1035 }
 0x58a   :  { %11019 = vmatmul.mubr.msk.f32.gmra.mxu1 %vm328_vm5, %v558_v63 }
 0x58b   :  { %11042 = vmatpush3.xpose.msk.msra.mxu1 %vm328_vm5, %v800_v24  ;;  %11021 = vmatprep.mubr.msk.f32.mxu1 %vm12784_vm0, %v16290_v0 }
 0x58c   :  { %v697_v36 = vpop.permute.xlu1 %696  ;;  %11043 = vmatprep.subr.mxu1 %v16290_v0 }
 0x58d   :  { %11025 = vmatpush3.msk.msra.mxu0 %vm50_vm3, %v697_v36  ;;  %v1034_v37 = vpop.permute.xlu0 %1033 }
 0x58e   :  { %11022 = vmatmul.mubr.msk.f32.gmra.mxu1 %vm328_vm5, %v560_v4  ;;  %11026 = vmatprep.subr.mxu0 %v16290_v0 }
 0x58f   :  { %11044 = vmatpush3.xpose.msk.msra.mxu1 %vm328_vm5, %v798_v30  ;;  %11045 = vmatprep.mubr.msk.f32.mxu1 %vm12784_vm0, %v16290_v0 }
 0x590   :  { %11069 = vmatprep.subr.mxu1 %v16290_v0  ;;  %v693_v55 = vpop.permute.xlu1 %692 }
 0x591   :  { %v1323_v39 = vpop.permute.xlu0 %1322 }
 0x592   :  { %11046 = vmatmul.mubr.msk.f32.vlgmr.msra.gmra.mxu1 %vm328_vm5, %v792_v7 }
 0x593   :  { %11070 = vmatpush3.xpose.msk.msra.mxu1 %vm328_vm5, %v1038_v33  ;;  %11048 = vmatprep.mubr.msk.f32.mxu1 %vm12784_vm0, %v16290_v0 }
 0x594   :  { %11071 = vmatprep.subr.mxu1 %v16290_v0 }
 0x595   :  { %v1321_v40 = vpop.permute.xlu0 %1320 }
 0x596   :  { %11049 = vmatmul.mubr.msk.f32.gmra.mxu1 %vm328_vm5, %v794_v62 }
 0x597   :  { %11072 = vmatpush3.xpose.msk.msra.mxu1 %vm328_vm5, %v1036_v35  ;;  %11051 = vmatprep.mubr.msk.f32.mxu1 %vm12784_vm0, %v16290_v0 }
 0x598   :  { %11073 = vmatprep.subr.mxu1 %v16290_v0 }
 0x599   :  { %v1319_v41 = vpop.permute.xlu0 %1318 }
 0x59a   :  { %11052 = vmatmul.mubr.msk.f32.gmra.mxu1 %vm328_vm5, %v796_v8 }
 0x59b   :  { %11074 = vmatpush3.xpose.msk.msra.mxu1 %vm328_vm5, %v1034_v37  ;;  %11075 = vmatprep.mubr.msk.f32.mxu1 %vm12784_vm0, %v16290_v0 }
 0x59c   :  { %11099 = vmatprep.subr.mxu1 %v16290_v0 }
 0x59d   :  { %v1557_v42 = vpop.permute.xlu0 %1556 }
 0x59e   :  { %11076 = vmatmul.mubr.msk.f32.vlgmr.msra.gmra.mxu1 %vm328_vm5, %v1028_v9 }
 0x59f   :  { %11100 = vmatpush3.xpose.msk.msra.mxu1 %vm328_vm5, %v1323_v39  ;;  %11078 = vmatprep.mubr.msk.f32.mxu1 %vm12784_vm0, %v16290_v0 }
 0x5a0   :  { %11101 = vmatprep.subr.mxu1 %v16290_v0 }
 0x5a1   :  { %v1549_v43 = vpop.permute.xlu0 %1548 }
 0x5a2   :  { %11079 = vmatmul.mubr.msk.f32.gmra.mxu1 %vm328_vm5, %v1030_v10 }
 0x5a3   :  { %11102 = vmatpush3.xpose.msk.msra.mxu1 %vm328_vm5, %v1321_v40  ;;  %11081 = vmatprep.mubr.msk.f32.mxu1 %vm12784_vm0, %v16290_v0 }
 0x5a4   :  { %11103 = vmatprep.subr.mxu1 %v16290_v0 }
 0x5a5   :  { %v1551_v44 = vpop.permute.xlu0 %1550 }
 0x5a6   :  { %11082 = vmatmul.mubr.msk.f32.gmra.mxu1 %vm328_vm5, %v13147_v11 }
 0x5a7   :  { %11104 = vmatpush3.xpose.msk.msra.mxu1 %vm328_vm5, %v1319_v41  ;;  %11105 = vmatprep.mubr.msk.f32.mxu1 %vm12784_vm0, %v16290_v0 }
 0x5a8   :  { %11129 = vmatprep.subr.mxu1 %v16290_v0 }
 0x5a9   :  { %v1553_v45 = vpop.permute.xlu0 %1552 }
 0x5aa   :  { %11106 = vmatmul.mubr.msk.f32.vlgmr.msra.gmra.mxu1 %vm328_vm5, %v13051_v52 }
 0x5ab   :  { %11130 = vmatpush3.xpose.msk.msra.mxu1 %vm328_vm5, %v13149_v13  ;;  %11108 = vmatprep.mubr.msk.f32.mxu1 %vm12784_vm0, %v16290_v0 }
 0x5ac   :  { %11131 = vmatprep.subr.mxu1 %v16290_v0 }
 0x5ad   :  { %v1785_v46 = vpop.permute.xlu0 %1784 }
 0x5ae   :  { %11109 = vmatmul.mubr.msk.f32.gmra.mxu1 %vm328_vm5, %v13059_v53 }
 0x5af   :  { %11132 = vmatpush3.xpose.msk.msra.mxu1 %vm328_vm5, %v1557_v42  ;;  %11111 = vmatprep.mubr.msk.f32.mxu1 %vm12784_vm0, %v16290_v0 }
 0x5b0   :  { %11133 = vmatprep.subr.mxu1 %v16290_v0 }
 0x5b1   :  { %v1787_v47 = vpop.permute.xlu0 %1786 }
 0x5b2   :  { %11112 = vmatmul.mubr.msk.f32.gmra.mxu1 %vm328_vm5, %v13045_v49 }
 0x5b3   :  { %11134 = vmatpush3.xpose.msk.msra.mxu1 %vm328_vm5, %v13151_v3  ;;  %11135 = vmatprep.mubr.msk.f32.mxu1 %vm12784_vm0, %v16290_v0 }
 0x5b4   :  { %11159 = vmatprep.subr.mxu1 %v16290_v0 }
 0x5b5   :  { %v1789_v48 = vpop.permute.xlu0 %1788 }
 0x5b6   :  { %11136 = vmatmul.mubr.msk.f32.vlgmr.msra.gmra.mxu1 %vm328_vm5, %v1549_v43 }
 0x5b7   :  { %11160 = vmatpush3.xpose.msk.msra.mxu1 %vm328_vm5, %v13153_v15  ;;  %11138 = vmatprep.mubr.msk.f32.mxu1 %vm12784_vm0, %v16290_v0 }
 0x5b8   :  { %11161 = vmatprep.subr.mxu1 %v16290_v0 }
 0x5b9   :  { %v2021_v50 = vpop.permute.xlu0 %2020 }
 0x5ba   :  { %11139 = vmatmul.mubr.msk.f32.gmra.mxu1 %vm328_vm5, %v1551_v44 }
 0x5bb   :  { %11162 = vmatpush3.xpose.msk.msra.mxu1 %vm328_vm5, %v13155_v17  ;;  %11141 = vmatprep.mubr.msk.f32.mxu1 %vm12784_vm0, %v16290_v0 }
 0x5bc   :  { %11163 = vmatprep.subr.mxu1 %v16290_v0 }
 0x5bd   :  { %v2025_v51 = vpop.permute.xlu0 %2024 }
 0x5be   :  { %11142 = vmatmul.mubr.msk.f32.gmra.mxu1 %vm328_vm5, %v1553_v45 }
 0x5bf   :  { %11164 = vmatpush3.xpose.msk.msra.mxu1 %vm328_vm5, %v13159_v19  ;;  %11165 = vmatprep.mubr.msk.f32.mxu1 %vm12784_vm0, %v16290_v0 }
 0x5c0   :  { %11189 = vmatprep.subr.mxu1 %v16290_v0 }
 0x5c1   :  { %v695_v54 = vpop.permute.xlu0 %694 }
 0x5c2   :  { %11027 = vmatpush3.msra.mxu0 %v695_v54  ;;  %11166 = vmatmul.mubr.msk.f32.vlgmr.msra.gmra.mxu1 %vm328_vm5, %v1785_v46 }
 0x5c3   :  { %11190 = vmatpush3.xpose.msk.msra.mxu1 %vm328_vm5, %v13161_v23  ;;  %11028 = vmatprep.subr.mxu0 %v16290_v0 }
 0x5c4   :  { %11029 = vmatpush3.msra.mxu0 %v693_v55  ;;  %11168 = vmatprep.mubr.msk.f32.mxu1 %vm12784_vm0, %v16290_v0 }
 0x5c5   :  { %11191 = vmatprep.subr.mxu1 %v16290_v0  ;;  %11054 = vmatprep.subr.mxu0 %v16290_v0 }
 0x5c6   :  { %11169 = vmatmul.mubr.msk.f32.gmra.mxu1 %vm328_vm5, %v1787_v47 }
 0x5c7   :  { %11192 = vmatpush3.xpose.msk.msra.mxu1 %vm328_vm5, %v13163_v26  ;;  %11171 = vmatprep.mubr.msk.f32.mxu1 %vm12784_vm0, %v16290_v0 }
 0x5c8   :  { %11193 = vmatprep.subr.mxu1 %v16290_v0 }
 0x5ca   :  { %11172 = vmatmul.mubr.msk.f32.gmra.mxu1 %vm328_vm5, %v1789_v48 }
 0x5cb   :  { %11194 = vmatpush3.xpose.msk.msra.mxu1 %vm328_vm5, %v13169_v31  ;;  %11195 = vmatprep.mubr.msk.f32.mxu1 %vm12784_vm0, %v16290_v0 }
 0x5cc   :  { %11219 = vmatprep.subr.bf16.mxu1 %v16290_v0 }
 0x5ce   :  { %11196 = vmatmul.mubr.msk.f32.vlgmr.msra.gmra.mxu1 %vm328_vm5, %v2021_v50 }
 0x5cf   :  { %11198 = vmatprep.mubr.msk.f32.mxu1 %vm12784_vm0, %v16290_v0 }
 0x5d2   :  { %11199 = vmatmul.mubr.msk.f32.gmra.mxu1 %vm328_vm5, %v13175_v34 }
 0x5d3   :  { %11201 = vmatprep.mubr.msk.f32.mxu1 %vm12784_vm0, %v16290_v0 }
 0x5d6   :  { %11202 = vmatmul.mubr.msk.f32.gmra.mxu1 %vm328_vm5, %v2025_v51 }
 0x5d7   :  { %11223 = vmatprep.mubr.msk.bf16.mxu1 %vm12784_vm0, %v16290_v0 }
 0x60d   :  { %v13289_v56 = vpop.f32.mrf.mxu1 }
 0x60f   :  { %v11002_v58 = vpop.f32.mrf.mxu1 }
 0x611   :  { %v13291_v59 = vpop.f32.mrf.mxu1 }
 0x613   :  { %v11005_v60 = vpop.f32.mrf.mxu1 }
 0x642   :  { %v13293_v61 = vpop.f32.mrf.mxu1 }
 0x644   :  { %v11008_v63 = vpop.f32.mrf.mxu1 }
 0x646   :  { %v13295_v1 = vpop.f32.mrf.mxu1 }
 0x647   :  { %v659_v2 = vsel %vm421_vm6, %v13295_v1, -inf }
 0x648   :  { %660 = vmax.xlane.f32.xlu1 %v659_v2  ;;  %v11017_v4 = vpop.f32.mrf.mxu1 }
 0x64a   :  { %v13299_v5 = vpop.f32.mrf.mxu1 }
 0x64b   :  { %v662_v6 = vsel %vm421_vm6, %v13299_v5, -inf }
 0x64c   :  { %663 = vmax.xlane.f32.xlu0 %v662_v6  ;;  %v11020_v7 = vpop.f32.mrf.mxu1 }
 0x64e   :  { %v13303_v62 = vpop.f32.mrf.mxu1 }
 0x64f   :  { %v665_v8 = vsel %vm428_vm7, %v13303_v62, -inf }
 0x650   :  { %666 = vmax.xlane.f32.xlu0 %v665_v8  ;;  %v11023_v9 = vpop.f32.mrf.mxu1 }
 0x652   :  { %v13307_v10 = vpop.f32.mrf.mxu1 }
 0x653   :  { %v895_v11 = vsel %vm421_vm6, %v13307_v10, -inf }
 0x654   :  { %896 = vmax.xlane.f32.xlu0 %v895_v11  ;;  %v11047_v13 = vpop.f32.mrf.mxu1 }
 0x656   :  { %v13311_v3 = vpop.f32.mrf.mxu1 }
 0x657   :  { %v898_v45 = vsel %vm421_vm6, %v13311_v3, -inf }
 0x658   :  { %v11050_v15 = vpop.f32.mrf.mxu1 }
 0x659   :  { %1451 = vrot.lane.b32.xlu1 %v13059_v53, %s12786_s9 }
 0x65a   :  { %v13315_v16 = vpop.f32.mrf.mxu1 }
 0x65b   :  { %v901_v17 = vsel %vm428_vm7, %v13315_v16, -inf }
 0x65c   :  { %902 = vmax.xlane.f32.xlu0 %v901_v17  ;;  %v11053_v18 = vpop.f32.mrf.mxu1 }
 0x65e   :  { %v13319_v19 = vpop.f32.mrf.mxu1 }
 0x65f   :  { %v1131_v48 = vsel %vm421_vm6, %v13319_v19, -inf }
 0x660   :  { %v11077_v22 = vpop.f32.mrf.mxu1 }
 0x662   :  { %v13321_v23 = vpop.f32.mrf.mxu1 }
 0x663   :  { %v1134_v24 = vsel %vm421_vm6, %v13321_v23, -inf }
 0x664   :  { %1135 = vmax.xlane.f32.xlu0 %v1134_v24  ;;  %v11080_v25 = vpop.f32.mrf.mxu1 }
 0x666   :  { %v13325_v26 = vpop.f32.mrf.mxu1 }
 0x667   :  { %v1137_v55 = vsel %vm428_vm7, %v13325_v26, -inf }
 0x668   :  { %v11083_v28 = vpop.f32.mrf.mxu1 }
 0x669   :  { %v13381_v28 = vpop.permute.xlu1 %932 }
 0x66a   :  { %v13327_v30 = vpop.f32.mrf.mxu1 }
 0x66b   :  { %v1416_v31 = vsel %vm421_vm6, %v13327_v30, -inf }
 0x66c   :  { %1417 = vmax.xlane.f32.xlu0 %v1416_v31  ;;  %v11107_v33 = vpop.f32.mrf.mxu1  ;;  %v13383_v31 = vpop.permute.xlu0 %930 }
 0x66e   :  { %v13331_v34 = vpop.f32.mrf.mxu1 }
 0x66f   :  { %v1419_v63 = vsel %vm421_vm6, %v13331_v34, -inf }
 0x670   :  { %v11110_v35 = vpop.f32.mrf.mxu1 }
 0x671   :  { %v13387_v35 = vpop.permute.xlu1 %928 }
 0x672   :  { %v13333_v36 = vpop.f32.mrf.mxu1 }
 0x673   :  { %v1422_v37 = vsel %vm428_vm7, %v13333_v36, -inf }
 0x674   :  { %1423 = vmax.xlane.f32.xlu0 %v1422_v37  ;;  %v11113_v39 = vpop.f32.mrf.mxu1  ;;  %v13389_v37 = vpop.permute.xlu0 %1168 }
 0x675   :  { %v13391_v39 = vpop.permute.xlu1 %1166 }
 0x676   :  { %v13337_v40 = vpop.f32.mrf.mxu1 }
 0x677   :  { %v1652_v7 = vsel %vm421_vm6, %v13337_v40, -inf }
 0x678   :  { %v11137_v41 = vpop.f32.mrf.mxu1 }
 0x679   :  { %v13393_v41 = vpop.permute.xlu0 %1453 }
 0x67a   :  { %v13339_v42 = vpop.f32.mrf.mxu1 }
 0x67b   :  { %v1655_v43 = vsel %vm421_vm6, %v13339_v42, -inf }
 0x67c   :  { %1656 = vmax.xlane.f32.xlu0 %v1655_v43  ;;  %v11140_v44 = vpop.f32.mrf.mxu1  ;;  %v13395_v43 = vpop.permute.xlu1 %1164 }
 0x67d   :  { %899 = vmax.xlane.f32.xlu1 %v898_v45  ;;  %v13397_v44 = vpop.permute.xlu0 %1449 }
 0x67e   :  { %v13345_v46 = vpop.f32.mrf.mxu1 }
 0x67f   :  { %v1658_v11 = vsel %vm428_vm7, %v13345_v46, -inf }
 0x680   :  { %v11143_v47 = vpop.f32.mrf.mxu1 }
 0x681   :  { %1132 = vmax.xlane.f32.xlu1 %v1131_v48 }
 0x682   :  { %v13349_v50 = vpop.f32.mrf.mxu1 }
 0x683   :  { %v1888_v51 = vsel %vm421_vm6, %v13349_v50, -inf }
 0x684   :  { %1889 = vmax.xlane.f32.xlu0 %v1888_v51  ;;  %v11167_v54 = vpop.f32.mrf.mxu1 }
 0x685   :  { %1138 = vmax.xlane.f32.xlu1 %v1137_v55 }
 0x686   :  { %v13355_v58 = vpop.f32.mrf.mxu1 }
 0x687   :  { %v1891_v17 = vsel %vm421_vm6, %v13355_v58, -inf }
 0x688   :  { %v11170_v60 = vpop.f32.mrf.mxu1 }
 0x689   :  { %1420 = vmax.xlane.f32.xlu1 %v1419_v63 }
 0x68a   :  { %v13359_v2 = vpop.f32.mrf.mxu1 }
 0x68b   :  { %v1894_v4 = vsel %vm428_vm7, %v13359_v2, -inf }
 0x68c   :  { %1895 = vmax.xlane.f32.xlu0 %v1894_v4  ;;  %v11173_v6 = vpop.f32.mrf.mxu1 }
 0x68d   :  { %1653 = vmax.xlane.f32.xlu1 %v1652_v7 }
 0x68e   :  { %v13365_v8 = vpop.f32.mrf.mxu1 }
 0x68f   :  { %v2124_v24 = vsel %vm421_vm6, %v13365_v8, -inf }
 0x690   :  { %v11197_v9 = vpop.f32.mrf.mxu1 }
 0x691   :  { %1659 = vmax.xlane.f32.xlu1 %v1658_v11 }
 0x692   :  { %v13369_v13 = vpop.f32.mrf.mxu1 }
 0x693   :  { %v2127_v33 = vsel %vm421_vm6, %v13369_v13, -inf }
 0x694   :  { %v11200_v15 = vpop.f32.mrf.mxu1 }
 0x695   :  { %1892 = vmax.xlane.f32.xlu1 %v1891_v17 }
 0x696   :  { %v13373_v18 = vpop.f32.mrf.mxu1 }
 0x697   :  { %v2130_v25 = vsel %vm428_vm7, %v13373_v18, -inf }
 0x698   :  { %v11203_v22 = vpop.f32.mrf.mxu1 }
 0x699   :  { %2125 = vmax.xlane.f32.xlu1 %v2124_v24 }
 0x69d   :  { %2131 = vmax.xlane.f32.xlu1 %v2130_v25 }
 0x6a2   :  { %1689 = vrot.lane.b32.xlu0 %v13045_v49, %s12793_s15 }
 0x6c1   :  { %2128 = vmax.xlane.f32.xlu0 %v2127_v33 }
 0x6d1   :  { %v661_v45 = vpop.xlane.xlu1 %660 }
 0x6d2   :  { %v668_v47 = vsub.f32 %v13295_v1, %v661_v45 }
 0x6d4   :  { %v671_v48 = vmul.f32 1.442695, %v668_v47 }
 0x6d5   :  { %v664_v51 = vpop.xlane.xlu0 %663  ;;  %v13426_v47 = vpop.permute.xlu1 %1451 }
 0x6d6   :  { %12305 = vpow2.f32 %v671_v48  ;;  %v669_v54 = vsub.f32 %v13299_v5, %v664_v51 }
 0x6d8   :  { %v673_v55 = vmul.f32 1.442695, %v669_v54 }
 0x6d9   :  { %v667_v60 = vpop.xlane.xlu0 %666 }
 0x6da   :  { %12307 = vpow2.f32 %v673_v55  ;;  %v670_v63 = vsub.f32 %v13303_v62, %v667_v60 }
 0x6dc   :  { %v675_v4 = vmul.f32 1.442695, %v670_v63 }
 0x6dd   :  { %v897_v6 = vpop.xlane.xlu0 %896 }
 0x6de   :  { %12309 = vpow2.f32 %v675_v4  ;;  %v904_v7 = vsub.f32 %v13307_v10, %v897_v6 }
 0x6e0   :  { %v907_v9 = vmul.f32 1.442695, %v904_v7 }
 0x6e2   :  { %12311 = vpow2.f32 %v907_v9 }
 0x6e3   :  { %v13403_v11 = vpop.eup %12305 }
 0x6e4   :  { %v677_v1 = vsel %vm421_vm6, %v13403_v11, 0.0 }
 0x6e5   :  { %v903_v15 = vpop.xlane.xlu0 %902  ;;  %678 = vadd.xlane.f32.xlu1 %v677_v1 }
 0x6e6   :  { %v906_v5 = vsub.f32 %v13315_v16, %v903_v15 }
 0x6e7   :  { %v13408_v17 = vpop.eup %12307 }
 0x6e8   :  { %v911_v22 = vmul.f32 1.442695, %v906_v5  ;;  %v680_v62 = vsel %vm421_vm6, %v13408_v17, 0.0 }
 0x6e9   :  { %681 = vadd.xlane.f32.xlu0 %v680_v62 }
 0x6ea   :  { %12313 = vpow2.f32 %v911_v22 }
 0x6eb   :  { %v13412_v10 = vpop.eup %12309 }
 0x6ec   :  { %v683_v24 = vsel %vm428_vm7, %v13412_v10, 0.0 }
 0x6ed   :  { %684 = vadd.xlane.f32.xlu1 %v683_v24  ;;  %v1136_v48 = vpop.xlane.xlu0 %1135 }
 0x6ee   :  { %v1141_v4 = vsub.f32 %v13321_v23, %v1136_v48 }
 0x6ef   :  { %v13416_v25 = vpop.eup %12311 }
 0x6f0   :  { %v913_v33 = vsel %vm421_vm6, %v13416_v25, 0.0  ;;  %v1145_v22 = vmul.f32 1.442695, %v1141_v4 }
 0x6f1   :  { %914 = vadd.xlane.f32.xlu0 %v913_v33 }
 0x6f5   :  { %v1418_v54 = vpop.xlane.xlu0 %1417 }
 0x6f6   :  { %v1425_v6 = vsub.f32 %v13327_v30, %v1418_v54 }
 0x6f7   :  { %v13420_v16 = vpop.eup %12313 }
 0x6f8   :  { %v919_v45 = vsel %vm428_vm7, %v13420_v16, 0.0  ;;  %v1428_v24 = vmul.f32 1.442695, %v1425_v6 }
 0x6f9   :  { %920 = vadd.xlane.f32.xlu0 %v919_v45 }
 0x6fd   :  { %v1424_v7 = vpop.xlane.xlu0 %1423 }
 0x6fe   :  { %1687 = vrot.lane.b32.xlu1 %v13059_v53, %s12793_s15  ;;  %v1427_v62 = vsub.f32 %v13333_v36, %v1424_v7 }
 0x700   :  { %v1432_v23 = vmul.f32 1.442695, %v1427_v62 }
 0x705   :  { %v1657_v33 = vpop.xlane.xlu0 %1656 }
 0x706   :  { %v900_v51 = vpop.xlane.xlu1 %899  ;;  %v1662_v30 = vsub.f32 %v13339_v42, %v1657_v33 }
 0x707   :  { %v905_v55 = vsub.f32 %v13311_v3, %v900_v51 }
 0x708   :  { %v1666_v54 = vmul.f32 1.442695, %v1662_v30 }
 0x709   :  { %v909_v9 = vmul.f32 1.442695, %v905_v55 }
 0x70a   :  { %v1133_v60 = vpop.xlane.xlu1 %1132 }
 0x70b   :  { %v1140_v63 = vsub.f32 %v13319_v19, %v1133_v60 }
 0x70d   :  { %v1143_v1 = vmul.f32 1.442695, %v1140_v63  ;;  %v1890_v36 = vpop.xlane.xlu0 %1889 }
 0x70e   :  { %v1139_v15 = vpop.xlane.xlu1 %1138 }
 0x70f   :  { %12315 = vpow2.f32 %v1143_v1  ;;  %v1142_v5 = vsub.f32 %v13325_v26, %v1139_v15 }
 0x710   :  { %12317 = vpow2.f32 %v909_v9 }
 0x711   :  { %v1147_v3 = vmul.f32 1.442695, %v1142_v5 }
 0x712   :  { %v1421_v45 = vpop.xlane.xlu1 %1420 }
 0x713   :  { %12319 = vpow2.f32 %v1147_v3  ;;  %v1426_v19 = vsub.f32 %v13331_v34, %v1421_v45  ;;  %v1897_v34 = vsub.f32 %v13349_v50, %v1890_v36 }
 0x714   :  { %12321 = vpow2.f32 %v1145_v22 }
 0x715   :  { %12323 = vpow2.f32 %v1428_v24  ;;  %v1430_v48 = vmul.f32 1.442695, %v1426_v19  ;;  %v1896_v6 = vpop.xlane.xlu0 %1895 }
 0x716   :  { %v1654_v51 = vpop.xlane.xlu1 %1653  ;;  %12325 = vpow2.f32 %v1432_v23  ;;  %v1899_v5 = vsub.f32 %v13359_v2, %v1896_v6 }
 0x717   :  { %v1661_v26 = vsub.f32 %v13337_v40, %v1654_v51  ;;  %12327 = vpow2.f32 %v1430_v48 }
 0x718   :  { %12329 = vpow2.f32 %v1666_v54  ;;  %v1904_v45 = vmul.f32 1.442695, %v1899_v5 }
 0x719   :  { %v1664_v55 = vmul.f32 1.442695, %v1661_v26 }
 0x71a   :  { %v1660_v60 = vpop.xlane.xlu1 %1659 }
 0x71b   :  { %v1663_v63 = vsub.f32 %v13345_v46, %v1660_v60  ;;  %12331 = vpow2.f32 %v1664_v55  ;;  %v1900_v46 = vmul.f32 1.442695, %v1897_v34 }
 0x71c   :  { %v13438_v4 = vpop.eup %12315 }
 0x71d   :  { %v1668_v42 = vmul.f32 1.442695, %v1663_v63  ;;  %v1149_v7 = vsel %vm421_vm6, %v13438_v4, 0.0  ;;  %v13443_v40 = vpop.eup %12317 }
 0x71e   :  { %v1893_v9 = vpop.xlane.xlu1 %1892  ;;  %1150 = vadd.xlane.f32.xlu0 %v1149_v7  ;;  %v916_v24 = vsel %vm421_vm6, %v13443_v40, 0.0 }
 0x71f   :  { %v1898_v1 = vsub.f32 %v13355_v58, %v1893_v9  ;;  %12333 = vpow2.f32 %v1668_v42 }
 0x720   :  { %v13446_v15 = vpop.eup %12319 }
 0x721   :  { %v13449_v22 = vpop.eup %12321  ;;  %v1902_v50 = vmul.f32 1.442695, %v1898_v1  ;;  %v1155_v62 = vsel %vm428_vm7, %v13446_v15, 0.0 }
 0x722   :  { %v13455_v33 = vpop.eup %12323  ;;  %v2126_v3 = vpop.xlane.xlu1 %2125  ;;  %1156 = vadd.xlane.f32.xlu0 %v1155_v62  ;;  %917 = vadd.xlane.f32.xlu1 %v916_v24  ;;  %v1152_v58 = vsel %vm421_vm6, %v13449_v22, 0.0 }
 0x723   :  { %12335 = vpow2.f32 %v1902_v50  ;;  %v13459_v2 = vpop.eup %12325  ;;  %v2133_v19 = vsub.f32 %v13365_v8, %v2126_v3  ;;  %v1434_v23 = vsel %vm421_vm6, %v13455_v33, 0.0  ;;  %v13498_v50 = vpop.permute.xlu0 %1689 }
 0x724   :  { %12337 = vpow2.f32 %v1900_v46  ;;  %v13464_v30 = vpop.eup %12327  ;;  %v1440_v26 = vsel %vm428_vm7, %v13459_v2, 0.0 }
 0x725   :  { %v13466_v48 = vpop.eup %12329  ;;  %12339 = vpow2.f32 %v1904_v45  ;;  %v2136_v51 = vmul.f32 1.442695, %v2133_v19  ;;  %v1437_v54 = vsel %vm421_vm6, %v13464_v30, 0.0 }
 0x726   :  { %1435 = vadd.xlane.f32.xlu0 %v1434_v23  ;;  %1153 = vadd.xlane.f32.xlu1 %v1152_v58  ;;  %v1673_v8 = vsel %vm421_vm6, %v13466_v48, 0.0  ;;  %v2132_v45 = vpop.xlane.xlu1 %2131 }
 0x727   :  { %12341 = vpow2.f32 %v2136_v51  ;;  %v2135_v19 = vsub.f32 %v13373_v18, %v2132_v45 }
 0x728   :  { %v13472_v36 = vpop.eup %12331 }
 0x729   :  { %v1670_v55 = vsel %vm421_vm6, %v13472_v36, 0.0  ;;  %v2140_v51 = vmul.f32 1.442695, %v2135_v19 }
 0x72a   :  { %1441 = vadd.xlane.f32.xlu0 %v1440_v26  ;;  %1438 = vadd.xlane.f32.xlu1 %v1437_v54 }
 0x72c   :  { %v13478_v60 = vpop.eup %12333 }
 0x72d   :  { %v1676_v6 = vsel %vm428_vm7, %v13478_v60, 0.0 }
 0x72e   :  { %1674 = vadd.xlane.f32.xlu0 %v1673_v8  ;;  %1671 = vadd.xlane.f32.xlu1 %v1670_v55 }
 0x730   :  { %v13480_v63 = vpop.eup %12335 }
 0x731   :  { %v1909_v34 = vsel %vm421_vm6, %v13480_v63, 0.0  ;;  %v13486_v42 = vpop.eup %12337 }
 0x732   :  { %1910 = vadd.xlane.f32.xlu0 %v1909_v34  ;;  %1677 = vadd.xlane.f32.xlu1 %v1676_v6  ;;  %v1906_v7 = vsel %vm421_vm6, %v13486_v42, 0.0  ;;  %v13490_v9 = vpop.eup %12339 }
 0x733   :  { %v1912_v1 = vsel %vm428_vm7, %v13490_v9, 0.0 }
 0x734   :  { %v13494_v46 = vpop.eup %12341 }
 0x735   :  { %v2142_v5 = vsel %vm421_vm6, %v13494_v46, 0.0 }
 0x736   :  { %1907 = vadd.xlane.f32.xlu1 %v1906_v7 }
 0x73a   :  { %1913 = vadd.xlane.f32.xlu1 %v1912_v1 }
 0x73e   :  { %2143 = vadd.xlane.f32.xlu1 %v2142_v5 }
 0x748   :  { %1685 = vrot.lane.b32.xlu0 %v13051_v52, %s12793_s15 }
 0x74a   :  { %v2129_v62 = vpop.xlane.xlu0 %2128 }
 0x74b   :  { %v2134_v24 = vsub.f32 %v13369_v13, %v2129_v62 }
 0x74d   :  { %v2138_v3 = vmul.f32 1.442695, %v2134_v24 }
 0x74f   :  { %1925 = vrot.lane.b32.xlu1 %v13045_v49, %s12794_s16  ;;  %12343 = vpow2.f32 %v2138_v3 }
 0x753   :  { %1923 = vrot.lane.b32.xlu1 %v13059_v53, %s12794_s16 }
 0x757   :  { %1921 = vrot.lane.b32.xlu1 %v13051_v52, %s12794_s16 }
 0x75b   :  { %2161 = vrot.lane.b32.xlu1 %v13045_v49, %s12795_s17 }
 0x75c   :  { %v13513_v58 = vpop.eup %12343 }
 0x75d   :  { %v2145_v13 = vsel %vm421_vm6, %v13513_v58, 0.0 }
 0x75f   :  { %2159 = vrot.lane.b32.xlu1 %v13059_v53, %s12795_s17 }
 0x763   :  { %2157 = vrot.lane.b32.xlu1 %v13051_v52, %s12795_s17 }
 0x767   :  { %2146 = vadd.xlane.f32.xlu0 %v2145_v13 }
 0x76e   :  { %v679_v23 = vpop.xlane.xlu1 %678 }
 0x76f   :  { %12345 = vrcp.f32 %v679_v23 }
 0x772   :  { %v682_v26 = vpop.xlane.xlu0 %681 }
 0x773   :  { %12347 = vrcp.f32 %v682_v26 }
 0x774   :  { %12349 = vpow2.f32 %v2140_v51 }
 0x776   :  { %v685_v49 = vpop.xlane.xlu1 %684 }
 0x777   :  { %12351 = vrcp.f32 %v685_v49 }
 0x77a   :  { %v915_v53 = vpop.xlane.xlu0 %914 }
 0x77b   :  { %12353 = vrcp.f32 %v915_v53 }
 0x77c   :  { %v12346_v54 = vpop.eup %12345 }
 0x77d   :  { %v689_v52 = vmul.f32 %v12346_v54, %v13403_v11 }
 0x77f   :  { %11031 = vmatmul.mubr.msk.f32.vlgmr.msra.gmra.mxu0 %vm421_vm6, %v689_v52 }
 0x780   :  { %v12348_v8 = vpop.eup %12347  ;;  %11055 = vmatpush3.msk.msra.mxu0 %vm50_vm3, %v13381_v28  ;;  %11033 = vmatprep.mubr.msk.f32.mxu0 %vm12784_vm0, %v16290_v0 }
 0x781   :  { %11056 = vmatprep.subr.mxu0 %v16290_v0  ;;  %v690_v18 = vmul.f32 %v12348_v8, %v13408_v17  ;;  %v13529_v55 = vpop.eup %12349 }
 0x782   :  { %11057 = vmatpush3.msra.mxu0 %v13383_v31  ;;  %v2148_v17 = vsel %vm428_vm7, %v13529_v55, 0.0 }
 0x783   :  { %11058 = vmatprep.subr.mxu0 %v16290_v0  ;;  %11034 = vmatmul.mubr.msk.f32.gmra.mxu0 %vm421_vm6, %v690_v18 }
 0x784   :  { %v12352_v11 = vpop.eup %12351  ;;  %11059 = vmatpush3.msra.mxu0 %v13387_v35  ;;  %11036 = vmatprep.mubr.msk.f32.mxu0 %vm12784_vm0, %v16290_v0  ;;  %v1688_v35 = vpop.permute.xlu1 %1687 }
 0x785   :  { %v691_v28 = vmul.f32 %v12352_v11, %v13412_v10  ;;  %11084 = vmatprep.subr.mxu0 %v16290_v0 }
 0x787   :  { %2149 = vadd.xlane.f32.xlu1 %v2148_v17  ;;  %11037 = vmatmul.mubr.msk.f32.gmra.mxu0 %vm421_vm6, %v691_v28 }
 0x788   :  { %v12354_v31 = vpop.eup %12353  ;;  %11060 = vmatprep.mubr.msk.f32.mxu0 %vm12784_vm0, %v16290_v0 }
 0x789   :  { %v925_v34 = vmul.f32 %v12354_v31, %v13416_v25  ;;  %v921_v25 = vpop.xlane.xlu0 %920 }
 0x78b   :  { %11061 = vmatmul.mubr.msk.f32.vlgmr.msra.gmra.mxu0 %vm421_vm6, %v925_v34 }
 0x78c   :  { %11085 = vmatpush3.msk.msra.mxu0 %vm50_vm3, %v13389_v37  ;;  %11063 = vmatprep.mubr.msk.f32.mxu0 %vm12784_vm0, %v16290_v0 }
 0x78d   :  { %11086 = vmatprep.subr.mxu0 %v16290_v0 }
 0x78e   :  { %11087 = vmatpush3.msra.mxu0 %v13391_v39 }
 0x78f   :  { %11088 = vmatprep.subr.mxu0 %v16290_v0 }
 0x790   :  { %11089 = vmatpush3.msra.mxu0 %v13395_v43 }
 0x791   :  { %11114 = vmatprep.subr.mxu0 %v16290_v0 }
 0x7a7   :  { %v1151_v37 = vpop.xlane.xlu0 %1150 }
 0x7ab   :  { %v918_v10 = vpop.xlane.xlu1 %917  ;;  %v1157_v1 = vpop.xlane.xlu0 %1156 }
 0x7ac   :  { %12355 = vrcp.f32 %v918_v10 }
 0x7ad   :  { %12357 = vrcp.f32 %v921_v25 }
 0x7ae   :  { %12359 = vrcp.f32 %v1151_v37 }
 0x7af   :  { %v1154_v6 = vpop.xlane.xlu1 %1153  ;;  %v1436_v3 = vpop.xlane.xlu0 %1435 }
 0x7b0   :  { %12361 = vrcp.f32 %v1154_v6 }
 0x7b1   :  { %12363 = vrcp.f32 %v1157_v1 }
 0x7b2   :  { %12365 = vrcp.f32 %v1436_v3 }
 0x7b3   :  { %v1439_v7 = vpop.xlane.xlu1 %1438 }
 0x7b4   :  { %12367 = vrcp.f32 %v1439_v7 }
 0x7b7   :  { %v1672_v5 = vpop.xlane.xlu1 %1671 }
 0x7b9   :  { %v12356_v62 = vpop.eup %12355 }
 0x7ba   :  { %v926_v24 = vmul.f32 %v12356_v62, %v13443_v40  ;;  %v12358_v43 = vpop.eup %12357  ;;  %v1442_v40 = vpop.xlane.xlu0 %1441 }
 0x7bb   :  { %v1678_v39 = vpop.xlane.xlu1 %1677  ;;  %v927_v45 = vmul.f32 %v12358_v43, %v13420_v16  ;;  %v12360_v19 = vpop.eup %12359  ;;  %12369 = vrcp.f32 %v1442_v40 }
 0x7bc   :  { %11064 = vmatmul.mubr.msk.f32.gmra.mxu0 %vm421_vm6, %v926_v24  ;;  %v1161_v23 = vmul.f32 %v12360_v19, %v13438_v4  ;;  %12371 = vrcp.f32 %v1672_v5 }
 0x7bd   :  { %11066 = vmatprep.mubr.msk.f32.mxu0 %vm12784_vm0, %v16290_v0  ;;  %v12362_v26 = vpop.eup %12361 }
 0x7be   :  { %v1162_v16 = vmul.f32 %v12362_v26, %v13449_v22  ;;  %v12364_v49 = vpop.eup %12363  ;;  %v1675_v4 = vpop.xlane.xlu0 %1674 }
 0x7bf   :  { %v1908_v13 = vpop.xlane.xlu1 %1907  ;;  %v12366_v22 = vpop.eup %12365  ;;  %12373 = vrcp.f32 %v1675_v4 }
 0x7c0   :  { %11067 = vmatmul.mubr.msk.f32.gmra.mxu0 %vm421_vm6, %v927_v45  ;;  %12375 = vrcp.f32 %v1678_v39 }
 0x7c1   :  { %11090 = vmatprep.mubr.msk.f32.mxu0 %vm12784_vm0, %v16290_v0  ;;  %12377 = vrcp.f32 %v1908_v13 }
 0x7c2   :  { %v1911_v54 = vpop.xlane.xlu0 %1910 }
 0x7c3   :  { %v1914_v51 = vpop.xlane.xlu1 %1913  ;;  %12379 = vrcp.f32 %v1911_v54 }
 0x7c4   :  { %11091 = vmatmul.mubr.msk.f32.vlgmr.msra.gmra.mxu0 %vm421_vm6, %v1161_v23  ;;  %12381 = vrcp.f32 %v1914_v51 }
 0x7c5   :  { %11115 = vmatpush3.msk.msra.mxu0 %vm50_vm3, %v13393_v41  ;;  %11093 = vmatprep.mubr.msk.f32.mxu0 %vm12784_vm0, %v16290_v0  ;;  %v1163_v41 = vmul.f32 %v12364_v49, %v13446_v15  ;;  %v12230_v49 = vld [vmem:[%s16286_s4] sm:$0xff]  }
 0x7c6   :  { %11116 = vmatprep.subr.mxu0 %v16290_v0 }
 0x7c7   :  { %11117 = vmatpush3.msra.mxu0 %v13426_v47  ;;  %v2144_v53 = vpop.xlane.xlu1 %2143  ;;  %v1446_v47 = vmul.f32 %v12366_v22, %v13455_v33  ;;  %v1686_v33 = vpop.permute.xlu0 %1685 }
 0x7c8   :  { %11118 = vmatprep.subr.mxu0 %v16290_v0  ;;  %11094 = vmatmul.mubr.msk.f32.gmra.mxu0 %vm421_vm6, %v1162_v16  ;;  %12383 = vrcp.f32 %v2144_v53 }
 0x7c9   :  { %11119 = vmatpush3.msra.mxu0 %v13397_v44  ;;  %11096 = vmatprep.mubr.msk.f32.mxu0 %vm12784_vm0, %v16290_v0  ;;  %v12368_v44 = vpop.eup %12367 }
 0x7ca   :  { %11144 = vmatprep.subr.mxu0 %v16290_v0  ;;  %v1447_v15 = vmul.f32 %v12368_v44, %v13464_v30  ;;  %v12370_v8 = vpop.eup %12369 }
 0x7cb   :  { %v1926_v52 = vpop.permute.xlu1 %1925  ;;  %v12372_v11 = vpop.eup %12371 }
 0x7cc   :  { %11097 = vmatmul.mubr.msk.f32.gmra.mxu0 %vm421_vm6, %v1163_v41  ;;  %v1682_v30 = vmul.f32 %v12372_v11, %v13472_v36  ;;  %v12374_v17 = vpop.eup %12373 }
 0x7cd   :  { %11120 = vmatprep.mubr.msk.f32.mxu0 %vm12784_vm0, %v16290_v0  ;;  %v12376_v31 = vpop.eup %12375 }
 0x7ce   :  { %v1684_v36 = vmul.f32 %v12376_v31, %v13478_v60 }
 0x7cf   :  { %v1924_v18 = vpop.permute.xlu1 %1923 }
 0x7d0   :  { %11121 = vmatmul.mubr.msk.f32.vlgmr.msra.gmra.mxu0 %vm421_vm6, %v1446_v47 }
 0x7d1   :  { %11145 = vmatpush3.msk.msra.mxu0 %vm50_vm3, %v13498_v50  ;;  %11123 = vmatprep.mubr.msk.f32.mxu0 %vm12784_vm0, %v16290_v0  ;;  %v1448_v50 = vmul.f32 %v12370_v8, %v13459_v2  ;;  %v1683_v2 = vmul.f32 %v12374_v17, %v13466_v48 }
 0x7d2   :  { %11146 = vmatprep.subr.mxu0 %v16290_v0 }
 0x7d3   :  { %11147 = vmatpush3.msra.mxu0 %v1688_v35  ;;  %v1922_v28 = vpop.permute.xlu1 %1921  ;;  %v12378_v35 = vpop.eup %12377 }
 0x7d4   :  { %11148 = vmatprep.subr.mxu0 %v16290_v0  ;;  %11124 = vmatmul.mubr.msk.f32.gmra.mxu0 %vm421_vm6, %v1447_v15  ;;  %v1918_v48 = vmul.f32 %v12378_v35, %v13486_v42  ;;  %v12380_v25 = vpop.eup %12379 }
 0x7d5   :  { %11149 = vmatpush3.msra.mxu0 %v1686_v33  ;;  %11126 = vmatprep.mubr.msk.f32.mxu0 %vm12784_vm0, %v16290_v0  ;;  %v1919_v60 = vmul.f32 %v12380_v25, %v13480_v63  ;;  %v12382_v6 = vpop.eup %12381 }
 0x7d6   :  { %11174 = vmatprep.subr.mxu0 %v16290_v0  ;;  %v1920_v42 = vmul.f32 %v12382_v6, %v13490_v9  ;;  %v12384_v7 = vpop.eup %12383 }
 0x7d7   :  { %v2162_v34 = vpop.permute.xlu1 %2161  ;;  %v2154_v63 = vmul.f32 %v12384_v7, %v13494_v46 }
 0x7d8   :  { %11127 = vmatmul.mubr.msk.f32.gmra.mxu0 %vm421_vm6, %v1448_v50 }
 0x7d9   :  { %11150 = vmatprep.mubr.msk.f32.mxu0 %vm12784_vm0, %v16290_v0 }
 0x7db   :  { %v2160_v10 = vpop.permute.xlu1 %2159 }
 0x7dc   :  { %11151 = vmatmul.mubr.msk.f32.vlgmr.msra.gmra.mxu0 %vm421_vm6, %v1682_v30 }
 0x7dd   :  { %11175 = vmatpush3.msk.msra.mxu0 %vm50_vm3, %v1926_v52  ;;  %11153 = vmatprep.mubr.msk.f32.mxu0 %vm12784_vm0, %v16290_v0 }
 0x7de   :  { %11176 = vmatprep.subr.mxu0 %v16290_v0 }
 0x7df   :  { %11177 = vmatpush3.msra.mxu0 %v1924_v18  ;;  %v2158_v37 = vpop.permute.xlu1 %2157 }
 0x7e0   :  { %11178 = vmatprep.subr.mxu0 %v16290_v0  ;;  %11154 = vmatmul.mubr.msk.f32.gmra.mxu0 %vm421_vm6, %v1683_v2 }
 0x7e1   :  { %11179 = vmatpush3.msra.mxu0 %v1922_v28  ;;  %11156 = vmatprep.mubr.msk.f32.mxu0 %vm12784_vm0, %v16290_v0 }
 0x7e2   :  { %11204 = vmatprep.subr.mxu0 %v16290_v0 }
 0x7e4   :  { %11157 = vmatmul.mubr.msk.f32.gmra.mxu0 %vm421_vm6, %v1684_v36 }
 0x7e5   :  { %11180 = vmatprep.mubr.msk.f32.mxu0 %vm12784_vm0, %v16290_v0 }
 0x7e8   :  { %11181 = vmatmul.mubr.msk.f32.vlgmr.msra.gmra.mxu0 %vm421_vm6, %v1918_v48 }
 0x7e9   :  { %11205 = vmatpush3.msk.msra.mxu0 %vm50_vm3, %v2162_v34  ;;  %11183 = vmatprep.mubr.msk.f32.mxu0 %vm12784_vm0, %v16290_v0 }
 0x7ea   :  { %11206 = vmatprep.subr.mxu0 %v16290_v0 }
 0x7eb   :  { %11207 = vmatpush3.msra.mxu0 %v2160_v10 }
 0x7ec   :  { %11208 = vmatprep.subr.mxu0 %v16290_v0  ;;  %11184 = vmatmul.mubr.msk.f32.gmra.mxu0 %vm421_vm6, %v1919_v60 }
 0x7ed   :  { %11209 = vmatpush3.msra.mxu0 %v2158_v37  ;;  %11186 = vmatprep.mubr.msk.f32.mxu0 %vm12784_vm0, %v16290_v0 }
 0x7ee   :  { %11235 = vmatprep.subr.bf16.mxu0 %v16290_v0 }
 0x7f0   :  { %v2147_v1 = vpop.xlane.xlu0 %2146  ;;  %11187 = vmatmul.mubr.msk.f32.gmra.mxu0 %vm421_vm6, %v1920_v42 }
 0x7f1   :  { %12385 = vrcp.f32 %v2147_v1  ;;  %11210 = vmatprep.mubr.msk.f32.mxu0 %vm12784_vm0, %v16290_v0 }
 0x7f4   :  { %11211 = vmatmul.mubr.msk.f32.vlgmr.msra.gmra.mxu0 %vm421_vm6, %v2154_v63 }
 0x7f5   :  { %11213 = vmatprep.mubr.msk.f32.mxu0 %vm12784_vm0, %v16290_v0 }
 0x7fe   :  { %v12386_v5 = vpop.eup %12385 }
 0x7ff   :  { %v2155_v9 = vmul.f32 %v12386_v5, %v13513_v58 }
 0x801   :  { %11214 = vmatmul.mubr.msk.f32.gmra.mxu0 %vm421_vm6, %v2155_v9 }
 0x802   :  { %11216 = vmatprep.mubr.msk.f32.mxu0 %vm12784_vm0, %v16290_v0 }
 0x810   :  { %v2150_v62 = vpop.xlane.xlu1 %2149 }
 0x811   :  { %12387 = vrcp.f32 %v2150_v62 }
 0x81e   :  { %v12388_v39 = vpop.eup %12387 }
 0x81f   :  { %v2156_v24 = vmul.f32 %v12388_v39, %v13529_v55  ;;  %v12229_v55 = vld [vmem:[%s16286_s4 + $0x8] sm:$0xff]  }
 0x820   :  { %11220 = vmatpush3.bf16.msra.mxu1 %v12229_v55 }
 0x821   :  { %11217 = vmatmul.mubr.msk.f32.gmra.mxu0 %vm421_vm6, %v2156_v24  ;;  %11221 = vmatprep.subr.bf16.mxu1 %v16290_v0 }
 0x822   :  { %11239 = vmatprep.mubr.msk.bf16.mxu0 %vm12784_vm0, %v16290_v0 }
 0x824   :  { %11222 = vmatpush3.bf16.msra.mxu1 %v12230_v49 }
 0x825   :  { %11251 = vmatprep.subr.bf16.mxu1 %v16290_v0 }
 0x83f   :  { %v777_v46 = vpop.f32.mrf.mxu0 }
 0x841   :  { %v11032_v43 = vpop.f32.mrf.mxu0 }
 0x843   :  { %v782_v3 = vpop.f32.mrf.mxu0 }
 0x844   :  { %v12124_v13 = vpack.i.bf16 %v782_v3, %v777_v46 }
 0x845   :  { %v11035_v58 = vpop.f32.mrf.mxu0 }
 0x846   :  { %12125 = vrot.lane.b32.xlu0 %v12124_v13, %s12796_s18 }
 0x847   :  { %v787_v45 = vpop.f32.mrf.mxu0 }
 0x849   :  { %v11038_v19 = vpop.f32.mrf.mxu0 }
 0x84b   :  { %v1013_v23 = vpop.f32.mrf.mxu0 }
 0x84d   :  { %v11062_v40 = vpop.f32.mrf.mxu0 }
 0x87c   :  { %v1018_v51 = vpop.f32.mrf.mxu0 }
 0x87d   :  { %v12129_v26 = vpack.i.bf16 %v1018_v51, %v1013_v23 }
 0x87e   :  { %v11065_v16 = vpop.f32.mrf.mxu0 }
 0x87f   :  { %12130 = vrot.lane.b32.xlu0 %v12129_v26, %s12797_s21 }
 0x880   :  { %v1023_v4 = vpop.f32.mrf.mxu0 }
 0x882   :  { %v11068_v53 = vpop.f32.mrf.mxu0 }
 0x884   :  { %v1249_v41 = vpop.f32.mrf.mxu0 }
 0x886   :  { %v11092_v22 = vpop.f32.mrf.mxu0 }
 0x888   :  { %v1254_v47 = vpop.f32.mrf.mxu0 }
 0x889   :  { %v12134_v54 = vpack.i.bf16 %v1254_v47, %v1249_v41 }
 0x88a   :  { %v11095_v52 = vpop.f32.mrf.mxu0 }
 0x88b   :  { %12135 = vrot.lane.b32.xlu0 %v12134_v54, %s12798_s0 }
 0x88c   :  { %v1259_v44 = vpop.f32.mrf.mxu0 }
 0x88e   :  { %v11098_v15 = vpop.f32.mrf.mxu0 }
 0x890   :  { %v13653_v8 = vpop.f32.mrf.mxu0 }
 0x892   :  { %v11122_v33 = vpop.f32.mrf.mxu0 }
 0x894   :  { %v13655_v18 = vpop.f32.mrf.mxu0 }
 0x896   :  { %v11125_v50 = vpop.f32.mrf.mxu0 }
 0x898   :  { %v13657_v11 = vpop.f32.mrf.mxu0 }
 0x89a   :  { %v11128_v30 = vpop.f32.mrf.mxu0 }
 0x89c   :  { %v1770_v28 = vpop.f32.mrf.mxu0 }
 0x89e   :  { %v11152_v17 = vpop.f32.mrf.mxu0 }
 0x8a0   :  { %v1775_v2 = vpop.f32.mrf.mxu0 }
 0x8a1   :  { %v12139_v31 = vpack.i.bf16 %v1775_v2, %v1770_v28 }
 0x8a2   :  { %v11155_v34 = vpop.f32.mrf.mxu0 }
 0x8a3   :  { %12140 = vrot.lane.b32.xlu0 %v12139_v31, %s12796_s18 }
 0x8a4   :  { %v1780_v36 = vpop.f32.mrf.mxu0 }
 0x8a6   :  { %v11158_v35 = vpop.f32.mrf.mxu0 }
 0x8a7   :  { %1270 = vrot.lane.b32.xlu0 %v787_v45, %s12796_s18 }
 0x8a8   :  { %v2006_v48 = vpop.f32.mrf.mxu0 }
 0x8aa   :  { %v11182_v10 = vpop.f32.mrf.mxu0 }
 0x8ab   :  { %1282 = vrot.lane.b32.xlu0 %v1023_v4, %s12797_s21 }
 0x8ac   :  { %v2011_v25 = vpop.f32.mrf.mxu0 }
 0x8ad   :  { %v12144_v60 = vpack.i.bf16 %v2011_v25, %v2006_v48 }
 0x8ae   :  { %v11185_v6 = vpop.f32.mrf.mxu0 }
 0x8af   :  { %12145 = vrot.lane.b32.xlu1 %v12144_v60, %s12797_s21 }
 0x8b0   :  { %v2016_v37 = vpop.f32.mrf.mxu0 }
 0x8b2   :  { %v11188_v42 = vpop.f32.mrf.mxu0 }
 0x8b3   :  { %2263 = vrot.lane.b32.xlu1 %v1780_v36, %s12796_s18 }
 0x8b4   :  { %v2242_v7 = vpop.f32.mrf.mxu0 }
 0x8b6   :  { %v11212_v1 = vpop.f32.mrf.mxu0 }
 0x8b8   :  { %v12126_v24 = vpop.permute.xlu0 %12125 }
 0x8b9   :  { %v12128_v43 = vunpack.i.h.bf16 %v12126_v24  ;;  %v12127_v3 = vunpack.i.l.bf16 %v12126_v24 }
 0x8bb   :  { %v1300_v19 = vsel %vm328_vm5, %v13291_v59, %v12128_v43  ;;  %v1299_v23 = vsel %vm328_vm5, %v13289_v56, %v12127_v3 }
 0x8c1   :  { %v2247_v63 = vpop.f32.mrf.mxu0 }
 0x8c2   :  { %v12149_v5 = vpack.i.bf16 %v2247_v63, %v2242_v7 }
 0x8c3   :  { %v11215_v9 = vpop.f32.mrf.mxu0 }
 0x8c4   :  { %12150 = vrot.lane.b32.xlu0 %v12149_v5, %s12798_s0 }
 0x8c8   :  { %1294 = vrot.lane.b32.xlu0 %v1259_v44, %s12798_s0 }
 0x8cc   :  { %2275 = vrot.lane.b32.xlu0 %v2016_v37, %s12797_s21 }
 0x8e1   :  { %v2252_v62 = vpop.f32.mrf.mxu0 }
 0x8e2   :  { %2287 = vrot.lane.b32.xlu1 %v2252_v62, %s12798_s0  ;;  %v13705_v62 = vsub.s32 3, %v12932_v12 }
 0x8e3   :  { %v11218_v39 = vpop.f32.mrf.mxu0 }
 0x8f1   :  { %v12131_v46 = vpop.permute.xlu0 %12130 }
 0x8f2   :  { %v12133_v13 = vunpack.i.h.bf16 %v12131_v46  ;;  %v12132_v58 = vunpack.i.l.bf16 %v12131_v46 }
 0x8f4   :  { %v1304_v51 = vsel %vm1302_vm9, %v1300_v19, %v12133_v13  ;;  %v1303_v26 = vsel %vm1302_vm9, %v1299_v23, %v12132_v58 }
 0x8fd   :  { %v12136_v45 = vpop.permute.xlu0 %12135 }
 0x8fe   :  { %v12138_v40 = vunpack.i.h.bf16 %v12136_v45  ;;  %v12137_v55 = vunpack.i.l.bf16 %v12136_v45 }
 0x900   :  { %v1308_v16 = vsel %vm1306_vm10, %v1304_v51, %v12138_v40  ;;  %v1307_v49 = vsel %vm1306_vm10, %v1303_v26, %v12137_v55 }
 0x901   :  { %v2313_v4 = vpack.c.bf16 %v1308_v16, %v1307_v49 }
 0x903   :  { %11224 = vmatmul.mubr.msk.bf16.vlgmr.msra.gmra.mxu1 %vm145_vm2, %v2313_v4 }
 0x904   :  { %11227 = vmatprep.mubr.msk.bf16.mxu1 %vm12784_vm0, %v16290_v0 }
 0x915   :  { %v12141_v59 = vpop.permute.xlu0 %12140 }
 0x916   :  { %v12143_v22 = vunpack.i.h.bf16 %v12141_v59  ;;  %v12142_v47 = vunpack.i.l.bf16 %v12141_v59 }
 0x918   :  { %v2293_v15 = vsel %vm328_vm5, %v13655_v18, %v12143_v22  ;;  %v2292_v33 = vsel %vm328_vm5, %v13653_v8, %v12142_v47 }
 0x919   :  { %v1271_v53 = vpop.permute.xlu0 %1270 }
 0x91a   :  { %v1301_v2 = vsel %vm328_vm5, %v13293_v61, %v1271_v53 }
 0x91d   :  { %v1283_v56 = vpop.permute.xlu0 %1282 }
 0x91e   :  { %v1305_v36 = vsel %vm1302_vm9, %v1301_v2, %v1283_v56 }
 0x921   :  { %v12146_v41 = vpop.permute.xlu1 %12145 }
 0x922   :  { %v12148_v54 = vunpack.i.h.bf16 %v12146_v41  ;;  %v12147_v52 = vunpack.i.l.bf16 %v12146_v41 }
 0x924   :  { %v2296_v28 = vsel %vm1302_vm9, %v2293_v15, %v12148_v54  ;;  %v2295_v17 = vsel %vm1302_vm9, %v2292_v33, %v12147_v52 }
 0x925   :  { %v2264_v61 = vpop.permute.xlu1 %2263 }
 0x926   :  { %v2294_v37 = vsel %vm328_vm5, %v13657_v11, %v2264_v61  ;;  %v13710_v11 = vld [vmem:[%s16285_s7] sm:$0xff] }
 0x927   :  { %v2405_v39 = vrot.slane %v13710_v11, %v13705_v62 }
 0x936   :  { %v12151_v44 = vpop.permute.xlu0 %12150 }
 0x937   :  { %v12153_v50 = vunpack.i.h.bf16 %v12151_v44  ;;  %v12152_v30 = vunpack.i.l.bf16 %v12151_v44 }
 0x939   :  { %v2299_v31 = vsel %vm1306_vm10, %v2296_v28, %v12153_v50  ;;  %v2298_v34 = vsel %vm1306_vm10, %v2295_v17, %v12152_v30 }
 0x93a   :  { %v2305_v35 = vrot.slane %v2299_v31, 7  ;;  %v2304_v18 = vrot.slane %v2298_v34, 7  ;;  %v1295_v48 = vpop.permute.xlu0 %1294  ;;  %v12231_v31 = vld [vmem:[%s16287_s5 + $0x8] sm:$0xff]   ;;  %v12232_v34 = vld [vmem:[%s16287_s5] sm:$0xff]  }
 0x93b   :  { %v1309_v8 = vsel %vm1306_vm10, %v1305_v36, %v1295_v48  ;;  %11236 = vmatpush3.bf16.msra.mxu0 %v12231_v31 }
 0x93c   :  { %v2306_v10 = vsel %vm50_vm3, %v2304_v18, %v2305_v35  ;;  %v2312_v25 = vsel %vm50_vm3, %v1309_v8, %v2304_v18  ;;  %11237 = vmatprep.subr.bf16.mxu0 %v16290_v0 }
 0x93d   :  { %v2314_v60 = vpack.c.bf16 %v2306_v10, %v2312_v25 }
 0x93e   :  { %v2276_v6 = vpop.permute.xlu0 %2275 }
 0x93f   :  { %11228 = vmatmul.mubr.msk.bf16.gmra.mxu1 %vm145_vm2, %v2314_v60  ;;  %v2297_v42 = vsel %vm1302_vm9, %v2294_v37, %v2276_v6  ;;  %11238 = vmatpush3.bf16.msra.mxu0 %v12232_v34 }
 0x940   :  { %11231 = vmatprep.mubr.msk.bf16.mxu1 %vm12784_vm0, %v16290_v0  ;;  %11279 = vmatprep.subr.bf16.mxu0 %v16290_v0 }
 0x954   :  { %v2288_v7 = vpop.permute.xlu1 %2287 }
 0x955   :  { %v2300_v1 = vsel %vm1306_vm10, %v2297_v42, %v2288_v7 }
 0x956   :  { %v2307_v63 = vrot.slane %v2300_v1, 7 }
 0x958   :  { %v2308_v5 = vsel %vm50_vm3, %v2305_v35, %v2307_v63 }
 0x959   :  { %v2315_v9 = vpack.c.bf16 %v2308_v5, %v2308_v5 }
 0x95b   :  { %11232 = vmatmul.mubr.msk.bf16.gmra.mxu1 %vm145_vm2, %v2315_v9 }
 0x95c   :  { %11267 = vmatprep.mubr.msk.bf16.mxu1 %vm12784_vm0, %v16290_v0 }
 0x9c3   :  { %v2375_v24 = vpop.f32.mrf.mxu1 }
 0x9c4   :  { %v2397_v46 = vadd.f32 %v2375_v24, %v12887_v14 }
 0x9c5   :  { %v11225_v43 = vpop.f32.mrf.mxu1 }
 0x9c6   :  { %v13715_v3 = vadd.f32 %v2405_v39, %v2397_v46 }
 0x9c7   :  { %v2378_v13 = vpop.f32.mrf.mxu1 }
 0x9c8   :  { %v2398_v58 = vadd.f32 %v2378_v13, %v12897_v21  ;;  %v2411_v45 = vsel %vm145_vm2, %v13715_v3, 0.0  ;;  %v13758_v13 = vsub.s32 4, %v12932_v12 }
 0x9c9   :  { %v11226_v19 = vpop.f32.mrf.mxu1  ;;  %2412 = vadd.xlane.f32.xlu0 %v2411_v45 }
 0x9ca   :  { %v13720_v23 = vadd.f32 %v2405_v39, %v2398_v58  ;;  %v2479_v45 = vrot.slane %v13710_v11, %v13758_v13 }
 0x9cc   :  { %v2414_v40 = vsel %vm145_vm2, %v13720_v23, 0.0 }
 0x9cd   :  { %2415 = vadd.xlane.f32.xlu1 %v2414_v40  ;;  %v13763_v40 = vsub.s32 5, %v12932_v12 }
 0x9ff   :  { %v2383_v55 = vpop.f32.mrf.mxu1 }
 0xa00   :  { %v2399_v14 = vadd.f32 %v2383_v55, %v12902_v27 }
 0xa01   :  { %v11229_v51 = vpop.f32.mrf.mxu1 }
 0xa02   :  { %v13725_v26 = vadd.f32 %v2405_v39, %v2399_v14 }
 0xa03   :  { %v2386_v16 = vpop.f32.mrf.mxu1 }
 0xa04   :  { %v2400_v21 = vadd.f32 %v2386_v16, %v12907_v32  ;;  %v2417_v49 = vsel %vm145_vm2, %v13725_v26, 0.0  ;;  %v2488_v16 = vrot.slane %v13710_v11, %v13763_v40 }
 0xa05   :  { %2418 = vadd.xlane.f32.xlu0 %v2417_v49  ;;  %v11230_v4 = vpop.f32.mrf.mxu1 }
 0xa06   :  { %v13730_v59 = vadd.f32 %v2405_v39, %v2400_v21 }
 0xa08   :  { %v2420_v53 = vsel %vm145_vm2, %v13730_v59, 0.0 }
 0xa09   :  { %2421 = vadd.xlane.f32.xlu0 %v2420_v53 }
 0xa1b   :  { %v2391_v41 = vpop.f32.mrf.mxu1 }
 0xa1c   :  { %v2401_v27 = vadd.f32 %v2391_v41, %v12912_v38 }
 0xa1d   :  { %v11233_v56 = vpop.f32.mrf.mxu1 }
 0xa1e   :  { %v13735_v22 = vadd.f32 %v2405_v39, %v2401_v27 }
 0xa1f   :  { %v2394_v47 = vpop.f32.mrf.mxu1 }
 0xa20   :  { %v2423_v32 = vsel %vm158_vm4, %v13735_v22, 0.0 }
 0xa21   :  { %2424 = vadd.xlane.f32.xlu0 %v2423_v32  ;;  %v11234_v54 = vpop.f32.mrf.mxu1 }
 0xa52   :  { %v2413_v52 = vpop.xlane.xlu0 %2412 }
 0xa53   :  { %v2426_v44 = vmul.f32 0.03125, %v2413_v52 }
 0xa55   :  { %v2431_v15 = vsub.f32 %v13715_v3, %v2426_v44 }
 0xa56   :  { %v2416_v33 = vpop.xlane.xlu1 %2415 }
 0xa57   :  { %v2427_v50 = vmul.f32 0.03125, %v2416_v33  ;;  %v2436_v30 = vmul.f32 %v2431_v15, %v2431_v15 }
 0xa59   :  { %v2432_v28 = vsub.f32 %v13720_v23, %v2427_v50  ;;  %v2441_v38 = vsel %vm145_vm2, %v2436_v30, 0.0 }
 0xa5a   :  { %2442 = vadd.xlane.f32.xlu1 %v2441_v38 }
 0xa5b   :  { %v2437_v17 = vmul.f32 %v2432_v28, %v2432_v28 }
 0xa5d   :  { %v2444_v2 = vsel %vm145_vm2, %v2437_v17, 0.0 }
 0xa5e   :  { %2445 = vadd.xlane.f32.xlu0 %v2444_v2 }
 0xa8e   :  { %v2419_v36 = vpop.xlane.xlu0 %2418 }
 0xa8f   :  { %v2428_v35 = vmul.f32 0.03125, %v2419_v36 }
 0xa91   :  { %v2433_v18 = vsub.f32 %v13725_v26, %v2428_v35 }
 0xa92   :  { %v2422_v48 = vpop.xlane.xlu0 %2421 }
 0xa93   :  { %v2429_v8 = vmul.f32 0.03125, %v2422_v48  ;;  %v2438_v10 = vmul.f32 %v2433_v18, %v2433_v18 }
 0xa95   :  { %v2434_v25 = vsub.f32 %v13730_v59, %v2429_v8  ;;  %v2447_v60 = vsel %vm145_vm2, %v2438_v10, 0.0  ;;  %v12233_v10 = vld [vmem:[%s16288_s6 + $0x38] sm:$0xff]  }
 0xa96   :  { %2448 = vadd.xlane.f32.xlu1 %v2447_v60  ;;  %11252 = vmatpush3.bf16.msra.mxu1 %v12233_v10  ;;  %v12235_v60 = vld [vmem:[%s16288_s6 + $0x28] sm:$0xff]  }
 0xa97   :  { %v2439_v61 = vmul.f32 %v2434_v25, %v2434_v25  ;;  %11253 = vmatprep.subr.bf16.mxu1 %v16290_v0 }
 0xa99   :  { %v2450_v6 = vsel %vm145_vm2, %v2439_v61, 0.0  ;;  %v12236_v61 = vld [vmem:[%s16288_s6 + $0x20] sm:$0xff]  }
 0xa9a   :  { %2451 = vadd.xlane.f32.xlu0 %v2450_v6  ;;  %v12237_v6 = vld [vmem:[%s16288_s6 + $0x18] sm:$0xff]  }
 0xaaa   :  { %v2425_v37 = vpop.xlane.xlu0 %2424 }
 0xaab   :  { %v2430_v42 = vmul.f32 0.03125, %v2425_v37  ;;  %v12238_v37 = vld [vmem:[%s16288_s6 + $0x10] sm:$0xff]  }
 0xaad   :  { %v2435_v7 = vsub.f32 %v13735_v22, %v2430_v42  ;;  %v12239_v42 = vld [vmem:[%s16288_s6 + $0x8] sm:$0xff]  }
 0xaaf   :  { %v2440_v1 = vmul.f32 %v2435_v7, %v2435_v7 }
 0xab1   :  { %v2453_v63 = vsel %vm158_vm4, %v2440_v1, 0.0  ;;  %v13809_v1 = vsub.s32 6, %v12932_v12 }
 0xab2   :  { %2454 = vadd.xlane.f32.xlu1 %v2453_v63 }
 0xab3   :  { %v13813_v63 = vrot.slane %v13710_v11, %v13809_v1 }
 0xae3   :  { %v2443_v5 = vpop.xlane.xlu1 %2442 }
 0xae4   :  { %v2456_v9 = vmul.f32 0.03125, %v2443_v5 }
 0xae6   :  { %v2461_v39 = vadd.f32 1e-05, %v2456_v9 }
 0xae7   :  { %v2446_v24 = vpop.xlane.xlu0 %2445 }
 0xae8   :  { %12389 = vrsqrt.f32 %v2461_v39  ;;  %v2457_v46 = vmul.f32 0.03125, %v2446_v24 }
 0xaea   :  { %v2462_v43 = vadd.f32 1e-05, %v2457_v46 }
 0xaec   :  { %12391 = vrsqrt.f32 %v2462_v43 }
 0xaf5   :  { %v12390_v58 = vpop.eup %12389 }
 0xaf6   :  { %v2471_v19 = vmul.f32 %v12390_v58, %v2431_v15 }
 0xaf8   :  { %v2480_v14 = vmul.f32 %v2479_v45, %v2471_v19 }
 0xaf9   :  { %v12392_v55 = vpop.eup %12391 }
 0xafa   :  { %v2472_v51 = vmul.f32 %v12392_v55, %v2432_v28  ;;  %v2489_v49 = vadd.f32 %v2488_v16, %v2480_v14 }
 0xafc   :  { %v2481_v21 = vmul.f32 %v2479_v45, %v2472_v51 }
 0xafe   :  { %v2490_v4 = vadd.f32 %v2488_v16, %v2481_v21 }
 0xb00   :  { %v2494_v53 = vpack.c.bf16 %v2490_v4, %v2489_v49 }
 0xb02   :  { %11240 = vmatmul.mubr.msk.bf16.vlgmr.msra.gmra.mxu0 %vm145_vm2, %v2494_v53 }
 0xb03   :  { %11243 = vmatprep.mubr.msk.bf16.mxu0 %vm12784_vm0, %v16290_v0 }
 0xb1f   :  { %v2449_v41 = vpop.xlane.xlu1 %2448 }
 0xb20   :  { %v2458_v27 = vmul.f32 0.03125, %v2449_v41 }
 0xb22   :  { %v2463_v56 = vadd.f32 1e-05, %v2458_v27 }
 0xb23   :  { %v2452_v47 = vpop.xlane.xlu0 %2451 }
 0xb24   :  { %12393 = vrsqrt.f32 %v2463_v56  ;;  %v2459_v32 = vmul.f32 0.03125, %v2452_v47 }
 0xb26   :  { %v2464_v54 = vadd.f32 1e-05, %v2459_v32 }
 0xb28   :  { %12395 = vrsqrt.f32 %v2464_v54 }
 0xb31   :  { %v12394_v52 = vpop.eup %12393 }
 0xb32   :  { %v2473_v44 = vmul.f32 %v12394_v52, %v2433_v18 }
 0xb34   :  { %v2482_v50 = vmul.f32 %v2479_v45, %v2473_v44 }
 0xb35   :  { %v12396_v15 = vpop.eup %12395 }
 0xb36   :  { %v2474_v33 = vmul.f32 %v12396_v15, %v2434_v25  ;;  %v2491_v28 = vadd.f32 %v2488_v16, %v2482_v50  ;;  %v12234_v25 = vld [vmem:[%s16288_s6 + $0x30] sm:$0xff]  }
 0xb37   :  { %11254 = vmatpush3.bf16.msra.mxu1 %v12234_v25 }
 0xb38   :  { %v2483_v30 = vmul.f32 %v2479_v45, %v2474_v33  ;;  %11255 = vmatprep.subr.bf16.mxu1 %v16290_v0 }
 0xb3a   :  { %v2492_v38 = vadd.f32 %v2488_v16, %v2483_v30 }
 0xb3b   :  { %v2455_v17 = vpop.xlane.xlu1 %2454  ;;  %11256 = vmatpush3.bf16.msra.mxu1 %v12235_v60 }
 0xb3c   :  { %v2460_v2 = vmul.f32 0.03125, %v2455_v17  ;;  %v2495_v31 = vpack.c.bf16 %v2492_v38, %v2491_v28  ;;  %11257 = vmatprep.subr.bf16.mxu1 %v16290_v0 }
 0xb3e   :  { %v2465_v34 = vadd.f32 1e-05, %v2460_v2  ;;  %11244 = vmatmul.mubr.msk.bf16.gmra.mxu0 %vm145_vm2, %v2495_v31 }
 0xb3f   :  { %11247 = vmatprep.mubr.msk.bf16.mxu0 %vm12784_vm0, %v16290_v0  ;;  %11258 = vmatpush3.bf16.msra.mxu1 %v12236_v61 }
 0xb40   :  { %12397 = vrsqrt.f32 %v2465_v34  ;;  %11259 = vmatprep.subr.bf16.mxu1 %v16290_v0 }
 0xb43   :  { %11260 = vmatpush3.bf16.msra.mxu1 %v12237_v6 }
 0xb44   :  { %11261 = vmatprep.subr.bf16.mxu1 %v16290_v0 }
 0xb47   :  { %11262 = vmatpush3.bf16.msra.mxu1 %v12238_v37 }
 0xb48   :  { %11263 = vmatprep.subr.bf16.mxu1 %v16290_v0 }
 0xb4b   :  { %11264 = vmatpush3.bf16.msra.mxu1 %v12239_v42 }
 0xb4c   :  { %11265 = vmatprep.subr.bf16.mxu1 %v16290_v0 }
 0xb4d   :  { %v12398_v36 = vpop.eup %12397 }
 0xb4e   :  { %v2475_v35 = vmul.f32 %v12398_v36, %v2435_v7  ;;  %v12240_v7 = vld [vmem:[%s16288_s6] sm:$0xff]  }
 0xb4f   :  { %11266 = vmatpush3.bf16.msra.mxu1 %v12240_v7 }
 0xb50   :  { %v2484_v48 = vmul.f32 %v2479_v45, %v2475_v35  ;;  %11310 = vmatprep.subr.mxu1 %v16290_v0 }
 0xb52   :  { %v2493_v18 = vadd.f32 %v2488_v16, %v2484_v48 }
 0xb54   :  { %v2496_v8 = vpack.c.bf16 %v2493_v18, %v2493_v18 }
 0xb56   :  { %11248 = vmatmul.mubr.msk.bf16.gmra.mxu0 %vm145_vm2, %v2496_v8 }
 0xb57   :  { %11283 = vmatprep.mubr.msk.bf16.mxu0 %vm12784_vm0, %v16290_v0 }
 0xbc2   :  { %v2560_v5 = vpop.f32.mrf.mxu0 }
 0xbc3   :  { %v2561_v9 = vadd.f32 %v2560_v5, %v13813_v63 }
 0xbc4   :  { %v11241_v39 = vpop.f32.mrf.mxu0 }
 0xbc5   :  { %v2587_v24 = vmul.f32 0.70710677, %v2561_v9 }
 0xbc6   :  { %v2563_v46 = vpop.f32.mrf.mxu0 }
 0xbc7   :  { %v2592_v43 = vand.u32 2147483647, %v2587_v24  ;;  %v2564_v58 = vadd.f32 %v2563_v46, %v13813_v63  ;;  %vm2692_vm11 = vcmp.ge.f32.partialorder %v2587_v24, 0.0 }
 0xbc8   :  { %v11242_v45 = vpop.f32.mrf.mxu0 }
 0xbc9   :  { %v2597_v19 = vmul.f32 0.3275911, %v2592_v43  ;;  %v2588_v55 = vmul.f32 0.70710677, %v2564_v58  ;;  %v2662_v49 = vmul.f32 %v2592_v43, %v2592_v43  ;;  %v2582_v43 = vmul.f32 0.5, %v2561_v9 }
 0xbca   :  { %v2583_v45 = vmul.f32 0.5, %v2564_v58 }
 0xbcb   :  { %v2602_v14 = vadd.f32 1.0, %v2597_v19  ;;  %v2593_v51 = vand.u32 2147483647, %v2588_v55  ;;  %v2667_v4 = vsub.f32 0.0, %v2662_v49  ;;  %vm2693_vm12 = vcmp.ge.f32.partialorder %v2588_v55, 0.0 }
 0xbcd   :  { %12399 = vrcp.f32 %v2602_v14  ;;  %v2598_v16 = vmul.f32 0.3275911, %v2593_v51  ;;  %v2663_v53 = vmul.f32 %v2593_v51, %v2593_v51  ;;  %v2672_v56 = vmul.f32 1.442695, %v2667_v4 }
 0xbcf   :  { %v2603_v21 = vadd.f32 1.0, %v2598_v16  ;;  %v2668_v47 = vsub.f32 0.0, %v2663_v53 }
 0xbd1   :  { %12401 = vrcp.f32 %v2603_v21  ;;  %v2674_v15 = vmul.f32 1.442695, %v2668_v47 }
 0xbd2   :  { %12403 = vpow2.f32 %v2672_v56 }
 0xbd3   :  { %12405 = vpow2.f32 %v2674_v15 }
 0xbda   :  { %v12400_v41 = vpop.eup %12399 }
 0xbdb   :  { %v2617_v27 = vmul.f32 1.0614054, %v12400_v41 }
 0xbdd   :  { %v2622_v32 = vadd.f32 -1.4531521, %v2617_v27 }
 0xbde   :  { %v12402_v54 = vpop.eup %12401 }
 0xbdf   :  { %v2627_v52 = vmul.f32 %v12400_v41, %v2622_v32  ;;  %v2618_v44 = vmul.f32 1.0614054, %v12402_v54  ;;  %v12404_v18 = vpop.eup %12403 }
 0xbe0   :  { %v12406_v61 = vpop.eup %12405 }
 0xbe1   :  { %v2632_v33 = vadd.f32 1.4214138, %v2627_v52  ;;  %v2623_v50 = vadd.f32 -1.4531521, %v2618_v44 }
 0xbe3   :  { %v2637_v30 = vmul.f32 %v12400_v41, %v2632_v33  ;;  %v2628_v28 = vmul.f32 %v12402_v54, %v2623_v50 }
 0xbe5   :  { %v2642_v38 = vadd.f32 -0.28449672, %v2637_v30  ;;  %v2633_v17 = vadd.f32 1.4214138, %v2628_v28 }
 0xbe7   :  { %v2647_v2 = vmul.f32 %v12400_v41, %v2642_v38  ;;  %v2638_v31 = vmul.f32 %v12402_v54, %v2633_v17 }
 0xbe9   :  { %v2652_v34 = vadd.f32 0.2548296, %v2647_v2  ;;  %v2643_v36 = vadd.f32 -0.28449672, %v2638_v31 }
 0xbeb   :  { %v2657_v35 = vmul.f32 %v12400_v41, %v2652_v34  ;;  %v2648_v48 = vmul.f32 %v12402_v54, %v2643_v36 }
 0xbed   :  { %v2682_v8 = vmul.f32 %v12404_v18, %v2657_v35  ;;  %v2653_v10 = vadd.f32 0.2548296, %v2648_v48 }
 0xbef   :  { %v2687_v25 = vsub.f32 1.0, %v2682_v8  ;;  %v2658_v60 = vmul.f32 %v12402_v54, %v2653_v10 }
 0xbf1   :  { %v2697_v6 = vsub.f32 0.0, %v2687_v25  ;;  %v2683_v37 = vmul.f32 %v12406_v61, %v2658_v60 }
 0xbf3   :  { %v2702_v42 = vsel %vm2692_vm11, %v2687_v25, %v2697_v6  ;;  %v2688_v7 = vsub.f32 1.0, %v2683_v37 }
 0xbf4   :  { %v2707_v39 = vadd.f32 1.0, %v2702_v42 }
 0xbf5   :  { %v2698_v5 = vsub.f32 0.0, %v2688_v7 }
 0xbf6   :  { %v2712_v14 = vmul.f32 %v2707_v39, %v2582_v43 }
 0xbf7   :  { %v2703_v46 = vsel %vm2693_vm12, %v2688_v7, %v2698_v5 }
 0xbf8   :  { %v2708_v19 = vadd.f32 1.0, %v2703_v46 }
 0xbfa   :  { %v2713_v51 = vmul.f32 %v2708_v19, %v2583_v45 }
 0xbfc   :  { %v2717_v16 = vpack.c.bf16 %v2713_v51, %v2712_v14 }
 0xbfe   :  { %v2568_v21 = vpop.f32.mrf.mxu0  ;;  %11268 = vmatmul.mubr.bf16.vlgmr.msra.gmra.mxu1 %v2717_v16 }
 0xbff   :  { %v13818_v49 = vadd.f32 %v2568_v21, %v13813_v63  ;;  %11271 = vmatprep.mubr.msk.bf16.mxu1 %vm12784_vm0, %v16290_v0 }
 0xc00   :  { %v11245_v4 = vpop.f32.mrf.mxu0 }
 0xc01   :  { %v13823_v24 = vmul.f32 0.70710677, %v13818_v49 }
 0xc02   :  { %v2571_v55 = vpop.f32.mrf.mxu0 }
 0xc03   :  { %v2594_v9 = vand.u32 2147483647, %v13823_v24  ;;  %v13827_v58 = vadd.f32 %v2571_v55, %v13813_v63  ;;  %vm2694_vm13 = vcmp.ge.f32.partialorder %v13823_v24, 0.0 }
 0xc04   :  { %v11246_v53 = vpop.f32.mrf.mxu0 }
 0xc05   :  { %v2599_v41 = vmul.f32 0.3275911, %v2594_v9  ;;  %v13830_v27 = vmul.f32 0.70710677, %v13827_v58  ;;  %v2664_v52 = vmul.f32 %v2594_v9, %v2594_v9 }
 0xc07   :  { %v2604_v56 = vadd.f32 1.0, %v2599_v41  ;;  %v2595_v47 = vand.u32 2147483647, %v13830_v27  ;;  %v2669_v44 = vsub.f32 0.0, %v2664_v52  ;;  %vm2695_vm14 = vcmp.ge.f32.partialorder %v13830_v27, 0.0 }
 0xc09   :  { %12407 = vrcp.f32 %v2604_v56  ;;  %v2600_v32 = vmul.f32 0.3275911, %v2595_v47  ;;  %v2665_v15 = vmul.f32 %v2595_v47, %v2595_v47  ;;  %v2676_v50 = vmul.f32 1.442695, %v2669_v44 }
 0xc0b   :  { %v2605_v54 = vadd.f32 1.0, %v2600_v32  ;;  %v2670_v38 = vsub.f32 0.0, %v2665_v15 }
 0xc0d   :  { %12409 = vrcp.f32 %v2605_v54  ;;  %v2678_v8 = vmul.f32 1.442695, %v2670_v38 }
 0xc0e   :  { %12411 = vpow2.f32 %v2676_v50 }
 0xc0f   :  { %12413 = vpow2.f32 %v2678_v8 }
 0xc16   :  { %v12408_v33 = vpop.eup %12407  ;;  %v2576_v30 = vpop.f32.mrf.mxu0 }
 0xc17   :  { %v2619_v28 = vmul.f32 1.0614054, %v12408_v33  ;;  %v13834_v17 = vadd.f32 %v2576_v30, %v13813_v63 }
 0xc18   :  { %v11249_v2 = vpop.f32.mrf.mxu0 }
 0xc19   :  { %v2624_v31 = vadd.f32 -1.4531521, %v2619_v28  ;;  %v13837_v34 = vmul.f32 0.70710677, %v13834_v17  ;;  %v2584_v2 = vmul.f32 0.5, %v13818_v49 }
 0xc1a   :  { %v12410_v36 = vpop.eup %12409  ;;  %v2579_v35 = vpop.f32.mrf.mxu0 }
 0xc1b   :  { %v2629_v48 = vmul.f32 %v12408_v33, %v2624_v31  ;;  %v2620_v18 = vmul.f32 1.0614054, %v12410_v36  ;;  %v2596_v10 = vand.u32 2147483647, %v13837_v34  ;;  %v12412_v19 = vpop.eup %12411  ;;  %v2585_v31 = vmul.f32 0.5, %v13827_v58 }
 0xc1c   :  { %v11250_v25 = vpop.f32.mrf.mxu0  ;;  %v12414_v41 = vpop.eup %12413  ;;  %vm2696_vm15 = vcmp.ge.f32.partialorder %v13837_v34, 0.0 }
 0xc1d   :  { %v2634_v60 = vadd.f32 1.4214138, %v2629_v48  ;;  %v2625_v61 = vadd.f32 -1.4531521, %v2620_v18  ;;  %v2601_v6 = vmul.f32 0.3275911, %v2596_v10  ;;  %v2666_v16 = vmul.f32 %v2596_v10, %v2596_v10 }
 0xc1f   :  { %v2639_v37 = vmul.f32 %v12408_v33, %v2634_v60  ;;  %v2630_v63 = vmul.f32 %v12410_v36, %v2625_v61  ;;  %v2606_v42 = vadd.f32 1.0, %v2601_v6  ;;  %v2671_v53 = vsub.f32 0.0, %v2666_v16 }
 0xc21   :  { %v2644_v7 = vadd.f32 -0.28449672, %v2639_v37  ;;  %v2635_v5 = vadd.f32 1.4214138, %v2630_v63  ;;  %12415 = vrcp.f32 %v2606_v42  ;;  %v2680_v44 = vmul.f32 1.442695, %v2671_v53 }
 0xc22   :  { %v2586_v63 = vmul.f32 0.5, %v13834_v17 }
 0xc23   :  { %v2649_v39 = vmul.f32 %v12408_v33, %v2644_v7  ;;  %v2640_v46 = vmul.f32 %v12410_v36, %v2635_v5  ;;  %12417 = vpow2.f32 %v2680_v44 }
 0xc25   :  { %v2654_v43 = vadd.f32 0.2548296, %v2649_v39  ;;  %v2645_v45 = vadd.f32 -0.28449672, %v2640_v46  ;;  %v13851_v39 = vsub.s32 7, %v12932_v12 }
 0xc27   :  { %v2659_v14 = vmul.f32 %v12408_v33, %v2654_v43  ;;  %v2650_v51 = vmul.f32 %v12410_v36, %v2645_v45  ;;  %v2739_v46 = vrot.slane %v13710_v11, %v13851_v39 }
 0xc29   :  { %v2684_v21 = vmul.f32 %v12412_v19, %v2659_v14  ;;  %v2655_v4 = vadd.f32 0.2548296, %v2650_v51 }
 0xc2b   :  { %v2689_v55 = vsub.f32 1.0, %v2684_v21  ;;  %v2660_v9 = vmul.f32 %v12410_v36, %v2655_v4 }
 0xc2d   :  { %v2699_v56 = vsub.f32 0.0, %v2689_v55  ;;  %v2685_v47 = vmul.f32 %v12414_v41, %v2660_v9 }
 0xc2e   :  { %v12416_v32 = vpop.eup %12415 }
 0xc2f   :  { %v2704_v54 = vsel %vm2694_vm13, %v2689_v55, %v2699_v56  ;;  %v2690_v52 = vsub.f32 1.0, %v2685_v47  ;;  %v2621_v15 = vmul.f32 1.0614054, %v12416_v32 }
 0xc30   :  { %v2709_v33 = vadd.f32 1.0, %v2704_v54  ;;  %v12418_v61 = vpop.eup %12417 }
 0xc31   :  { %v2700_v50 = vsub.f32 0.0, %v2690_v52  ;;  %v2626_v30 = vadd.f32 -1.4531521, %v2621_v15 }
 0xc32   :  { %v2714_v48 = vmul.f32 %v2709_v33, %v2584_v2 }
 0xc33   :  { %v2705_v28 = vsel %vm2695_vm14, %v2690_v52, %v2700_v50  ;;  %v2631_v38 = vmul.f32 %v12416_v32, %v2626_v30 }
 0xc34   :  { %v2710_v36 = vadd.f32 1.0, %v2705_v28 }
 0xc35   :  { %v2636_v35 = vadd.f32 1.4214138, %v2631_v38 }
 0xc36   :  { %v2715_v24 = vmul.f32 %v2710_v36, %v2585_v31 }
 0xc37   :  { %v2641_v18 = vmul.f32 %v12416_v32, %v2636_v35 }
 0xc38   :  { %v2718_v8 = vpack.c.bf16 %v2715_v24, %v2714_v48  ;;  %v12241_v48 = vld [vmem:[%s16284_s3 + $0x18] sm:$0xff]   ;;  %v12242_v24 = vld [vmem:[%s16284_s3 + $0x10] sm:$0xff]  }
 0xc39   :  { %v2646_v10 = vadd.f32 -0.28449672, %v2641_v18  ;;  %11280 = vmatpush3.bf16.msra.mxu0 %v12241_v48 }
 0xc3a   :  { %11272 = vmatmul.mubr.bf16.gmra.mxu1 %v2718_v8  ;;  %11281 = vmatprep.subr.bf16.mxu0 %v16290_v0 }
 0xc3b   :  { %11275 = vmatprep.mubr.msk.bf16.mxu1 %vm12784_vm0, %v16290_v0  ;;  %v2651_v25 = vmul.f32 %v12416_v32, %v2646_v10 }
 0xc3d   :  { %v2656_v27 = vadd.f32 0.2548296, %v2651_v25  ;;  %11282 = vmatpush3.bf16.msra.mxu0 %v12242_v24 }
 0xc3e   :  { %11295 = vmatprep.subr.mxu0 %v16290_v0 }
 0xc3f   :  { %v2661_v60 = vmul.f32 %v12416_v32, %v2656_v27 }
 0xc41   :  { %v2686_v6 = vmul.f32 %v12418_v61, %v2661_v60 }
 0xc43   :  { %v2691_v37 = vsub.f32 1.0, %v2686_v6 }
 0xc45   :  { %v2701_v49 = vsub.f32 0.0, %v2691_v37 }
 0xc47   :  { %v2706_v58 = vsel %vm2696_vm15, %v2691_v37, %v2701_v49 }
 0xc48   :  { %v2711_v42 = vadd.f32 1.0, %v2706_v58 }
 0xc4a   :  { %v2716_v7 = vmul.f32 %v2711_v42, %v2586_v63 }
 0xc4c   :  { %v2719_v5 = vpack.c.bf16 %v2716_v7, %v2716_v7 }
 0xc4e   :  { %11276 = vmatmul.mubr.bf16.gmra.mxu1 %v2719_v5 }
 0xc4f   :  { %11316 = vmatprep.mubr.msk.f32.mxu1 %vm12784_vm0, %v16290_v0 }
 0xcbe   :  { %v2822_v43 = vpop.f32.mrf.mxu1 }
 0xcbf   :  { %v2823_v45 = vadd.f32 %v2822_v43, %v2739_v46 }
 0xcc0   :  { %v11269_v19 = vpop.f32.mrf.mxu1 }
 0xcc1   :  { %v13856_v34 = vadd.f32 %v2823_v45, %v13715_v3 }
 0xcc2   :  { %v2825_v17 = vpop.f32.mrf.mxu1 }
 0xcc3   :  { %16305 = vst [vmem:[#allocation5_spill] sm:$0xff] %v13856_v34  ;;  %v2826_v14 = vadd.f32 %v2825_v17, %v2739_v46  ;;  %v2851_v51 = vsel %vm145_vm2, %v13856_v34, 0.0 }
 0xcc4   :  { %2852 = vadd.xlane.f32.xlu0 %v2851_v51  ;;  %v11270_v16 = vpop.f32.mrf.mxu1  ;;  %v10143_v51 = vld [vmem:[%s16285_s7 + $0x8] sm:$0xff] }
 0xcc5   :  { %v13861_v21 = vadd.f32 %v2826_v14, %v13720_v23 }
 0xcc7   :  { %16306 = vst [vmem:[#allocation6_spill] sm:$0xff] %v13861_v21  ;;  %v2854_v12 = vsel %vm145_vm2, %v13861_v21, 0.0 }
 0xcc8   :  { %2855 = vadd.xlane.f32.xlu1 %v2854_v12  ;;  %v2919_v12 = vrot.slane %v10143_v51, %v12936_v20 }
 0xcfa   :  { %v2830_v11 = vpop.f32.mrf.mxu1 }
 0xcfb   :  { %v2831_v4 = vadd.f32 %v2830_v11, %v2739_v46 }
 0xcfc   :  { %v11273_v55 = vpop.f32.mrf.mxu1 }
 0xcfd   :  { %v13866_v3 = vadd.f32 %v2831_v4, %v13725_v26 }
 0xcfe   :  { %v2833_v9 = vpop.f32.mrf.mxu1 }
 0xcff   :  { %16307 = vst [vmem:[#allocation7_spill] sm:$0xff] %v13866_v3  ;;  %v2834_v53 = vadd.f32 %v2833_v9, %v2739_v46  ;;  %v2857_v41 = vsel %vm145_vm2, %v13866_v3, 0.0 }
 0xd00   :  { %2858 = vadd.xlane.f32.xlu0 %v2857_v41  ;;  %v11274_v56 = vpop.f32.mrf.mxu1 }
 0xd01   :  { %v13871_v23 = vadd.f32 %v2834_v53, %v13730_v59  ;;  %v2928_v53 = vrot.slane %v10143_v51, %v12944_v29 }
 0xd03   :  { %16308 = vst [vmem:[#allocation8_spill] sm:$0xff] %v13871_v23  ;;  %v2860_v47 = vsel %vm145_vm2, %v13871_v23, 0.0 }
 0xd04   :  { %2861 = vadd.xlane.f32.xlu1 %v2860_v47 }
 0xd0e   :  { %v2838_v32 = vpop.f32.mrf.mxu1 }
 0xd0f   :  { %v2839_v54 = vadd.f32 %v2838_v32, %v2739_v46 }
 0xd10   :  { %v11277_v52 = vpop.f32.mrf.mxu1 }
 0xd11   :  { %v13876_v26 = vadd.f32 %v2839_v54, %v13735_v22 }
 0xd12   :  { %v2841_v44 = vpop.f32.mrf.mxu1 }
 0xd13   :  { %16309 = vst [vmem:[#allocation9_spill] sm:$0xff] %v13876_v26  ;;  %v2863_v15 = vsel %vm158_vm4, %v13876_v26, 0.0 }
 0xd14   :  { %2864 = vadd.xlane.f32.xlu0 %v2863_v15  ;;  %v11278_v50 = vpop.f32.mrf.mxu1 }
 0xd4d   :  { %v2853_v30 = vpop.xlane.xlu0 %2852 }
 0xd4e   :  { %v2866_v33 = vmul.f32 0.03125, %v2853_v30 }
 0xd50   :  { %v2871_v59 = vsub.f32 %v13856_v34, %v2866_v33 }
 0xd51   :  { %v2856_v28 = vpop.xlane.xlu1 %2855 }
 0xd52   :  { %v2867_v38 = vmul.f32 0.03125, %v2856_v28  ;;  %v2876_v2 = vmul.f32 %v2871_v59, %v2871_v59 }
 0xd54   :  { %v2872_v31 = vsub.f32 %v13861_v21, %v2867_v38  ;;  %v2881_v36 = vsel %vm145_vm2, %v2876_v2, 0.0 }
 0xd55   :  { %2882 = vadd.xlane.f32.xlu1 %v2881_v36 }
 0xd56   :  { %v2877_v22 = vmul.f32 %v2872_v31, %v2872_v31 }
 0xd58   :  { %v2884_v35 = vsel %vm145_vm2, %v2877_v22, 0.0 }
 0xd59   :  { %2885 = vadd.xlane.f32.xlu0 %v2884_v35 }
 0xd89   :  { %v2859_v18 = vpop.xlane.xlu0 %2858 }
 0xd8a   :  { %v2868_v8 = vmul.f32 0.03125, %v2859_v18 }
 0xd8c   :  { %v2873_v10 = vsub.f32 %v13866_v3, %v2868_v8 }
 0xd8d   :  { %v2862_v25 = vpop.xlane.xlu1 %2861 }
 0xd8e   :  { %v2869_v27 = vmul.f32 0.03125, %v2862_v25  ;;  %v2878_v60 = vmul.f32 %v2873_v10, %v2873_v10 }
 0xd90   :  { %v2874_v61 = vsub.f32 %v13871_v23, %v2869_v27  ;;  %v2887_v6 = vsel %vm145_vm2, %v2878_v60, 0.0 }
 0xd91   :  { %2888 = vadd.xlane.f32.xlu1 %v2887_v6 }
 0xd92   :  { %v2879_v37 = vmul.f32 %v2874_v61, %v2874_v61 }
 0xd94   :  { %v2890_v49 = vsel %vm145_vm2, %v2879_v37, 0.0  ;;  %v2945_v37 = vrot.slane %v10143_v51, %v12957_v57 }
 0xd95   :  { %2891 = vadd.xlane.f32.xlu0 %v2890_v49 }
 0xd9d   :  { %v2865_v58 = vpop.xlane.xlu0 %2864 }
 0xd9e   :  { %v2870_v63 = vmul.f32 0.03125, %v2865_v58 }
 0xda0   :  { %v2875_v42 = vsub.f32 %v13876_v26, %v2870_v63 }
 0xda2   :  { %v2880_v7 = vmul.f32 %v2875_v42, %v2875_v42 }
 0xda4   :  { %v2893_v5 = vsel %vm158_vm4, %v2880_v7, 0.0 }
 0xda5   :  { %2894 = vadd.xlane.f32.xlu1 %v2893_v5 }
 0xdde   :  { %v2883_v46 = vpop.xlane.xlu1 %2882 }
 0xddf   :  { %v2896_v43 = vmul.f32 0.03125, %v2883_v46 }
 0xde1   :  { %v2901_v45 = vadd.f32 1e-05, %v2896_v43 }
 0xde2   :  { %v2886_v19 = vpop.xlane.xlu0 %2885 }
 0xde3   :  { %12419 = vrsqrt.f32 %v2901_v45  ;;  %v2897_v17 = vmul.f32 0.03125, %v2886_v19 }
 0xde5   :  { %v2902_v14 = vadd.f32 1e-05, %v2897_v17 }
 0xde7   :  { %12421 = vrsqrt.f32 %v2902_v14 }
 0xdf0   :  { %v12420_v16 = vpop.eup %12419 }
 0xdf1   :  { %v2911_v11 = vmul.f32 %v12420_v16, %v2871_v59 }
 0xdf3   :  { %v2920_v55 = vmul.f32 %v2919_v12, %v2911_v11 }
 0xdf4   :  { %v12422_v4 = vpop.eup %12421 }
 0xdf5   :  { %v2912_v9 = vmul.f32 %v12422_v4, %v2872_v31  ;;  %v2929_v56 = vadd.f32 %v2928_v53, %v2920_v55 }
 0xdf7   :  { %v2921_v41 = vmul.f32 %v2919_v12, %v2912_v9 }
 0xdf9   :  { %v2930_v47 = vadd.f32 %v2928_v53, %v2921_v41 }
 0xdfb   :  { %v2934_v32 = vpack.c.bf16 %v2930_v47, %v2929_v56 }
 0xdfd   :  { %11284 = vmatmul.mubr.msk.bf16.vlgmr.msra.gmra.mxu0 %vm145_vm2, %v2934_v32 }
 0xdfe   :  { %11287 = vmatprep.mubr.msk.bf16.mxu0 %vm12784_vm0, %v16290_v0 }
 0xe1a   :  { %v2889_v54 = vpop.xlane.xlu1 %2888 }
 0xe1b   :  { %v2898_v52 = vmul.f32 0.03125, %v2889_v54 }
 0xe1d   :  { %v2903_v44 = vadd.f32 1e-05, %v2898_v52 }
 0xe1e   :  { %v2892_v15 = vpop.xlane.xlu0 %2891 }
 0xe1f   :  { %12423 = vrsqrt.f32 %v2903_v44  ;;  %v2899_v50 = vmul.f32 0.03125, %v2892_v15 }
 0xe21   :  { %v2904_v30 = vadd.f32 1e-05, %v2899_v50 }
 0xe23   :  { %12425 = vrsqrt.f32 %v2904_v30 }
 0xe2c   :  { %v12424_v33 = vpop.eup %12423 }
 0xe2d   :  { %v2913_v59 = vmul.f32 %v12424_v33, %v2873_v10 }
 0xe2e   :  { %v2895_v28 = vpop.xlane.xlu1 %2894 }
 0xe2f   :  { %v2900_v38 = vmul.f32 0.03125, %v2895_v28  ;;  %v2922_v22 = vmul.f32 %v2919_v12, %v2913_v59 }
 0xe30   :  { %v12426_v2 = vpop.eup %12425 }
 0xe31   :  { %v2905_v31 = vadd.f32 1e-05, %v2900_v38  ;;  %v2914_v36 = vmul.f32 %v12426_v2, %v2874_v61  ;;  %v2931_v48 = vadd.f32 %v2928_v53, %v2922_v22 }
 0xe33   :  { %12427 = vrsqrt.f32 %v2905_v31  ;;  %v2923_v35 = vmul.f32 %v2919_v12, %v2914_v36 }
 0xe35   :  { %v2932_v24 = vadd.f32 %v2928_v53, %v2923_v35 }
 0xe37   :  { %v2935_v18 = vpack.c.bf16 %v2932_v24, %v2931_v48 }
 0xe39   :  { %11288 = vmatmul.mubr.msk.bf16.gmra.mxu0 %vm145_vm2, %v2935_v18 }
 0xe3a   :  { %11291 = vmatprep.mubr.msk.bf16.mxu0 %vm12784_vm0, %v16290_v0 }
 0xe40   :  { %v12428_v8 = vpop.eup %12427 }
 0xe41   :  { %v2915_v25 = vmul.f32 %v12428_v8, %v2875_v42 }
 0xe43   :  { %v2924_v27 = vmul.f32 %v2919_v12, %v2915_v25 }
 0xe45   :  { %v2933_v10 = vadd.f32 %v2928_v53, %v2924_v27 }
 0xe47   :  { %v2936_v60 = vpack.c.bf16 %v2933_v10, %v2933_v10 }
 0xe49   :  { %11292 = vmatmul.mubr.msk.bf16.gmra.mxu0 %vm145_vm2, %v2936_v60 }
 0xe4a   :  { %11301 = vmatprep.mubr.msk.f32.mxu0 %vm12784_vm0, %v16290_v0 }
 0xebd   :  { %v3001_v61 = vpop.f32.mrf.mxu0 }
 0xebe   :  { %v13917_v42 = vadd.f32 %v3001_v61, %v2945_v37 }
 0xebf   :  { %v11285_v6 = vpop.f32.mrf.mxu0 }
 0xec1   :  { %v3004_v49 = vpop.f32.mrf.mxu0 }
 0xec2   :  { %v13913_v58 = vadd.f32 %v3004_v49, %v2945_v37 }
 0xec3   :  { %v11286_v63 = vpop.f32.mrf.mxu0 }
 0xec4   :  { %3028 = vrot.lane.b32.xlu1 %v13913_v58, %s12785_s30 }
 0xec8   :  { %3026 = vrot.lane.b32.xlu1 %v13917_v42, %s12785_s30 }
 0xef9   :  { %v3009_v7 = vpop.f32.mrf.mxu0 }
 0xefa   :  { %v13921_v5 = vadd.f32 %v3009_v7, %v2945_v37 }
 0xefb   :  { %v11289_v46 = vpop.f32.mrf.mxu0 }
 0xefc   :  { %3266 = vrot.lane.b32.xlu1 %v13921_v5, %s12787_s10  ;;  %3030 = vrot.lane.b32.xlu0 %v13921_v5, %s12785_s30  ;;  %v4011_v9 = vrot.slane %v13921_v5, 1 }
 0xefd   :  { %v3012_v43 = vpop.f32.mrf.mxu0 }
 0xefe   :  { %v3013_v12 = vadd.f32 %v3012_v43, %v2945_v37 }
 0xeff   :  { %v11290_v45 = vpop.f32.mrf.mxu0 }
 0xf00   :  { %3262 = vrot.lane.b32.xlu1 %v13917_v42, %s12787_s10  ;;  %3264 = vrot.lane.b32.xlu0 %v13913_v58, %s12787_s10  ;;  %v4012_v4 = vrot.slane %v3013_v12, 1 }
 0xf02   :  { %v13971_v53 = vsel %vm1312_vm8, %v4011_v9, %v4012_v4 }
 0xf04   :  { %3502 = vrot.lane.b32.xlu1 %v13921_v5, %s12791_s14  ;;  %3256 = vrot.lane.b32.xlu0 %v13917_v42, %s12788_s11 }
 0xf08   :  { %3500 = vrot.lane.b32.xlu1 %v13913_v58, %s12791_s14  ;;  %3258 = vrot.lane.b32.xlu0 %v13913_v58, %s12788_s11 }
 0xf09   :  { %v3017_v19 = vpop.f32.mrf.mxu0 }
 0xf0a   :  { %v3018_v16 = vadd.f32 %v3017_v19, %v2945_v37 }
 0xf0b   :  { %v11293_v17 = vpop.f32.mrf.mxu0 }
 0xf0c   :  { %3498 = vrot.lane.b32.xlu1 %v13917_v42, %s12791_s14  ;;  %3260 = vrot.lane.b32.xlu0 %v13921_v5, %s12788_s11  ;;  %v13955_v11 = vrot.slane %v3018_v16, 1 }
 0xf0d   :  { %v3020_v14 = vpop.f32.mrf.mxu0 }
 0xf0e   :  { %v13963_v55 = vsel %vm1312_vm8, %v4012_v4, %v13955_v11 }
 0xf0f   :  { %v11294_v51 = vpop.f32.mrf.mxu0 }
 0xf10   :  { %3738 = vrot.lane.b32.xlu1 %v13921_v5, %s12792_s1  ;;  %3492 = vrot.lane.b32.xlu0 %v13917_v42, %s12789_s12 }
 0xf14   :  { %3736 = vrot.lane.b32.xlu1 %v13913_v58, %s12792_s1  ;;  %3494 = vrot.lane.b32.xlu0 %v13913_v58, %s12789_s12 }
 0xf18   :  { %3734 = vrot.lane.b32.xlu1 %v13917_v42, %s12792_s1  ;;  %3496 = vrot.lane.b32.xlu0 %v13921_v5, %s12789_s12 }
 0xf1c   :  { %3728 = vrot.lane.b32.xlu0 %v13917_v42, %s12790_s13  ;;  %4020 = vrot.lane.b32.xlu1 %v13955_v11, %s12785_s30 }
 0xf20   :  { %3730 = vrot.lane.b32.xlu0 %v13913_v58, %s12790_s13  ;;  %4018 = vrot.lane.b32.xlu1 %v13963_v55, %s12785_s30 }
 0xf24   :  { %3732 = vrot.lane.b32.xlu0 %v13921_v5, %s12790_s13  ;;  %4016 = vrot.lane.b32.xlu1 %v13971_v53, %s12785_s30 }
 0xf28   :  { %4256 = vrot.lane.b32.xlu0 %v13955_v11, %s12787_s10  ;;  %4254 = vrot.lane.b32.xlu1 %v13963_v55, %s12787_s10 }
 0xf2c   :  { %4252 = vrot.lane.b32.xlu0 %v13971_v53, %s12787_s10  ;;  %4246 = vrot.lane.b32.xlu1 %v13971_v53, %s12788_s11 }
 0xf30   :  { %4492 = vrot.lane.b32.xlu0 %v13955_v11, %s12791_s14  ;;  %4248 = vrot.lane.b32.xlu1 %v13963_v55, %s12788_s11 }
 0xf34   :  { %4490 = vrot.lane.b32.xlu0 %v13963_v55, %s12791_s14  ;;  %4250 = vrot.lane.b32.xlu1 %v13955_v11, %s12788_s11 }
 0xf36   :  { %v3029_v41 = vpop.permute.xlu1 %3028 }
 0xf38   :  { %4488 = vrot.lane.b32.xlu0 %v13971_v53, %s12791_s14  ;;  %4482 = vrot.lane.b32.xlu1 %v13971_v53, %s12789_s12 }
 0xf3a   :  { %v3027_v56 = vpop.permute.xlu1 %3026 }
 0xf3c   :  { %4728 = vrot.lane.b32.xlu0 %v13955_v11, %s12792_s1  ;;  %4484 = vrot.lane.b32.xlu1 %v13963_v55, %s12789_s12 }
 0xf40   :  { %4726 = vrot.lane.b32.xlu0 %v13963_v55, %s12792_s1  ;;  %4486 = vrot.lane.b32.xlu1 %v13955_v11, %s12789_s12 }
 0xf44   :  { %4724 = vrot.lane.b32.xlu0 %v13971_v53, %s12792_s1  ;;  %4718 = vrot.lane.b32.xlu1 %v13971_v53, %s12790_s13 }
 0xf48   :  { %4720 = vrot.lane.b32.xlu0 %v13963_v55, %s12790_s13  ;;  %4722 = vrot.lane.b32.xlu1 %v13955_v11, %s12790_s13 }
 0xf4c   :  { %3159 = vrot.lane.b32.xlu0 %v13913_v58, %s12786_s9  ;;  %3161 = vrot.lane.b32.xlu1 %v13921_v5, %s12786_s9 }
 0xf50   :  { %3395 = vrot.lane.b32.xlu0 %v13913_v58, %s12793_s15  ;;  %3157 = vrot.lane.b32.xlu1 %v13917_v42, %s12786_s9 }
 0xf54   :  { %3631 = vrot.lane.b32.xlu0 %v13913_v58, %s12794_s16  ;;  %3397 = vrot.lane.b32.xlu1 %v13921_v5, %s12793_s15 }
 0xf58   :  { %3869 = vrot.lane.b32.xlu0 %v13921_v5, %s12795_s17  ;;  %3393 = vrot.lane.b32.xlu1 %v13917_v42, %s12793_s15 }
 0xf5c   :  { %4151 = vrot.lane.b32.xlu0 %v13955_v11, %s12786_s9  ;;  %3633 = vrot.lane.b32.xlu1 %v13921_v5, %s12794_s16 }
 0xf60   :  { %3629 = vrot.lane.b32.xlu1 %v13917_v42, %s12794_s16 }
 0xf64   :  { %3867 = vrot.lane.b32.xlu1 %v13913_v58, %s12795_s17 }
 0xf68   :  { %3865 = vrot.lane.b32.xlu1 %v13917_v42, %s12795_s17 }
 0xf6e   :  { %v3267_v47 = vpop.permute.xlu1 %3266  ;;  %v3031_v32 = vpop.permute.xlu0 %3030 }
 0xf6f   :  { %11296 = vmatpush3.xpose.msk.msra.mxu0 %vm328_vm5, %v3031_v32 }
 0xf70   :  { %11297 = vmatprep.subr.mxu0 %v16290_v0 }
 0xf72   :  { %v3263_v54 = vpop.permute.xlu1 %3262  ;;  %v3265_v52 = vpop.permute.xlu0 %3264 }
 0xf73   :  { %11298 = vmatpush3.xpose.msk.msra.mxu0 %vm328_vm5, %v3029_v41 }
 0xf74   :  { %11299 = vmatprep.subr.mxu0 %v16290_v0 }
 0xf76   :  { %v3503_v44 = vpop.permute.xlu1 %3502  ;;  %v3257_v15 = vpop.permute.xlu0 %3256 }
 0xf77   :  { %11300 = vmatpush3.xpose.msk.msra.mxu0 %vm328_vm5, %v3027_v56 }
 0xf78   :  { %11325 = vmatprep.subr.mxu0 %v16290_v0 }
 0xf7a   :  { %v3501_v50 = vpop.permute.xlu1 %3500  ;;  %11302 = vmatmul.mubr.msk.f32.vlgmr.msra.gmra.mxu0 %vm328_vm5, %v13917_v42  ;;  %v3259_v30 = vpop.permute.xlu0 %3258 }
 0xf7b   :  { %11326 = vmatpush3.xpose.msk.msra.mxu0 %vm328_vm5, %v3267_v47  ;;  %11304 = vmatprep.mubr.msk.f32.mxu0 %vm12784_vm0, %v16290_v0 }
 0xf7c   :  { %11327 = vmatprep.subr.mxu0 %v16290_v0 }
 0xf7e   :  { %v3499_v33 = vpop.permute.xlu1 %3498  ;;  %11305 = vmatmul.mubr.msk.f32.gmra.mxu0 %vm328_vm5, %v13913_v58  ;;  %v3261_v59 = vpop.permute.xlu0 %3260 }
 0xf7f   :  { %11328 = vmatpush3.xpose.msk.msra.mxu0 %vm328_vm5, %v3265_v52  ;;  %11307 = vmatprep.mubr.msk.f32.mxu0 %vm12784_vm0, %v16290_v0 }
 0xf80   :  { %11329 = vmatprep.subr.mxu0 %v16290_v0 }
 0xf82   :  { %v3739_v28 = vpop.permute.xlu1 %3738  ;;  %11308 = vmatmul.mubr.msk.f32.gmra.mxu0 %vm328_vm5, %v13921_v5  ;;  %v3493_v38 = vpop.permute.xlu0 %3492 }
 0xf83   :  { %11330 = vmatpush3.xpose.msk.msra.mxu0 %vm328_vm5, %v3263_v54  ;;  %11331 = vmatprep.mubr.msk.f32.mxu0 %vm12784_vm0, %v16290_v0 }
 0xf84   :  { %11355 = vmatprep.subr.mxu0 %v16290_v0 }
 0xf86   :  { %v3737_v2 = vpop.permute.xlu1 %3736  ;;  %11332 = vmatmul.mubr.msk.f32.vlgmr.msra.gmra.mxu0 %vm328_vm5, %v3257_v15  ;;  %v3495_v31 = vpop.permute.xlu0 %3494 }
 0xf87   :  { %11356 = vmatpush3.xpose.msk.msra.mxu0 %vm328_vm5, %v3503_v44  ;;  %11334 = vmatprep.mubr.msk.f32.mxu0 %vm12784_vm0, %v16290_v0 }
 0xf88   :  { %11357 = vmatprep.subr.mxu0 %v16290_v0 }
 0xf8a   :  { %v3735_v36 = vpop.permute.xlu1 %3734  ;;  %11335 = vmatmul.mubr.msk.f32.gmra.mxu0 %vm328_vm5, %v3259_v30  ;;  %v3497_v22 = vpop.permute.xlu0 %3496 }
 0xf8b   :  { %11358 = vmatpush3.xpose.msk.msra.mxu0 %vm328_vm5, %v3501_v50  ;;  %11337 = vmatprep.mubr.msk.f32.mxu0 %vm12784_vm0, %v16290_v0 }
 0xf8c   :  { %11359 = vmatprep.subr.mxu0 %v16290_v0 }
 0xf8e   :  { %11338 = vmatmul.mubr.msk.f32.gmra.mxu0 %vm328_vm5, %v3261_v59  ;;  %v3729_v35 = vpop.permute.xlu0 %3728  ;;  %v4021_v48 = vpop.permute.xlu1 %4020 }
 0xf8f   :  { %11360 = vmatpush3.xpose.msk.msra.mxu0 %vm328_vm5, %v3499_v33  ;;  %11361 = vmatprep.mubr.msk.f32.mxu0 %vm12784_vm0, %v16290_v0 }
 0xf90   :  { %11385 = vmatprep.subr.mxu0 %v16290_v0 }
 0xf92   :  { %11362 = vmatmul.mubr.msk.f32.vlgmr.msra.gmra.mxu0 %vm328_vm5, %v3493_v38  ;;  %v3731_v24 = vpop.permute.xlu0 %3730  ;;  %v4019_v18 = vpop.permute.xlu1 %4018 }
 0xf93   :  { %11386 = vmatpush3.xpose.msk.msra.mxu0 %vm328_vm5, %v3739_v28  ;;  %11364 = vmatprep.mubr.msk.f32.mxu0 %vm12784_vm0, %v16290_v0 }
 0xf94   :  { %11387 = vmatprep.subr.mxu0 %v16290_v0 }
 0xf96   :  { %11365 = vmatmul.mubr.msk.f32.gmra.mxu0 %vm328_vm5, %v3495_v31  ;;  %v3733_v8 = vpop.permute.xlu0 %3732  ;;  %v4017_v25 = vpop.permute.xlu1 %4016 }
 0xf97   :  { %11388 = vmatpush3.xpose.msk.msra.mxu0 %vm328_vm5, %v3737_v2  ;;  %11367 = vmatprep.mubr.msk.f32.mxu0 %vm12784_vm0, %v16290_v0 }
 0xf98   :  { %11389 = vmatprep.subr.mxu0 %v16290_v0 }
 0xf9a   :  { %11368 = vmatmul.mubr.msk.f32.gmra.mxu0 %vm328_vm5, %v3497_v22  ;;  %v4257_v27 = vpop.permute.xlu0 %4256  ;;  %v4255_v10 = vpop.permute.xlu1 %4254 }
 0xf9b   :  { %11390 = vmatpush3.xpose.msk.msra.mxu0 %vm328_vm5, %v3735_v36  ;;  %11391 = vmatprep.mubr.msk.f32.mxu0 %vm12784_vm0, %v16290_v0 }
 0xf9c   :  { %11415 = vmatprep.subr.mxu0 %v16290_v0 }
 0xf9e   :  { %11392 = vmatmul.mubr.msk.f32.vlgmr.msra.gmra.mxu0 %vm328_vm5, %v3729_v35  ;;  %v4253_v60 = vpop.permute.xlu0 %4252  ;;  %v4247_v61 = vpop.permute.xlu1 %4246 }
 0xf9f   :  { %11416 = vmatpush3.xpose.msk.msra.mxu0 %vm328_vm5, %v4021_v48  ;;  %11394 = vmatprep.mubr.msk.f32.mxu0 %vm12784_vm0, %v16290_v0 }
 0xfa0   :  { %11417 = vmatprep.subr.mxu0 %v16290_v0 }
 0xfa2   :  { %11395 = vmatmul.mubr.msk.f32.gmra.mxu0 %vm328_vm5, %v3731_v24  ;;  %v4493_v6 = vpop.permute.xlu0 %4492  ;;  %v4249_v37 = vpop.permute.xlu1 %4248 }
 0xfa3   :  { %11418 = vmatpush3.xpose.msk.msra.mxu0 %vm328_vm5, %v4019_v18  ;;  %11397 = vmatprep.mubr.msk.f32.mxu0 %vm12784_vm0, %v16290_v0 }
 0xfa4   :  { %11419 = vmatprep.subr.mxu0 %v16290_v0 }
 0xfa6   :  { %11398 = vmatmul.mubr.msk.f32.gmra.mxu0 %vm328_vm5, %v3733_v8  ;;  %v4491_v49 = vpop.permute.xlu0 %4490  ;;  %v4251_v58 = vpop.permute.xlu1 %4250 }
 0xfa7   :  { %11420 = vmatpush3.xpose.msk.msra.mxu0 %vm328_vm5, %v4017_v25  ;;  %11421 = vmatprep.mubr.msk.f32.mxu0 %vm12784_vm0, %v16290_v0 }
 0xfa8   :  { %11445 = vmatprep.subr.mxu0 %v16290_v0 }
 0xfaa   :  { %v4489_v63 = vpop.permute.xlu0 %4488  ;;  %11422 = vmatmul.mubr.msk.f32.vlgmr.msra.gmra.mxu0 %vm328_vm5, %v13971_v53  ;;  %v4483_v42 = vpop.permute.xlu1 %4482 }
 0xfab   :  { %11446 = vmatpush3.xpose.msk.msra.mxu0 %vm328_vm5, %v4257_v27  ;;  %11424 = vmatprep.mubr.msk.f32.mxu0 %vm12784_vm0, %v16290_v0 }
 0xfac   :  { %11447 = vmatprep.subr.mxu0 %v16290_v0 }
 0xfae   :  { %v4729_v7 = vpop.permute.xlu0 %4728  ;;  %11425 = vmatmul.mubr.msk.f32.gmra.mxu0 %vm328_vm5, %v13963_v55  ;;  %v4485_v5 = vpop.permute.xlu1 %4484 }
 0xfaf   :  { %11448 = vmatpush3.xpose.msk.msra.mxu0 %vm328_vm5, %v4255_v10  ;;  %11427 = vmatprep.mubr.msk.f32.mxu0 %vm12784_vm0, %v16290_v0 }
 0xfb0   :  { %11449 = vmatprep.subr.mxu0 %v16290_v0 }
 0xfb2   :  { %v4727_v46 = vpop.permute.xlu0 %4726  ;;  %11428 = vmatmul.mubr.msk.f32.gmra.mxu0 %vm328_vm5, %v13955_v11  ;;  %v4487_v43 = vpop.permute.xlu1 %4486 }
 0xfb3   :  { %11450 = vmatpush3.xpose.msk.msra.mxu0 %vm328_vm5, %v4253_v60  ;;  %11451 = vmatprep.mubr.msk.f32.mxu0 %vm12784_vm0, %v16290_v0 }
 0xfb4   :  { %11475 = vmatprep.subr.mxu0 %v16290_v0 }
 0xfb6   :  { %v4725_v45 = vpop.permute.xlu0 %4724  ;;  %11452 = vmatmul.mubr.msk.f32.vlgmr.msra.gmra.mxu0 %vm328_vm5, %v4247_v61  ;;  %v4719_v19 = vpop.permute.xlu1 %4718 }
 0xfb7   :  { %11476 = vmatpush3.xpose.msk.msra.mxu0 %vm328_vm5, %v4493_v6  ;;  %11454 = vmatprep.mubr.msk.f32.mxu0 %vm12784_vm0, %v16290_v0 }
 0xfb8   :  { %11477 = vmatprep.subr.mxu0 %v16290_v0 }
 0xfba   :  { %v4721_v17 = vpop.permute.xlu0 %4720  ;;  %11455 = vmatmul.mubr.msk.f32.gmra.mxu0 %vm328_vm5, %v4249_v37  ;;  %v4723_v14 = vpop.permute.xlu1 %4722 }
 0xfbb   :  { %11478 = vmatpush3.xpose.msk.msra.mxu0 %vm328_vm5, %v4491_v49  ;;  %11457 = vmatprep.mubr.msk.f32.mxu0 %vm12784_vm0, %v16290_v0 }
 0xfbc   :  { %11479 = vmatprep.subr.mxu0 %v16290_v0 }
 0xfbe   :  { %11458 = vmatmul.mubr.msk.f32.gmra.mxu0 %vm328_vm5, %v4251_v58  ;;  %v3162_v51 = vpop.permute.xlu1 %3161  ;;  %v3160_v16 = vpop.permute.xlu0 %3159 }
 0xfbf   :  { %11311 = vmatpush3.msk.msra.mxu1 %vm50_vm3, %v3162_v51  ;;  %11480 = vmatpush3.xpose.msk.msra.mxu0 %vm328_vm5, %v4489_v63 }
 0xfc0   :  { %11312 = vmatprep.subr.mxu1 %v16290_v0  ;;  %11481 = vmatprep.mubr.msk.f32.mxu0 %vm12784_vm0, %v16290_v0 }
 0xfc1   :  { %11313 = vmatpush3.msra.mxu1 %v3160_v16  ;;  %11505 = vmatprep.subr.mxu0 %v16290_v0 }
 0xfc2   :  { %11314 = vmatprep.subr.mxu1 %v16290_v0  ;;  %11482 = vmatmul.mubr.msk.f32.vlgmr.msra.gmra.mxu0 %vm328_vm5, %v4483_v42  ;;  %v3158_v12 = vpop.permute.xlu1 %3157 }
 0xfc3   :  { %11315 = vmatpush3.msra.mxu1 %v3158_v12  ;;  %11506 = vmatpush3.xpose.msk.msra.mxu0 %vm328_vm5, %v4729_v7 }
 0xfc4   :  { %11484 = vmatprep.mubr.msk.f32.mxu0 %vm12784_vm0, %v16290_v0  ;;  %11507 = vmatprep.subr.mxu0 %v16290_v0 }
 0xfc5   :  { %11340 = vmatprep.subr.mxu1 %v16290_v0 }
 0xfc6   :  { %11485 = vmatmul.mubr.msk.f32.gmra.mxu0 %vm328_vm5, %v4485_v5 }
 0xfc7   :  { %11508 = vmatpush3.xpose.msk.msra.mxu0 %vm328_vm5, %v4727_v46  ;;  %11487 = vmatprep.mubr.msk.f32.mxu0 %vm12784_vm0, %v16290_v0 }
 0xfc8   :  { %11509 = vmatprep.subr.mxu0 %v16290_v0 }
 0xfca   :  { %11488 = vmatmul.mubr.msk.f32.gmra.mxu0 %vm328_vm5, %v4487_v43 }
 0xfcb   :  { %11510 = vmatpush3.xpose.msk.msra.mxu0 %vm328_vm5, %v4725_v45  ;;  %11511 = vmatprep.mubr.msk.f32.mxu0 %vm12784_vm0, %v16290_v0 }
 0xfcc   :  { %11535 = vmatprep.subr.bf16.mxu0 %v16290_v0 }
 0xfce   :  { %11512 = vmatmul.mubr.msk.f32.vlgmr.msra.gmra.mxu0 %vm328_vm5, %v4719_v19 }
 0xfcf   :  { %11514 = vmatprep.mubr.msk.f32.mxu0 %vm12784_vm0, %v16290_v0 }
 0xfd2   :  { %11515 = vmatmul.mubr.msk.f32.gmra.mxu0 %vm328_vm5, %v4721_v17 }
 0xfd3   :  { %11517 = vmatprep.mubr.msk.f32.mxu0 %vm12784_vm0, %v16290_v0 }
 0xfd6   :  { %11518 = vmatmul.mubr.msk.f32.gmra.mxu0 %vm328_vm5, %v4723_v14 }
 0xfd7   :  { %11539 = vmatprep.mubr.msk.bf16.mxu0 %vm12784_vm0, %v16290_v0 }
0x103a   :  { %v14169_v4 = vpop.f32.mrf.mxu0 }
0x103b   :  { %v3124_v9 = vsel %vm421_vm6, %v14169_v4, -inf }
0x103c   :  { %3125 = vmax.xlane.f32.xlu0 %v3124_v9  ;;  %v11303_v41 = vpop.f32.mrf.mxu0 }
0x103e   :  { %v14173_v56 = vpop.f32.mrf.mxu0 }
0x103f   :  { %v3127_v47 = vsel %vm421_vm6, %v14173_v56, -inf }
0x1040   :  { %3128 = vmax.xlane.f32.xlu1 %v3127_v47  ;;  %v11306_v32 = vpop.f32.mrf.mxu0 }
0x1042   :  { %v14177_v54 = vpop.f32.mrf.mxu0 }
0x1043   :  { %v3130_v6 = vsel %vm428_vm7, %v14177_v54, -inf }
0x1044   :  { %v11309_v52 = vpop.f32.mrf.mxu0 }
0x1046   :  { %v14179_v44 = vpop.f32.mrf.mxu0 }
0x1047   :  { %v3360_v58 = vsel %vm421_vm6, %v14179_v44, -inf }
0x1048   :  { %v11333_v15 = vpop.f32.mrf.mxu0 }
0x104a   :  { %v14181_v50 = vpop.f32.mrf.mxu0 }
0x104b   :  { %v3363_v5 = vsel %vm421_vm6, %v14181_v50, -inf }
0x104c   :  { %v11336_v30 = vpop.f32.mrf.mxu0 }
0x104e   :  { %v14183_v33 = vpop.f32.mrf.mxu0 }
0x104f   :  { %v3366_v63 = vsel %vm428_vm7, %v14183_v33, -inf }
0x1050   :  { %v11339_v59 = vpop.f32.mrf.mxu0 }
0x1051   :  { %4149 = vrot.lane.b32.xlu1 %v13963_v55, %s12786_s9 }
0x1052   :  { %4147 = vrot.lane.b32.xlu0 %v13971_v53, %s12786_s9  ;;  %v14189_v28 = vpop.f32.mrf.mxu0 }
0x1053   :  { %v3596_v19 = vsel %vm421_vm6, %v14189_v28, -inf }
0x1054   :  { %v11363_v38 = vpop.f32.mrf.mxu0 }
0x1056   :  { %v14191_v2 = vpop.f32.mrf.mxu0 }
0x1057   :  { %v3599_v46 = vsel %vm421_vm6, %v14191_v2, -inf }
0x1058   :  { %v11366_v31 = vpop.f32.mrf.mxu0 }
0x105a   :  { %v14193_v36 = vpop.f32.mrf.mxu0 }
0x105b   :  { %v3602_v16 = vsel %vm428_vm7, %v14193_v36, -inf }
0x105c   :  { %v11369_v22 = vpop.f32.mrf.mxu0 }
0x105e   :  { %v14195_v35 = vpop.f32.mrf.mxu0 }
0x105f   :  { %v3832_v17 = vsel %vm421_vm6, %v14195_v35, -inf }
0x1060   :  { %v11393_v48 = vpop.f32.mrf.mxu0 }
0x1062   :  { %v14197_v24 = vpop.f32.mrf.mxu0 }
0x1063   :  { %v3835_v47 = vsel %vm421_vm6, %v14197_v24, -inf }
0x1064   :  { %v11396_v18 = vpop.f32.mrf.mxu0 }
0x1066   :  { %v14199_v8 = vpop.f32.mrf.mxu0 }
0x1067   :  { %v3838_v12 = vsel %vm428_vm7, %v14199_v8, -inf }
0x1068   :  { %v11399_v25 = vpop.f32.mrf.mxu0 }
0x106a   :  { %v14201_v27 = vpop.f32.mrf.mxu0 }
0x106b   :  { %v4114_v30 = vsel %vm421_vm6, %v14201_v27, -inf }
0x106c   :  { %v11423_v10 = vpop.f32.mrf.mxu0 }
0x106e   :  { %v14203_v60 = vpop.f32.mrf.mxu0 }
0x106f   :  { %v4117_v32 = vsel %vm421_vm6, %v14203_v60, -inf }
0x1070   :  { %v11426_v61 = vpop.f32.mrf.mxu0 }
0x1071   :  { %3131 = vmax.xlane.f32.xlu0 %v3130_v6 }
0x1072   :  { %v14207_v37 = vpop.f32.mrf.mxu0 }
0x1073   :  { %v4120_v22 = vsel %vm428_vm7, %v14207_v37, -inf }
0x1074   :  { %v11429_v49 = vpop.f32.mrf.mxu0 }
0x1075   :  { %3361 = vmax.xlane.f32.xlu0 %v3360_v58  ;;  %3367 = vmax.xlane.f32.xlu1 %v3366_v63 }
0x1076   :  { %v14213_v42 = vpop.f32.mrf.mxu0 }
0x1077   :  { %v4350_v59 = vsel %vm421_vm6, %v14213_v42, -inf }
0x1078   :  { %v11453_v7 = vpop.f32.mrf.mxu0 }
0x1079   :  { %3364 = vmax.xlane.f32.xlu0 %v3363_v5  ;;  %3600 = vmax.xlane.f32.xlu1 %v3599_v46  ;;  %v14263_v46 = vpop.permute.xlu1 %3397 }
0x107a   :  { %v14219_v43 = vpop.f32.mrf.mxu0 }
0x107b   :  { %v4353_v10 = vsel %vm421_vm6, %v14219_v43, -inf }
0x107c   :  { %v11456_v45 = vpop.f32.mrf.mxu0 }
0x107d   :  { %3597 = vmax.xlane.f32.xlu0 %v3596_v19  ;;  %3833 = vmax.xlane.f32.xlu1 %v3832_v17  ;;  %v14267_v45 = vpop.permute.xlu1 %3393  ;;  %v14269_v19 = vpop.permute.xlu0 %3395 }
0x107e   :  { %v14225_v14 = vpop.f32.mrf.mxu0 }
0x107f   :  { %v4356_v48 = vsel %vm428_vm7, %v14225_v14, -inf }
0x1080   :  { %v11459_v51 = vpop.f32.mrf.mxu0 }
0x1081   :  { %3603 = vmax.xlane.f32.xlu0 %v3602_v16  ;;  %3839 = vmax.xlane.f32.xlu1 %v3838_v12  ;;  %v14271_v17 = vpop.permute.xlu1 %3633  ;;  %v14273_v51 = vpop.permute.xlu0 %3631 }
0x1082   :  { %v14231_v9 = vpop.f32.mrf.mxu0 }
0x1084   :  { %v11483_v41 = vpop.f32.mrf.mxu0 }
0x1085   :  { %3836 = vmax.xlane.f32.xlu0 %v3835_v47  ;;  %4118 = vmax.xlane.f32.xlu1 %v4117_v32  ;;  %v14275_v16 = vpop.permute.xlu1 %3629  ;;  %v14277_v12 = vpop.permute.xlu0 %3869 }
0x1086   :  { %v14237_v52 = vpop.f32.mrf.mxu0 }
0x1087   :  { %v4589_v61 = vsel %vm421_vm6, %v14237_v52, -inf }
0x1088   :  { %v11486_v15 = vpop.f32.mrf.mxu0 }
0x1089   :  { %4115 = vmax.xlane.f32.xlu0 %v4114_v30  ;;  %4351 = vmax.xlane.f32.xlu1 %v4350_v59  ;;  %v14279_v41 = vpop.permute.xlu1 %3867  ;;  %v14281_v47 = vpop.permute.xlu0 %4151  ;;  %v4586_v30 = vsel %vm421_vm6, %v14231_v9, -inf }
0x108a   :  { %v14243_v38 = vpop.f32.mrf.mxu0 }
0x108c   :  { %v11489_v31 = vpop.f32.mrf.mxu0 }
0x108d   :  { %4121 = vmax.xlane.f32.xlu0 %v4120_v22  ;;  %4357 = vmax.xlane.f32.xlu1 %v4356_v48  ;;  %v14283_v32 = vpop.permute.xlu1 %3865  ;;  %v4592_v48 = vsel %vm428_vm7, %v14243_v38, -inf }
0x108e   :  { %v14249_v18 = vpop.f32.mrf.mxu0 }
0x108f   :  { %v4822_v58 = vsel %vm421_vm6, %v14249_v18, -inf }
0x1090   :  { %v11513_v25 = vpop.f32.mrf.mxu0 }
0x1091   :  { %4354 = vmax.xlane.f32.xlu0 %v4353_v10  ;;  %4590 = vmax.xlane.f32.xlu1 %v4589_v61 }
0x1092   :  { %v14255_v6 = vpop.f32.mrf.mxu0 }
0x1093   :  { %v4825_v61 = vsel %vm421_vm6, %v14255_v6, -inf }
0x1094   :  { %v11516_v49 = vpop.f32.mrf.mxu0 }
0x1095   :  { %4823 = vmax.xlane.f32.xlu1 %v4822_v58 }
0x1096   :  { %v14259_v63 = vpop.f32.mrf.mxu0 }
0x1097   :  { %v4828_v7 = vsel %vm428_vm7, %v14259_v63, -inf }
0x1098   :  { %v11519_v5 = vpop.f32.mrf.mxu0 }
0x1099   :  { %4829 = vmax.xlane.f32.xlu1 %v4828_v7 }
0x10a7   :  { %4387 = vrot.lane.b32.xlu0 %v13955_v11, %s12793_s15 }
0x10c5   :  { %v3126_v15 = vpop.xlane.xlu0 %3125 }
0x10c6   :  { %v3133_v59 = vsub.f32 %v14169_v4, %v3126_v15  ;;  %4587 = vmax.xlane.f32.xlu0 %v4586_v30 }
0x10c8   :  { %v3136_v31 = vmul.f32 1.442695, %v3133_v59 }
0x10c9   :  { %v3129_v22 = vpop.xlane.xlu1 %3128 }
0x10ca   :  { %12429 = vpow2.f32 %v3136_v31  ;;  %v3134_v25 = vsub.f32 %v14173_v56, %v3129_v22  ;;  %4593 = vmax.xlane.f32.xlu0 %v4592_v48  ;;  %v14301_v56 = vpop.permute.xlu0 %4147 }
0x10cc   :  { %v3138_v10 = vmul.f32 1.442695, %v3134_v25 }
0x10cd   :  { %v14303_v5 = vpop.permute.xlu1 %4149 }
0x10ce   :  { %12431 = vpow2.f32 %v3138_v10  ;;  %4826 = vmax.xlane.f32.xlu0 %v4825_v61 }
0x10d7   :  { %v14293_v49 = vpop.eup %12429 }
0x10d8   :  { %v3142_v4 = vsel %vm421_vm6, %v14293_v49, 0.0 }
0x10d9   :  { %3143 = vadd.xlane.f32.xlu1 %v3142_v4 }
0x10db   :  { %v14297_v58 = vpop.eup %12431 }
0x10dc   :  { %v3145_v7 = vsel %vm421_vm6, %v14297_v58, 0.0 }
0x10dd   :  { %3146 = vadd.xlane.f32.xlu0 %v3145_v7 }
0x10fa   :  { %v3132_v15 = vpop.xlane.xlu0 %3131 }
0x10fb   :  { %v3135_v30 = vsub.f32 %v14177_v54, %v3132_v15 }
0x10fd   :  { %v3140_v59 = vmul.f32 1.442695, %v3135_v30 }
0x10fe   :  { %v3362_v31 = vpop.xlane.xlu0 %3361  ;;  %v3368_v22 = vpop.xlane.xlu1 %3367 }
0x10ff   :  { %12433 = vpow2.f32 %v3140_v59  ;;  %v3369_v48 = vsub.f32 %v14179_v44, %v3362_v31  ;;  %v3371_v25 = vsub.f32 %v14183_v33, %v3368_v22 }
0x1101   :  { %v3372_v10 = vmul.f32 1.442695, %v3369_v48  ;;  %v3376_v61 = vmul.f32 1.442695, %v3371_v25 }
0x1102   :  { %v3365_v4 = vpop.xlane.xlu0 %3364  ;;  %v14308_v0 = vpop.xlane.xlu1 %3600 }
0x1103   :  { %12435 = vpow2.f32 %v3372_v10  ;;  %v3370_v7 = vsub.f32 %v14181_v50, %v3365_v4 }
0x1104   :  { %12437 = vpow2.f32 %v3376_v61 }
0x1105   :  { %v3374_v57 = vmul.f32 1.442695, %v3370_v7 }
0x1106   :  { %v3598_v29 = vpop.xlane.xlu0 %3597  ;;  %v3834_v54 = vpop.xlane.xlu1 %3833 }
0x1107   :  { %12439 = vpow2.f32 %v3374_v57  ;;  %v3605_v15 = vsub.f32 %v14189_v28, %v3598_v29  ;;  %v3841_v44 = vsub.f32 %v14195_v35, %v3834_v54 }
0x1109   :  { %v3608_v30 = vmul.f32 1.442695, %v3605_v15  ;;  %v3844_v48 = vmul.f32 1.442695, %v3841_v44 }
0x110a   :  { %v3604_v59 = vpop.xlane.xlu0 %3603  ;;  %v3840_v33 = vpop.xlane.xlu1 %3839 }
0x110b   :  { %12441 = vpow2.f32 %v3608_v30  ;;  %v3607_v31 = vsub.f32 %v14193_v36, %v3604_v59  ;;  %v3843_v50 = vsub.f32 %v14199_v8, %v3840_v33 }
0x110c   :  { %v14314_v22 = vpop.eup %12433 }
0x110d   :  { %v3612_v25 = vmul.f32 1.442695, %v3607_v31  ;;  %v3148_v10 = vsel %vm428_vm7, %v14314_v22, 0.0  ;;  %v3848_v35 = vmul.f32 1.442695, %v3843_v50 }
0x110e   :  { %v14319_v57 = vpop.xlane.xlu0 %3836  ;;  %v14321_v29 = vpop.xlane.xlu1 %4118  ;;  %3149 = vadd.xlane.f32.xlu1 %v3148_v10 }
0x110f   :  { %12443 = vpow2.f32 %v3612_v25 }
0x1110   :  { %v14323_v28 = vpop.eup %12435  ;;  %12445 = vpow2.f32 %v3844_v48 }
0x1111   :  { %v3378_v36 = vsel %vm421_vm6, %v14323_v28, 0.0  ;;  %v14327_v61 = vpop.eup %12437  ;;  %12447 = vpow2.f32 %v3848_v35 }
0x1112   :  { %v4116_v4 = vpop.xlane.xlu0 %4115  ;;  %v4352_v8 = vpop.xlane.xlu1 %4351  ;;  %3379 = vadd.xlane.f32.xlu0 %v3378_v36  ;;  %v3384_v30 = vsel %vm428_vm7, %v14327_v61, 0.0 }
0x1113   :  { %v4123_v7 = vsub.f32 %v14201_v27, %v4116_v4 }
0x1114   :  { %v14330_v54 = vpop.eup %12439 }
0x1115   :  { %v4126_v15 = vmul.f32 1.442695, %v4123_v7  ;;  %v3381_v44 = vsel %vm421_vm6, %v14330_v54, 0.0 }
0x1116   :  { %v4122_v59 = vpop.xlane.xlu0 %4121  ;;  %v4358_v33 = vpop.xlane.xlu1 %4357  ;;  %3385 = vadd.xlane.f32.xlu0 %v3384_v30  ;;  %3382 = vadd.xlane.f32.xlu1 %v3381_v44 }
0x1117   :  { %v4125_v31 = vsub.f32 %v14207_v37, %v4122_v59  ;;  %12449 = vpow2.f32 %v4126_v15 }
0x1118   :  { %v14337_v48 = vpop.eup %12441 }
0x1119   :  { %v4130_v27 = vmul.f32 1.442695, %v4125_v31  ;;  %v3614_v25 = vsel %vm421_vm6, %v14337_v48, 0.0 }
0x111a   :  { %v4355_v50 = vpop.xlane.xlu0 %4354  ;;  %v4591_v10 = vpop.xlane.xlu1 %4590  ;;  %3615 = vadd.xlane.f32.xlu0 %v3614_v25 }
0x111b   :  { %v4360_v35 = vsub.f32 %v14219_v43, %v4355_v50  ;;  %12451 = vpow2.f32 %v4130_v27  ;;  %v4596_v7 = vsub.f32 %v14237_v52, %v4591_v10 }
0x111c   :  { %v14342_v36 = vpop.eup %12443 }
0x111d   :  { %v4364_v4 = vmul.f32 1.442695, %v4360_v35  ;;  %v3620_v37 = vsel %vm428_vm7, %v14342_v36, 0.0  ;;  %v14347_v30 = vpop.eup %12445  ;;  %v4600_v15 = vmul.f32 1.442695, %v4596_v7 }
0x111e   :  { %3621 = vadd.xlane.f32.xlu0 %v3620_v37  ;;  %v3850_v44 = vsel %vm421_vm6, %v14347_v30, 0.0  ;;  %v14351_v59 = vpop.eup %12447 }
0x111f   :  { %12453 = vpow2.f32 %v4364_v4  ;;  %v3856_v43 = vsel %vm428_vm7, %v14351_v59, 0.0  ;;  %v3606_v4 = vsub.f32 %v14191_v2, %v14308_v0  ;;  %v4361_v2 = vsub.f32 %v14225_v14, %v4358_v33  ;;  %v4824_v14 = vpop.xlane.xlu1 %4823 }
0x1120   :  { %12455 = vpow2.f32 %v4600_v15  ;;  %v3842_v15 = vsub.f32 %v14197_v24, %v14319_v57  ;;  %v4831_v33 = vsub.f32 %v14249_v18, %v4824_v14 }
0x1121   :  { %v3610_v37 = vmul.f32 1.442695, %v3606_v4 }
0x1122   :  { %3851 = vadd.xlane.f32.xlu0 %v3850_v44  ;;  %v3846_v44 = vmul.f32 1.442695, %v3842_v15 }
0x1123   :  { %12457 = vpow2.f32 %v3610_v37 }
0x1124   :  { %v14355_v31 = vpop.eup %12449  ;;  %12459 = vpow2.f32 %v3846_v44 }
0x1125   :  { %v4132_v52 = vsel %vm421_vm6, %v14355_v31, 0.0 }
0x1126   :  { %3857 = vadd.xlane.f32.xlu0 %v3856_v43  ;;  %v4124_v43 = vsub.f32 %v14203_v60, %v14321_v29 }
0x1127   :  { %4385 = vrot.lane.b32.xlu1 %v13963_v55, %s12793_s15 }
0x1128   :  { %v14361_v27 = vpop.eup %12451 }
0x1129   :  { %v4138_v25 = vsel %vm428_vm7, %v14361_v27, 0.0 }
0x112a   :  { %4133 = vadd.xlane.f32.xlu0 %v4132_v52  ;;  %v4128_v52 = vmul.f32 1.442695, %v4124_v43 }
0x112c   :  { %v14365_v50 = vpop.eup %12453  ;;  %12461 = vpow2.f32 %v4128_v52 }
0x112d   :  { %v4371_v10 = vsel %vm421_vm6, %v14365_v50, 0.0  ;;  %v14369_v35 = vpop.eup %12455 }
0x112e   :  { %4139 = vadd.xlane.f32.xlu0 %v4138_v25  ;;  %v4607_v7 = vsel %vm421_vm6, %v14369_v35, 0.0  ;;  %v4359_v25 = vsub.f32 %v14213_v42, %v4352_v8 }
0x1130   :  { %v4362_v0 = vmul.f32 1.442695, %v4359_v25  ;;  %v14381_v4 = vpop.eup %12457  ;;  %v4834_v25 = vmul.f32 1.442695, %v4831_v33 }
0x1131   :  { %v3617_v24 = vsel %vm421_vm6, %v14381_v4, 0.0  ;;  %v14385_v57 = vpop.eup %12459 }
0x1132   :  { %4372 = vadd.xlane.f32.xlu0 %v4371_v10  ;;  %12463 = vpow2.f32 %v4362_v0  ;;  %v4366_v10 = vmul.f32 1.442695, %v4361_v2  ;;  %v3853_v60 = vsel %vm421_vm6, %v14385_v57, 0.0 }
0x1134   :  { %12465 = vpow2.f32 %v4366_v10 }
0x1136   :  { %4608 = vadd.xlane.f32.xlu0 %v4607_v7  ;;  %v14387_v7 = vpop.permute.xlu0 %4387 }
0x1139   :  { %v14393_v42 = vpop.eup %12461 }
0x113a   :  { %v4135_v15 = vsel %vm421_vm6, %v14393_v42, 0.0 }
0x113f   :  { %v14399_v44 = vpop.eup %12463 }
0x1140   :  { %v4368_v2 = vsel %vm421_vm6, %v14399_v44, 0.0 }
0x1141   :  { %v14404_v10 = vpop.eup %12465 }
0x114b   :  { %3618 = vadd.xlane.f32.xlu1 %v3617_v24 }
0x114c   :  { %4383 = vrot.lane.b32.xlu0 %v13971_v53, %s12793_s15 }
0x114f   :  { %v4588_v29 = vpop.xlane.xlu0 %4587  ;;  %3854 = vadd.xlane.f32.xlu1 %v3853_v60  ;;  %v4374_v60 = vsel %vm428_vm7, %v14404_v10, 0.0 }
0x1150   :  { %v4595_v8 = vsub.f32 %v14231_v9, %v4588_v29 }
0x1152   :  { %v4598_v37 = vmul.f32 1.442695, %v4595_v8 }
0x1153   :  { %v4594_v43 = vpop.xlane.xlu0 %4593  ;;  %4136 = vadd.xlane.f32.xlu1 %v4135_v15 }
0x1154   :  { %12467 = vpow2.f32 %v4598_v37  ;;  %v4597_v52 = vsub.f32 %v14243_v38, %v4594_v43  ;;  %v4830_v38 = vpop.xlane.xlu1 %4829 }
0x1156   :  { %v4602_v0 = vmul.f32 1.442695, %v4597_v52 }
0x1157   :  { %v4827_v9 = vpop.xlane.xlu0 %4826  ;;  %4369 = vadd.xlane.f32.xlu1 %v4368_v2 }
0x1158   :  { %12469 = vpow2.f32 %v4602_v0  ;;  %v4832_v18 = vsub.f32 %v14255_v6, %v4827_v9 }
0x1159   :  { %12471 = vpow2.f32 %v4834_v25 }
0x115a   :  { %v4836_v24 = vmul.f32 1.442695, %v4832_v18  ;;  %v16310_v18 = vmov 0.0  }
0x115b   :  { %4375 = vadd.xlane.f32.xlu1 %v4374_v60 }
0x115c   :  { %12473 = vpow2.f32 %v4836_v24 }
0x1161   :  { %v14409_v14 = vpop.eup %12467 }
0x1162   :  { %v3144_v29 = vpop.xlane.xlu1 %3143  ;;  %v4604_v8 = vsel %vm421_vm6, %v14409_v14, 0.0 }
0x1163   :  { %12475 = vrcp.f32 %v3144_v29  ;;  %4605 = vadd.xlane.f32.xlu1 %v4604_v8 }
0x1165   :  { %v14413_v33 = vpop.eup %12469 }
0x1166   :  { %v3147_v37 = vpop.xlane.xlu0 %3146  ;;  %v4610_v6 = vsel %vm428_vm7, %v14413_v33, 0.0  ;;  %v14417_v15 = vpop.eup %12471 }
0x1167   :  { %12477 = vrcp.f32 %v3147_v37  ;;  %4611 = vadd.xlane.f32.xlu1 %v4610_v6  ;;  %v4840_v25 = vsel %vm421_vm6, %v14417_v15, 0.0 }
0x1169   :  { %v14419_v43 = vpop.eup %12473 }
0x116a   :  { %v4843_v52 = vsel %vm421_vm6, %v14419_v43, 0.0 }
0x116b   :  { %4844 = vadd.xlane.f32.xlu0 %v4843_v52  ;;  %4841 = vadd.xlane.f32.xlu1 %v4840_v25 }
0x1170   :  { %v12476_v0 = vpop.eup %12475 }
0x1171   :  { %v3154_v2 = vmul.f32 %v12476_v0, %v14293_v49 }
0x1173   :  { %11317 = vmatmul.mubr.msk.f32.vlgmr.msra.gmra.mxu1 %vm421_vm6, %v3154_v2 }
0x1174   :  { %v12478_v9 = vpop.eup %12477  ;;  %11341 = vmatpush3.msk.msra.mxu1 %vm50_vm3, %v14263_v46  ;;  %11319 = vmatprep.mubr.msk.f32.mxu1 %vm12784_vm0, %v16310_v18 }
0x1175   :  { %11342 = vmatprep.subr.mxu1 %v16310_v18  ;;  %v3155_v24 = vmul.f32 %v12478_v9, %v14297_v58 }
0x1176   :  { %11343 = vmatpush3.msra.mxu1 %v14269_v19 }
0x1177   :  { %11344 = vmatprep.subr.mxu1 %v16310_v18  ;;  %11320 = vmatmul.mubr.msk.f32.gmra.mxu1 %vm421_vm6, %v3155_v24 }
0x1178   :  { %11345 = vmatpush3.msra.mxu1 %v14267_v45  ;;  %11322 = vmatprep.mubr.msk.f32.mxu1 %vm12784_vm0, %v16310_v18  ;;  %v4833_v45 = vsub.f32 %v14259_v63, %v4830_v38 }
0x1179   :  { %11370 = vmatprep.subr.mxu1 %v16310_v18 }
0x117a   :  { %v4838_v49 = vmul.f32 1.442695, %v4833_v45 }
0x117c   :  { %4623 = vrot.lane.b32.xlu1 %v13955_v11, %s12794_s16 }
0x1180   :  { %4621 = vrot.lane.b32.xlu1 %v13963_v55, %s12794_s16 }
0x1184   :  { %4619 = vrot.lane.b32.xlu1 %v13971_v53, %s12794_s16 }
0x1188   :  { %4859 = vrot.lane.b32.xlu1 %v13955_v11, %s12795_s17 }
0x118c   :  { %4857 = vrot.lane.b32.xlu1 %v13963_v55, %s12795_s17 }
0x1190   :  { %4855 = vrot.lane.b32.xlu1 %v13971_v53, %s12795_s17 }
0x1197   :  { %v3150_v46 = vpop.xlane.xlu1 %3149 }
0x1198   :  { %12479 = vrcp.f32 %v3150_v46 }
0x119b   :  { %v3380_v19 = vpop.xlane.xlu0 %3379 }
0x119c   :  { %12481 = vrcp.f32 %v3380_v19 }
0x119f   :  { %v3386_v58 = vpop.xlane.xlu0 %3385  ;;  %v3383_v60 = vpop.xlane.xlu1 %3382 }
0x11a0   :  { %12483 = vrcp.f32 %v3383_v60 }
0x11a1   :  { %12485 = vpow2.f32 %v4838_v49 }
0x11a2   :  { %12487 = vrcp.f32 %v3386_v58 }
0x11a3   :  { %v3616_v29 = vpop.xlane.xlu0 %3615 }
0x11a4   :  { %12489 = vrcp.f32 %v3616_v29 }
0x11a5   :  { %v12480_v11 = vpop.eup %12479 }
0x11a6   :  { %v3156_v8 = vmul.f32 %v12480_v11, %v14314_v22 }
0x11a8   :  { %11323 = vmatmul.mubr.msk.f32.gmra.mxu1 %vm421_vm6, %v3156_v8 }
0x11a9   :  { %v12482_v55 = vpop.eup %12481  ;;  %11346 = vmatprep.mubr.msk.f32.mxu1 %vm12784_vm0, %v16310_v18 }
0x11aa   :  { %v3390_v53 = vmul.f32 %v12482_v55, %v14323_v28 }
0x11ac   :  { %11347 = vmatmul.mubr.msk.f32.vlgmr.msra.gmra.mxu1 %vm421_vm6, %v3390_v53 }
0x11ad   :  { %11371 = vmatpush3.msk.msra.mxu1 %vm50_vm3, %v14271_v17  ;;  %11349 = vmatprep.mubr.msk.f32.mxu1 %vm12784_vm0, %v16310_v18  ;;  %v12484_v63 = vpop.eup %12483 }
0x11ae   :  { %11372 = vmatprep.subr.mxu1 %v16310_v18  ;;  %v14464_v22 = vpop.eup %12485  ;;  %v3391_v38 = vmul.f32 %v12484_v63, %v14330_v54 }
0x11af   :  { %11373 = vmatpush3.msra.mxu1 %v14273_v51  ;;  %v12488_v37 = vpop.eup %12487  ;;  %v4846_v17 = vsel %vm428_vm7, %v14464_v22, 0.0 }
0x11b0   :  { %11374 = vmatprep.subr.mxu1 %v16310_v18  ;;  %11350 = vmatmul.mubr.msk.f32.gmra.mxu1 %vm421_vm6, %v3391_v38  ;;  %v3392_v28 = vmul.f32 %v12488_v37, %v14327_v61  ;;  %v3622_v61 = vpop.xlane.xlu0 %3621 }
0x11b1   :  { %11375 = vmatpush3.msra.mxu1 %v14275_v16  ;;  %11352 = vmatprep.mubr.msk.f32.mxu1 %vm12784_vm0, %v16310_v18  ;;  %v12490_v51 = vpop.eup %12489  ;;  %v4386_v16 = vpop.permute.xlu1 %4385 }
0x11b2   :  { %11400 = vmatprep.subr.mxu1 %v16310_v18  ;;  %v3626_v54 = vmul.f32 %v12490_v51, %v14337_v48 }
0x11b4   :  { %4847 = vadd.xlane.f32.xlu1 %v4846_v17  ;;  %11353 = vmatmul.mubr.msk.f32.gmra.mxu1 %vm421_vm6, %v3392_v28  ;;  %v3852_v6 = vpop.xlane.xlu0 %3851 }
0x11b5   :  { %11376 = vmatprep.mubr.msk.f32.mxu1 %vm12784_vm0, %v16310_v18 }
0x11b8   :  { %11377 = vmatmul.mubr.msk.f32.vlgmr.msra.gmra.mxu1 %vm421_vm6, %v3626_v54  ;;  %v3858_v25 = vpop.xlane.xlu0 %3857 }
0x11b9   :  { %11401 = vmatpush3.msk.msra.mxu1 %vm50_vm3, %v14277_v12  ;;  %11379 = vmatprep.mubr.msk.f32.mxu1 %vm12784_vm0, %v16310_v18 }
0x11ba   :  { %11402 = vmatprep.subr.mxu1 %v16310_v18 }
0x11bb   :  { %11403 = vmatpush3.msra.mxu1 %v14279_v41 }
0x11bc   :  { %11404 = vmatprep.subr.mxu1 %v16310_v18 }
0x11bd   :  { %11405 = vmatpush3.msra.mxu1 %v14283_v32  ;;  %v4134_v32 = vpop.xlane.xlu0 %4133 }
0x11be   :  { %11430 = vmatprep.subr.mxu1 %v16310_v18 }
0x11d4   :  { %v3619_v48 = vpop.xlane.xlu1 %3618 }
0x11d5   :  { %12491 = vrcp.f32 %v3619_v48 }
0x11d6   :  { %12493 = vrcp.f32 %v3622_v61 }
0x11d7   :  { %12495 = vrcp.f32 %v3852_v6 }
0x11d8   :  { %v3855_v12 = vpop.xlane.xlu1 %3854 }
0x11d9   :  { %12497 = vrcp.f32 %v3855_v12 }
0x11da   :  { %12499 = vrcp.f32 %v3858_v25 }
0x11db   :  { %12501 = vrcp.f32 %v4134_v32 }
0x11dc   :  { %v4137_v52 = vpop.xlane.xlu1 %4136 }
0x11dd   :  { %12503 = vrcp.f32 %v4137_v52 }
0x11e0   :  { %v4370_v2 = vpop.xlane.xlu1 %4369 }
0x11e2   :  { %v12492_v0 = vpop.eup %12491 }
0x11e3   :  { %v3627_v41 = vmul.f32 %v12492_v0, %v14381_v4  ;;  %v12494_v9 = vpop.eup %12493  ;;  %v4140_v4 = vpop.xlane.xlu0 %4139 }
0x11e4   :  { %v3628_v24 = vmul.f32 %v12494_v9, %v14342_v36  ;;  %v12496_v46 = vpop.eup %12495  ;;  %v4376_v45 = vpop.xlane.xlu1 %4375  ;;  %12505 = vrcp.f32 %v4140_v4 }
0x11e5   :  { %11380 = vmatmul.mubr.msk.f32.gmra.mxu1 %vm421_vm6, %v3627_v41  ;;  %v3862_v19 = vmul.f32 %v12496_v46, %v14347_v30  ;;  %12507 = vrcp.f32 %v4370_v2 }
0x11e6   :  { %11382 = vmatprep.mubr.msk.f32.mxu1 %vm12784_vm0, %v16310_v18  ;;  %v12498_v49 = vpop.eup %12497 }
0x11e7   :  { %v3863_v36 = vmul.f32 %v12498_v49, %v14385_v57  ;;  %v12500_v60 = vpop.eup %12499  ;;  %v4373_v29 = vpop.xlane.xlu0 %4372 }
0x11e8   :  { %v12502_v57 = vpop.eup %12501  ;;  %12509 = vrcp.f32 %v4373_v29 }
0x11e9   :  { %11383 = vmatmul.mubr.msk.f32.gmra.mxu1 %vm421_vm6, %v3628_v24  ;;  %12511 = vrcp.f32 %v4376_v45 }
0x11ea   :  { %11406 = vmatprep.mubr.msk.f32.mxu1 %vm12784_vm0, %v16310_v18 }
0x11eb   :  { %v4609_v8 = vpop.xlane.xlu0 %4608 }
0x11ec   :  { %v4606_v58 = vpop.xlane.xlu1 %4605 }
0x11ed   :  { %11407 = vmatmul.mubr.msk.f32.vlgmr.msra.gmra.mxu1 %vm421_vm6, %v3862_v19  ;;  %12513 = vrcp.f32 %v4606_v58 }
0x11ee   :  { %11431 = vmatpush3.msk.msra.mxu1 %vm50_vm3, %v14281_v47  ;;  %11409 = vmatprep.mubr.msk.f32.mxu1 %vm12784_vm0, %v16310_v18  ;;  %v3864_v47 = vmul.f32 %v12500_v60, %v14351_v59  ;;  %12515 = vrcp.f32 %v4609_v8  ;;  %v12244_v8 = vld [vmem:[%s16286_s4 + $0x10] sm:$0xff]  }
0x11ef   :  { %11432 = vmatprep.subr.mxu1 %v16310_v18 }
0x11f0   :  { %11433 = vmatpush3.msra.mxu1 %v14303_v5  ;;  %v4612_v30 = vpop.xlane.xlu1 %4611  ;;  %v4144_v5 = vmul.f32 %v12502_v57, %v14355_v31  ;;  %v4384_v31 = vpop.permute.xlu0 %4383 }
0x11f1   :  { %11434 = vmatprep.subr.mxu1 %v16310_v18  ;;  %11410 = vmatmul.mubr.msk.f32.gmra.mxu1 %vm421_vm6, %v3863_v36  ;;  %12517 = vrcp.f32 %v4612_v30 }
0x11f2   :  { %11435 = vmatpush3.msra.mxu1 %v14301_v56  ;;  %11412 = vmatprep.mubr.msk.f32.mxu1 %vm12784_vm0, %v16310_v18  ;;  %v12504_v56 = vpop.eup %12503 }
0x11f3   :  { %11460 = vmatprep.subr.mxu1 %v16310_v18  ;;  %v4145_v59 = vmul.f32 %v12504_v56, %v14393_v42  ;;  %v12506_v53 = vpop.eup %12505 }
0x11f4   :  { %v4842_v11 = vpop.xlane.xlu1 %4841  ;;  %v12508_v38 = vpop.eup %12507 }
0x11f5   :  { %11413 = vmatmul.mubr.msk.f32.gmra.mxu1 %vm421_vm6, %v3864_v47  ;;  %v4380_v42 = vmul.f32 %v12508_v38, %v14399_v44  ;;  %v12510_v17 = vpop.eup %12509  ;;  %12519 = vrcp.f32 %v4842_v11 }
0x11f6   :  { %11436 = vmatprep.mubr.msk.f32.mxu1 %vm12784_vm0, %v16310_v18  ;;  %v12512_v28 = vpop.eup %12511 }
0x11f7   :  { %v4382_v44 = vmul.f32 %v12512_v28, %v14404_v10 }
0x11f8   :  { %v4624_v55 = vpop.permute.xlu1 %4623 }
0x11f9   :  { %11437 = vmatmul.mubr.msk.f32.vlgmr.msra.gmra.mxu1 %vm421_vm6, %v4144_v5 }
0x11fa   :  { %11461 = vmatpush3.msk.msra.mxu1 %vm50_vm3, %v14387_v7  ;;  %11439 = vmatprep.mubr.msk.f32.mxu1 %vm12784_vm0, %v16310_v18  ;;  %v4146_v7 = vmul.f32 %v12506_v53, %v14361_v27  ;;  %v4381_v27 = vmul.f32 %v12510_v17, %v14365_v50  ;;  %v12514_v54 = vpop.eup %12513 }
0x11fb   :  { %11462 = vmatprep.subr.mxu1 %v16310_v18  ;;  %v4616_v50 = vmul.f32 %v12514_v54, %v14409_v14  ;;  %v12516_v48 = vpop.eup %12515 }
0x11fc   :  { %11463 = vmatpush3.msra.mxu1 %v4386_v16  ;;  %v4622_v63 = vpop.permute.xlu1 %4621  ;;  %v4845_v16 = vpop.xlane.xlu0 %4844  ;;  %v4617_v10 = vmul.f32 %v12516_v48, %v14369_v35 }
0x11fd   :  { %11464 = vmatprep.subr.mxu1 %v16310_v18  ;;  %11440 = vmatmul.mubr.msk.f32.gmra.mxu1 %vm421_vm6, %v4145_v59  ;;  %12521 = vrcp.f32 %v4845_v16 }
0x11fe   :  { %11465 = vmatpush3.msra.mxu1 %v4384_v31  ;;  %11442 = vmatprep.mubr.msk.f32.mxu1 %vm12784_vm0, %v16310_v18  ;;  %v12518_v6 = vpop.eup %12517 }
0x11ff   :  { %11490 = vmatprep.subr.mxu1 %v16310_v18  ;;  %v4618_v14 = vmul.f32 %v12518_v6, %v14413_v33 }
0x1200   :  { %v4620_v37 = vpop.permute.xlu1 %4619 }
0x1201   :  { %11443 = vmatmul.mubr.msk.f32.gmra.mxu1 %vm421_vm6, %v4146_v7 }
0x1202   :  { %11466 = vmatprep.mubr.msk.f32.mxu1 %vm12784_vm0, %v16310_v18  ;;  %v12520_v52 = vpop.eup %12519 }
0x1203   :  { %v4852_v35 = vmul.f32 %v12520_v52, %v14417_v15 }
0x1204   :  { %v4860_v51 = vpop.permute.xlu1 %4859 }
0x1205   :  { %11467 = vmatmul.mubr.msk.f32.vlgmr.msra.gmra.mxu1 %vm421_vm6, %v4380_v42 }
0x1206   :  { %11491 = vmatpush3.msk.msra.mxu1 %vm50_vm3, %v4624_v55  ;;  %11469 = vmatprep.mubr.msk.f32.mxu1 %vm12784_vm0, %v16310_v18 }
0x1207   :  { %11492 = vmatprep.subr.mxu1 %v16310_v18 }
0x1208   :  { %11493 = vmatpush3.msra.mxu1 %v4622_v63  ;;  %v4858_v61 = vpop.permute.xlu1 %4857 }
0x1209   :  { %11494 = vmatprep.subr.mxu1 %v16310_v18  ;;  %11470 = vmatmul.mubr.msk.f32.gmra.mxu1 %vm421_vm6, %v4381_v27 }
0x120a   :  { %11495 = vmatpush3.msra.mxu1 %v4620_v37  ;;  %11472 = vmatprep.mubr.msk.f32.mxu1 %vm12784_vm0, %v16310_v18  ;;  %v12522_v25 = vpop.eup %12521 }
0x120b   :  { %11520 = vmatprep.subr.mxu1 %v16310_v18  ;;  %v4853_v0 = vmul.f32 %v12522_v25, %v14419_v43 }
0x120c   :  { %v4856_v12 = vpop.permute.xlu1 %4855 }
0x120d   :  { %11473 = vmatmul.mubr.msk.f32.gmra.mxu1 %vm421_vm6, %v4382_v44 }
0x120e   :  { %11496 = vmatprep.mubr.msk.f32.mxu1 %vm12784_vm0, %v16310_v18 }
0x1211   :  { %11497 = vmatmul.mubr.msk.f32.vlgmr.msra.gmra.mxu1 %vm421_vm6, %v4616_v50 }
0x1212   :  { %11521 = vmatpush3.msk.msra.mxu1 %vm50_vm3, %v4860_v51  ;;  %11499 = vmatprep.mubr.msk.f32.mxu1 %vm12784_vm0, %v16310_v18 }
0x1213   :  { %11522 = vmatprep.subr.mxu1 %v16310_v18 }
0x1214   :  { %11523 = vmatpush3.msra.mxu1 %v4858_v61 }
0x1215   :  { %11524 = vmatprep.subr.mxu1 %v16310_v18  ;;  %11500 = vmatmul.mubr.msk.f32.gmra.mxu1 %vm421_vm6, %v4617_v10 }
0x1216   :  { %11525 = vmatpush3.msra.mxu1 %v4856_v12  ;;  %11502 = vmatprep.mubr.msk.f32.mxu1 %vm12784_vm0, %v16310_v18 }
0x1217   :  { %11551 = vmatprep.subr.bf16.mxu1 %v16310_v18 }
0x1219   :  { %11503 = vmatmul.mubr.msk.f32.gmra.mxu1 %vm421_vm6, %v4618_v14 }
0x121a   :  { %11526 = vmatprep.mubr.msk.f32.mxu1 %vm12784_vm0, %v16310_v18 }
0x121d   :  { %11527 = vmatmul.mubr.msk.f32.vlgmr.msra.gmra.mxu1 %vm421_vm6, %v4852_v35 }
0x121e   :  { %11529 = vmatprep.mubr.msk.f32.mxu1 %vm12784_vm0, %v16310_v18 }
0x1221   :  { %11530 = vmatmul.mubr.msk.f32.gmra.mxu1 %vm421_vm6, %v4853_v0 }
0x1222   :  { %11532 = vmatprep.mubr.msk.f32.mxu1 %vm12784_vm0, %v16310_v18 }
0x1233   :  { %v14575_v33 = vpop.f32.mrf.mxu1 }
0x1235   :  { %v11318_v2 = vpop.f32.mrf.mxu1 }
0x1237   :  { %v14577_v41 = vpop.f32.mrf.mxu1 }
0x1239   :  { %v11321_v9 = vpop.f32.mrf.mxu1 }
0x123d   :  { %v4848_v15 = vpop.xlane.xlu1 %4847 }
0x123e   :  { %12523 = vrcp.f32 %v4848_v15 }
0x124b   :  { %v12524_v32 = vpop.eup %12523 }
0x124c   :  { %v4854_v24 = vmul.f32 %v12524_v32, %v14464_v22  ;;  %v12243_v22 = vld [vmem:[%s16286_s4 + $0x18] sm:$0xff]  }
0x124d   :  { %11536 = vmatpush3.bf16.msra.mxu0 %v12243_v22 }
0x124e   :  { %11533 = vmatmul.mubr.msk.f32.gmra.mxu1 %vm421_vm6, %v4854_v24  ;;  %11537 = vmatprep.subr.bf16.mxu0 %v16310_v18 }
0x124f   :  { %11555 = vmatprep.mubr.msk.bf16.mxu1 %vm12784_vm0, %v16310_v18 }
0x1251   :  { %11538 = vmatpush3.bf16.msra.mxu0 %v12244_v8 }
0x1252   :  { %11567 = vmatprep.subr.bf16.mxu0 %v16310_v18 }
0x1268   :  { %v14583_v43 = vpop.f32.mrf.mxu1 }
0x126a   :  { %v11324_v46 = vpop.f32.mrf.mxu1 }
0x126c   :  { %v3478_v45 = vpop.f32.mrf.mxu1 }
0x126e   :  { %v11348_v19 = vpop.f32.mrf.mxu1 }
0x1270   :  { %v3483_v4 = vpop.f32.mrf.mxu1 }
0x1271   :  { %v12154_v49 = vpack.i.bf16 %v3483_v4, %v3478_v45 }
0x1272   :  { %v11351_v58 = vpop.f32.mrf.mxu1 }
0x1273   :  { %12155 = vrot.lane.b32.xlu0 %v12154_v49, %s12796_s18 }
0x1274   :  { %v3488_v36 = vpop.f32.mrf.mxu1 }
0x1276   :  { %v11354_v60 = vpop.f32.mrf.mxu1 }
0x1278   :  { %v3714_v30 = vpop.f32.mrf.mxu1 }
0x127a   :  { %v11378_v29 = vpop.f32.mrf.mxu1 }
0x12a5   :  { %v3719_v47 = vpop.f32.mrf.mxu1 }
0x12a6   :  { %v12159_v57 = vpack.i.bf16 %v3719_v47, %v3714_v30 }
0x12a7   :  { %v11381_v11 = vpop.f32.mrf.mxu1 }
0x12a8   :  { %12160 = vrot.lane.b32.xlu0 %v12159_v57, %s12797_s21 }
0x12a9   :  { %v3724_v5 = vpop.f32.mrf.mxu1 }
0x12ab   :  { %v11384_v56 = vpop.f32.mrf.mxu1 }
0x12ad   :  { %v3950_v55 = vpop.f32.mrf.mxu1 }
0x12af   :  { %v11408_v59 = vpop.f32.mrf.mxu1 }
0x12b1   :  { %v3955_v53 = vpop.f32.mrf.mxu1 }
0x12b2   :  { %v12164_v31 = vpack.i.bf16 %v3955_v53, %v3950_v55 }
0x12b3   :  { %v11411_v63 = vpop.f32.mrf.mxu1 }
0x12b4   :  { %12165 = vrot.lane.b32.xlu0 %v12164_v31, %s12798_s0 }
0x12b5   :  { %v3960_v7 = vpop.f32.mrf.mxu1 }
0x12b7   :  { %v11414_v38 = vpop.f32.mrf.mxu1 }
0x12b9   :  { %v14596_v42 = vpop.f32.mrf.mxu1 }
0x12bb   :  { %v11438_v37 = vpop.f32.mrf.mxu1 }
0x12bd   :  { %v4237_v17 = vpop.f32.mrf.mxu1 }
0x12bf   :  { %v11441_v27 = vpop.f32.mrf.mxu1 }
0x12c1   :  { %v14598_v28 = vpop.f32.mrf.mxu1 }
0x12c3   :  { %v11444_v51 = vpop.f32.mrf.mxu1 }
0x12c5   :  { %v4468_v44 = vpop.f32.mrf.mxu1 }
0x12c7   :  { %v11468_v54 = vpop.f32.mrf.mxu1 }
0x12c9   :  { %v4473_v16 = vpop.f32.mrf.mxu1 }
0x12ca   :  { %v12169_v50 = vpack.i.bf16 %v4473_v16, %v4468_v44 }
0x12cb   :  { %v11471_v61 = vpop.f32.mrf.mxu1 }
0x12cc   :  { %12170 = vrot.lane.b32.xlu0 %v12169_v50, %s12796_s18 }
0x12cd   :  { %v4478_v48 = vpop.f32.mrf.mxu1 }
0x12cf   :  { %v11474_v10 = vpop.f32.mrf.mxu1 }
0x12d0   :  { %3971 = vrot.lane.b32.xlu0 %v3488_v36, %s12796_s18 }
0x12d1   :  { %v4704_v6 = vpop.f32.mrf.mxu1 }
0x12d3   :  { %v11498_v12 = vpop.f32.mrf.mxu1 }
0x12d4   :  { %3983 = vrot.lane.b32.xlu0 %v3724_v5, %s12797_s21 }
0x12d5   :  { %v4709_v14 = vpop.f32.mrf.mxu1 }
0x12d6   :  { %v12174_v52 = vpack.i.bf16 %v4709_v14, %v4704_v6 }
0x12d7   :  { %v11501_v35 = vpop.f32.mrf.mxu1 }
0x12d8   :  { %12175 = vrot.lane.b32.xlu1 %v12174_v52, %s12797_s21 }
0x12d9   :  { %v4714_v25 = vpop.f32.mrf.mxu1 }
0x12db   :  { %v11504_v0 = vpop.f32.mrf.mxu1 }
0x12dc   :  { %4961 = vrot.lane.b32.xlu1 %v4478_v48, %s12796_s18 }
0x12dd   :  { %v4940_v2 = vpop.f32.mrf.mxu1 }
0x12df   :  { %v11528_v9 = vpop.f32.mrf.mxu1 }
0x12e1   :  { %v4945_v15 = vpop.f32.mrf.mxu1 }
0x12e2   :  { %v12179_v32 = vpack.i.bf16 %v4945_v15, %v4940_v2 }
0x12e3   :  { %v11531_v24 = vpop.f32.mrf.mxu1 }
0x12e4   :  { %12180 = vrot.lane.b32.xlu0 %v12179_v32, %s12798_s0 }
0x12e5   :  { %v12156_v19 = vpop.permute.xlu0 %12155 }
0x12e6   :  { %v12158_v49 = vunpack.i.h.bf16 %v12156_v19  ;;  %v12157_v58 = vunpack.i.l.bf16 %v12156_v19  ;;  %v14647_v19 = vld [vmem:[%s16285_s7 + $0x8] sm:$0xff] }
0x12e8   :  { %3995 = vrot.lane.b32.xlu0 %v3960_v7, %s12798_s0  ;;  %v4001_v29 = vsel %vm328_vm5, %v14577_v41, %v12158_v49  ;;  %v4000_v22 = vsel %vm328_vm5, %v14575_v33, %v12157_v58 }
0x12ec   :  { %4973 = vrot.lane.b32.xlu0 %v4714_v25, %s12797_s21 }
0x130e   :  { %v4950_v46 = vpop.f32.mrf.mxu1 }
0x130f   :  { %4985 = vrot.lane.b32.xlu1 %v4950_v46, %s12798_s0 }
0x1310   :  { %v11534_v45 = vpop.f32.mrf.mxu1 }
0x131a   :  { %v12161_v4 = vpop.permute.xlu0 %12160 }
0x131b   :  { %v12163_v36 = vunpack.i.h.bf16 %v12161_v4  ;;  %v12162_v60 = vunpack.i.l.bf16 %v12161_v4 }
0x131d   :  { %v4004_v11 = vsel %vm1302_vm9, %v4001_v29, %v12163_v36  ;;  %v4003_v5 = vsel %vm1302_vm9, %v4000_v22, %v12162_v60 }
0x1326   :  { %v12166_v30 = vpop.permute.xlu0 %12165 }
0x1327   :  { %v12168_v47 = vunpack.i.h.bf16 %v12166_v30  ;;  %v12167_v57 = vunpack.i.l.bf16 %v12166_v30 }
0x1329   :  { %v4007_v8 = vsel %vm1306_vm10, %v4004_v11, %v12168_v47  ;;  %v4006_v56 = vsel %vm1306_vm10, %v4003_v5, %v12167_v57 }
0x132a   :  { %v5011_v55 = vpack.c.bf16 %v4007_v8, %v4006_v56 }
0x132c   :  { %11540 = vmatmul.mubr.msk.bf16.vlgmr.msra.gmra.mxu0 %vm145_vm2, %v5011_v55 }
0x132d   :  { %11543 = vmatprep.mubr.msk.bf16.mxu0 %vm12784_vm0, %v16310_v18 }
0x133e   :  { %v12171_v41 = vpop.permute.xlu0 %12170 }
0x133f   :  { %v12173_v31 = vunpack.i.h.bf16 %v12171_v41  ;;  %v12172_v63 = vunpack.i.l.bf16 %v12171_v41 }
0x1341   :  { %v4991_v27 = vsel %vm328_vm5, %v4237_v17, %v12173_v31  ;;  %v4990_v51 = vsel %vm328_vm5, %v14596_v42, %v12172_v63 }
0x1342   :  { %v3972_v59 = vpop.permute.xlu0 %3971 }
0x1343   :  { %v4002_v61 = vsel %vm328_vm5, %v14583_v43, %v3972_v59 }
0x1346   :  { %v3984_v33 = vpop.permute.xlu0 %3983 }
0x1347   :  { %v4005_v6 = vsel %vm1302_vm9, %v4002_v61, %v3984_v33 }
0x134a   :  { %v12176_v53 = vpop.permute.xlu1 %12175 }
0x134b   :  { %v12178_v7 = vunpack.i.h.bf16 %v12176_v53  ;;  %v12177_v38 = vunpack.i.l.bf16 %v12176_v53 }
0x134d   :  { %v4994_v16 = vsel %vm1302_vm9, %v4991_v27, %v12178_v7  ;;  %v4993_v50 = vsel %vm1302_vm9, %v4990_v51, %v12177_v38 }
0x134e   :  { %v4962_v43 = vpop.permute.xlu1 %4961 }
0x134f   :  { %v4992_v2 = vsel %vm328_vm5, %v14598_v28, %v4962_v43  ;;  %v5104_v28 = vrot.slane %v14647_v19, %v13705_v62 }
0x1356   :  { %v12181_v37 = vpop.permute.xlu0 %12180 }
0x1357   :  { %v12183_v44 = vunpack.i.h.bf16 %v12181_v37  ;;  %v12182_v54 = vunpack.i.l.bf16 %v12181_v37 }
0x1359   :  { %v4996_v48 = vsel %vm1306_vm10, %v4993_v50, %v12182_v54  ;;  %v4997_v10 = vsel %vm1306_vm10, %v4994_v16, %v12183_v44 }
0x135a   :  { %v5002_v12 = vrot.slane %v4996_v48, 7  ;;  %v5003_v17 = vrot.slane %v4997_v10, 7  ;;  %v3996_v14 = vpop.permute.xlu0 %3995 }
0x135b   :  { %v4008_v42 = vsel %vm1306_vm10, %v4005_v6, %v3996_v14 }
0x135c   :  { %v5004_v52 = vsel %vm50_vm3, %v5002_v12, %v5003_v17  ;;  %v5010_v35 = vsel %vm50_vm3, %v4008_v42, %v5002_v12  ;;  %v12245_v42 = vld [vmem:[%s16287_s5 + $0x18] sm:$0xff]  }
0x135d   :  { %v5012_v25 = vpack.c.bf16 %v5004_v52, %v5010_v35  ;;  %11552 = vmatpush3.bf16.msra.mxu1 %v12245_v42  ;;  %v12246_v52 = vld [vmem:[%s16287_s5 + $0x10] sm:$0xff]  }
0x135e   :  { %v4974_v0 = vpop.permute.xlu0 %4973  ;;  %11553 = vmatprep.subr.bf16.mxu1 %v16310_v18 }
0x135f   :  { %11544 = vmatmul.mubr.msk.bf16.gmra.mxu0 %vm145_vm2, %v5012_v25  ;;  %v4995_v9 = vsel %vm1302_vm9, %v4992_v2, %v4974_v0 }
0x1360   :  { %11547 = vmatprep.mubr.msk.bf16.mxu0 %vm12784_vm0, %v16310_v18 }
0x1361   :  { %11554 = vmatpush3.bf16.msra.mxu1 %v12246_v52 }
0x1362   :  { %11595 = vmatprep.subr.bf16.mxu1 %v16310_v18 }
0x1381   :  { %v4986_v15 = vpop.permute.xlu1 %4985 }
0x1382   :  { %v4998_v32 = vsel %vm1306_vm10, %v4995_v9, %v4986_v15 }
0x1383   :  { %v5005_v24 = vrot.slane %v4998_v32, 7 }
0x1385   :  { %v5006_v46 = vsel %vm50_vm3, %v5003_v17, %v5005_v24 }
0x1386   :  { %v5013_v45 = vpack.c.bf16 %v5006_v46, %v5006_v46 }
0x1388   :  { %11548 = vmatmul.mubr.msk.bf16.gmra.mxu0 %vm145_vm2, %v5013_v45 }
0x1389   :  { %11583 = vmatprep.mubr.msk.bf16.mxu0 %vm12784_vm0, %v16310_v18 }
0x13ec   :  { %v5074_v4 = vpop.f32.mrf.mxu0 }
0x13ed   :  { %v5096_v49 = vadd.f32 %v5074_v4, %v13856_v34 }
0x13ee   :  { %v11541_v58 = vpop.f32.mrf.mxu0 }
0x13ef   :  { %v14652_v36 = vadd.f32 %v5104_v28, %v5096_v49 }
0x13f0   :  { %v5077_v60 = vpop.f32.mrf.mxu0 }
0x13f1   :  { %v5097_v30 = vadd.f32 %v5077_v60, %v13861_v21  ;;  %v5110_v29 = vsel %vm145_vm2, %v14652_v36, 0.0 }
0x13f2   :  { %5111 = vadd.xlane.f32.xlu0 %v5110_v29  ;;  %v11542_v22 = vpop.f32.mrf.mxu0 }
0x13f3   :  { %v14657_v47 = vadd.f32 %v5104_v28, %v5097_v30 }
0x13f5   :  { %v5113_v57 = vsel %vm145_vm2, %v14657_v47, 0.0 }
0x13f6   :  { %5114 = vadd.xlane.f32.xlu1 %v5113_v57 }
0x141f   :  { %v5082_v11 = vpop.f32.mrf.mxu0 }
0x1420   :  { %v5098_v5 = vadd.f32 %v5082_v11, %v13866_v3 }
0x1421   :  { %v11545_v8 = vpop.f32.mrf.mxu0 }
0x1422   :  { %v14662_v56 = vadd.f32 %v5104_v28, %v5098_v5  ;;  %v5178_v8 = vrot.slane %v14647_v19, %v13758_v13 }
0x1423   :  { %v5085_v55 = vpop.f32.mrf.mxu0 }
0x1424   :  { %v5099_v41 = vadd.f32 %v5085_v55, %v13871_v23  ;;  %v5116_v59 = vsel %vm145_vm2, %v14662_v56, 0.0 }
0x1425   :  { %5117 = vadd.xlane.f32.xlu0 %v5116_v59  ;;  %v11546_v53 = vpop.f32.mrf.mxu0  ;;  %v5187_v59 = vrot.slane %v14647_v19, %v13763_v40 }
0x1426   :  { %v14667_v33 = vadd.f32 %v5104_v28, %v5099_v41 }
0x1428   :  { %v5119_v31 = vsel %vm145_vm2, %v14667_v33, 0.0 }
0x1429   :  { %5120 = vadd.xlane.f32.xlu0 %v5119_v31 }
0x1448   :  { %v5090_v63 = vpop.f32.mrf.mxu0 }
0x1449   :  { %v5100_v7 = vadd.f32 %v5090_v63, %v13876_v26 }
0x144a   :  { %v11549_v38 = vpop.f32.mrf.mxu0 }
0x144b   :  { %v14672_v37 = vadd.f32 %v5104_v28, %v5100_v7 }
0x144c   :  { %v5093_v27 = vpop.f32.mrf.mxu0 }
0x144d   :  { %v5122_v51 = vsel %vm158_vm4, %v14672_v37, 0.0 }
0x144e   :  { %5123 = vadd.xlane.f32.xlu0 %v5122_v51  ;;  %v11550_v44 = vpop.f32.mrf.mxu0 }
0x147b   :  { %v5112_v54 = vpop.xlane.xlu0 %5111 }
0x147c   :  { %v5125_v16 = vmul.f32 0.03125, %v5112_v54 }
0x147e   :  { %v5130_v50 = vsub.f32 %v14652_v36, %v5125_v16 }
0x147f   :  { %v5115_v61 = vpop.xlane.xlu1 %5114 }
0x1480   :  { %v5126_v48 = vmul.f32 0.03125, %v5115_v61  ;;  %v5135_v10 = vmul.f32 %v5130_v50, %v5130_v50 }
0x1482   :  { %v5131_v6 = vsub.f32 %v14657_v47, %v5126_v48  ;;  %v5140_v12 = vsel %vm145_vm2, %v5135_v10, 0.0 }
0x1483   :  { %5141 = vadd.xlane.f32.xlu1 %v5140_v12 }
0x1484   :  { %v5136_v17 = vmul.f32 %v5131_v6, %v5131_v6 }
0x1486   :  { %v5143_v14 = vsel %vm145_vm2, %v5136_v17, 0.0 }
0x1487   :  { %5144 = vadd.xlane.f32.xlu0 %v5143_v14 }
0x14ae   :  { %v5118_v35 = vpop.xlane.xlu0 %5117 }
0x14af   :  { %v5127_v25 = vmul.f32 0.03125, %v5118_v35 }
0x14b1   :  { %v5132_v43 = vsub.f32 %v14662_v56, %v5127_v25 }
0x14b2   :  { %v5121_v0 = vpop.xlane.xlu0 %5120 }
0x14b3   :  { %v5128_v2 = vmul.f32 0.03125, %v5121_v0  ;;  %v5137_v9 = vmul.f32 %v5132_v43, %v5132_v43 }
0x14b5   :  { %v5133_v15 = vsub.f32 %v14667_v33, %v5128_v2  ;;  %v5146_v32 = vsel %vm145_vm2, %v5137_v9, 0.0 }
0x14b6   :  { %5147 = vadd.xlane.f32.xlu1 %v5146_v32 }
0x14b7   :  { %v5138_v24 = vmul.f32 %v5133_v15, %v5133_v15 }
0x14b9   :  { %v5149_v46 = vsel %vm145_vm2, %v5138_v24, 0.0 }
0x14ba   :  { %5150 = vadd.xlane.f32.xlu0 %v5149_v46 }
0x14d7   :  { %v5124_v45 = vpop.xlane.xlu0 %5123 }
0x14d8   :  { %v5129_v28 = vmul.f32 0.03125, %v5124_v45  ;;  %v12248_v45 = vld [vmem:[%s16288_s6 + $0x70] sm:$0xff]  }
0x14da   :  { %v5134_v4 = vsub.f32 %v14672_v37, %v5129_v28  ;;  %v12249_v28 = vld [vmem:[%s16288_s6 + $0x68] sm:$0xff]  }
0x14dc   :  { %v5139_v49 = vmul.f32 %v5134_v4, %v5134_v4 }
0x14de   :  { %v5152_v58 = vsel %vm158_vm4, %v5139_v49, 0.0  ;;  %v12251_v49 = vld [vmem:[%s16288_s6 + $0x58] sm:$0xff]  }
0x14df   :  { %5153 = vadd.xlane.f32.xlu1 %v5152_v58  ;;  %v12252_v58 = vld [vmem:[%s16288_s6 + $0x50] sm:$0xff]  }
0x150c   :  { %v5142_v60 = vpop.xlane.xlu1 %5141 }
0x150d   :  { %v5155_v30 = vmul.f32 0.03125, %v5142_v60  ;;  %v12253_v60 = vld [vmem:[%s16288_s6 + $0x48] sm:$0xff]  }
0x150f   :  { %v5160_v29 = vadd.f32 1e-05, %v5155_v30  ;;  %v12254_v30 = vld [vmem:[%s16288_s6 + $0x40] sm:$0xff]  }
0x1510   :  { %v5145_v22 = vpop.xlane.xlu0 %5144 }
0x1511   :  { %12525 = vrsqrt.f32 %v5160_v29  ;;  %v5156_v57 = vmul.f32 0.03125, %v5145_v22  ;;  %v14741_v29 = vrot.slane %v14647_v19, %v13809_v1 }
0x1513   :  { %v5161_v11 = vadd.f32 1e-05, %v5156_v57 }
0x1515   :  { %12527 = vrsqrt.f32 %v5161_v11 }
0x151e   :  { %v12526_v5 = vpop.eup %12525 }
0x151f   :  { %v5170_v55 = vmul.f32 %v12526_v5, %v5130_v50 }
0x1521   :  { %v5179_v53 = vmul.f32 %v5178_v8, %v5170_v55 }
0x1522   :  { %v12528_v41 = vpop.eup %12527 }
0x1523   :  { %v5171_v31 = vmul.f32 %v12528_v41, %v5131_v6  ;;  %v5188_v7 = vadd.f32 %v5187_v59, %v5179_v53 }
0x1525   :  { %v5180_v63 = vmul.f32 %v5178_v8, %v5171_v31 }
0x1527   :  { %v5189_v38 = vadd.f32 %v5187_v59, %v5180_v63 }
0x1529   :  { %v5193_v27 = vpack.c.bf16 %v5189_v38, %v5188_v7 }
0x152b   :  { %11556 = vmatmul.mubr.msk.bf16.vlgmr.msra.gmra.mxu1 %vm145_vm2, %v5193_v27 }
0x152c   :  { %11559 = vmatprep.mubr.msk.bf16.mxu1 %vm12784_vm0, %v16310_v18 }
0x153f   :  { %v5148_v51 = vpop.xlane.xlu1 %5147 }
0x1540   :  { %v5157_v44 = vmul.f32 0.03125, %v5148_v51 }
0x1542   :  { %v5162_v54 = vadd.f32 1e-05, %v5157_v44 }
0x1543   :  { %v5151_v16 = vpop.xlane.xlu0 %5150 }
0x1544   :  { %12529 = vrsqrt.f32 %v5162_v54  ;;  %v5158_v50 = vmul.f32 0.03125, %v5151_v16 }
0x1546   :  { %v5163_v61 = vadd.f32 1e-05, %v5158_v50 }
0x1548   :  { %12531 = vrsqrt.f32 %v5163_v61 }
0x1551   :  { %v12530_v48 = vpop.eup %12529 }
0x1552   :  { %v5172_v10 = vmul.f32 %v12530_v48, %v5132_v43 }
0x1554   :  { %v5181_v17 = vmul.f32 %v5178_v8, %v5172_v10 }
0x1555   :  { %v12532_v6 = vpop.eup %12531 }
0x1556   :  { %v5173_v12 = vmul.f32 %v12532_v6, %v5133_v15  ;;  %v5190_v42 = vadd.f32 %v5187_v59, %v5181_v17  ;;  %v12247_v15 = vld [vmem:[%s16288_s6 + $0x78] sm:$0xff]  }
0x1557   :  { %11568 = vmatpush3.bf16.msra.mxu0 %v12247_v15 }
0x1558   :  { %v5182_v14 = vmul.f32 %v5178_v8, %v5173_v12  ;;  %11569 = vmatprep.subr.bf16.mxu0 %v16310_v18 }
0x155a   :  { %v5191_v52 = vadd.f32 %v5187_v59, %v5182_v14 }
0x155b   :  { %11570 = vmatpush3.bf16.msra.mxu0 %v12248_v45 }
0x155c   :  { %v5194_v35 = vpack.c.bf16 %v5191_v52, %v5190_v42  ;;  %11571 = vmatprep.subr.bf16.mxu0 %v16310_v18 }
0x155e   :  { %11560 = vmatmul.mubr.msk.bf16.gmra.mxu1 %vm145_vm2, %v5194_v35 }
0x155f   :  { %11563 = vmatprep.mubr.msk.bf16.mxu1 %vm12784_vm0, %v16310_v18  ;;  %11572 = vmatpush3.bf16.msra.mxu0 %v12249_v28 }
0x1560   :  { %11573 = vmatprep.subr.bf16.mxu0 %v16310_v18 }
0x1568   :  { %v5154_v25 = vpop.xlane.xlu1 %5153 }
0x1569   :  { %v5159_v0 = vmul.f32 0.03125, %v5154_v25 }
0x156b   :  { %v5164_v2 = vadd.f32 1e-05, %v5159_v0 }
0x156d   :  { %12533 = vrsqrt.f32 %v5164_v2 }
0x157a   :  { %v12534_v9 = vpop.eup %12533 }
0x157b   :  { %v5174_v32 = vmul.f32 %v12534_v9, %v5134_v4  ;;  %v12250_v4 = vld [vmem:[%s16288_s6 + $0x60] sm:$0xff]  }
0x157c   :  { %11574 = vmatpush3.bf16.msra.mxu0 %v12250_v4 }
0x157d   :  { %v5183_v24 = vmul.f32 %v5178_v8, %v5174_v32  ;;  %11575 = vmatprep.subr.bf16.mxu0 %v16310_v18 }
0x157f   :  { %v5192_v43 = vadd.f32 %v5187_v59, %v5183_v24 }
0x1580   :  { %11576 = vmatpush3.bf16.msra.mxu0 %v12251_v49 }
0x1581   :  { %v5195_v46 = vpack.c.bf16 %v5192_v43, %v5192_v43  ;;  %11577 = vmatprep.subr.bf16.mxu0 %v16310_v18 }
0x1583   :  { %11564 = vmatmul.mubr.msk.bf16.gmra.mxu1 %vm145_vm2, %v5195_v46 }
0x1584   :  { %11599 = vmatprep.mubr.msk.bf16.mxu1 %vm12784_vm0, %v16310_v18  ;;  %11578 = vmatpush3.bf16.msra.mxu0 %v12252_v58 }
0x1585   :  { %11579 = vmatprep.subr.bf16.mxu0 %v16310_v18 }
0x1588   :  { %11580 = vmatpush3.bf16.msra.mxu0 %v12253_v60 }
0x1589   :  { %11581 = vmatprep.subr.bf16.mxu0 %v16310_v18 }
0x158c   :  { %11582 = vmatpush3.bf16.msra.mxu0 %v12254_v30 }
0x158d   :  { %11626 = vmatprep.subr.mxu0 %v16310_v18 }
0x15eb   :  { %v5260_v22 = vpop.f32.mrf.mxu1 }
0x15ec   :  { %v5261_v57 = vadd.f32 %v5260_v22, %v14741_v29 }
0x15ed   :  { %v11557_v11 = vpop.f32.mrf.mxu1 }
0x15ee   :  { %v5287_v5 = vmul.f32 0.70710677, %v5261_v57 }
0x15ef   :  { %v5263_v8 = vpop.f32.mrf.mxu1 }
0x15f0   :  { %v5292_v55 = vand.u32 2147483647, %v5287_v5  ;;  %v5264_v41 = vadd.f32 %v5263_v8, %v14741_v29  ;;  %vm5392_vm1 = vcmp.ge.f32.partialorder %v5287_v5, 0.0 }
0x15f1   :  { %v11558_v59 = vpop.f32.mrf.mxu1 }
0x15f2   :  { %v5297_v53 = vmul.f32 0.3275911, %v5292_v55  ;;  %v5288_v31 = vmul.f32 0.70710677, %v5264_v41  ;;  %v5362_v51 = vmul.f32 %v5292_v55, %v5292_v55 }
0x15f4   :  { %v5302_v63 = vadd.f32 1.0, %v5297_v53  ;;  %v5293_v7 = vand.u32 2147483647, %v5288_v31  ;;  %v5367_v44 = vsub.f32 0.0, %v5362_v51  ;;  %vm5393_vm11 = vcmp.ge.f32.partialorder %v5288_v31, 0.0 }
0x15f5   :  { %v5283_v51 = vmul.f32 0.5, %v5264_v41 }
0x15f6   :  { %12535 = vrcp.f32 %v5302_v63  ;;  %v5298_v38 = vmul.f32 0.3275911, %v5293_v7  ;;  %v5363_v54 = vmul.f32 %v5293_v7, %v5293_v7  ;;  %v5372_v61 = vmul.f32 1.442695, %v5367_v44 }
0x15f8   :  { %v5303_v27 = vadd.f32 1.0, %v5298_v38  ;;  %v5368_v48 = vsub.f32 0.0, %v5363_v54 }
0x15fa   :  { %12537 = vrcp.f32 %v5303_v27  ;;  %v5374_v14 = vmul.f32 1.442695, %v5368_v48  ;;  %v5282_v27 = vmul.f32 0.5, %v5261_v57 }
0x15fb   :  { %12539 = vpow2.f32 %v5372_v61 }
0x15fc   :  { %12541 = vpow2.f32 %v5374_v14 }
0x1603   :  { %v12536_v16 = vpop.eup %12535 }
0x1604   :  { %v5317_v50 = vmul.f32 1.0614054, %v12536_v16 }
0x1606   :  { %v5322_v10 = vadd.f32 -1.4531521, %v5317_v50 }
0x1607   :  { %v12538_v6 = vpop.eup %12537 }
0x1608   :  { %v5327_v12 = vmul.f32 %v12536_v16, %v5322_v10  ;;  %v5318_v17 = vmul.f32 1.0614054, %v12538_v6  ;;  %v12540_v45 = vpop.eup %12539 }
0x1609   :  { %v12542_v60 = vpop.eup %12541 }
0x160a   :  { %v5332_v42 = vadd.f32 1.4214138, %v5327_v12  ;;  %v5323_v52 = vadd.f32 -1.4531521, %v5318_v17 }
0x160c   :  { %v5337_v35 = vmul.f32 %v12536_v16, %v5332_v42  ;;  %v5328_v25 = vmul.f32 %v12538_v6, %v5323_v52 }
0x160e   :  { %v5342_v0 = vadd.f32 -0.28449672, %v5337_v35  ;;  %v5333_v2 = vadd.f32 1.4214138, %v5328_v25 }
0x1610   :  { %v5347_v9 = vmul.f32 %v12536_v16, %v5342_v0  ;;  %v5338_v32 = vmul.f32 %v12538_v6, %v5333_v2 }
0x1612   :  { %v5352_v24 = vadd.f32 0.2548296, %v5347_v9  ;;  %v5343_v43 = vadd.f32 -0.28449672, %v5338_v32 }
0x1614   :  { %v5357_v46 = vmul.f32 %v12536_v16, %v5352_v24  ;;  %v5348_v15 = vmul.f32 %v12538_v6, %v5343_v43 }
0x1616   :  { %v5382_v28 = vmul.f32 %v12540_v45, %v5357_v46  ;;  %v5353_v4 = vadd.f32 0.2548296, %v5348_v15 }
0x1618   :  { %v5387_v49 = vsub.f32 1.0, %v5382_v28  ;;  %v5358_v58 = vmul.f32 %v12538_v6, %v5353_v4 }
0x161a   :  { %v5397_v30 = vsub.f32 0.0, %v5387_v49  ;;  %v5383_v22 = vmul.f32 %v12542_v60, %v5358_v58 }
0x161c   :  { %v5402_v11 = vsel %vm5392_vm1, %v5387_v49, %v5397_v30  ;;  %v5388_v8 = vsub.f32 1.0, %v5383_v22 }
0x161d   :  { %v5407_v53 = vadd.f32 1.0, %v5402_v11 }
0x161e   :  { %v5398_v55 = vsub.f32 0.0, %v5388_v8  ;;  %v5268_v59 = vpop.f32.mrf.mxu1 }
0x161f   :  { %v14746_v63 = vadd.f32 %v5268_v59, %v14741_v29  ;;  %v5412_v50 = vmul.f32 %v5407_v53, %v5282_v27 }
0x1620   :  { %v5403_v7 = vsel %vm5393_vm11, %v5388_v8, %v5398_v55  ;;  %v11561_v38 = vpop.f32.mrf.mxu1 }
0x1621   :  { %v5408_v44 = vadd.f32 1.0, %v5403_v7  ;;  %v14749_v54 = vmul.f32 0.70710677, %v14746_v63 }
0x1622   :  { %v5271_v16 = vpop.f32.mrf.mxu1 }
0x1623   :  { %v5413_v5 = vmul.f32 %v5408_v44, %v5283_v51  ;;  %v5294_v61 = vand.u32 2147483647, %v14749_v54  ;;  %v14753_v48 = vadd.f32 %v5271_v16, %v14741_v29  ;;  %vm5394_vm12 = vcmp.ge.f32.partialorder %v14749_v54, 0.0 }
0x1624   :  { %v11562_v31 = vpop.f32.mrf.mxu1 }
0x1625   :  { %v5417_v10 = vpack.c.bf16 %v5413_v5, %v5412_v50  ;;  %v5299_v6 = vmul.f32 0.3275911, %v5294_v61  ;;  %v5290_v12 = vmul.f32 0.70710677, %v14753_v48  ;;  %v5364_v42 = vmul.f32 %v5294_v61, %v5294_v61 }
0x1627   :  { %v5304_v17 = vadd.f32 1.0, %v5299_v6  ;;  %11584 = vmatmul.mubr.bf16.vlgmr.msra.gmra.mxu0 %v5417_v10  ;;  %v5295_v57 = vand.u32 2147483647, %v5290_v12  ;;  %v5369_v52 = vsub.f32 0.0, %v5364_v42  ;;  %vm5395_vm13 = vcmp.ge.f32.partialorder %v5290_v12, 0.0 }
0x1628   :  { %11587 = vmatprep.mubr.msk.bf16.mxu0 %vm12784_vm0, %v16310_v18 }
0x1629   :  { %12543 = vrcp.f32 %v5304_v17  ;;  %v5300_v41 = vmul.f32 0.3275911, %v5295_v57  ;;  %v5365_v35 = vmul.f32 %v5295_v57, %v5295_v57  ;;  %v5376_v2 = vmul.f32 1.442695, %v5369_v52 }
0x162b   :  { %v5305_v14 = vadd.f32 1.0, %v5300_v41  ;;  %v5370_v9 = vsub.f32 0.0, %v5365_v35 }
0x162d   :  { %12545 = vrcp.f32 %v5305_v14  ;;  %v5378_v15 = vmul.f32 1.442695, %v5370_v9  ;;  %v5285_v9 = vmul.f32 0.5, %v14753_v48 }
0x162e   :  { %12547 = vpow2.f32 %v5376_v2  ;;  %v5284_v2 = vmul.f32 0.5, %v14746_v63 }
0x162f   :  { %12549 = vpow2.f32 %v5378_v15 }
0x1636   :  { %v12544_v25 = vpop.eup %12543 }
0x1637   :  { %v5319_v0 = vmul.f32 1.0614054, %v12544_v25 }
0x1639   :  { %v5324_v32 = vadd.f32 -1.4531521, %v5319_v0 }
0x163a   :  { %v12546_v24 = vpop.eup %12545 }
0x163b   :  { %v5329_v43 = vmul.f32 %v12544_v25, %v5324_v32  ;;  %v5320_v46 = vmul.f32 1.0614054, %v12546_v24  ;;  %v12548_v51 = vpop.eup %12547 }
0x163c   :  { %v12550_v57 = vpop.eup %12549 }
0x163d   :  { %v5334_v45 = vadd.f32 1.4214138, %v5329_v43  ;;  %v5325_v28 = vadd.f32 -1.4531521, %v5320_v46 }
0x163f   :  { %v5339_v4 = vmul.f32 %v12544_v25, %v5334_v45  ;;  %v5330_v49 = vmul.f32 %v12546_v24, %v5325_v28 }
0x1641   :  { %v5344_v58 = vadd.f32 -0.28449672, %v5339_v4  ;;  %v5335_v60 = vadd.f32 1.4214138, %v5330_v49 }
0x1643   :  { %v5349_v30 = vmul.f32 %v12544_v25, %v5344_v58  ;;  %v5276_v22 = vpop.f32.mrf.mxu1  ;;  %v5340_v11 = vmul.f32 %v12546_v24, %v5335_v60 }
0x1644   :  { %v5277_v8 = vadd.f32 %v5276_v22, %v14741_v29 }
0x1645   :  { %v5354_v55 = vadd.f32 0.2548296, %v5349_v30  ;;  %v11565_v59 = vpop.f32.mrf.mxu1  ;;  %v5345_v53 = vadd.f32 -0.28449672, %v5340_v11 }
0x1646   :  { %v5291_v7 = vmul.f32 0.70710677, %v5277_v8 }
0x1647   :  { %v5359_v38 = vmul.f32 %v12544_v25, %v5354_v55  ;;  %v5279_v27 = vpop.f32.mrf.mxu1  ;;  %v5350_v44 = vmul.f32 %v12546_v24, %v5345_v53 }
0x1648   :  { %v5296_v16 = vand.u32 2147483647, %v5291_v7  ;;  %vm5396_vm14 = vcmp.ge.f32.partialorder %v5291_v7, 0.0 }
0x1649   :  { %v5384_v50 = vmul.f32 %v12548_v51, %v5359_v38  ;;  %v11566_v5 = vpop.f32.mrf.mxu1  ;;  %v5355_v61 = vadd.f32 0.2548296, %v5350_v44  ;;  %v5286_v38 = vmul.f32 0.5, %v5277_v8 }
0x164a   :  { %v5301_v31 = vmul.f32 0.3275911, %v5296_v16  ;;  %v5366_v0 = vmul.f32 %v5296_v16, %v5296_v16  ;;  %v5440_v16 = vrot.slane %v14647_v19, %v13851_v39 }
0x164b   :  { %v5389_v10 = vsub.f32 1.0, %v5384_v50  ;;  %v5360_v6 = vmul.f32 %v12546_v24, %v5355_v61 }
0x164c   :  { %v5306_v17 = vadd.f32 1.0, %v5301_v31  ;;  %v5371_v46 = vsub.f32 0.0, %v5366_v0 }
0x164d   :  { %v5399_v41 = vsub.f32 0.0, %v5389_v10  ;;  %v5385_v14 = vmul.f32 %v12550_v57, %v5360_v6 }
0x164e   :  { %12551 = vrcp.f32 %v5306_v17  ;;  %v5380_v54 = vmul.f32 1.442695, %v5371_v46 }
0x164f   :  { %v5404_v29 = vsel %vm5394_vm12, %v5389_v10, %v5399_v41  ;;  %v5390_v42 = vsub.f32 1.0, %v5385_v14 }
0x1650   :  { %v5409_v35 = vadd.f32 1.0, %v5404_v29  ;;  %12553 = vpow2.f32 %v5380_v54 }
0x1651   :  { %v5400_v52 = vsub.f32 0.0, %v5390_v42 }
0x1652   :  { %v5414_v24 = vmul.f32 %v5409_v35, %v5284_v2 }
0x1653   :  { %v5405_v25 = vsel %vm5395_vm13, %v5390_v42, %v5400_v52 }
0x1654   :  { %v5410_v32 = vadd.f32 1.0, %v5405_v25 }
0x1656   :  { %v5415_v43 = vmul.f32 %v5410_v32, %v5285_v9 }
0x1658   :  { %v5418_v15 = vpack.c.bf16 %v5415_v43, %v5414_v24 }
0x165a   :  { %11588 = vmatmul.mubr.bf16.gmra.mxu0 %v5418_v15 }
0x165b   :  { %v12552_v45 = vpop.eup %12551  ;;  %11591 = vmatprep.mubr.msk.bf16.mxu0 %vm12784_vm0, %v16310_v18 }
0x165c   :  { %v5321_v28 = vmul.f32 1.0614054, %v12552_v45 }
0x165d   :  { %v12554_v22 = vpop.eup %12553 }
0x165e   :  { %v5326_v4 = vadd.f32 -1.4531521, %v5321_v28 }
0x1660   :  { %v5331_v12 = vmul.f32 %v12552_v45, %v5326_v4 }
0x1662   :  { %v5336_v49 = vadd.f32 1.4214138, %v5331_v12 }
0x1664   :  { %v5341_v58 = vmul.f32 %v12552_v45, %v5336_v49 }
0x1666   :  { %v5346_v63 = vadd.f32 -0.28449672, %v5341_v58  ;;  %v12255_v58 = vld [vmem:[%s16284_s3 + $0x28] sm:$0xff]  }
0x1667   :  { %11596 = vmatpush3.bf16.msra.mxu1 %v12255_v58 }
0x1668   :  { %v5351_v60 = vmul.f32 %v12552_v45, %v5346_v63  ;;  %11597 = vmatprep.subr.bf16.mxu1 %v16310_v18  ;;  %v12256_v63 = vld [vmem:[%s16284_s3 + $0x20] sm:$0xff]  }
0x166a   :  { %v5356_v48 = vadd.f32 0.2548296, %v5351_v60 }
0x166b   :  { %11598 = vmatpush3.bf16.msra.mxu1 %v12256_v63 }
0x166c   :  { %v5361_v30 = vmul.f32 %v12552_v45, %v5356_v48  ;;  %11611 = vmatprep.subr.mxu1 %v16310_v18 }
0x166e   :  { %v5386_v11 = vmul.f32 %v12554_v22, %v5361_v30 }
0x1670   :  { %v5391_v55 = vsub.f32 1.0, %v5386_v11 }
0x1672   :  { %v5401_v59 = vsub.f32 0.0, %v5391_v55 }
0x1674   :  { %v5406_v53 = vsel %vm5396_vm14, %v5391_v55, %v5401_v59 }
0x1675   :  { %v5411_v27 = vadd.f32 1.0, %v5406_v53 }
0x1677   :  { %v5416_v51 = vmul.f32 %v5411_v27, %v5286_v38 }
0x1679   :  { %v5419_v44 = vpack.c.bf16 %v5416_v51, %v5416_v51 }
0x167b   :  { %11592 = vmatmul.mubr.bf16.gmra.mxu0 %v5419_v44 }
0x167c   :  { %11632 = vmatprep.mubr.msk.f32.mxu0 %vm12784_vm0, %v16310_v18 }
0x16e7   :  { %v5523_v50 = vpop.f32.mrf.mxu0 }
0x16e8   :  { %v5524_v5 = vadd.f32 %v5523_v50, %v5440_v16 }
0x16e9   :  { %v11585_v61 = vpop.f32.mrf.mxu0 }
0x16ea   :  { %v14769_v31 = vadd.f32 %v5524_v5, %v14652_v36 }
0x16eb   :  { %v5526_v10 = vpop.f32.mrf.mxu0 }
0x16ec   :  { %v5527_v7 = vadd.f32 %v5526_v10, %v5440_v16  ;;  %v5552_v8 = vsel %vm145_vm2, %v14769_v31, 0.0 }
0x16ed   :  { %5553 = vadd.xlane.f32.xlu0 %v5552_v8  ;;  %v11586_v6 = vpop.f32.mrf.mxu0 }
0x16ee   :  { %v14774_v17 = vadd.f32 %v5527_v7, %v14657_v47 }
0x16f0   :  { %v5555_v57 = vsel %vm145_vm2, %v14774_v17, 0.0 }
0x16f1   :  { %5556 = vadd.xlane.f32.xlu1 %v5555_v57 }
0x171a   :  { %v5531_v19 = vpop.f32.mrf.mxu0 }
0x171b   :  { %v5532_v41 = vadd.f32 %v5531_v19, %v5440_v16  ;;  %v10275_v19 = vld [vmem:[%s16285_s7 + $0x10] sm:$0xff] }
0x171c   :  { %v11589_v14 = vpop.f32.mrf.mxu0 }
0x171d   :  { %v14779_v36 = vadd.f32 %v5532_v41, %v14662_v56  ;;  %v5620_v14 = vrot.slane %v10275_v19, %v12936_v20 }
0x171e   :  { %v5534_v29 = vpop.f32.mrf.mxu0 }
0x171f   :  { %v5535_v42 = vadd.f32 %v5534_v29, %v5440_v16  ;;  %v5558_v52 = vsel %vm145_vm2, %v14779_v36, 0.0 }
0x1720   :  { %5559 = vadd.xlane.f32.xlu0 %v5558_v52  ;;  %v11590_v35 = vpop.f32.mrf.mxu0  ;;  %v16311_v52 = vld [vmem:[#allocation3_spill] sm:$0xff] }
0x1721   :  { %v14784_v47 = vadd.f32 %v5535_v42, %v14667_v33  ;;  %v5629_v35 = vrot.slane %v10275_v19, %v16311_v52 }
0x1723   :  { %v5561_v25 = vsel %vm145_vm2, %v14784_v47, 0.0 }
0x1724   :  { %5562 = vadd.xlane.f32.xlu1 %v5561_v25 }
0x173b   :  { %v5539_v0 = vpop.f32.mrf.mxu0 }
0x173c   :  { %v5540_v2 = vadd.f32 %v5539_v0, %v5440_v16 }
0x173d   :  { %v11593_v9 = vpop.f32.mrf.mxu0 }
0x173e   :  { %v14789_v56 = vadd.f32 %v5540_v2, %v14672_v37 }
0x173f   :  { %v5542_v32 = vpop.f32.mrf.mxu0 }
0x1740   :  { %v5564_v24 = vsel %vm158_vm4, %v14789_v56, 0.0 }
0x1741   :  { %5565 = vadd.xlane.f32.xlu0 %v5564_v24  ;;  %v11594_v43 = vpop.f32.mrf.mxu0 }
0x1776   :  { %v5554_v46 = vpop.xlane.xlu0 %5553 }
0x1777   :  { %v5567_v15 = vmul.f32 0.03125, %v5554_v46 }
0x1779   :  { %v5572_v33 = vsub.f32 %v14769_v31, %v5567_v15 }
0x177a   :  { %v5557_v45 = vpop.xlane.xlu1 %5556 }
0x177b   :  { %v5568_v28 = vmul.f32 0.03125, %v5557_v45  ;;  %v5577_v54 = vmul.f32 %v5572_v33, %v5572_v33 }
0x177d   :  { %v5573_v4 = vsub.f32 %v14774_v17, %v5568_v28  ;;  %v5582_v12 = vsel %vm145_vm2, %v5577_v54, 0.0 }
0x177e   :  { %5583 = vadd.xlane.f32.xlu1 %v5582_v12 }
0x177f   :  { %v5578_v37 = vmul.f32 %v5573_v4, %v5573_v4 }
0x1781   :  { %v5585_v49 = vsel %vm145_vm2, %v5578_v37, 0.0 }
0x1782   :  { %5586 = vadd.xlane.f32.xlu0 %v5585_v49 }
0x17a9   :  { %v5560_v60 = vpop.xlane.xlu0 %5559 }
0x17aa   :  { %v5569_v48 = vmul.f32 0.03125, %v5560_v60 }
0x17ac   :  { %v5574_v30 = vsub.f32 %v14779_v36, %v5569_v48 }
0x17ad   :  { %v5563_v22 = vpop.xlane.xlu1 %5562 }
0x17ae   :  { %v5570_v11 = vmul.f32 0.03125, %v5563_v22  ;;  %v5579_v55 = vmul.f32 %v5574_v30, %v5574_v30 }
0x17b0   :  { %v5575_v59 = vsub.f32 %v14784_v47, %v5570_v11  ;;  %v5588_v53 = vsel %vm145_vm2, %v5579_v55, 0.0 }
0x17b1   :  { %5589 = vadd.xlane.f32.xlu1 %v5588_v53 }
0x17b2   :  { %v5580_v38 = vmul.f32 %v5575_v59, %v5575_v59 }
0x17b4   :  { %v5591_v27 = vsel %vm145_vm2, %v5580_v38, 0.0 }
0x17b5   :  { %5592 = vadd.xlane.f32.xlu0 %v5591_v27 }
0x17ca   :  { %v5566_v51 = vpop.xlane.xlu0 %5565 }
0x17cb   :  { %v5571_v44 = vmul.f32 0.03125, %v5566_v51 }
0x17cd   :  { %v5576_v16 = vsub.f32 %v14789_v56, %v5571_v44 }
0x17cf   :  { %v5581_v50 = vmul.f32 %v5576_v16, %v5576_v16 }
0x17d1   :  { %v5594_v5 = vsel %vm158_vm4, %v5581_v50, 0.0  ;;  %v16312_v50 = vld [vmem:[#allocation4_spill] sm:$0xff] }
0x17d2   :  { %5595 = vadd.xlane.f32.xlu1 %v5594_v5  ;;  %v5646_v5 = vrot.slane %v10275_v19, %v16312_v50 }
0x1807   :  { %v5584_v61 = vpop.xlane.xlu1 %5583 }
0x1808   :  { %v5597_v10 = vmul.f32 0.03125, %v5584_v61 }
0x180a   :  { %v5602_v7 = vadd.f32 1e-05, %v5597_v10 }
0x180b   :  { %v5587_v8 = vpop.xlane.xlu0 %5586 }
0x180c   :  { %12555 = vrsqrt.f32 %v5602_v7  ;;  %v5598_v6 = vmul.f32 0.03125, %v5587_v8 }
0x180e   :  { %v5603_v57 = vadd.f32 1e-05, %v5598_v6 }
0x1810   :  { %12557 = vrsqrt.f32 %v5603_v57 }
0x1819   :  { %v12556_v41 = vpop.eup %12555 }
0x181a   :  { %v5612_v29 = vmul.f32 %v12556_v41, %v5572_v33 }
0x181c   :  { %v5621_v25 = vmul.f32 %v5620_v14, %v5612_v29 }
0x181d   :  { %v12558_v42 = vpop.eup %12557 }
0x181e   :  { %v5613_v0 = vmul.f32 %v12558_v42, %v5573_v4  ;;  %v5630_v9 = vadd.f32 %v5629_v35, %v5621_v25 }
0x1820   :  { %v5622_v2 = vmul.f32 %v5620_v14, %v5613_v0 }
0x1822   :  { %v5631_v32 = vadd.f32 %v5629_v35, %v5622_v2 }
0x1824   :  { %v5635_v24 = vpack.c.bf16 %v5631_v32, %v5630_v9 }
0x1826   :  { %11600 = vmatmul.mubr.msk.bf16.vlgmr.msra.gmra.mxu1 %vm145_vm2, %v5635_v24 }
0x1827   :  { %11603 = vmatprep.mubr.msk.bf16.mxu1 %vm12784_vm0, %v16310_v18 }
0x183a   :  { %v5590_v43 = vpop.xlane.xlu1 %5589 }
0x183b   :  { %v5599_v46 = vmul.f32 0.03125, %v5590_v43 }
0x183d   :  { %v5604_v15 = vadd.f32 1e-05, %v5599_v46 }
0x183e   :  { %v5593_v45 = vpop.xlane.xlu0 %5592 }
0x183f   :  { %12559 = vrsqrt.f32 %v5604_v15  ;;  %v5600_v33 = vmul.f32 0.03125, %v5593_v45 }
0x1841   :  { %v5605_v28 = vadd.f32 1e-05, %v5600_v33 }
0x1843   :  { %12561 = vrsqrt.f32 %v5605_v28 }
0x184c   :  { %v12560_v54 = vpop.eup %12559 }
0x184d   :  { %v5614_v12 = vmul.f32 %v12560_v54, %v5574_v30 }
0x184f   :  { %v5623_v49 = vmul.f32 %v5620_v14, %v5614_v12 }
0x1850   :  { %v12562_v4 = vpop.eup %12561 }
0x1851   :  { %v5615_v37 = vmul.f32 %v12562_v4, %v5575_v59  ;;  %v5632_v63 = vadd.f32 %v5629_v35, %v5623_v49 }
0x1853   :  { %v5624_v58 = vmul.f32 %v5620_v14, %v5615_v37 }
0x1855   :  { %v5633_v60 = vadd.f32 %v5629_v35, %v5624_v58 }
0x1857   :  { %v5636_v48 = vpack.c.bf16 %v5633_v60, %v5632_v63 }
0x1859   :  { %11604 = vmatmul.mubr.msk.bf16.gmra.mxu1 %vm145_vm2, %v5636_v48 }
0x185a   :  { %11607 = vmatprep.mubr.msk.bf16.mxu1 %vm12784_vm0, %v16310_v18 }
0x185b   :  { %v5596_v22 = vpop.xlane.xlu1 %5595 }
0x185c   :  { %v5601_v11 = vmul.f32 0.03125, %v5596_v22 }
0x185e   :  { %v5606_v55 = vadd.f32 1e-05, %v5601_v11 }
0x1860   :  { %12563 = vrsqrt.f32 %v5606_v55 }
0x186d   :  { %v12564_v53 = vpop.eup %12563 }
0x186e   :  { %v5616_v38 = vmul.f32 %v12564_v53, %v5576_v16 }
0x1870   :  { %v5625_v27 = vmul.f32 %v5620_v14, %v5616_v38 }
0x1872   :  { %v5634_v30 = vadd.f32 %v5629_v35, %v5625_v27 }
0x1874   :  { %v5637_v51 = vpack.c.bf16 %v5634_v30, %v5634_v30 }
0x1876   :  { %11608 = vmatmul.mubr.msk.bf16.gmra.mxu1 %vm145_vm2, %v5637_v51 }
0x1877   :  { %11617 = vmatprep.mubr.msk.f32.mxu1 %vm12784_vm0, %v16310_v18 }
0x18e6   :  { %v5702_v59 = vpop.f32.mrf.mxu1 }
0x18e7   :  { %v14830_v16 = vadd.f32 %v5702_v59, %v5646_v5 }
0x18e8   :  { %v11601_v44 = vpop.f32.mrf.mxu1 }
0x18ea   :  { %v5705_v61 = vpop.f32.mrf.mxu1 }
0x18eb   :  { %v14826_v10 = vadd.f32 %v5705_v61, %v5646_v5 }
0x18ec   :  { %v11602_v7 = vpop.f32.mrf.mxu1 }
0x18ed   :  { %5729 = vrot.lane.b32.xlu1 %v14826_v10, %s12785_s30 }
0x18f1   :  { %5727 = vrot.lane.b32.xlu1 %v14830_v16, %s12785_s30 }
0x1919   :  { %v5710_v8 = vpop.f32.mrf.mxu1 }
0x191a   :  { %v14834_v6 = vadd.f32 %v5710_v8, %v5646_v5 }
0x191b   :  { %v11605_v57 = vpop.f32.mrf.mxu1 }
0x191c   :  { %5967 = vrot.lane.b32.xlu1 %v14834_v6, %s12787_s10  ;;  %5731 = vrot.lane.b32.xlu0 %v14834_v6, %s12785_s30  ;;  %v6712_v24 = vrot.slane %v14834_v6, 1 }
0x191d   :  { %v5713_v19 = vpop.f32.mrf.mxu1 }
0x191e   :  { %v5714_v25 = vadd.f32 %v5713_v19, %v5646_v5 }
0x191f   :  { %v11606_v41 = vpop.f32.mrf.mxu1 }
0x1920   :  { %5963 = vrot.lane.b32.xlu1 %v14830_v16, %s12787_s10  ;;  %5965 = vrot.lane.b32.xlu0 %v14826_v10, %s12787_s10  ;;  %v6713_v9 = vrot.slane %v5714_v25, 1 }
0x1922   :  { %v14884_v43 = vsel %vm1312_vm8, %v6712_v24, %v6713_v9 }
0x1924   :  { %6203 = vrot.lane.b32.xlu1 %v14834_v6, %s12791_s14  ;;  %5957 = vrot.lane.b32.xlu0 %v14830_v16, %s12788_s11 }
0x1928   :  { %6201 = vrot.lane.b32.xlu1 %v14826_v10, %s12791_s14  ;;  %5959 = vrot.lane.b32.xlu0 %v14826_v10, %s12788_s11 }
0x192c   :  { %6199 = vrot.lane.b32.xlu1 %v14830_v16, %s12791_s14  ;;  %5961 = vrot.lane.b32.xlu0 %v14834_v6, %s12788_s11 }
0x1930   :  { %6439 = vrot.lane.b32.xlu1 %v14834_v6, %s12792_s1  ;;  %6193 = vrot.lane.b32.xlu0 %v14830_v16, %s12789_s12 }
0x1934   :  { %6437 = vrot.lane.b32.xlu1 %v14826_v10, %s12792_s1  ;;  %6195 = vrot.lane.b32.xlu0 %v14826_v10, %s12789_s12 }
0x1936   :  { %v5718_v14 = vpop.f32.mrf.mxu1 }
0x1937   :  { %v5719_v29 = vadd.f32 %v5718_v14, %v5646_v5 }
0x1938   :  { %v11609_v42 = vpop.f32.mrf.mxu1  ;;  %6435 = vrot.lane.b32.xlu1 %v14830_v16, %s12792_s1  ;;  %6197 = vrot.lane.b32.xlu0 %v14834_v6, %s12789_s12 }
0x1939   :  { %v14864_v35 = vrot.slane %v5719_v29, 1 }
0x193a   :  { %v5721_v0 = vpop.f32.mrf.mxu1 }
0x193b   :  { %v14876_v32 = vsel %vm1312_vm8, %v6713_v9, %v14864_v35 }
0x193c   :  { %v11610_v2 = vpop.f32.mrf.mxu1  ;;  %6429 = vrot.lane.b32.xlu0 %v14830_v16, %s12790_s13  ;;  %6721 = vrot.lane.b32.xlu1 %v14864_v35, %s12785_s30 }
0x1940   :  { %6431 = vrot.lane.b32.xlu0 %v14826_v10, %s12790_s13  ;;  %6719 = vrot.lane.b32.xlu1 %v14876_v32, %s12785_s30 }
0x1944   :  { %6433 = vrot.lane.b32.xlu0 %v14834_v6, %s12790_s13  ;;  %6717 = vrot.lane.b32.xlu1 %v14884_v43, %s12785_s30 }
0x1948   :  { %6957 = vrot.lane.b32.xlu0 %v14864_v35, %s12787_s10  ;;  %6955 = vrot.lane.b32.xlu1 %v14876_v32, %s12787_s10 }
0x194c   :  { %6953 = vrot.lane.b32.xlu0 %v14884_v43, %s12787_s10  ;;  %6947 = vrot.lane.b32.xlu1 %v14884_v43, %s12788_s11 }
0x1950   :  { %7193 = vrot.lane.b32.xlu0 %v14864_v35, %s12791_s14  ;;  %6949 = vrot.lane.b32.xlu1 %v14876_v32, %s12788_s11 }
0x1954   :  { %7191 = vrot.lane.b32.xlu0 %v14876_v32, %s12791_s14  ;;  %6951 = vrot.lane.b32.xlu1 %v14864_v35, %s12788_s11 }
0x1958   :  { %7189 = vrot.lane.b32.xlu0 %v14884_v43, %s12791_s14  ;;  %7183 = vrot.lane.b32.xlu1 %v14884_v43, %s12789_s12 }
0x195c   :  { %7429 = vrot.lane.b32.xlu0 %v14864_v35, %s12792_s1  ;;  %7185 = vrot.lane.b32.xlu1 %v14876_v32, %s12789_s12 }
0x195f   :  { %v5730_v46 = vpop.permute.xlu1 %5729 }
0x1960   :  { %7427 = vrot.lane.b32.xlu0 %v14876_v32, %s12792_s1  ;;  %7187 = vrot.lane.b32.xlu1 %v14864_v35, %s12789_s12 }
0x1963   :  { %v5728_v15 = vpop.permute.xlu1 %5727 }
0x1964   :  { %7425 = vrot.lane.b32.xlu0 %v14884_v43, %s12792_s1  ;;  %7419 = vrot.lane.b32.xlu1 %v14884_v43, %s12790_s13 }
0x1968   :  { %7421 = vrot.lane.b32.xlu0 %v14876_v32, %s12790_s13  ;;  %7423 = vrot.lane.b32.xlu1 %v14864_v35, %s12790_s13 }
0x196c   :  { %5860 = vrot.lane.b32.xlu0 %v14826_v10, %s12786_s9  ;;  %5862 = vrot.lane.b32.xlu1 %v14834_v6, %s12786_s9 }
0x1970   :  { %6098 = vrot.lane.b32.xlu0 %v14834_v6, %s12793_s15  ;;  %5858 = vrot.lane.b32.xlu1 %v14830_v16, %s12786_s9 }
0x1974   :  { %6334 = vrot.lane.b32.xlu0 %v14834_v6, %s12794_s16  ;;  %6096 = vrot.lane.b32.xlu1 %v14826_v10, %s12793_s15 }
0x1978   :  { %6330 = vrot.lane.b32.xlu0 %v14830_v16, %s12794_s16  ;;  %6094 = vrot.lane.b32.xlu1 %v14830_v16, %s12793_s15 }
0x197c   :  { %6570 = vrot.lane.b32.xlu0 %v14834_v6, %s12795_s17  ;;  %6332 = vrot.lane.b32.xlu1 %v14826_v10, %s12794_s16 }
0x1980   :  { %6566 = vrot.lane.b32.xlu0 %v14830_v16, %s12795_s17  ;;  %6568 = vrot.lane.b32.xlu1 %v14826_v10, %s12795_s17 }
0x1984   :  { %6852 = vrot.lane.b32.xlu0 %v14864_v35, %s12786_s9  ;;  %6850 = vrot.lane.b32.xlu1 %v14876_v32, %s12786_s9 }
0x1988   :  { %6848 = vrot.lane.b32.xlu0 %v14884_v43, %s12786_s9 }
0x198e   :  { %v5968_v45 = vpop.permute.xlu1 %5967  ;;  %v5732_v33 = vpop.permute.xlu0 %5731 }
0x198f   :  { %11612 = vmatpush3.xpose.msk.msra.mxu1 %vm328_vm5, %v5732_v33 }
0x1990   :  { %11613 = vmatprep.subr.mxu1 %v16310_v18 }
0x1992   :  { %v5964_v28 = vpop.permute.xlu1 %5963  ;;  %v5966_v54 = vpop.permute.xlu0 %5965 }
0x1993   :  { %11614 = vmatpush3.xpose.msk.msra.mxu1 %vm328_vm5, %v5730_v46 }
0x1994   :  { %11615 = vmatprep.subr.mxu1 %v16310_v18 }
0x1996   :  { %v6204_v12 = vpop.permute.xlu1 %6203  ;;  %v5958_v4 = vpop.permute.xlu0 %5957 }
0x1997   :  { %11616 = vmatpush3.xpose.msk.msra.mxu1 %vm328_vm5, %v5728_v15 }
0x1998   :  { %11641 = vmatprep.subr.mxu1 %v16310_v18 }
0x199a   :  { %v6202_v37 = vpop.permute.xlu1 %6201  ;;  %11618 = vmatmul.mubr.msk.f32.vlgmr.msra.gmra.mxu1 %vm328_vm5, %v14830_v16  ;;  %v5960_v49 = vpop.permute.xlu0 %5959 }
0x199b   :  { %11642 = vmatpush3.xpose.msk.msra.mxu1 %vm328_vm5, %v5968_v45  ;;  %11620 = vmatprep.mubr.msk.f32.mxu1 %vm12784_vm0, %v16310_v18 }
0x199c   :  { %11643 = vmatprep.subr.mxu1 %v16310_v18 }
0x199e   :  { %v6200_v58 = vpop.permute.xlu1 %6199  ;;  %11621 = vmatmul.mubr.msk.f32.gmra.mxu1 %vm328_vm5, %v14826_v10  ;;  %v5962_v63 = vpop.permute.xlu0 %5961 }
0x199f   :  { %11644 = vmatpush3.xpose.msk.msra.mxu1 %vm328_vm5, %v5966_v54  ;;  %11623 = vmatprep.mubr.msk.f32.mxu1 %vm12784_vm0, %v16310_v18 }
0x19a0   :  { %11645 = vmatprep.subr.mxu1 %v16310_v18 }
0x19a2   :  { %v6440_v60 = vpop.permute.xlu1 %6439  ;;  %11624 = vmatmul.mubr.msk.f32.gmra.mxu1 %vm328_vm5, %v14834_v6  ;;  %v6194_v48 = vpop.permute.xlu0 %6193 }
0x19a3   :  { %11646 = vmatpush3.xpose.msk.msra.mxu1 %vm328_vm5, %v5964_v28  ;;  %11647 = vmatprep.mubr.msk.f32.mxu1 %vm12784_vm0, %v16310_v18 }
0x19a4   :  { %11671 = vmatprep.subr.mxu1 %v16310_v18 }
0x19a6   :  { %v6438_v22 = vpop.permute.xlu1 %6437  ;;  %11648 = vmatmul.mubr.msk.f32.vlgmr.msra.gmra.mxu1 %vm328_vm5, %v5958_v4  ;;  %v6196_v11 = vpop.permute.xlu0 %6195 }
0x19a7   :  { %11672 = vmatpush3.xpose.msk.msra.mxu1 %vm328_vm5, %v6204_v12  ;;  %11650 = vmatprep.mubr.msk.f32.mxu1 %vm12784_vm0, %v16310_v18 }
0x19a8   :  { %11673 = vmatprep.subr.mxu1 %v16310_v18 }
0x19aa   :  { %v6436_v55 = vpop.permute.xlu1 %6435  ;;  %11651 = vmatmul.mubr.msk.f32.gmra.mxu1 %vm328_vm5, %v5960_v49  ;;  %v6198_v53 = vpop.permute.xlu0 %6197 }
0x19ab   :  { %11674 = vmatpush3.xpose.msk.msra.mxu1 %vm328_vm5, %v6202_v37  ;;  %11653 = vmatprep.mubr.msk.f32.mxu1 %vm12784_vm0, %v16310_v18 }
0x19ac   :  { %11675 = vmatprep.subr.mxu1 %v16310_v18 }
0x19ae   :  { %11654 = vmatmul.mubr.msk.f32.gmra.mxu1 %vm328_vm5, %v5962_v63  ;;  %v6430_v38 = vpop.permute.xlu0 %6429  ;;  %v6722_v27 = vpop.permute.xlu1 %6721 }
0x19af   :  { %11676 = vmatpush3.xpose.msk.msra.mxu1 %vm328_vm5, %v6200_v58  ;;  %11677 = vmatprep.mubr.msk.f32.mxu1 %vm12784_vm0, %v16310_v18 }
0x19b0   :  { %11701 = vmatprep.subr.mxu1 %v16310_v18 }
0x19b2   :  { %11678 = vmatmul.mubr.msk.f32.vlgmr.msra.gmra.mxu1 %vm328_vm5, %v6194_v48  ;;  %v6432_v30 = vpop.permute.xlu0 %6431  ;;  %v6720_v51 = vpop.permute.xlu1 %6719 }
0x19b3   :  { %11702 = vmatpush3.xpose.msk.msra.mxu1 %vm328_vm5, %v6440_v60  ;;  %11680 = vmatprep.mubr.msk.f32.mxu1 %vm12784_vm0, %v16310_v18 }
0x19b4   :  { %11703 = vmatprep.subr.mxu1 %v16310_v18 }
0x19b6   :  { %11681 = vmatmul.mubr.msk.f32.gmra.mxu1 %vm328_vm5, %v6196_v11  ;;  %v6434_v59 = vpop.permute.xlu0 %6433  ;;  %v6718_v44 = vpop.permute.xlu1 %6717 }
0x19b7   :  { %11704 = vmatpush3.xpose.msk.msra.mxu1 %vm328_vm5, %v6438_v22  ;;  %11683 = vmatprep.mubr.msk.f32.mxu1 %vm12784_vm0, %v16310_v18 }
0x19b8   :  { %11705 = vmatprep.subr.mxu1 %v16310_v18 }
0x19ba   :  { %11684 = vmatmul.mubr.msk.f32.gmra.mxu1 %vm328_vm5, %v6198_v53  ;;  %v6958_v5 = vpop.permute.xlu0 %6957  ;;  %v6956_v61 = vpop.permute.xlu1 %6955 }
0x19bb   :  { %11706 = vmatpush3.xpose.msk.msra.mxu1 %vm328_vm5, %v6436_v55  ;;  %11707 = vmatprep.mubr.msk.f32.mxu1 %vm12784_vm0, %v16310_v18 }
0x19bc   :  { %11731 = vmatprep.subr.mxu1 %v16310_v18 }
0x19be   :  { %11708 = vmatmul.mubr.msk.f32.vlgmr.msra.gmra.mxu1 %vm328_vm5, %v6430_v38  ;;  %v6954_v10 = vpop.permute.xlu0 %6953  ;;  %v6948_v7 = vpop.permute.xlu1 %6947 }
0x19bf   :  { %11732 = vmatpush3.xpose.msk.msra.mxu1 %vm328_vm5, %v6722_v27  ;;  %11710 = vmatprep.mubr.msk.f32.mxu1 %vm12784_vm0, %v16310_v18 }
0x19c0   :  { %11733 = vmatprep.subr.mxu1 %v16310_v18 }
0x19c2   :  { %11711 = vmatmul.mubr.msk.f32.gmra.mxu1 %vm328_vm5, %v6432_v30  ;;  %v7194_v16 = vpop.permute.xlu0 %7193  ;;  %v6950_v8 = vpop.permute.xlu1 %6949 }
0x19c3   :  { %11734 = vmatpush3.xpose.msk.msra.mxu1 %vm328_vm5, %v6720_v51  ;;  %11713 = vmatprep.mubr.msk.f32.mxu1 %vm12784_vm0, %v16310_v18 }
0x19c4   :  { %11735 = vmatprep.subr.mxu1 %v16310_v18 }
0x19c6   :  { %11714 = vmatmul.mubr.msk.f32.gmra.mxu1 %vm328_vm5, %v6434_v59  ;;  %v7192_v6 = vpop.permute.xlu0 %7191  ;;  %v6952_v57 = vpop.permute.xlu1 %6951 }
0x19c7   :  { %11736 = vmatpush3.xpose.msk.msra.mxu1 %vm328_vm5, %v6718_v44  ;;  %11737 = vmatprep.mubr.msk.f32.mxu1 %vm12784_vm0, %v16310_v18 }
0x19c8   :  { %11761 = vmatprep.subr.mxu1 %v16310_v18 }
0x19ca   :  { %v7190_v19 = vpop.permute.xlu0 %7189  ;;  %11738 = vmatmul.mubr.msk.f32.vlgmr.msra.gmra.mxu1 %vm328_vm5, %v14884_v43  ;;  %v7184_v41 = vpop.permute.xlu1 %7183 }
0x19cb   :  { %11762 = vmatpush3.xpose.msk.msra.mxu1 %vm328_vm5, %v6958_v5  ;;  %11740 = vmatprep.mubr.msk.f32.mxu1 %vm12784_vm0, %v16310_v18 }
0x19cc   :  { %11763 = vmatprep.subr.mxu1 %v16310_v18 }
0x19ce   :  { %v7430_v14 = vpop.permute.xlu0 %7429  ;;  %11741 = vmatmul.mubr.msk.f32.gmra.mxu1 %vm328_vm5, %v14876_v32  ;;  %v7186_v29 = vpop.permute.xlu1 %7185 }
0x19cf   :  { %11764 = vmatpush3.xpose.msk.msra.mxu1 %vm328_vm5, %v6956_v61  ;;  %11743 = vmatprep.mubr.msk.f32.mxu1 %vm12784_vm0, %v16310_v18 }
0x19d0   :  { %11765 = vmatprep.subr.mxu1 %v16310_v18 }
0x19d2   :  { %v7428_v42 = vpop.permute.xlu0 %7427  ;;  %11744 = vmatmul.mubr.msk.f32.gmra.mxu1 %vm328_vm5, %v14864_v35  ;;  %v7188_v25 = vpop.permute.xlu1 %7187 }
0x19d3   :  { %11766 = vmatpush3.xpose.msk.msra.mxu1 %vm328_vm5, %v6954_v10  ;;  %11767 = vmatprep.mubr.msk.f32.mxu1 %vm12784_vm0, %v16310_v18 }
0x19d4   :  { %11791 = vmatprep.subr.mxu1 %v16310_v18 }
0x19d6   :  { %v7426_v0 = vpop.permute.xlu0 %7425  ;;  %11768 = vmatmul.mubr.msk.f32.vlgmr.msra.gmra.mxu1 %vm328_vm5, %v6948_v7  ;;  %v7420_v2 = vpop.permute.xlu1 %7419 }
0x19d7   :  { %11792 = vmatpush3.xpose.msk.msra.mxu1 %vm328_vm5, %v7194_v16  ;;  %11770 = vmatprep.mubr.msk.f32.mxu1 %vm12784_vm0, %v16310_v18 }
0x19d8   :  { %11793 = vmatprep.subr.mxu1 %v16310_v18 }
0x19da   :  { %v7422_v9 = vpop.permute.xlu0 %7421  ;;  %11771 = vmatmul.mubr.msk.f32.gmra.mxu1 %vm328_vm5, %v6950_v8  ;;  %v7424_v24 = vpop.permute.xlu1 %7423 }
0x19db   :  { %11794 = vmatpush3.xpose.msk.msra.mxu1 %vm328_vm5, %v7192_v6  ;;  %11773 = vmatprep.mubr.msk.f32.mxu1 %vm12784_vm0, %v16310_v18 }
0x19dc   :  { %11795 = vmatprep.subr.mxu1 %v16310_v18 }
0x19de   :  { %11774 = vmatmul.mubr.msk.f32.gmra.mxu1 %vm328_vm5, %v6952_v57  ;;  %v5863_v46 = vpop.permute.xlu1 %5862  ;;  %v5861_v15 = vpop.permute.xlu0 %5860 }
0x19df   :  { %11627 = vmatpush3.msk.msra.mxu0 %vm50_vm3, %v5863_v46  ;;  %11796 = vmatpush3.xpose.msk.msra.mxu1 %vm328_vm5, %v7190_v19 }
0x19e0   :  { %11628 = vmatprep.subr.mxu0 %v16310_v18  ;;  %11797 = vmatprep.mubr.msk.f32.mxu1 %vm12784_vm0, %v16310_v18 }
0x19e1   :  { %11629 = vmatpush3.msra.mxu0 %v5861_v15  ;;  %11821 = vmatprep.subr.mxu1 %v16310_v18 }
0x19e2   :  { %11630 = vmatprep.subr.mxu0 %v16310_v18  ;;  %11798 = vmatmul.mubr.msk.f32.vlgmr.msra.gmra.mxu1 %vm328_vm5, %v7184_v41  ;;  %v5859_v45 = vpop.permute.xlu1 %5858 }
0x19e3   :  { %11631 = vmatpush3.msra.mxu0 %v5859_v45  ;;  %11822 = vmatpush3.xpose.msk.msra.mxu1 %vm328_vm5, %v7430_v14 }
0x19e4   :  { %11800 = vmatprep.mubr.msk.f32.mxu1 %vm12784_vm0, %v16310_v18  ;;  %11823 = vmatprep.subr.mxu1 %v16310_v18 }
0x19e5   :  { %11656 = vmatprep.subr.mxu0 %v16310_v18 }
0x19e6   :  { %11801 = vmatmul.mubr.msk.f32.gmra.mxu1 %vm328_vm5, %v7186_v29 }
0x19e7   :  { %11824 = vmatpush3.xpose.msk.msra.mxu1 %vm328_vm5, %v7428_v42  ;;  %11803 = vmatprep.mubr.msk.f32.mxu1 %vm12784_vm0, %v16310_v18 }
0x19e8   :  { %11825 = vmatprep.subr.mxu1 %v16310_v18 }
0x19ea   :  { %11804 = vmatmul.mubr.msk.f32.gmra.mxu1 %vm328_vm5, %v7188_v25 }
0x19eb   :  { %11826 = vmatpush3.xpose.msk.msra.mxu1 %vm328_vm5, %v7426_v0  ;;  %11827 = vmatprep.mubr.msk.f32.mxu1 %vm12784_vm0, %v16310_v18 }
0x19ec   :  { %11851 = vmatprep.subr.bf16.mxu1 %v16310_v18 }
0x19ee   :  { %11828 = vmatmul.mubr.msk.f32.vlgmr.msra.gmra.mxu1 %vm328_vm5, %v7420_v2 }
0x19ef   :  { %11830 = vmatprep.mubr.msk.f32.mxu1 %vm12784_vm0, %v16310_v18 }
0x19f2   :  { %11831 = vmatmul.mubr.msk.f32.gmra.mxu1 %vm328_vm5, %v7422_v9 }
0x19f3   :  { %11833 = vmatprep.mubr.msk.f32.mxu1 %vm12784_vm0, %v16310_v18 }
0x19f6   :  { %11834 = vmatmul.mubr.msk.f32.gmra.mxu1 %vm328_vm5, %v7424_v24 }
0x19f7   :  { %11855 = vmatprep.mubr.msk.bf16.mxu1 %vm12784_vm0, %v16310_v18 }
0x1a5a   :  { %v15086_v33 = vpop.f32.mrf.mxu1 }
0x1a5b   :  { %v5825_v28 = vsel %vm421_vm6, %v15086_v33, -inf }
0x1a5c   :  { %5826 = vmax.xlane.f32.xlu0 %v5825_v28  ;;  %v11619_v54 = vpop.f32.mrf.mxu1 }
0x1a5e   :  { %v15090_v12 = vpop.f32.mrf.mxu1 }
0x1a5f   :  { %v5828_v4 = vsel %vm421_vm6, %v15090_v12, -inf }
0x1a60   :  { %5829 = vmax.xlane.f32.xlu1 %v5828_v4  ;;  %v11622_v37 = vpop.f32.mrf.mxu1 }
0x1a62   :  { %v15094_v49 = vpop.f32.mrf.mxu1 }
0x1a63   :  { %v5831_v58 = vsel %vm428_vm7, %v15094_v49, -inf }
0x1a64   :  { %5832 = vmax.xlane.f32.xlu0 %v5831_v58  ;;  %v11625_v63 = vpop.f32.mrf.mxu1 }
0x1a66   :  { %v15098_v60 = vpop.f32.mrf.mxu1 }
0x1a67   :  { %v6061_v48 = vsel %vm421_vm6, %v15098_v60, -inf }
0x1a68   :  { %6062 = vmax.xlane.f32.xlu0 %v6061_v48  ;;  %v11649_v22 = vpop.f32.mrf.mxu1 }
0x1a6a   :  { %v15102_v11 = vpop.f32.mrf.mxu1 }
0x1a6b   :  { %v6064_v55 = vsel %vm421_vm6, %v15102_v11, -inf }
0x1a6c   :  { %6065 = vmax.xlane.f32.xlu0 %v6064_v55  ;;  %v11652_v53 = vpop.f32.mrf.mxu1 }
0x1a6e   :  { %v15106_v38 = vpop.f32.mrf.mxu1 }
0x1a6f   :  { %v6067_v27 = vsel %vm428_vm7, %v15106_v38, -inf }
0x1a70   :  { %6068 = vmax.xlane.f32.xlu1 %v6067_v27  ;;  %v11655_v30 = vpop.f32.mrf.mxu1 }
0x1a72   :  { %v15110_v51 = vpop.f32.mrf.mxu1 }
0x1a73   :  { %v6297_v59 = vsel %vm421_vm6, %v15110_v51, -inf }
0x1a74   :  { %6298 = vmax.xlane.f32.xlu0 %v6297_v59  ;;  %v11679_v44 = vpop.f32.mrf.mxu1 }
0x1a76   :  { %v15114_v5 = vpop.f32.mrf.mxu1 }
0x1a77   :  { %v6300_v61 = vsel %vm421_vm6, %v15114_v5, -inf }
0x1a78   :  { %6301 = vmax.xlane.f32.xlu1 %v6300_v61  ;;  %v11682_v10 = vpop.f32.mrf.mxu1 }
0x1a7a   :  { %v15118_v7 = vpop.f32.mrf.mxu1 }
0x1a7b   :  { %v6303_v16 = vsel %vm428_vm7, %v15118_v7, -inf }
0x1a7c   :  { %6304 = vmax.xlane.f32.xlu0 %v6303_v16  ;;  %v11685_v8 = vpop.f32.mrf.mxu1 }
0x1a7e   :  { %v15122_v6 = vpop.f32.mrf.mxu1 }
0x1a7f   :  { %v6533_v57 = vsel %vm421_vm6, %v15122_v6, -inf }
0x1a80   :  { %6534 = vmax.xlane.f32.xlu1 %v6533_v57  ;;  %v11709_v19 = vpop.f32.mrf.mxu1 }
0x1a82   :  { %v15126_v41 = vpop.f32.mrf.mxu1 }
0x1a83   :  { %v6536_v14 = vsel %vm421_vm6, %v15126_v41, -inf }
0x1a84   :  { %6537 = vmax.xlane.f32.xlu0 %v6536_v14  ;;  %v11712_v29 = vpop.f32.mrf.mxu1 }
0x1a86   :  { %v15130_v42 = vpop.f32.mrf.mxu1 }
0x1a87   :  { %v6539_v25 = vsel %vm428_vm7, %v15130_v42, -inf }
0x1a88   :  { %6540 = vmax.xlane.f32.xlu1 %v6539_v25  ;;  %v11715_v0 = vpop.f32.mrf.mxu1 }
0x1a8a   :  { %v15134_v2 = vpop.f32.mrf.mxu1 }
0x1a8b   :  { %v6815_v9 = vsel %vm421_vm6, %v15134_v2, -inf }
0x1a8c   :  { %6816 = vmax.xlane.f32.xlu0 %v6815_v9  ;;  %v11739_v24 = vpop.f32.mrf.mxu1 }
0x1a8e   :  { %v15138_v46 = vpop.f32.mrf.mxu1 }
0x1a8f   :  { %v6818_v15 = vsel %vm421_vm6, %v15138_v46, -inf }
0x1a90   :  { %6819 = vmax.xlane.f32.xlu1 %v6818_v15  ;;  %v11742_v45 = vpop.f32.mrf.mxu1 }
0x1a92   :  { %v15142_v28 = vpop.f32.mrf.mxu1 }
0x1a93   :  { %v6821_v54 = vsel %vm428_vm7, %v15142_v28, -inf }
0x1a94   :  { %6822 = vmax.xlane.f32.xlu0 %v6821_v54  ;;  %v11745_v4 = vpop.f32.mrf.mxu1 }
0x1a95   :  { %v15180_v4 = vpop.permute.xlu0 %6098 }
0x1a96   :  { %v15146_v37 = vpop.f32.mrf.mxu1 }
0x1a97   :  { %v7051_v58 = vsel %vm421_vm6, %v15146_v37, -inf }
0x1a98   :  { %7052 = vmax.xlane.f32.xlu1 %v7051_v58  ;;  %v11769_v63 = vpop.f32.mrf.mxu1 }
0x1a99   :  { %v15184_v58 = vpop.permute.xlu0 %6334 }
0x1a9a   :  { %v15150_v48 = vpop.f32.mrf.mxu1 }
0x1a9b   :  { %v7054_v22 = vsel %vm421_vm6, %v15150_v48, -inf }
0x1a9c   :  { %7055 = vmax.xlane.f32.xlu0 %v7054_v22  ;;  %v11772_v55 = vpop.f32.mrf.mxu1  ;;  %v15188_v22 = vpop.permute.xlu1 %6096 }
0x1a9d   :  { %v15186_v63 = vpop.permute.xlu0 %6330 }
0x1a9e   :  { %v15154_v53 = vpop.f32.mrf.mxu1 }
0x1a9f   :  { %v7057_v27 = vsel %vm428_vm7, %v15154_v53, -inf }
0x1aa0   :  { %7058 = vmax.xlane.f32.xlu1 %v7057_v27  ;;  %v11775_v30 = vpop.f32.mrf.mxu1  ;;  %v15192_v27 = vpop.permute.xlu1 %6094 }
0x1aa1   :  { %v15190_v55 = vpop.permute.xlu0 %6570 }
0x1aa2   :  { %v15158_v59 = vpop.f32.mrf.mxu1 }
0x1aa3   :  { %v7287_v44 = vsel %vm421_vm6, %v15158_v59, -inf }
0x1aa4   :  { %7288 = vmax.xlane.f32.xlu0 %v7287_v44  ;;  %v11799_v61 = vpop.f32.mrf.mxu1  ;;  %v15196_v44 = vpop.permute.xlu1 %6332 }
0x1aa5   :  { %v15194_v30 = vpop.permute.xlu0 %6566 }
0x1aa6   :  { %v15162_v10 = vpop.f32.mrf.mxu1 }
0x1aa7   :  { %v7290_v16 = vsel %vm421_vm6, %v15162_v10, -inf }
0x1aa8   :  { %7291 = vmax.xlane.f32.xlu1 %v7290_v16  ;;  %v11802_v8 = vpop.f32.mrf.mxu1  ;;  %v15200_v16 = vpop.permute.xlu1 %6568 }
0x1aa9   :  { %v15198_v61 = vpop.permute.xlu0 %6852 }
0x1aaa   :  { %v15166_v57 = vpop.f32.mrf.mxu1 }
0x1aab   :  { %v7293_v19 = vsel %vm428_vm7, %v15166_v57, -inf }
0x1aac   :  { %7294 = vmax.xlane.f32.xlu0 %v7293_v19  ;;  %v11805_v14 = vpop.f32.mrf.mxu1 }
0x1aad   :  { %v15204_v19 = vpop.permute.xlu0 %6848  ;;  %v15206_v14 = vpop.permute.xlu1 %6850 }
0x1aae   :  { %v15170_v29 = vpop.f32.mrf.mxu1 }
0x1aaf   :  { %v7523_v25 = vsel %vm421_vm6, %v15170_v29, -inf }
0x1ab0   :  { %7524 = vmax.xlane.f32.xlu1 %v7523_v25  ;;  %v11829_v0 = vpop.f32.mrf.mxu1 }
0x1ab2   :  { %v15174_v9 = vpop.f32.mrf.mxu1 }
0x1ab3   :  { %v7526_v8 = vsel %vm421_vm6, %v15174_v9, -inf }
0x1ab4   :  { %v11832_v24 = vpop.f32.mrf.mxu1 }
0x1ab6   :  { %v15176_v15 = vpop.f32.mrf.mxu1 }
0x1ab7   :  { %v7529_v45 = vsel %vm428_vm7, %v15176_v15, -inf }
0x1ab8   :  { %7530 = vmax.xlane.f32.xlu1 %v7529_v45  ;;  %v11835_v54 = vpop.f32.mrf.mxu1 }
0x1ac2   :  { %7088 = vrot.lane.b32.xlu0 %v14864_v35, %s12793_s15 }
0x1ae1   :  { %7527 = vmax.xlane.f32.xlu0 %v7526_v8 }
0x1ae5   :  { %v5827_v25 = vpop.xlane.xlu0 %5826 }
0x1ae6   :  { %v5834_v0 = vsub.f32 %v15086_v33, %v5827_v25 }
0x1ae8   :  { %v5837_v24 = vmul.f32 1.442695, %v5834_v0 }
0x1ae9   :  { %v5830_v45 = vpop.xlane.xlu1 %5829 }
0x1aea   :  { %12565 = vpow2.f32 %v5837_v24  ;;  %v5835_v54 = vsub.f32 %v15090_v12, %v5830_v45 }
0x1aec   :  { %v5839_v21 = vmul.f32 1.442695, %v5835_v54 }
0x1aed   :  { %v5833_v34 = vpop.xlane.xlu0 %5832 }
0x1aee   :  { %12567 = vpow2.f32 %v5839_v21 }
0x1af1   :  { %v6063_v26 = vpop.xlane.xlu0 %6062 }
0x1af2   :  { %v6070_v3 = vsub.f32 %v15098_v60, %v6063_v26 }
0x1af4   :  { %v6073_v23 = vmul.f32 1.442695, %v6070_v3 }
0x1af5   :  { %v6066_v52 = vpop.xlane.xlu0 %6065 }
0x1af6   :  { %12569 = vpow2.f32 %v6073_v23 }
0x1af7   :  { %v15211_v50 = vpop.eup %12565 }
0x1af8   :  { %v5843_v8 = vsel %vm421_vm6, %v15211_v50, 0.0 }
0x1af9   :  { %v6069_v33 = vpop.xlane.xlu1 %6068  ;;  %5844 = vadd.xlane.f32.xlu1 %v5843_v8 }
0x1afa   :  { %v6072_v25 = vsub.f32 %v15106_v38, %v6069_v33 }
0x1afb   :  { %v15216_v0 = vpop.eup %12567 }
0x1afc   :  { %v6077_v12 = vmul.f32 1.442695, %v6072_v25  ;;  %v5846_v21 = vsel %vm421_vm6, %v15216_v0, 0.0 }
0x1afd   :  { %v6299_v24 = vpop.xlane.xlu0 %6298  ;;  %5847 = vadd.xlane.f32.xlu0 %v5846_v21 }
0x1afe   :  { %12571 = vpow2.f32 %v6077_v12  ;;  %v6306_v3 = vsub.f32 %v15110_v51, %v6299_v24 }
0x1b00   :  { %v6309_v23 = vmul.f32 1.442695, %v6306_v3 }
0x1b01   :  { %v6302_v33 = vpop.xlane.xlu1 %6301 }
0x1b02   :  { %12573 = vpow2.f32 %v6309_v23  ;;  %v5836_v23 = vsub.f32 %v15094_v49, %v5833_v34 }
0x1b03   :  { %v15221_v26 = vpop.eup %12569 }
0x1b04   :  { %v6079_v60 = vsel %vm421_vm6, %v15221_v26, 0.0 }
0x1b05   :  { %v6305_v45 = vpop.xlane.xlu0 %6304  ;;  %6080 = vadd.xlane.f32.xlu0 %v6079_v60 }
0x1b06   :  { %v6308_v38 = vsub.f32 %v15118_v7, %v6305_v45 }
0x1b08   :  { %v6313_v54 = vmul.f32 1.442695, %v6308_v38 }
0x1b09   :  { %v6535_v3 = vpop.xlane.xlu1 %6534 }
0x1b0a   :  { %12575 = vpow2.f32 %v6313_v54  ;;  %7086 = vrot.lane.b32.xlu1 %v14876_v32, %s12793_s15  ;;  %v5841_v54 = vmul.f32 1.442695, %v5836_v23 }
0x1b0b   :  { %v15228_v8 = vpop.eup %12571 }
0x1b0c   :  { %v6085_v51 = vsel %vm428_vm7, %v15228_v8, 0.0 }
0x1b0d   :  { %v6538_v25 = vpop.xlane.xlu0 %6537  ;;  %6086 = vadd.xlane.f32.xlu0 %v6085_v51 }
0x1b0e   :  { %v6543_v12 = vsub.f32 %v15126_v41, %v6538_v25  ;;  %v6071_v41 = vsub.f32 %v15102_v11, %v6066_v52  ;;  %v6542_v52 = vsub.f32 %v15122_v6, %v6535_v3 }
0x1b0f   :  { %v15233_v21 = vpop.eup %12573 }
0x1b10   :  { %v6547_v24 = vmul.f32 1.442695, %v6543_v12  ;;  %v6315_v7 = vsel %vm421_vm6, %v15233_v21, 0.0  ;;  %v6075_v20 = vmul.f32 1.442695, %v6071_v41 }
0x1b11   :  { %6316 = vadd.xlane.f32.xlu0 %v6315_v7  ;;  %v6541_v60 = vpop.xlane.xlu1 %6540 }
0x1b12   :  { %12577 = vpow2.f32 %v6547_v24  ;;  %v6307_v24 = vsub.f32 %v15114_v5, %v6302_v33 }
0x1b13   :  { %12579 = vpow2.f32 %v5841_v54 }
0x1b14   :  { %v6311_v23 = vmul.f32 1.442695, %v6307_v24 }
0x1b15   :  { %v6817_v7 = vpop.xlane.xlu0 %6816 }
0x1b17   :  { %v15238_v45 = vpop.eup %12575 }
0x1b18   :  { %v6321_v38 = vsel %vm428_vm7, %v15238_v45, 0.0 }
0x1b19   :  { %v6820_v51 = vpop.xlane.xlu1 %6819  ;;  %6322 = vadd.xlane.f32.xlu0 %v6321_v38  ;;  %v6544_v38 = vsub.f32 %v15130_v42, %v6541_v60 }
0x1b1a   :  { %v6825_v25 = vsub.f32 %v15138_v46, %v6820_v51  ;;  %v6545_v46 = vmul.f32 1.442695, %v6542_v52  ;;  %v6824_v51 = vsub.f32 %v15134_v2, %v6817_v7 }
0x1b1b   :  { %v6549_v41 = vmul.f32 1.442695, %v6544_v38 }
0x1b1c   :  { %v6829_v12 = vmul.f32 1.442695, %v6825_v25  ;;  %v6827_v3 = vmul.f32 1.442695, %v6824_v51 }
0x1b1d   :  { %v6823_v11 = vpop.xlane.xlu0 %6822 }
0x1b1e   :  { %12581 = vpow2.f32 %v6829_v12  ;;  %v6826_v42 = vsub.f32 %v15142_v28, %v6823_v11 }
0x1b1f   :  { %v15245_v34 = vpop.eup %12577  ;;  %12583 = vpow2.f32 %v6075_v20 }
0x1b20   :  { %v6554_v49 = vsel %vm421_vm6, %v15245_v34, 0.0  ;;  %12585 = vpow2.f32 %v6311_v23  ;;  %v15253_v12 = vpop.eup %12579  ;;  %v6831_v2 = vmul.f32 1.442695, %v6826_v42 }
0x1b21   :  { %6555 = vadd.xlane.f32.xlu0 %v6554_v49  ;;  %12587 = vpow2.f32 %v6545_v46  ;;  %v7053_v25 = vpop.xlane.xlu1 %7052 }
0x1b22   :  { %v7060_v7 = vsub.f32 %v15146_v37, %v7053_v25 }
0x1b24   :  { %v7063_v46 = vmul.f32 1.442695, %v7060_v7 }
0x1b25   :  { %v7056_v54 = vpop.xlane.xlu0 %7055 }
0x1b26   :  { %v7061_v5 = vsub.f32 %v15150_v48, %v7056_v54  ;;  %v5849_v48 = vsel %vm428_vm7, %v15253_v12, 0.0 }
0x1b28   :  { %v7065_v33 = vmul.f32 1.442695, %v7061_v5 }
0x1b29   :  { %v7059_v60 = vpop.xlane.xlu1 %7058 }
0x1b2a   :  { %12589 = vpow2.f32 %v7065_v33  ;;  %v7062_v38 = vsub.f32 %v15154_v53, %v7059_v60 }
0x1b2b   :  { %v15255_v20 = vpop.eup %12581  ;;  %12591 = vpow2.f32 %v6549_v41 }
0x1b2c   :  { %v6836_v6 = vsel %vm421_vm6, %v15255_v20, 0.0  ;;  %v15262_v24 = vpop.eup %12583  ;;  %12593 = vpow2.f32 %v6827_v3 }
0x1b2d   :  { %6837 = vadd.xlane.f32.xlu0 %v6836_v6  ;;  %v6082_v23 = vsel %vm421_vm6, %v15262_v24, 0.0  ;;  %v15267_v52 = vpop.eup %12585  ;;  %12595 = vpow2.f32 %v6831_v2  ;;  %v7289_v37 = vpop.xlane.xlu0 %7288 }
0x1b2e   :  { %5850 = vadd.xlane.f32.xlu1 %v5849_v48  ;;  %v6318_v54 = vsel %vm421_vm6, %v15267_v52, 0.0  ;;  %v15273_v5 = vpop.eup %12587  ;;  %v7296_v51 = vsub.f32 %v15158_v59, %v7289_v37 }
0x1b2f   :  { %v6551_v53 = vsel %vm421_vm6, %v15273_v5, 0.0 }
0x1b30   :  { %v7299_v3 = vmul.f32 1.442695, %v7296_v51 }
0x1b31   :  { %v7292_v49 = vpop.xlane.xlu1 %7291 }
0x1b32   :  { %v7297_v28 = vsub.f32 %v15162_v10, %v7292_v49  ;;  %6083 = vadd.xlane.f32.xlu1 %v6082_v23  ;;  %v7067_v10 = vmul.f32 1.442695, %v7062_v38 }
0x1b34   :  { %v7301_v11 = vmul.f32 1.442695, %v7297_v28 }
0x1b35   :  { %v7295_v6 = vpop.xlane.xlu0 %7294 }
0x1b36   :  { %12597 = vpow2.f32 %v7301_v11  ;;  %6319 = vadd.xlane.f32.xlu1 %v6318_v54  ;;  %v7298_v42 = vsub.f32 %v15166_v57, %v7295_v6 }
0x1b37   :  { %v15275_v33 = vpop.eup %12589  ;;  %12599 = vpow2.f32 %v7063_v46 }
0x1b38   :  { %v7072_v41 = vsel %vm421_vm6, %v15275_v33, 0.0  ;;  %v15282_v25 = vpop.eup %12591  ;;  %12601 = vpow2.f32 %v7067_v10  ;;  %v7303_v59 = vmul.f32 1.442695, %v7298_v42 }
0x1b39   :  { %7073 = vadd.xlane.f32.xlu0 %v7072_v41  ;;  %v6557_v60 = vsel %vm428_vm7, %v15282_v25, 0.0  ;;  %v15287_v48 = vpop.eup %12593  ;;  %v7525_v2 = vpop.xlane.xlu1 %7524  ;;  %12603 = vpow2.f32 %v7299_v3 }
0x1b3a   :  { %6552 = vadd.xlane.f32.xlu1 %v6551_v53  ;;  %v7532_v7 = vsub.f32 %v15170_v29, %v7525_v2  ;;  %v6833_v49 = vsel %vm421_vm6, %v15287_v48, 0.0  ;;  %v15292_v23 = vpop.eup %12595  ;;  %12605 = vpow2.f32 %v7303_v59  ;;  %v15322_v42 = vpop.permute.xlu0 %7088 }
0x1b3b   :  { %v6839_v46 = vsel %vm428_vm7, %v15292_v23, 0.0 }
0x1b3c   :  { %v7535_v11 = vmul.f32 1.442695, %v7532_v7 }
0x1b3e   :  { %6558 = vadd.xlane.f32.xlu1 %v6557_v60  ;;  %12607 = vpow2.f32 %v7535_v11 }
0x1b42   :  { %6834 = vadd.xlane.f32.xlu1 %v6833_v49  ;;  %v7531_v49 = vpop.xlane.xlu1 %7530 }
0x1b43   :  { %v15294_v28 = vpop.eup %12597 }
0x1b44   :  { %v7308_v57 = vsel %vm421_vm6, %v15294_v28, 0.0  ;;  %v15300_v38 = vpop.eup %12599 }
0x1b45   :  { %7309 = vadd.xlane.f32.xlu0 %v7308_v57  ;;  %v7069_v29 = vsel %vm421_vm6, %v15300_v38, 0.0  ;;  %v15304_v54 = vpop.eup %12601 }
0x1b46   :  { %6840 = vadd.xlane.f32.xlu1 %v6839_v46  ;;  %v7075_v37 = vsel %vm428_vm7, %v15304_v54, 0.0  ;;  %v15308_v41 = vpop.eup %12603  ;;  %v7534_v46 = vsub.f32 %v15176_v15, %v7531_v49 }
0x1b47   :  { %v7305_v10 = vsel %vm421_vm6, %v15308_v41, 0.0  ;;  %v15312_v51 = vpop.eup %12605 }
0x1b48   :  { %v7311_v53 = vsel %vm428_vm7, %v15312_v51, 0.0 }
0x1b4a   :  { %7070 = vadd.xlane.f32.xlu1 %v7069_v29 }
0x1b4b   :  { %v15316_v6 = vpop.eup %12607 }
0x1b4c   :  { %v7541_v3 = vsel %vm421_vm6, %v15316_v6, 0.0 }
0x1b4e   :  { %7076 = vadd.xlane.f32.xlu1 %v7075_v37 }
0x1b52   :  { %7306 = vadd.xlane.f32.xlu1 %v7305_v10 }
0x1b56   :  { %7312 = vadd.xlane.f32.xlu1 %v7311_v53 }
0x1b5a   :  { %7542 = vadd.xlane.f32.xlu1 %v7541_v3 }
0x1b5b   :  { %7084 = vrot.lane.b32.xlu0 %v14884_v43, %s12793_s15 }
0x1b6a   :  { %v7528_v60 = vpop.xlane.xlu0 %7527 }
0x1b6b   :  { %v7533_v2 = vsub.f32 %v15174_v9, %v7528_v60  ;;  %7324 = vrot.lane.b32.xlu1 %v14864_v35, %s12794_s16 }
0x1b6d   :  { %v7537_v59 = vmul.f32 1.442695, %v7533_v2 }
0x1b6f   :  { %12609 = vpow2.f32 %v7537_v59  ;;  %7322 = vrot.lane.b32.xlu1 %v14876_v32, %s12794_s16 }
0x1b73   :  { %7320 = vrot.lane.b32.xlu1 %v14884_v43, %s12794_s16 }
0x1b77   :  { %7560 = vrot.lane.b32.xlu1 %v14864_v35, %s12795_s17  ;;  %v7539_v35 = vmul.f32 1.442695, %v7534_v46 }
0x1b7b   :  { %7558 = vrot.lane.b32.xlu1 %v14876_v32, %s12795_s17 }
0x1b7c   :  { %v15335_v7 = vpop.eup %12609 }
0x1b7d   :  { %v7544_v9 = vsel %vm421_vm6, %v15335_v7, 0.0 }
0x1b7e   :  { %7545 = vadd.xlane.f32.xlu0 %v7544_v9 }
0x1b7f   :  { %7556 = vrot.lane.b32.xlu1 %v14884_v43, %s12795_s17 }
0x1b82   :  { %v5845_v57 = vpop.xlane.xlu1 %5844 }
0x1b83   :  { %12611 = vrcp.f32 %v5845_v57 }
0x1b86   :  { %v5848_v11 = vpop.xlane.xlu0 %5847 }
0x1b87   :  { %12613 = vrcp.f32 %v5848_v11 }
0x1b88   :  { %12615 = vpow2.f32 %v7539_v35 }
0x1b90   :  { %v12612_v29 = vpop.eup %12611 }
0x1b91   :  { %v5855_v32 = vmul.f32 %v12612_v29, %v15211_v50 }
0x1b93   :  { %11633 = vmatmul.mubr.msk.f32.vlgmr.msra.gmra.mxu0 %vm421_vm6, %v5855_v32 }
0x1b94   :  { %v12614_v37 = vpop.eup %12613  ;;  %11657 = vmatpush3.msk.msra.mxu0 %vm50_vm3, %v15180_v4  ;;  %11635 = vmatprep.mubr.msk.f32.mxu0 %vm12784_vm0, %v16310_v18  ;;  %v15361_v4 = vpop.permute.xlu1 %7086 }
0x1b95   :  { %11658 = vmatprep.subr.mxu0 %v16310_v18  ;;  %v5856_v43 = vmul.f32 %v12614_v37, %v15216_v0  ;;  %v15357_v50 = vpop.eup %12615 }
0x1b96   :  { %11659 = vmatpush3.msra.mxu0 %v15188_v22  ;;  %v7547_v15 = vsel %vm428_vm7, %v15357_v50, 0.0  ;;  %v6081_v22 = vpop.xlane.xlu0 %6080 }
0x1b97   :  { %11660 = vmatprep.subr.mxu0 %v16310_v18  ;;  %11636 = vmatmul.mubr.msk.f32.gmra.mxu0 %vm421_vm6, %v5856_v43 }
0x1b98   :  { %11661 = vmatpush3.msra.mxu0 %v15192_v27  ;;  %11638 = vmatprep.mubr.msk.f32.mxu0 %vm12784_vm0, %v16310_v18 }
0x1b99   :  { %11686 = vmatprep.subr.mxu0 %v16310_v18 }
0x1b9a   :  { %v6087_v53 = vpop.xlane.xlu0 %6086 }
0x1b9e   :  { %v6317_v3 = vpop.xlane.xlu0 %6316 }
0x1ba2   :  { %v6323_v46 = vpop.xlane.xlu0 %6322 }
0x1ba3   :  { %7548 = vadd.xlane.f32.xlu1 %v7547_v15 }
0x1bb7   :  { %v5851_v0 = vpop.xlane.xlu1 %5850 }
0x1bb8   :  { %12617 = vrcp.f32 %v5851_v0 }
0x1bb9   :  { %12619 = vrcp.f32 %v6081_v22 }
0x1bbb   :  { %v6084_v10 = vpop.xlane.xlu1 %6083 }
0x1bbc   :  { %12621 = vrcp.f32 %v6084_v10 }
0x1bbd   :  { %12623 = vrcp.f32 %v6087_v53 }
0x1bbe   :  { %12625 = vrcp.f32 %v6317_v3 }
0x1bbf   :  { %v6320_v27 = vpop.xlane.xlu1 %6319 }
0x1bc0   :  { %12627 = vrcp.f32 %v6320_v27 }
0x1bc1   :  { %12629 = vrcp.f32 %v6323_v46 }
0x1bc3   :  { %v6553_v60 = vpop.xlane.xlu1 %6552 }
0x1bc4   :  { %12631 = vrcp.f32 %v6553_v60 }
0x1bc5   :  { %v12618_v2 = vpop.eup %12617 }
0x1bc6   :  { %v5857_v59 = vmul.f32 %v12618_v2, %v15253_v12  ;;  %v12620_v9 = vpop.eup %12619 }
0x1bc7   :  { %v6559_v49 = vpop.xlane.xlu1 %6558  ;;  %v6091_v57 = vmul.f32 %v12620_v9, %v15221_v26 }
0x1bc8   :  { %11639 = vmatmul.mubr.msk.f32.gmra.mxu0 %vm421_vm6, %v5857_v59 }
0x1bc9   :  { %11662 = vmatprep.mubr.msk.f32.mxu0 %vm12784_vm0, %v16310_v18  ;;  %v12622_v11 = vpop.eup %12621 }
0x1bca   :  { %v6092_v12 = vmul.f32 %v12622_v11, %v15262_v24  ;;  %v12624_v29 = vpop.eup %12623  ;;  %v6556_v24 = vpop.xlane.xlu0 %6555 }
0x1bcb   :  { %v6835_v35 = vpop.xlane.xlu1 %6834  ;;  %v12626_v32 = vpop.eup %12625  ;;  %12633 = vrcp.f32 %v6556_v24 }
0x1bcc   :  { %11663 = vmatmul.mubr.msk.f32.vlgmr.msra.gmra.mxu0 %vm421_vm6, %v6091_v57  ;;  %12635 = vrcp.f32 %v6559_v49 }
0x1bcd   :  { %11687 = vmatpush3.msk.msra.mxu0 %vm50_vm3, %v15184_v58  ;;  %11665 = vmatprep.mubr.msk.f32.mxu0 %vm12784_vm0, %v16310_v18  ;;  %v6093_v58 = vmul.f32 %v12624_v29, %v15228_v8  ;;  %12637 = vrcp.f32 %v6835_v35 }
0x1bce   :  { %11688 = vmatprep.subr.mxu0 %v16310_v18 }
0x1bcf   :  { %11689 = vmatpush3.msra.mxu0 %v15196_v44  ;;  %v6841_v26 = vpop.xlane.xlu1 %6840  ;;  %v6327_v44 = vmul.f32 %v12626_v32, %v15233_v21 }
0x1bd0   :  { %11690 = vmatprep.subr.mxu0 %v16310_v18  ;;  %11666 = vmatmul.mubr.msk.f32.gmra.mxu0 %vm421_vm6, %v6092_v12 }
0x1bd1   :  { %11691 = vmatpush3.msra.mxu0 %v15186_v63  ;;  %11668 = vmatprep.mubr.msk.f32.mxu0 %vm12784_vm0, %v16310_v18  ;;  %v12628_v63 = vpop.eup %12627 }
0x1bd2   :  { %11716 = vmatprep.subr.mxu0 %v16310_v18  ;;  %v6328_v8 = vmul.f32 %v12628_v63, %v15267_v52  ;;  %v12630_v15 = vpop.eup %12629  ;;  %v6838_v52 = vpop.xlane.xlu0 %6837 }
0x1bd3   :  { %v7071_v37 = vpop.xlane.xlu1 %7070  ;;  %v12632_v22 = vpop.eup %12631  ;;  %12639 = vrcp.f32 %v6838_v52 }
0x1bd4   :  { %11669 = vmatmul.mubr.msk.f32.gmra.mxu0 %vm421_vm6, %v6093_v58  ;;  %12641 = vrcp.f32 %v6841_v26 }
0x1bd5   :  { %11692 = vmatprep.mubr.msk.f32.mxu0 %vm12784_vm0, %v16310_v18  ;;  %12643 = vrcp.f32 %v7071_v37 }
0x1bd7   :  { %v7077_v43 = vpop.xlane.xlu1 %7076 }
0x1bd8   :  { %11693 = vmatmul.mubr.msk.f32.vlgmr.msra.gmra.mxu0 %vm421_vm6, %v6327_v44 }
0x1bd9   :  { %11717 = vmatpush3.msk.msra.mxu0 %vm50_vm3, %v15190_v55  ;;  %11695 = vmatprep.mubr.msk.f32.mxu0 %vm12784_vm0, %v16310_v18  ;;  %v6329_v55 = vmul.f32 %v12630_v15, %v15238_v45 }
0x1bda   :  { %11718 = vmatprep.subr.mxu0 %v16310_v18 }
0x1bdb   :  { %11719 = vmatpush3.msra.mxu0 %v15200_v16  ;;  %v7307_v21 = vpop.xlane.xlu1 %7306  ;;  %v6563_v16 = vmul.f32 %v12632_v22, %v15273_v5 }
0x1bdc   :  { %11720 = vmatprep.subr.mxu0 %v16310_v18  ;;  %11696 = vmatmul.mubr.msk.f32.gmra.mxu0 %vm421_vm6, %v6328_v8 }
0x1bdd   :  { %11721 = vmatpush3.msra.mxu0 %v15194_v30  ;;  %11698 = vmatprep.mubr.msk.f32.mxu0 %vm12784_vm0, %v16310_v18  ;;  %v12634_v30 = vpop.eup %12633 }
0x1bde   :  { %11746 = vmatprep.subr.mxu0 %v16310_v18  ;;  %v6564_v45 = vmul.f32 %v12634_v30, %v15245_v34  ;;  %v12636_v10 = vpop.eup %12635 }
0x1bdf   :  { %v7313_v0 = vpop.xlane.xlu1 %7312  ;;  %v6565_v5 = vmul.f32 %v12636_v10, %v15282_v25  ;;  %v12638_v34 = vpop.eup %12637 }
0x1be0   :  { %11699 = vmatmul.mubr.msk.f32.gmra.mxu0 %vm421_vm6, %v6329_v55  ;;  %v12640_v3 = vpop.eup %12639 }
0x1be1   :  { %11722 = vmatprep.mubr.msk.f32.mxu0 %vm12784_vm0, %v16310_v18  ;;  %v6846_v25 = vmul.f32 %v12640_v3, %v15255_v20  ;;  %v12642_v60 = vpop.eup %12641 }
0x1be2   :  { %v12644_v59 = vpop.eup %12643 }
0x1be3   :  { %v7543_v53 = vpop.xlane.xlu1 %7542  ;;  %v7081_v20 = vmul.f32 %v12644_v59, %v15300_v38 }
0x1be4   :  { %11723 = vmatmul.mubr.msk.f32.vlgmr.msra.gmra.mxu0 %vm421_vm6, %v6563_v16 }
0x1be5   :  { %11747 = vmatpush3.msk.msra.mxu0 %vm50_vm3, %v15198_v61  ;;  %11725 = vmatprep.mubr.msk.f32.mxu0 %vm12784_vm0, %v16310_v18  ;;  %v7074_v61 = vpop.xlane.xlu0 %7073 }
0x1be6   :  { %11748 = vmatprep.subr.mxu0 %v16310_v18  ;;  %12645 = vrcp.f32 %v7074_v61 }
0x1be7   :  { %11749 = vmatpush3.msra.mxu0 %v15206_v14  ;;  %v6845_v14 = vmul.f32 %v12638_v34, %v15287_v48  ;;  %12647 = vrcp.f32 %v7077_v43  ;;  %v12258_v34 = vld [vmem:[%s16286_s4 + $0x20] sm:$0xff]  }
0x1be8   :  { %11750 = vmatprep.subr.mxu0 %v16310_v18  ;;  %11726 = vmatmul.mubr.msk.f32.gmra.mxu0 %vm421_vm6, %v6564_v45  ;;  %12649 = vrcp.f32 %v7307_v21 }
0x1be9   :  { %11751 = vmatpush3.msra.mxu0 %v15204_v19  ;;  %11728 = vmatprep.mubr.msk.f32.mxu0 %vm12784_vm0, %v16310_v18  ;;  %v7310_v27 = vpop.xlane.xlu0 %7309  ;;  %v7325_v19 = vpop.permute.xlu1 %7324 }
0x1bea   :  { %11776 = vmatprep.subr.mxu0 %v16310_v18  ;;  %12651 = vrcp.f32 %v7310_v27 }
0x1beb   :  { %12653 = vrcp.f32 %v7313_v0  ;;  %v12257_v0 = vld [vmem:[%s16286_s4 + $0x28] sm:$0xff]  }
0x1bec   :  { %11729 = vmatmul.mubr.msk.f32.gmra.mxu0 %vm421_vm6, %v6565_v5  ;;  %12655 = vrcp.f32 %v7543_v53  ;;  %11852 = vmatpush3.bf16.msra.mxu1 %v12257_v0 }
0x1bed   :  { %11752 = vmatprep.mubr.msk.f32.mxu0 %vm12784_vm0, %v16310_v18  ;;  %v7085_v48 = vpop.permute.xlu0 %7084  ;;  %v7323_v2 = vpop.permute.xlu1 %7322  ;;  %11853 = vmatprep.subr.bf16.mxu1 %v16310_v18 }
0x1bf0   :  { %11753 = vmatmul.mubr.msk.f32.vlgmr.msra.gmra.mxu0 %vm421_vm6, %v6845_v14  ;;  %11854 = vmatpush3.bf16.msra.mxu1 %v12258_v34 }
0x1bf1   :  { %11777 = vmatpush3.msk.msra.mxu0 %vm50_vm3, %v15322_v42  ;;  %11755 = vmatprep.mubr.msk.f32.mxu0 %vm12784_vm0, %v16310_v18  ;;  %v6847_v42 = vmul.f32 %v12642_v60, %v15292_v23 }
0x1bf2   :  { %11778 = vmatprep.subr.mxu0 %v16310_v18  ;;  %11883 = vmatprep.subr.bf16.mxu1 %v16310_v18 }
0x1bf3   :  { %11779 = vmatpush3.msra.mxu0 %v15361_v4  ;;  %v7321_v4 = vpop.permute.xlu1 %7320  ;;  %v12646_v9 = vpop.eup %12645 }
0x1bf4   :  { %11780 = vmatprep.subr.mxu0 %v16310_v18  ;;  %11756 = vmatmul.mubr.msk.f32.gmra.mxu0 %vm421_vm6, %v6846_v25  ;;  %v7082_v23 = vmul.f32 %v12646_v9, %v15275_v33  ;;  %v12648_v49 = vpop.eup %12647 }
0x1bf5   :  { %11781 = vmatpush3.msra.mxu0 %v7085_v48  ;;  %11758 = vmatprep.mubr.msk.f32.mxu0 %vm12784_vm0, %v16310_v18  ;;  %v7083_v38 = vmul.f32 %v12648_v49, %v15304_v54  ;;  %v12650_v11 = vpop.eup %12649 }
0x1bf6   :  { %11806 = vmatprep.subr.mxu0 %v16310_v18  ;;  %v7317_v33 = vmul.f32 %v12650_v11, %v15308_v41 }
0x1bf7   :  { %v7561_v57 = vpop.permute.xlu1 %7560  ;;  %v12652_v35 = vpop.eup %12651 }
0x1bf8   :  { %11759 = vmatmul.mubr.msk.f32.gmra.mxu0 %vm421_vm6, %v6847_v42  ;;  %v7318_v54 = vmul.f32 %v12652_v35, %v15294_v28  ;;  %v12654_v29 = vpop.eup %12653 }
0x1bf9   :  { %11782 = vmatprep.mubr.msk.f32.mxu0 %vm12784_vm0, %v16310_v18  ;;  %v7319_v41 = vmul.f32 %v12654_v29, %v15312_v51  ;;  %v12656_v58 = vpop.eup %12655 }
0x1bfa   :  { %v7553_v28 = vmul.f32 %v12656_v58, %v15316_v6 }
0x1bfb   :  { %v7559_v46 = vpop.permute.xlu1 %7558 }
0x1bfc   :  { %11783 = vmatmul.mubr.msk.f32.vlgmr.msra.gmra.mxu0 %vm421_vm6, %v7081_v20 }
0x1bfd   :  { %11807 = vmatpush3.msk.msra.mxu0 %vm50_vm3, %v7325_v19  ;;  %11785 = vmatprep.mubr.msk.f32.mxu0 %vm12784_vm0, %v16310_v18 }
0x1bfe   :  { %11808 = vmatprep.subr.mxu0 %v16310_v18 }
0x1bff   :  { %11809 = vmatpush3.msra.mxu0 %v7323_v2  ;;  %v7557_v26 = vpop.permute.xlu1 %7556 }
0x1c00   :  { %11810 = vmatprep.subr.mxu0 %v16310_v18  ;;  %11786 = vmatmul.mubr.msk.f32.gmra.mxu0 %vm421_vm6, %v7082_v23 }
0x1c01   :  { %11811 = vmatpush3.msra.mxu0 %v7321_v4  ;;  %11788 = vmatprep.mubr.msk.f32.mxu0 %vm12784_vm0, %v16310_v18 }
0x1c02   :  { %11836 = vmatprep.subr.mxu0 %v16310_v18 }
0x1c04   :  { %11789 = vmatmul.mubr.msk.f32.gmra.mxu0 %vm421_vm6, %v7083_v38 }
0x1c05   :  { %11812 = vmatprep.mubr.msk.f32.mxu0 %vm12784_vm0, %v16310_v18 }
0x1c07   :  { %v7546_v12 = vpop.xlane.xlu0 %7545 }
0x1c08   :  { %12657 = vrcp.f32 %v7546_v12  ;;  %11813 = vmatmul.mubr.msk.f32.vlgmr.msra.gmra.mxu0 %vm421_vm6, %v7317_v33 }
0x1c09   :  { %11837 = vmatpush3.msk.msra.mxu0 %vm50_vm3, %v7561_v57  ;;  %11815 = vmatprep.mubr.msk.f32.mxu0 %vm12784_vm0, %v16310_v18 }
0x1c0a   :  { %11838 = vmatprep.subr.mxu0 %v16310_v18 }
0x1c0b   :  { %11839 = vmatpush3.msra.mxu0 %v7559_v46 }
0x1c0c   :  { %11840 = vmatprep.subr.mxu0 %v16310_v18  ;;  %11816 = vmatmul.mubr.msk.f32.gmra.mxu0 %vm421_vm6, %v7318_v54 }
0x1c0d   :  { %11841 = vmatpush3.msra.mxu0 %v7557_v26  ;;  %11818 = vmatprep.mubr.msk.f32.mxu0 %vm12784_vm0, %v16310_v18 }
0x1c0e   :  { %11867 = vmatprep.subr.bf16.mxu0 %v16310_v18 }
0x1c10   :  { %11819 = vmatmul.mubr.msk.f32.gmra.mxu0 %vm421_vm6, %v7319_v41 }
0x1c11   :  { %11842 = vmatprep.mubr.msk.f32.mxu0 %vm12784_vm0, %v16310_v18 }
0x1c14   :  { %11843 = vmatmul.mubr.msk.f32.vlgmr.msra.gmra.mxu0 %vm421_vm6, %v7553_v28 }
0x1c15   :  { %v12658_v32 = vpop.eup %12657  ;;  %11845 = vmatprep.mubr.msk.f32.mxu0 %vm12784_vm0, %v16310_v18 }
0x1c16   :  { %v7554_v24 = vmul.f32 %v12658_v32, %v15335_v7 }
0x1c18   :  { %11846 = vmatmul.mubr.msk.f32.gmra.mxu0 %vm421_vm6, %v7554_v24 }
0x1c19   :  { %11848 = vmatprep.mubr.msk.f32.mxu0 %vm12784_vm0, %v16310_v18 }
0x1c2c   :  { %v7549_v51 = vpop.xlane.xlu1 %7548 }
0x1c2d   :  { %12659 = vrcp.f32 %v7549_v51 }
0x1c3a   :  { %v12660_v37 = vpop.eup %12659 }
0x1c3b   :  { %v7555_v44 = vmul.f32 %v12660_v37, %v15357_v50 }
0x1c3d   :  { %11849 = vmatmul.mubr.msk.f32.gmra.mxu0 %vm421_vm6, %v7555_v44 }
0x1c3e   :  { %11871 = vmatprep.mubr.msk.bf16.mxu0 %vm12784_vm0, %v16310_v18 }
0x1c53   :  { %v15486_v6 = vpop.f32.mrf.mxu0 }
0x1c55   :  { %v11634_v63 = vpop.f32.mrf.mxu0 }
0x1c57   :  { %v15488_v43 = vpop.f32.mrf.mxu0 }
0x1c59   :  { %v11637_v7 = vpop.f32.mrf.mxu0 }
0x1c88   :  { %v15490_v8 = vpop.f32.mrf.mxu0 }
0x1c8a   :  { %v11640_v15 = vpop.f32.mrf.mxu0 }
0x1c8c   :  { %v6179_v21 = vpop.f32.mrf.mxu0 }
0x1c8e   :  { %v11664_v55 = vpop.f32.mrf.mxu0 }
0x1c90   :  { %v6184_v22 = vpop.f32.mrf.mxu0 }
0x1c91   :  { %v12184_v52 = vpack.i.bf16 %v6184_v22, %v6179_v21 }
0x1c92   :  { %v11667_v16 = vpop.f32.mrf.mxu0 }
0x1c93   :  { %12185 = vrot.lane.b32.xlu0 %v12184_v52, %s12796_s18 }
0x1c94   :  { %v6189_v50 = vpop.f32.mrf.mxu0 }
0x1c96   :  { %v11670_v30 = vpop.f32.mrf.mxu0 }
0x1c98   :  { %v6415_v45 = vpop.f32.mrf.mxu0 }
0x1c9a   :  { %v11694_v10 = vpop.f32.mrf.mxu0 }
0x1c9c   :  { %v6420_v53 = vpop.f32.mrf.mxu0 }
0x1c9d   :  { %v12189_v61 = vpack.i.bf16 %v6420_v53, %v6415_v45 }
0x1c9e   :  { %v11697_v5 = vpop.f32.mrf.mxu0 }
0x1c9f   :  { %12190 = vrot.lane.b32.xlu0 %v12189_v61, %s12797_s21 }
0x1ca0   :  { %v6425_v14 = vpop.f32.mrf.mxu0 }
0x1ca2   :  { %v11700_v27 = vpop.f32.mrf.mxu0 }
0x1ca4   :  { %v6651_v19 = vpop.f32.mrf.mxu0 }
0x1ca6   :  { %v11724_v3 = vpop.f32.mrf.mxu0 }
0x1ca8   :  { %v6656_v25 = vpop.f32.mrf.mxu0 }
0x1ca9   :  { %v12194_v60 = vpack.i.bf16 %v6656_v25, %v6651_v19 }
0x1caa   :  { %v11727_v48 = vpop.f32.mrf.mxu0 }
0x1cab   :  { %12195 = vrot.lane.b32.xlu0 %v12194_v60, %s12798_s0 }
0x1cac   :  { %v6661_v2 = vpop.f32.mrf.mxu0 }
0x1cae   :  { %v11730_v42 = vpop.f32.mrf.mxu0 }
0x1cb0   :  { %v15503_v59 = vpop.f32.mrf.mxu0 }
0x1cb2   :  { %v11754_v20 = vpop.f32.mrf.mxu0 }
0x1cb4   :  { %v6938_v4 = vpop.f32.mrf.mxu0 }
0x1cb6   :  { %v11757_v9 = vpop.f32.mrf.mxu0 }
0x1cb8   :  { %v15505_v23 = vpop.f32.mrf.mxu0 }
0x1cba   :  { %v11760_v49 = vpop.f32.mrf.mxu0 }
0x1cbc   :  { %v7169_v57 = vpop.f32.mrf.mxu0 }
0x1cbe   :  { %v11784_v38 = vpop.f32.mrf.mxu0 }
0x1cc0   :  { %v7174_v11 = vpop.f32.mrf.mxu0 }
0x1cc1   :  { %v12199_v33 = vpack.i.bf16 %v7174_v11, %v7169_v57 }
0x1cc2   :  { %v11787_v46 = vpop.f32.mrf.mxu0 }
0x1cc3   :  { %12200 = vrot.lane.b32.xlu0 %v12199_v33, %s12796_s18 }
0x1cc4   :  { %v7179_v35 = vpop.f32.mrf.mxu0 }
0x1cc6   :  { %v11790_v12 = vpop.f32.mrf.mxu0 }
0x1cc7   :  { %6672 = vrot.lane.b32.xlu0 %v6189_v50, %s12796_s18 }
0x1cc8   :  { %v7405_v54 = vpop.f32.mrf.mxu0 }
0x1cca   :  { %v11814_v29 = vpop.f32.mrf.mxu0 }
0x1ccb   :  { %6684 = vrot.lane.b32.xlu0 %v6425_v14, %s12797_s21 }
0x1ccc   :  { %v7410_v26 = vpop.f32.mrf.mxu0 }
0x1ccd   :  { %v12204_v41 = vpack.i.bf16 %v7410_v26, %v7405_v54 }
0x1cce   :  { %v11817_v58 = vpop.f32.mrf.mxu0 }
0x1ccf   :  { %12205 = vrot.lane.b32.xlu1 %v12204_v41, %s12797_s21 }
0x1cd0   :  { %v7415_v28 = vpop.f32.mrf.mxu0 }
0x1cd2   :  { %v11820_v32 = vpop.f32.mrf.mxu0 }
0x1cd3   :  { %7662 = vrot.lane.b32.xlu1 %v7179_v35, %s12796_s18 }
0x1cd4   :  { %v7641_v24 = vpop.f32.mrf.mxu0 }
0x1cd6   :  { %v11844_v51 = vpop.f32.mrf.mxu0 }
0x1cd8   :  { %v7646_v37 = vpop.f32.mrf.mxu0 }
0x1cd9   :  { %v12209_v44 = vpack.i.bf16 %v7646_v37, %v7641_v24 }
0x1cda   :  { %v11847_v63 = vpop.f32.mrf.mxu0 }
0x1cdb   :  { %12210 = vrot.lane.b32.xlu0 %v12209_v44, %s12798_s0 }
0x1cdf   :  { %6696 = vrot.lane.b32.xlu0 %v6661_v2, %s12798_s0 }
0x1ce3   :  { %7674 = vrot.lane.b32.xlu0 %v7415_v28, %s12797_s21 }
0x1cfd   :  { %v7651_v7 = vpop.f32.mrf.mxu0 }
0x1cfe   :  { %7686 = vrot.lane.b32.xlu1 %v7651_v7, %s12798_s0 }
0x1cff   :  { %v11850_v15 = vpop.f32.mrf.mxu0 }
0x1d00   :  { %v15554_v15 = vld [vmem:[%s16285_s7 + $0x10] sm:$0xff] }
0x1d05   :  { %v12186_v21 = vpop.permute.xlu0 %12185 }
0x1d06   :  { %v12188_v22 = vunpack.i.h.bf16 %v12186_v21  ;;  %v12187_v52 = vunpack.i.l.bf16 %v12186_v21 }
0x1d08   :  { %v6702_v30 = vsel %vm328_vm5, %v15488_v43, %v12188_v22  ;;  %v6701_v45 = vsel %vm328_vm5, %v15486_v6, %v12187_v52 }
0x1d11   :  { %v12191_v55 = vpop.permute.xlu0 %12190 }
0x1d12   :  { %v12193_v16 = vunpack.i.h.bf16 %v12191_v55  ;;  %v12192_v50 = vunpack.i.l.bf16 %v12191_v55 }
0x1d14   :  { %v6705_v61 = vsel %vm1302_vm9, %v6702_v30, %v12193_v16  ;;  %v6704_v5 = vsel %vm1302_vm9, %v6701_v45, %v12192_v50 }
0x1d1d   :  { %v12196_v0 = vpop.permute.xlu0 %12195 }
0x1d1e   :  { %v12198_v10 = vunpack.i.h.bf16 %v12196_v0  ;;  %v12197_v53 = vunpack.i.l.bf16 %v12196_v0 }
0x1d20   :  { %v6708_v34 = vsel %vm1306_vm10, %v6705_v61, %v12198_v10  ;;  %v6707_v14 = vsel %vm1306_vm10, %v6704_v5, %v12197_v53 }
0x1d21   :  { %v7712_v27 = vpack.c.bf16 %v6708_v34, %v6707_v14 }
0x1d23   :  { %11856 = vmatmul.mubr.msk.bf16.vlgmr.msra.gmra.mxu1 %vm145_vm2, %v7712_v27 }
0x1d24   :  { %11859 = vmatprep.mubr.msk.bf16.mxu1 %vm12784_vm0, %v16310_v18 }
0x1d35   :  { %v12201_v43 = vpop.permute.xlu0 %12200 }
0x1d36   :  { %v12203_v25 = vunpack.i.h.bf16 %v12201_v43  ;;  %v12202_v60 = vunpack.i.l.bf16 %v12201_v43 }
0x1d38   :  { %v7692_v20 = vsel %vm328_vm5, %v6938_v4, %v12203_v25  ;;  %v7691_v9 = vsel %vm328_vm5, %v15503_v59, %v12202_v60 }
0x1d39   :  { %v6673_v19 = vpop.permute.xlu0 %6672 }
0x1d3a   :  { %v6703_v33 = vsel %vm328_vm5, %v15490_v8, %v6673_v19 }
0x1d3d   :  { %v6685_v6 = vpop.permute.xlu0 %6684 }
0x1d3e   :  { %v6706_v12 = vsel %vm1302_vm9, %v6703_v33, %v6685_v6 }
0x1d41   :  { %v12206_v3 = vpop.permute.xlu1 %12205 }
0x1d42   :  { %v12208_v48 = vunpack.i.h.bf16 %v12206_v3  ;;  %v12207_v2 = vunpack.i.l.bf16 %v12206_v3 }
0x1d44   :  { %v7695_v38 = vsel %vm1302_vm9, %v7692_v20, %v12208_v48  ;;  %v7694_v11 = vsel %vm1302_vm9, %v7691_v9, %v12207_v2 }
0x1d45   :  { %v7663_v8 = vpop.permute.xlu1 %7662 }
0x1d46   :  { %v7693_v32 = vsel %vm328_vm5, %v15505_v23, %v7663_v8  ;;  %v7805_v23 = vrot.slane %v15554_v15, %v13705_v62 }
0x1d4d   :  { %v12211_v42 = vpop.permute.xlu0 %12210 }
0x1d4e   :  { %v12213_v49 = vunpack.i.h.bf16 %v12211_v42  ;;  %v12212_v57 = vunpack.i.l.bf16 %v12211_v42 }
0x1d50   :  { %v7698_v46 = vsel %vm1306_vm10, %v7695_v38, %v12213_v49  ;;  %v7697_v35 = vsel %vm1306_vm10, %v7694_v11, %v12212_v57 }
0x1d51   :  { %v7704_v54 = vrot.slane %v7698_v46, 7  ;;  %v7703_v4 = vrot.slane %v7697_v35, 7  ;;  %v6697_v29 = vpop.permute.xlu0 %6696 }
0x1d52   :  { %v6709_v59 = vsel %vm1306_vm10, %v6706_v12, %v6697_v29  ;;  %v12259_v29 = vld [vmem:[%s16287_s5 + $0x28] sm:$0xff]  }
0x1d53   :  { %v7705_v26 = vsel %vm50_vm3, %v7703_v4, %v7704_v54  ;;  %v7711_v41 = vsel %vm50_vm3, %v6709_v59, %v7703_v4  ;;  %11868 = vmatpush3.bf16.msra.mxu0 %v12259_v29  ;;  %v12260_v59 = vld [vmem:[%s16287_s5 + $0x20] sm:$0xff]  }
0x1d54   :  { %v7713_v58 = vpack.c.bf16 %v7705_v26, %v7711_v41  ;;  %11869 = vmatprep.subr.bf16.mxu0 %v16310_v18 }
0x1d55   :  { %v7675_v28 = vpop.permute.xlu0 %7674 }
0x1d56   :  { %11860 = vmatmul.mubr.msk.bf16.gmra.mxu1 %vm145_vm2, %v7713_v58  ;;  %v7696_v24 = vsel %vm1302_vm9, %v7693_v32, %v7675_v28 }
0x1d57   :  { %11863 = vmatprep.mubr.msk.bf16.mxu1 %vm12784_vm0, %v16310_v18  ;;  %11870 = vmatpush3.bf16.msra.mxu0 %v12260_v59 }
0x1d58   :  { %11911 = vmatprep.subr.bf16.mxu0 %v16310_v18 }
0x1d70   :  { %v7687_v51 = vpop.permute.xlu1 %7686 }
0x1d71   :  { %v7699_v37 = vsel %vm1306_vm10, %v7696_v24, %v7687_v51 }
0x1d72   :  { %v7706_v44 = vrot.slane %v7699_v37, 7 }
0x1d74   :  { %v7707_v63 = vsel %vm50_vm3, %v7704_v54, %v7706_v44 }
0x1d75   :  { %v7714_v7 = vpack.c.bf16 %v7707_v63, %v7707_v63 }
0x1d77   :  { %11864 = vmatmul.mubr.msk.bf16.gmra.mxu1 %vm145_vm2, %v7714_v7 }
0x1d78   :  { %11899 = vmatprep.mubr.msk.bf16.mxu1 %vm12784_vm0, %v16310_v18 }
0x1de3   :  { %v7775_v21 = vpop.f32.mrf.mxu1 }
0x1de4   :  { %v7797_v55 = vadd.f32 %v7775_v21, %v14769_v31 }
0x1de5   :  { %v11857_v22 = vpop.f32.mrf.mxu1 }
0x1de6   :  { %v15559_v52 = vadd.f32 %v7805_v23, %v7797_v55 }
0x1de7   :  { %v7778_v16 = vpop.f32.mrf.mxu1 }
0x1de8   :  { %v7798_v50 = vadd.f32 %v7778_v16, %v14774_v17  ;;  %v7811_v0 = vsel %vm145_vm2, %v15559_v52, 0.0 }
0x1de9   :  { %v11858_v30 = vpop.f32.mrf.mxu1  ;;  %7812 = vadd.xlane.f32.xlu0 %v7811_v0 }
0x1dea   :  { %v15564_v45 = vadd.f32 %v7805_v23, %v7798_v50 }
0x1dec   :  { %v7814_v10 = vsel %vm145_vm2, %v15564_v45, 0.0 }
0x1ded   :  { %7815 = vadd.xlane.f32.xlu1 %v7814_v10 }
0x1e16   :  { %v7783_v53 = vpop.f32.mrf.mxu1 }
0x1e17   :  { %v7799_v61 = vadd.f32 %v7783_v53, %v14779_v36 }
0x1e18   :  { %v11861_v5 = vpop.f32.mrf.mxu1 }
0x1e19   :  { %v15569_v34 = vadd.f32 %v7805_v23, %v7799_v61  ;;  %v7879_v61 = vrot.slane %v15554_v15, %v13758_v13 }
0x1e1a   :  { %v7786_v14 = vpop.f32.mrf.mxu1 }
0x1e1b   :  { %v7800_v27 = vadd.f32 %v7786_v14, %v14784_v47  ;;  %v7817_v43 = vsel %vm145_vm2, %v15569_v34, 0.0 }
0x1e1c   :  { %7818 = vadd.xlane.f32.xlu0 %v7817_v43  ;;  %v11862_v19 = vpop.f32.mrf.mxu1 }
0x1e1d   :  { %v15574_v3 = vadd.f32 %v7805_v23, %v7800_v27  ;;  %v7888_v27 = vrot.slane %v15554_v15, %v13763_v40 }
0x1e1f   :  { %v7820_v6 = vsel %vm145_vm2, %v15574_v3, 0.0 }
0x1e20   :  { %7821 = vadd.xlane.f32.xlu0 %v7820_v6 }
0x1e37   :  { %v7791_v25 = vpop.f32.mrf.mxu1 }
0x1e38   :  { %v7801_v60 = vadd.f32 %v7791_v25, %v14789_v56 }
0x1e39   :  { %v11865_v48 = vpop.f32.mrf.mxu1 }
0x1e3a   :  { %v15579_v2 = vadd.f32 %v7805_v23, %v7801_v60 }
0x1e3b   :  { %v7794_v42 = vpop.f32.mrf.mxu1 }
0x1e3c   :  { %v7823_v20 = vsel %vm158_vm4, %v15579_v2, 0.0 }
0x1e3d   :  { %7824 = vadd.xlane.f32.xlu0 %v7823_v20  ;;  %v11866_v9 = vpop.f32.mrf.mxu1 }
0x1e72   :  { %v7813_v49 = vpop.xlane.xlu0 %7812 }
0x1e73   :  { %v7826_v57 = vmul.f32 0.03125, %v7813_v49 }
0x1e75   :  { %v7831_v38 = vsub.f32 %v15559_v52, %v7826_v57 }
0x1e76   :  { %v7816_v11 = vpop.xlane.xlu1 %7815 }
0x1e77   :  { %v7827_v33 = vmul.f32 0.03125, %v7816_v11  ;;  %v7836_v46 = vmul.f32 %v7831_v38, %v7831_v38 }
0x1e79   :  { %v7832_v35 = vsub.f32 %v15564_v45, %v7827_v33  ;;  %v7841_v12 = vsel %vm145_vm2, %v7836_v46, 0.0 }
0x1e7a   :  { %7842 = vadd.xlane.f32.xlu1 %v7841_v12 }
0x1e7b   :  { %v7837_v54 = vmul.f32 %v7832_v35, %v7832_v35 }
0x1e7d   :  { %v7844_v4 = vsel %vm145_vm2, %v7837_v54, 0.0 }
0x1e7e   :  { %7845 = vadd.xlane.f32.xlu0 %v7844_v4 }
0x1ea5   :  { %v7819_v26 = vpop.xlane.xlu0 %7818 }
0x1ea6   :  { %v7828_v41 = vmul.f32 0.03125, %v7819_v26 }
0x1ea8   :  { %v7833_v58 = vsub.f32 %v15569_v34, %v7828_v41 }
0x1ea9   :  { %v7822_v8 = vpop.xlane.xlu0 %7821 }
0x1eaa   :  { %v7829_v28 = vmul.f32 0.03125, %v7822_v8  ;;  %v7838_v32 = vmul.f32 %v7833_v58, %v7833_v58 }
0x1eac   :  { %v7834_v24 = vsub.f32 %v15574_v3, %v7829_v28  ;;  %v7847_v51 = vsel %vm145_vm2, %v7838_v32, 0.0 }
0x1ead   :  { %7848 = vadd.xlane.f32.xlu1 %v7847_v51 }
0x1eae   :  { %v7839_v37 = vmul.f32 %v7834_v24, %v7834_v24 }
0x1eb0   :  { %v7850_v44 = vsel %vm145_vm2, %v7839_v37, 0.0 }
0x1eb1   :  { %7851 = vadd.xlane.f32.xlu0 %v7850_v44  ;;  %v12262_v44 = vld [vmem:[%s16288_s6 + $0xb0] sm:$0xff]  }
0x1ec6   :  { %v7825_v63 = vpop.xlane.xlu0 %7824 }
0x1ec7   :  { %v7830_v7 = vmul.f32 0.03125, %v7825_v63  ;;  %v12263_v63 = vld [vmem:[%s16288_s6 + $0xa8] sm:$0xff]  }
0x1ec9   :  { %v7835_v23 = vsub.f32 %v15579_v2, %v7830_v7  ;;  %v12264_v7 = vld [vmem:[%s16288_s6 + $0xa0] sm:$0xff]  }
0x1ecb   :  { %v7840_v21 = vmul.f32 %v7835_v23, %v7835_v23 }
0x1ecd   :  { %v7853_v55 = vsel %vm158_vm4, %v7840_v21, 0.0  ;;  %v12266_v21 = vld [vmem:[%s16288_s6 + $0x90] sm:$0xff]  }
0x1ece   :  { %7854 = vadd.xlane.f32.xlu1 %v7853_v55  ;;  %v12267_v55 = vld [vmem:[%s16288_s6 + $0x88] sm:$0xff]  }
0x1f03   :  { %v7843_v22 = vpop.xlane.xlu1 %7842 }
0x1f04   :  { %v7856_v16 = vmul.f32 0.03125, %v7843_v22  ;;  %v12268_v22 = vld [vmem:[%s16288_s6 + $0x80] sm:$0xff]  }
0x1f06   :  { %v7861_v50 = vadd.f32 1e-05, %v7856_v16  ;;  %v15648_v16 = vrot.slane %v15554_v15, %v13809_v1 }
0x1f07   :  { %v7846_v0 = vpop.xlane.xlu0 %7845 }
0x1f08   :  { %12661 = vrsqrt.f32 %v7861_v50  ;;  %v7857_v30 = vmul.f32 0.03125, %v7846_v0 }
0x1f0a   :  { %v7862_v10 = vadd.f32 1e-05, %v7857_v30 }
0x1f0c   :  { %12663 = vrsqrt.f32 %v7862_v10 }
0x1f15   :  { %v12662_v53 = vpop.eup %12661 }
0x1f16   :  { %v7871_v5 = vmul.f32 %v12662_v53, %v7831_v38 }
0x1f18   :  { %v7880_v43 = vmul.f32 %v7879_v61, %v7871_v5 }
0x1f19   :  { %v12664_v14 = vpop.eup %12663 }
0x1f1a   :  { %v7872_v19 = vmul.f32 %v12664_v14, %v7832_v35  ;;  %v7889_v25 = vadd.f32 %v7888_v27, %v7880_v43 }
0x1f1c   :  { %v7881_v6 = vmul.f32 %v7879_v61, %v7872_v19 }
0x1f1e   :  { %v7890_v60 = vadd.f32 %v7888_v27, %v7881_v6 }
0x1f20   :  { %v7894_v48 = vpack.c.bf16 %v7890_v60, %v7889_v25 }
0x1f22   :  { %11872 = vmatmul.mubr.msk.bf16.vlgmr.msra.gmra.mxu0 %vm145_vm2, %v7894_v48 }
0x1f23   :  { %11875 = vmatprep.mubr.msk.bf16.mxu0 %vm12784_vm0, %v16310_v18 }
0x1f36   :  { %v7849_v42 = vpop.xlane.xlu1 %7848 }
0x1f37   :  { %v7858_v20 = vmul.f32 0.03125, %v7849_v42 }
0x1f39   :  { %v7863_v9 = vadd.f32 1e-05, %v7858_v20 }
0x1f3a   :  { %v7852_v49 = vpop.xlane.xlu0 %7851 }
0x1f3b   :  { %12665 = vrsqrt.f32 %v7863_v9  ;;  %v7859_v57 = vmul.f32 0.03125, %v7852_v49 }
0x1f3d   :  { %v7864_v38 = vadd.f32 1e-05, %v7859_v57 }
0x1f3f   :  { %12667 = vrsqrt.f32 %v7864_v38 }
0x1f48   :  { %v12666_v11 = vpop.eup %12665 }
0x1f49   :  { %v7873_v33 = vmul.f32 %v12666_v11, %v7833_v58 }
0x1f4b   :  { %v7882_v12 = vmul.f32 %v7879_v61, %v7873_v33 }
0x1f4c   :  { %v12668_v46 = vpop.eup %12667 }
0x1f4d   :  { %v7874_v35 = vmul.f32 %v12668_v46, %v7834_v24  ;;  %v7891_v4 = vadd.f32 %v7888_v27, %v7882_v12  ;;  %v12261_v24 = vld [vmem:[%s16288_s6 + $0xb8] sm:$0xff]  }
0x1f4e   :  { %11884 = vmatpush3.bf16.msra.mxu1 %v12261_v24 }
0x1f4f   :  { %v7883_v54 = vmul.f32 %v7879_v61, %v7874_v35  ;;  %11885 = vmatprep.subr.bf16.mxu1 %v16310_v18 }
0x1f51   :  { %v7892_v29 = vadd.f32 %v7888_v27, %v7883_v54 }
0x1f52   :  { %11886 = vmatpush3.bf16.msra.mxu1 %v12262_v44 }
0x1f53   :  { %v7895_v59 = vpack.c.bf16 %v7892_v29, %v7891_v4  ;;  %11887 = vmatprep.subr.bf16.mxu1 %v16310_v18 }
0x1f55   :  { %11876 = vmatmul.mubr.msk.bf16.gmra.mxu0 %vm145_vm2, %v7895_v59 }
0x1f56   :  { %11879 = vmatprep.mubr.msk.bf16.mxu0 %vm12784_vm0, %v16310_v18  ;;  %11888 = vmatpush3.bf16.msra.mxu1 %v12263_v63 }
0x1f57   :  { %v7855_v26 = vpop.xlane.xlu1 %7854  ;;  %11889 = vmatprep.subr.bf16.mxu1 %v16310_v18 }
0x1f58   :  { %v7860_v41 = vmul.f32 0.03125, %v7855_v26 }
0x1f5a   :  { %v7865_v8 = vadd.f32 1e-05, %v7860_v41  ;;  %11890 = vmatpush3.bf16.msra.mxu1 %v12264_v7 }
0x1f5b   :  { %11891 = vmatprep.subr.bf16.mxu1 %v16310_v18 }
0x1f5c   :  { %12669 = vrsqrt.f32 %v7865_v8 }
0x1f69   :  { %v12670_v28 = vpop.eup %12669 }
0x1f6a   :  { %v7875_v32 = vmul.f32 %v12670_v28, %v7835_v23  ;;  %v12265_v23 = vld [vmem:[%s16288_s6 + $0x98] sm:$0xff]  }
0x1f6b   :  { %11892 = vmatpush3.bf16.msra.mxu1 %v12265_v23 }
0x1f6c   :  { %v7884_v51 = vmul.f32 %v7879_v61, %v7875_v32  ;;  %11893 = vmatprep.subr.bf16.mxu1 %v16310_v18 }
0x1f6e   :  { %v7893_v58 = vadd.f32 %v7888_v27, %v7884_v51 }
0x1f6f   :  { %11894 = vmatpush3.bf16.msra.mxu1 %v12266_v21 }
0x1f70   :  { %v7896_v37 = vpack.c.bf16 %v7893_v58, %v7893_v58  ;;  %11895 = vmatprep.subr.bf16.mxu1 %v16310_v18 }
0x1f72   :  { %11880 = vmatmul.mubr.msk.bf16.gmra.mxu0 %vm145_vm2, %v7896_v37 }
0x1f73   :  { %11915 = vmatprep.mubr.msk.bf16.mxu0 %vm12784_vm0, %v16310_v18  ;;  %11896 = vmatpush3.bf16.msra.mxu1 %v12267_v55 }
0x1f74   :  { %11897 = vmatprep.subr.bf16.mxu1 %v16310_v18 }
0x1f77   :  { %11898 = vmatpush3.bf16.msra.mxu1 %v12268_v22 }
0x1f78   :  { %11942 = vmatprep.subr.mxu1 %v16310_v18 }
0x1fe2   :  { %v7961_v50 = vpop.f32.mrf.mxu0 }
0x1fe3   :  { %v7962_v0 = vadd.f32 %v7961_v50, %v15648_v16 }
0x1fe4   :  { %v11873_v30 = vpop.f32.mrf.mxu0 }
0x1fe5   :  { %v7988_v10 = vmul.f32 0.70710677, %v7962_v0 }
0x1fe6   :  { %v7964_v53 = vpop.f32.mrf.mxu0 }
0x1fe7   :  { %v7993_v61 = vand.u32 2147483647, %v7988_v10  ;;  %v7965_v5 = vadd.f32 %v7964_v53, %v15648_v16  ;;  %vm8093_vm5 = vcmp.ge.f32.partialorder %v7988_v10, 0.0 }
0x1fe8   :  { %v11874_v14 = vpop.f32.mrf.mxu0 }
0x1fe9   :  { %v7998_v27 = vmul.f32 0.3275911, %v7993_v61  ;;  %v7989_v43 = vmul.f32 0.70710677, %v7965_v5  ;;  %v8063_v48 = vmul.f32 %v7993_v61, %v7993_v61 }
0x1feb   :  { %v8003_v19 = vadd.f32 1.0, %v7998_v27  ;;  %v7994_v6 = vand.u32 2147483647, %v7989_v43  ;;  %v8068_v42 = vsub.f32 0.0, %v8063_v48  ;;  %vm8094_vm10 = vcmp.ge.f32.partialorder %v7989_v43, 0.0 }
0x1fed   :  { %12671 = vrcp.f32 %v8003_v19  ;;  %v7999_v25 = vmul.f32 0.3275911, %v7994_v6  ;;  %v8064_v20 = vmul.f32 %v7994_v6, %v7994_v6  ;;  %v8073_v57 = vmul.f32 1.442695, %v8068_v42 }
0x1fef   :  { %v8004_v60 = vadd.f32 1.0, %v7999_v25  ;;  %v8069_v38 = vsub.f32 0.0, %v8064_v20  ;;  %v7983_v25 = vmul.f32 0.5, %v7962_v0 }
0x1ff1   :  { %12673 = vrcp.f32 %v8004_v60  ;;  %v8075_v12 = vmul.f32 1.442695, %v8069_v38  ;;  %v7984_v60 = vmul.f32 0.5, %v7965_v5 }
0x1ff2   :  { %12675 = vpow2.f32 %v8073_v57 }
0x1ff3   :  { %12677 = vpow2.f32 %v8075_v12 }
0x1ffa   :  { %v12672_v9 = vpop.eup %12671 }
0x1ffb   :  { %v8018_v49 = vmul.f32 1.0614054, %v12672_v9 }
0x1ffd   :  { %v8023_v11 = vadd.f32 -1.4531521, %v8018_v49 }
0x1ffe   :  { %v12674_v33 = vpop.eup %12673 }
0x1fff   :  { %v8028_v46 = vmul.f32 %v12672_v9, %v8023_v11  ;;  %v8019_v35 = vmul.f32 1.0614054, %v12674_v33  ;;  %v12676_v24 = vpop.eup %12675 }
0x2000   :  { %v12678_v21 = vpop.eup %12677 }
0x2001   :  { %v8033_v54 = vadd.f32 1.4214138, %v8028_v46  ;;  %v8024_v4 = vadd.f32 -1.4531521, %v8019_v35 }
0x2003   :  { %v8038_v29 = vmul.f32 %v12672_v9, %v8033_v54  ;;  %v8029_v59 = vmul.f32 %v12674_v33, %v8024_v4 }
0x2005   :  { %v8043_v26 = vadd.f32 -0.28449672, %v8038_v29  ;;  %v8034_v41 = vadd.f32 1.4214138, %v8029_v59 }
0x2007   :  { %v8048_v8 = vmul.f32 %v12672_v9, %v8043_v26  ;;  %v8039_v28 = vmul.f32 %v12674_v33, %v8034_v41 }
0x2009   :  { %v8053_v32 = vadd.f32 0.2548296, %v8048_v8  ;;  %v8044_v51 = vadd.f32 -0.28449672, %v8039_v28 }
0x200b   :  { %v8058_v58 = vmul.f32 %v12672_v9, %v8053_v32  ;;  %v8049_v37 = vmul.f32 %v12674_v33, %v8044_v51 }
0x200d   :  { %v8083_v44 = vmul.f32 %v12676_v24, %v8058_v58  ;;  %v8054_v63 = vadd.f32 0.2548296, %v8049_v37 }
0x200f   :  { %v8088_v7 = vsub.f32 1.0, %v8083_v44  ;;  %v8059_v23 = vmul.f32 %v12674_v33, %v8054_v63 }
0x2011   :  { %v8098_v55 = vsub.f32 0.0, %v8088_v7  ;;  %v8084_v22 = vmul.f32 %v12678_v21, %v8059_v23 }
0x2013   :  { %v8103_v50 = vsel %vm8093_vm5, %v8088_v7, %v8098_v55  ;;  %v8089_v30 = vsub.f32 1.0, %v8084_v22 }
0x2014   :  { %v8108_v14 = vadd.f32 1.0, %v8103_v50 }
0x2015   :  { %v8099_v53 = vsub.f32 0.0, %v8089_v30  ;;  %v7969_v61 = vpop.f32.mrf.mxu0 }
0x2016   :  { %v15653_v27 = vadd.f32 %v7969_v61, %v15648_v16  ;;  %v8113_v9 = vmul.f32 %v8108_v14, %v7983_v25 }
0x2017   :  { %v8104_v19 = vsel %vm8094_vm10, %v8089_v30, %v8099_v53  ;;  %v11877_v6 = vpop.f32.mrf.mxu0 }
0x2018   :  { %v8109_v48 = vadd.f32 1.0, %v8104_v19  ;;  %v15656_v42 = vmul.f32 0.70710677, %v15653_v27 }
0x2019   :  { %v7972_v20 = vpop.f32.mrf.mxu0 }
0x201a   :  { %v8114_v10 = vmul.f32 %v8109_v48, %v7984_v60  ;;  %v7995_v49 = vand.u32 2147483647, %v15656_v42  ;;  %v15660_v57 = vadd.f32 %v7972_v20, %v15648_v16  ;;  %vm8095_vm15 = vcmp.ge.f32.partialorder %v15656_v42, 0.0 }
0x201b   :  { %v11878_v43 = vpop.f32.mrf.mxu0 }
0x201c   :  { %v8118_v38 = vpack.c.bf16 %v8114_v10, %v8113_v9  ;;  %v8000_v11 = vmul.f32 0.3275911, %v7995_v49  ;;  %v15663_v33 = vmul.f32 0.70710677, %v15660_v57  ;;  %v8065_v12 = vmul.f32 %v7995_v49, %v7995_v49 }
0x201e   :  { %v8005_v0 = vadd.f32 1.0, %v8000_v11  ;;  %11900 = vmatmul.mubr.bf16.vlgmr.msra.gmra.mxu1 %v8118_v38  ;;  %v7996_v5 = vand.u32 2147483647, %v15663_v33  ;;  %v8070_v54 = vsub.f32 0.0, %v8065_v12  ;;  %vm8096_vm1 = vcmp.ge.f32.partialorder %v15663_v33, 0.0 }
0x201f   :  { %11903 = vmatprep.mubr.msk.bf16.mxu1 %vm12784_vm0, %v16310_v18 }
0x2020   :  { %12679 = vrcp.f32 %v8005_v0  ;;  %v8001_v46 = vmul.f32 0.3275911, %v7996_v5  ;;  %v8066_v4 = vmul.f32 %v7996_v5, %v7996_v5  ;;  %v8077_v26 = vmul.f32 1.442695, %v8070_v54 }
0x2022   :  { %v8006_v35 = vadd.f32 1.0, %v8001_v46  ;;  %v8071_v41 = vsub.f32 0.0, %v8066_v4 }
0x2024   :  { %12681 = vrcp.f32 %v8006_v35  ;;  %v8079_v37 = vmul.f32 1.442695, %v8071_v41 }
0x2025   :  { %12683 = vpow2.f32 %v8077_v26 }
0x2026   :  { %12685 = vpow2.f32 %v8079_v37 }
0x202d   :  { %v12680_v29 = vpop.eup %12679 }
0x202e   :  { %v8020_v59 = vmul.f32 1.0614054, %v12680_v29 }
0x2030   :  { %v8025_v8 = vadd.f32 -1.4531521, %v8020_v59 }
0x2031   :  { %v12682_v28 = vpop.eup %12681 }
0x2032   :  { %v8030_v32 = vmul.f32 %v12680_v29, %v8025_v8  ;;  %v7977_v51 = vpop.f32.mrf.mxu0  ;;  %v8021_v58 = vmul.f32 1.0614054, %v12682_v28  ;;  %v12684_v20 = vpop.eup %12683 }
0x2033   :  { %v15669_v24 = vadd.f32 %v7977_v51, %v15648_v16  ;;  %v12686_v0 = vpop.eup %12685 }
0x2034   :  { %v8035_v44 = vadd.f32 1.4214138, %v8030_v32  ;;  %v11881_v63 = vpop.f32.mrf.mxu0  ;;  %v8026_v7 = vadd.f32 -1.4531521, %v8021_v58  ;;  %v7985_v32 = vmul.f32 0.5, %v15653_v27 }
0x2035   :  { %v7992_v23 = vmul.f32 0.70710677, %v15669_v24 }
0x2036   :  { %v8040_v21 = vmul.f32 %v12680_v29, %v8035_v44  ;;  %v7980_v55 = vpop.f32.mrf.mxu0  ;;  %v8031_v22 = vmul.f32 %v12682_v28, %v8026_v7 }
0x2037   :  { %v7997_v50 = vand.u32 2147483647, %v7992_v23  ;;  %vm8097_vm11 = vcmp.ge.f32.partialorder %v7992_v23, 0.0 }
0x2038   :  { %v8045_v30 = vadd.f32 -0.28449672, %v8040_v21  ;;  %v11882_v53 = vpop.f32.mrf.mxu0  ;;  %v8036_v61 = vadd.f32 1.4214138, %v8031_v22 }
0x2039   :  { %v8002_v14 = vmul.f32 0.3275911, %v7997_v50  ;;  %v8067_v11 = vmul.f32 %v7997_v50, %v7997_v50 }
0x203a   :  { %v8050_v19 = vmul.f32 %v12680_v29, %v8045_v30  ;;  %v8041_v6 = vmul.f32 %v12682_v28, %v8036_v61 }
0x203b   :  { %v8007_v25 = vadd.f32 1.0, %v8002_v14  ;;  %v8072_v54 = vsub.f32 0.0, %v8067_v11  ;;  %v7987_v14 = vmul.f32 0.5, %v15669_v24 }
0x203c   :  { %v8055_v60 = vadd.f32 0.2548296, %v8050_v19  ;;  %v8046_v16 = vadd.f32 -0.28449672, %v8041_v6 }
0x203d   :  { %12687 = vrcp.f32 %v8007_v25  ;;  %v8081_v8 = vmul.f32 1.442695, %v8072_v54 }
0x203e   :  { %v8060_v48 = vmul.f32 %v12680_v29, %v8055_v60  ;;  %v8051_v9 = vmul.f32 %v12682_v28, %v8046_v16  ;;  %v8141_v60 = vrot.slane %v15554_v15, %v13851_v39 }
0x203f   :  { %12689 = vpow2.f32 %v8081_v8 }
0x2040   :  { %v8085_v10 = vmul.f32 %v12684_v20, %v8060_v48  ;;  %v8056_v49 = vadd.f32 0.2548296, %v8051_v9 }
0x2042   :  { %v8090_v43 = vsub.f32 1.0, %v8085_v10  ;;  %v8061_v38 = vmul.f32 %v12682_v28, %v8056_v49  ;;  %v7986_v28 = vmul.f32 0.5, %v15660_v57 }
0x2044   :  { %v8100_v5 = vsub.f32 0.0, %v8090_v43  ;;  %v8086_v46 = vmul.f32 %v12686_v0, %v8061_v38 }
0x2046   :  { %v8105_v35 = vsel %vm8095_vm15, %v8090_v43, %v8100_v5  ;;  %v8091_v12 = vsub.f32 1.0, %v8086_v46 }
0x2047   :  { %v8110_v26 = vadd.f32 1.0, %v8105_v35 }
0x2048   :  { %v8101_v4 = vsub.f32 0.0, %v8091_v12 }
0x2049   :  { %v8115_v37 = vmul.f32 %v8110_v26, %v7985_v32 }
0x204a   :  { %v12688_v59 = vpop.eup %12687  ;;  %v8106_v29 = vsel %vm8096_vm1, %v8091_v12, %v8101_v4 }
0x204b   :  { %v8022_v41 = vmul.f32 1.0614054, %v12688_v59  ;;  %v8111_v51 = vadd.f32 1.0, %v8106_v29 }
0x204c   :  { %v12690_v27 = vpop.eup %12689 }
0x204d   :  { %v8027_v58 = vadd.f32 -1.4531521, %v8022_v41  ;;  %v8116_v44 = vmul.f32 %v8111_v51, %v7986_v28 }
0x204f   :  { %v8032_v42 = vmul.f32 %v12688_v59, %v8027_v58  ;;  %v8119_v63 = vpack.c.bf16 %v8116_v44, %v8115_v37 }
0x2051   :  { %v8037_v7 = vadd.f32 1.4214138, %v8032_v42  ;;  %11904 = vmatmul.mubr.bf16.gmra.mxu1 %v8119_v63 }
0x2052   :  { %11907 = vmatprep.mubr.msk.bf16.mxu1 %vm12784_vm0, %v16310_v18 }
0x2053   :  { %v8042_v21 = vmul.f32 %v12688_v59, %v8037_v7  ;;  %v12269_v7 = vld [vmem:[%s16284_s3 + $0x38] sm:$0xff]  }
0x2054   :  { %11912 = vmatpush3.bf16.msra.mxu0 %v12269_v7 }
0x2055   :  { %v8047_v33 = vadd.f32 -0.28449672, %v8042_v21  ;;  %11913 = vmatprep.subr.bf16.mxu0 %v16310_v18  ;;  %v12270_v21 = vld [vmem:[%s16284_s3 + $0x30] sm:$0xff]  }
0x2057   :  { %v8052_v55 = vmul.f32 %v12688_v59, %v8047_v33 }
0x2058   :  { %11914 = vmatpush3.bf16.msra.mxu0 %v12270_v21 }
0x2059   :  { %v8057_v22 = vadd.f32 0.2548296, %v8052_v55  ;;  %11927 = vmatprep.subr.mxu0 %v16310_v18 }
0x205b   :  { %v8062_v50 = vmul.f32 %v12688_v59, %v8057_v22 }
0x205d   :  { %v8087_v30 = vmul.f32 %v12690_v27, %v8062_v50 }
0x205f   :  { %v8092_v57 = vsub.f32 1.0, %v8087_v30 }
0x2061   :  { %v8102_v53 = vsub.f32 0.0, %v8092_v57 }
0x2063   :  { %v8107_v61 = vsel %vm8097_vm11, %v8092_v57, %v8102_v53 }
0x2064   :  { %v8112_v19 = vadd.f32 1.0, %v8107_v61 }
0x2066   :  { %v8117_v6 = vmul.f32 %v8112_v19, %v7987_v14 }
0x2068   :  { %v8120_v25 = vpack.c.bf16 %v8117_v6, %v8117_v6 }
0x206a   :  { %11908 = vmatmul.mubr.bf16.gmra.mxu1 %v8120_v25 }
0x206b   :  { %11948 = vmatprep.mubr.msk.f32.mxu1 %vm12784_vm0, %v16310_v18 }
0x20de   :  { %v8224_v16 = vpop.f32.mrf.mxu1 }
0x20df   :  { %v8225_v48 = vadd.f32 %v8224_v16, %v8141_v60 }
0x20e0   :  { %v11901_v20 = vpop.f32.mrf.mxu1 }
0x20e1   :  { %v15684_v9 = vadd.f32 %v8225_v48, %v15559_v52 }
0x20e2   :  { %v8227_v23 = vpop.f32.mrf.mxu1 }
0x20e3   :  { %v8228_v10 = vadd.f32 %v8227_v23, %v8141_v60  ;;  %v8253_v24 = vsel %vm145_vm2, %v15684_v9, 0.0 }
0x20e4   :  { %8254 = vadd.xlane.f32.xlu0 %v8253_v24  ;;  %v11902_v49 = vpop.f32.mrf.mxu1 }
0x20e5   :  { %v15689_v43 = vadd.f32 %v8228_v10, %v15564_v45 }
0x20e7   :  { %v8256_v38 = vsel %vm145_vm2, %v15689_v43, 0.0 }
0x20e8   :  { %8257 = vadd.xlane.f32.xlu1 %v8256_v38  ;;  %v15729_v38 = vld [vmem:[%s16285_s7 + $0x18] sm:$0xff] }
0x2111   :  { %v8232_v15 = vpop.f32.mrf.mxu1 }
0x2112   :  { %v8233_v11 = vadd.f32 %v8232_v15, %v8141_v60 }
0x2113   :  { %v11905_v0 = vpop.f32.mrf.mxu1 }
0x2114   :  { %v15694_v52 = vadd.f32 %v8233_v11, %v15569_v34  ;;  %v16313_v11 = vld [vmem:[#allocation2_spill] sm:$0xff] }
0x2115   :  { %v8235_v5 = vpop.f32.mrf.mxu1  ;;  %v8321_v0 = vrot.slane %v15729_v38, %v16313_v11 }
0x2116   :  { %v8236_v46 = vadd.f32 %v8235_v5, %v8141_v60  ;;  %v8259_v35 = vsel %vm145_vm2, %v15694_v52, 0.0 }
0x2117   :  { %8260 = vadd.xlane.f32.xlu0 %v8259_v35  ;;  %v11906_v12 = vpop.f32.mrf.mxu1  ;;  %v16314_v35 = vld [vmem:[#allocation3_spill] sm:$0xff] }
0x2118   :  { %v15699_v45 = vadd.f32 %v8236_v46, %v15574_v3  ;;  %v8330_v12 = vrot.slane %v15729_v38, %v16314_v35 }
0x211a   :  { %v8262_v54 = vsel %vm145_vm2, %v15699_v45, 0.0 }
0x211b   :  { %8263 = vadd.xlane.f32.xlu1 %v8262_v54 }
0x212a   :  { %v8240_v4 = vpop.f32.mrf.mxu1 }
0x212b   :  { %v8241_v59 = vadd.f32 %v8240_v4, %v8141_v60 }
0x212c   :  { %v11909_v26 = vpop.f32.mrf.mxu1 }
0x212d   :  { %v15704_v34 = vadd.f32 %v8241_v59, %v15579_v2 }
0x212e   :  { %v8243_v29 = vpop.f32.mrf.mxu1 }
0x212f   :  { %v8265_v41 = vsel %vm158_vm4, %v15704_v34, 0.0 }
0x2130   :  { %8266 = vadd.xlane.f32.xlu0 %v8265_v41  ;;  %v11910_v8 = vpop.f32.mrf.mxu1 }
0x216d   :  { %v8255_v32 = vpop.xlane.xlu0 %8254 }
0x216e   :  { %v8268_v28 = vmul.f32 0.03125, %v8255_v32 }
0x2170   :  { %v8273_v3 = vsub.f32 %v15684_v9, %v8268_v28 }
0x2171   :  { %v8258_v51 = vpop.xlane.xlu1 %8257 }
0x2172   :  { %v8269_v58 = vmul.f32 0.03125, %v8258_v51  ;;  %v8278_v37 = vmul.f32 %v8273_v3, %v8273_v3 }
0x2174   :  { %v8274_v44 = vsub.f32 %v15689_v43, %v8269_v58  ;;  %v8283_v42 = vsel %vm145_vm2, %v8278_v37, 0.0 }
0x2175   :  { %8284 = vadd.xlane.f32.xlu1 %v8283_v42 }
0x2176   :  { %v8279_v2 = vmul.f32 %v8274_v44, %v8274_v44 }
0x2178   :  { %v8286_v63 = vsel %vm145_vm2, %v8279_v2, 0.0 }
0x2179   :  { %8287 = vadd.xlane.f32.xlu0 %v8286_v63 }
0x21a0   :  { %v8261_v33 = vpop.xlane.xlu0 %8260 }
0x21a1   :  { %v8270_v55 = vmul.f32 0.03125, %v8261_v33 }
0x21a3   :  { %v8275_v22 = vsub.f32 %v15694_v52, %v8270_v55 }
0x21a4   :  { %v8264_v50 = vpop.xlane.xlu1 %8263 }
0x21a5   :  { %v8271_v27 = vmul.f32 0.03125, %v8264_v50  ;;  %v8280_v30 = vmul.f32 %v8275_v22, %v8275_v22 }
0x21a7   :  { %v8276_v57 = vsub.f32 %v15699_v45, %v8271_v27  ;;  %v8289_v53 = vsel %vm145_vm2, %v8280_v30, 0.0 }
0x21a8   :  { %8290 = vadd.xlane.f32.xlu1 %v8289_v53 }
0x21a9   :  { %v8281_v61 = vmul.f32 %v8276_v57, %v8276_v57 }
0x21ab   :  { %v8292_v14 = vsel %vm145_vm2, %v8281_v61, 0.0 }
0x21ac   :  { %8293 = vadd.xlane.f32.xlu0 %v8292_v14 }
0x21b9   :  { %v8267_v19 = vpop.xlane.xlu0 %8266 }
0x21ba   :  { %v8272_v6 = vmul.f32 0.03125, %v8267_v19 }
0x21bc   :  { %v8277_v25 = vsub.f32 %v15704_v34, %v8272_v6 }
0x21be   :  { %v8282_v60 = vmul.f32 %v8277_v25, %v8277_v25 }
0x21c0   :  { %v8295_v16 = vsel %vm158_vm4, %v8282_v60, 0.0  ;;  %v16315_v60 = vld [vmem:[#allocation4_spill] sm:$0xff] }
0x21c1   :  { %8296 = vadd.xlane.f32.xlu1 %v8295_v16  ;;  %v8347_v16 = vrot.slane %v15729_v38, %v16315_v60 }
0x21fe   :  { %v8285_v48 = vpop.xlane.xlu1 %8284 }
0x21ff   :  { %v8298_v20 = vmul.f32 0.03125, %v8285_v48 }
0x2201   :  { %v8303_v23 = vadd.f32 1e-05, %v8298_v20 }
0x2202   :  { %v8288_v10 = vpop.xlane.xlu0 %8287 }
0x2203   :  { %12691 = vrsqrt.f32 %v8303_v23  ;;  %v8299_v24 = vmul.f32 0.03125, %v8288_v10 }
0x2205   :  { %v8304_v49 = vadd.f32 1e-05, %v8299_v24 }
0x2207   :  { %12693 = vrsqrt.f32 %v8304_v49 }
0x2210   :  { %v12692_v15 = vpop.eup %12691 }
0x2211   :  { %v8313_v5 = vmul.f32 %v12692_v15, %v8273_v3 }
0x2213   :  { %v8322_v54 = vmul.f32 %v8321_v0, %v8313_v5 }
0x2214   :  { %v12694_v46 = vpop.eup %12693 }
0x2215   :  { %v8314_v4 = vmul.f32 %v12694_v46, %v8274_v44  ;;  %v8331_v26 = vadd.f32 %v8330_v12, %v8322_v54 }
0x2217   :  { %v8323_v59 = vmul.f32 %v8321_v0, %v8314_v4 }
0x2219   :  { %v8332_v29 = vadd.f32 %v8330_v12, %v8323_v59 }
0x221b   :  { %v8336_v41 = vpack.c.bf16 %v8332_v29, %v8331_v26 }
0x221d   :  { %11916 = vmatmul.mubr.msk.bf16.vlgmr.msra.gmra.mxu0 %vm145_vm2, %v8336_v41 }
0x221e   :  { %11919 = vmatprep.mubr.msk.bf16.mxu0 %vm12784_vm0, %v16310_v18 }
0x2231   :  { %v8291_v8 = vpop.xlane.xlu1 %8290 }
0x2232   :  { %v8300_v32 = vmul.f32 0.03125, %v8291_v8 }
0x2234   :  { %v8305_v28 = vadd.f32 1e-05, %v8300_v32 }
0x2235   :  { %v8294_v51 = vpop.xlane.xlu0 %8293 }
0x2236   :  { %12695 = vrsqrt.f32 %v8305_v28  ;;  %v8301_v3 = vmul.f32 0.03125, %v8294_v51 }
0x2238   :  { %v8306_v58 = vadd.f32 1e-05, %v8301_v3 }
0x223a   :  { %12697 = vrsqrt.f32 %v8306_v58 }
0x2243   :  { %v12696_v37 = vpop.eup %12695 }
0x2244   :  { %v8315_v42 = vmul.f32 %v12696_v37, %v8275_v22 }
0x2246   :  { %v8324_v63 = vmul.f32 %v8321_v0, %v8315_v42 }
0x2247   :  { %v12698_v44 = vpop.eup %12697 }
0x2248   :  { %v8316_v2 = vmul.f32 %v12698_v44, %v8276_v57  ;;  %v8333_v50 = vadd.f32 %v8330_v12, %v8324_v63 }
0x224a   :  { %v8297_v7 = vpop.xlane.xlu1 %8296  ;;  %v8325_v33 = vmul.f32 %v8321_v0, %v8316_v2 }
0x224b   :  { %v8302_v21 = vmul.f32 0.03125, %v8297_v7 }
0x224c   :  { %v8334_v27 = vadd.f32 %v8330_v12, %v8325_v33 }
0x224d   :  { %v8307_v55 = vadd.f32 1e-05, %v8302_v21 }
0x224e   :  { %v8337_v30 = vpack.c.bf16 %v8334_v27, %v8333_v50 }
0x224f   :  { %12699 = vrsqrt.f32 %v8307_v55 }
0x2250   :  { %11920 = vmatmul.mubr.msk.bf16.gmra.mxu0 %vm145_vm2, %v8337_v30 }
0x2251   :  { %11923 = vmatprep.mubr.msk.bf16.mxu0 %vm12784_vm0, %v16310_v18 }
0x225c   :  { %v12700_v53 = vpop.eup %12699 }
0x225d   :  { %v8317_v61 = vmul.f32 %v12700_v53, %v8277_v25 }
0x225f   :  { %v8326_v14 = vmul.f32 %v8321_v0, %v8317_v61 }
0x2261   :  { %v8335_v22 = vadd.f32 %v8330_v12, %v8326_v14 }
0x2263   :  { %v8338_v19 = vpack.c.bf16 %v8335_v22, %v8335_v22 }
0x2265   :  { %11924 = vmatmul.mubr.msk.bf16.gmra.mxu0 %vm145_vm2, %v8338_v19 }
0x2266   :  { %11933 = vmatprep.mubr.msk.f32.mxu0 %vm12784_vm0, %v16310_v18 }
0x22dd   :  { %v8403_v57 = vpop.f32.mrf.mxu0 }
0x22de   :  { %v15747_v10 = vadd.f32 %v8403_v57, %v8347_v16 }
0x22df   :  { %v11917_v6 = vpop.f32.mrf.mxu0 }
0x22e1   :  { %v8406_v48 = vpop.f32.mrf.mxu0 }
0x22e2   :  { %v8407_v20 = vadd.f32 %v8406_v48, %v8347_v16 }
0x22e3   :  { %v11918_v23 = vpop.f32.mrf.mxu0 }
0x22e4   :  { %8430 = vrot.lane.b32.xlu1 %v8407_v20, %s12785_s30 }
0x22e8   :  { %8428 = vrot.lane.b32.xlu1 %v15747_v10, %s12785_s30 }
0x2310   :  { %v8411_v25 = vpop.f32.mrf.mxu0 }
0x2311   :  { %v8412_v24 = vadd.f32 %v8411_v25, %v8347_v16 }
0x2312   :  { %v11921_v49 = vpop.f32.mrf.mxu0 }
0x2313   :  { %8668 = vrot.lane.b32.xlu1 %v8412_v24, %s12791_s14  ;;  %8432 = vrot.lane.b32.xlu0 %v8412_v24, %s12785_s30  ;;  %v8911_v59 = vrot.slane %v8412_v24, 1 }
0x2314   :  { %v8414_v15 = vpop.f32.mrf.mxu0 }
0x2315   :  { %v8415_v0 = vadd.f32 %v8414_v15, %v8347_v16 }
0x2316   :  { %v11922_v11 = vpop.f32.mrf.mxu0 }
0x2317   :  { %8664 = vrot.lane.b32.xlu1 %v15747_v10, %s12791_s14  ;;  %8666 = vrot.lane.b32.xlu0 %v8407_v20, %s12791_s14  ;;  %v8912_v54 = vrot.slane %v8415_v0, 1 }
0x2319   :  { %v15767_v29 = vsel %vm1312_vm8, %v8911_v59, %v8912_v54 }
0x231b   :  { %8658 = vrot.lane.b32.xlu0 %v15747_v10, %s12789_s12 }
0x231f   :  { %8660 = vrot.lane.b32.xlu0 %v8407_v20, %s12789_s12 }
0x2323   :  { %8662 = vrot.lane.b32.xlu0 %v8412_v24, %s12789_s12 }
0x2325   :  { %v8419_v5 = vpop.f32.mrf.mxu0 }
0x2326   :  { %v8420_v46 = vadd.f32 %v8419_v5, %v8347_v16 }
0x2327   :  { %v11925_v35 = vpop.f32.mrf.mxu0 }
0x2328   :  { %v15760_v12 = vrot.slane %v8420_v46, 1 }
0x2329   :  { %v8422_v4 = vpop.f32.mrf.mxu0 }
0x232a   :  { %9156 = vrot.lane.b32.xlu0 %v15760_v12, %s12791_s14  ;;  %8920 = vrot.lane.b32.xlu1 %v15760_v12, %s12785_s30  ;;  %v15771_v41 = vsel %vm1312_vm8, %v8912_v54, %v15760_v12 }
0x232b   :  { %v11926_v26 = vpop.f32.mrf.mxu0 }
0x232e   :  { %9152 = vrot.lane.b32.xlu0 %v15767_v29, %s12791_s14  ;;  %8918 = vrot.lane.b32.xlu1 %v15771_v41, %s12785_s30 }
0x2332   :  { %9148 = vrot.lane.b32.xlu0 %v15771_v41, %s12789_s12  ;;  %8916 = vrot.lane.b32.xlu1 %v15767_v29, %s12785_s30 }
0x2336   :  { %8563 = vrot.lane.b32.xlu0 %v8412_v24, %s12786_s9  ;;  %9154 = vrot.lane.b32.xlu1 %v15771_v41, %s12791_s14 }
0x233a   :  { %8799 = vrot.lane.b32.xlu0 %v8412_v24, %s12794_s16  ;;  %9146 = vrot.lane.b32.xlu1 %v15767_v29, %s12789_s12 }
0x233e   :  { %9150 = vrot.lane.b32.xlu1 %v15760_v12, %s12789_s12 }
0x2342   :  { %8561 = vrot.lane.b32.xlu1 %v8407_v20, %s12786_s9 }
0x2346   :  { %8559 = vrot.lane.b32.xlu1 %v15747_v10, %s12786_s9 }
0x234a   :  { %8797 = vrot.lane.b32.xlu1 %v8407_v20, %s12794_s16 }
0x2356   :  { %v8431_v32 = vpop.permute.xlu1 %8430 }
0x235a   :  { %v8429_v51 = vpop.permute.xlu1 %8428 }
0x2385   :  { %v8433_v8 = vpop.permute.xlu0 %8432  ;;  %v8669_v58 = vpop.permute.xlu1 %8668 }
0x2386   :  { %11928 = vmatpush3.xpose.msk.msra.mxu0 %vm1302_vm9, %v8433_v8 }
0x2387   :  { %11929 = vmatprep.subr.mxu0 %v16310_v18 }
0x2389   :  { %v8667_v28 = vpop.permute.xlu0 %8666  ;;  %v8665_v42 = vpop.permute.xlu1 %8664 }
0x238a   :  { %11930 = vmatpush3.xpose.msk.msra.mxu0 %vm1302_vm9, %v8431_v32 }
0x238b   :  { %11931 = vmatprep.subr.mxu0 %v16310_v18 }
0x238d   :  { %v8659_v3 = vpop.permute.xlu0 %8658 }
0x238e   :  { %11932 = vmatpush3.xpose.msk.msra.mxu0 %vm1302_vm9, %v8429_v51 }
0x238f   :  { %11957 = vmatprep.subr.mxu0 %v16310_v18 }
0x2391   :  { %11934 = vmatmul.mubr.msk.f32.vlgmr.msra.gmra.mxu0 %vm1302_vm9, %v15747_v10  ;;  %v8661_v37 = vpop.permute.xlu0 %8660 }
0x2392   :  { %11958 = vmatpush3.xpose.msk.msra.mxu0 %vm1302_vm9, %v8669_v58  ;;  %11936 = vmatprep.mubr.msk.f32.mxu0 %vm12784_vm0, %v16310_v18 }
0x2393   :  { %11959 = vmatprep.subr.mxu0 %v16310_v18 }
0x2395   :  { %11937 = vmatmul.mubr.msk.f32.gmra.mxu0 %vm1302_vm9, %v8407_v20  ;;  %v8663_v44 = vpop.permute.xlu0 %8662 }
0x2396   :  { %11960 = vmatpush3.xpose.msk.msra.mxu0 %vm1302_vm9, %v8667_v28  ;;  %11939 = vmatprep.mubr.msk.f32.mxu0 %vm12784_vm0, %v16310_v18 }
0x2397   :  { %11961 = vmatprep.subr.mxu0 %v16310_v18 }
0x2399   :  { %11940 = vmatmul.mubr.msk.f32.gmra.mxu0 %vm1302_vm9, %v8412_v24 }
0x239a   :  { %11962 = vmatpush3.xpose.msk.msra.mxu0 %vm1302_vm9, %v8665_v42  ;;  %11963 = vmatprep.mubr.msk.f32.mxu0 %vm12784_vm0, %v16310_v18 }
0x239b   :  { %11987 = vmatprep.subr.mxu0 %v16310_v18 }
0x239c   :  { %v9157_v2 = vpop.permute.xlu0 %9156  ;;  %v8921_v63 = vpop.permute.xlu1 %8920 }
0x239d   :  { %11964 = vmatmul.mubr.msk.f32.vlgmr.msra.gmra.mxu0 %vm1302_vm9, %v8659_v3 }
0x239e   :  { %11988 = vmatpush3.xpose.msk.msra.mxu0 %vm1302_vm9, %v8921_v63  ;;  %11966 = vmatprep.mubr.msk.f32.mxu0 %vm12784_vm0, %v16310_v18 }
0x239f   :  { %11989 = vmatprep.subr.mxu0 %v16310_v18 }
0x23a0   :  { %v9153_v7 = vpop.permute.xlu0 %9152  ;;  %v8919_v21 = vpop.permute.xlu1 %8918 }
0x23a1   :  { %11967 = vmatmul.mubr.msk.f32.gmra.mxu0 %vm1302_vm9, %v8661_v37 }
0x23a2   :  { %11990 = vmatpush3.xpose.msk.msra.mxu0 %vm1302_vm9, %v8919_v21  ;;  %11969 = vmatprep.mubr.msk.f32.mxu0 %vm12784_vm0, %v16310_v18 }
0x23a3   :  { %11991 = vmatprep.subr.mxu0 %v16310_v18 }
0x23a4   :  { %v9149_v33 = vpop.permute.xlu0 %9148  ;;  %v8917_v55 = vpop.permute.xlu1 %8916 }
0x23a5   :  { %11970 = vmatmul.mubr.msk.f32.gmra.mxu0 %vm1302_vm9, %v8663_v44 }
0x23a6   :  { %11992 = vmatpush3.xpose.msk.msra.mxu0 %vm1302_vm9, %v8917_v55  ;;  %11993 = vmatprep.mubr.msk.f32.mxu0 %vm12784_vm0, %v16310_v18 }
0x23a7   :  { %12017 = vmatprep.subr.mxu0 %v16310_v18 }
0x23a8   :  { %v8564_v50 = vpop.permute.xlu0 %8563  ;;  %v9155_v27 = vpop.permute.xlu1 %9154 }
0x23a9   :  { %11943 = vmatpush3.msk.msra.mxu1 %vm50_vm3, %v8564_v50  ;;  %11994 = vmatmul.mubr.msk.f32.vlgmr.msra.gmra.mxu0 %vm1302_vm9, %v15767_v29 }
0x23aa   :  { %11944 = vmatprep.subr.mxu1 %v16310_v18  ;;  %12018 = vmatpush3.xpose.msk.msra.mxu0 %vm1302_vm9, %v9157_v2 }
0x23ab   :  { %11996 = vmatprep.mubr.msk.f32.mxu0 %vm12784_vm0, %v16310_v18  ;;  %12019 = vmatprep.subr.mxu0 %v16310_v18 }
0x23ac   :  { %v9147_v30 = vpop.permute.xlu1 %9146  ;;  %v15899_v55 = vpop.permute.xlu0 %8799 }
0x23ad   :  { %11997 = vmatmul.mubr.msk.f32.gmra.mxu0 %vm1302_vm9, %v15771_v41 }
0x23ae   :  { %12020 = vmatpush3.xpose.msk.msra.mxu0 %vm1302_vm9, %v9155_v27  ;;  %11999 = vmatprep.mubr.msk.f32.mxu0 %vm12784_vm0, %v16310_v18 }
0x23af   :  { %12021 = vmatprep.subr.mxu0 %v16310_v18 }
0x23b0   :  { %v9151_v53 = vpop.permute.xlu1 %9150 }
0x23b1   :  { %12000 = vmatmul.mubr.msk.f32.gmra.mxu0 %vm1302_vm9, %v15760_v12 }
0x23b2   :  { %12022 = vmatpush3.xpose.msk.msra.mxu0 %vm1302_vm9, %v9153_v7  ;;  %12023 = vmatprep.mubr.msk.f32.mxu0 %vm12784_vm0, %v16310_v18 }
0x23b3   :  { %12047 = vmatprep.subr.bf16.mxu0 %v16310_v18 }
0x23b4   :  { %v8562_v61 = vpop.permute.xlu1 %8561 }
0x23b5   :  { %11945 = vmatpush3.msra.mxu1 %v8562_v61  ;;  %12024 = vmatmul.mubr.msk.f32.vlgmr.msra.gmra.mxu0 %vm1302_vm9, %v9147_v30 }
0x23b6   :  { %11946 = vmatprep.subr.mxu1 %v16310_v18  ;;  %12026 = vmatprep.mubr.msk.f32.mxu0 %vm12784_vm0, %v16310_v18 }
0x23b8   :  { %v8560_v14 = vpop.permute.xlu1 %8559 }
0x23b9   :  { %11947 = vmatpush3.msra.mxu1 %v8560_v14  ;;  %12027 = vmatmul.mubr.msk.f32.gmra.mxu0 %vm1302_vm9, %v9149_v33 }
0x23ba   :  { %11972 = vmatprep.subr.mxu1 %v16310_v18  ;;  %12029 = vmatprep.mubr.msk.f32.mxu0 %vm12784_vm0, %v16310_v18 }
0x23bc   :  { %v15901_v50 = vpop.permute.xlu1 %8797 }
0x23bd   :  { %12030 = vmatmul.mubr.msk.f32.gmra.mxu0 %vm1302_vm9, %v9151_v53 }
0x23be   :  { %12051 = vmatprep.mubr.msk.bf16.mxu0 %vm12784_vm0, %v16310_v18 }
0x2451   :  { %v8512_v22 = vpop.f32.mrf.mxu0 }
0x2452   :  { %v8526_v19 = vsel %vm421_vm6, %v8512_v22, -inf }
0x2453   :  { %8527 = vmax.xlane.f32.xlu0 %v8526_v19  ;;  %v11935_v57 = vpop.f32.mrf.mxu0 }
0x2455   :  { %v8517_v6 = vpop.f32.mrf.mxu0 }
0x2456   :  { %v8529_v60 = vsel %vm421_vm6, %v8517_v6, -inf }
0x2457   :  { %8530 = vmax.xlane.f32.xlu1 %v8529_v60  ;;  %v11938_v16 = vpop.f32.mrf.mxu0 }
0x2459   :  { %v8522_v48 = vpop.f32.mrf.mxu0 }
0x245a   :  { %v8532_v20 = vsel %vm428_vm7, %v8522_v48, -inf }
0x245b   :  { %8533 = vmax.xlane.f32.xlu0 %v8532_v20  ;;  %v11941_v23 = vpop.f32.mrf.mxu0 }
0x245d   :  { %v8748_v25 = vpop.f32.mrf.mxu0 }
0x245e   :  { %v8762_v24 = vsel %vm421_vm6, %v8748_v25, -inf }
0x245f   :  { %8763 = vmax.xlane.f32.xlu0 %v8762_v24  ;;  %v11965_v49 = vpop.f32.mrf.mxu0 }
0x2461   :  { %v8753_v15 = vpop.f32.mrf.mxu0 }
0x2462   :  { %v8765_v11 = vsel %vm421_vm6, %v8753_v15, -inf }
0x2463   :  { %8766 = vmax.xlane.f32.xlu0 %v8765_v11  ;;  %v11968_v0 = vpop.f32.mrf.mxu0 }
0x2465   :  { %v8758_v5 = vpop.f32.mrf.mxu0 }
0x2466   :  { %v8768_v46 = vsel %vm428_vm7, %v8758_v5, -inf }
0x2467   :  { %8769 = vmax.xlane.f32.xlu1 %v8768_v46  ;;  %v11971_v35 = vpop.f32.mrf.mxu0 }
0x2469   :  { %v15867_v54 = vpop.f32.mrf.mxu0 }
0x246a   :  { %v9014_v4 = vsel %vm421_vm6, %v15867_v54, -inf }
0x246b   :  { %9015 = vmax.xlane.f32.xlu0 %v9014_v4  ;;  %v11995_v59 = vpop.f32.mrf.mxu0 }
0x246d   :  { %v15871_v26 = vpop.f32.mrf.mxu0 }
0x246e   :  { %v9017_v8 = vsel %vm421_vm6, %v15871_v26, -inf }
0x246f   :  { %9018 = vmax.xlane.f32.xlu1 %v9017_v8  ;;  %v11998_v32 = vpop.f32.mrf.mxu0 }
0x2471   :  { %v15875_v28 = vpop.f32.mrf.mxu0 }
0x2472   :  { %v9020_v51 = vsel %vm428_vm7, %v15875_v28, -inf }
0x2473   :  { %9021 = vmax.xlane.f32.xlu0 %v9020_v51  ;;  %v12001_v3 = vpop.f32.mrf.mxu0 }
0x2475   :  { %v15879_v58 = vpop.f32.mrf.mxu0 }
0x2476   :  { %v9250_v37 = vsel %vm421_vm6, %v15879_v58, -inf }
0x2477   :  { %9251 = vmax.xlane.f32.xlu1 %v9250_v37  ;;  %v12025_v42 = vpop.f32.mrf.mxu0 }
0x2479   :  { %v15883_v44 = vpop.f32.mrf.mxu0 }
0x247a   :  { %v9253_v2 = vsel %vm421_vm6, %v15883_v44, -inf }
0x247b   :  { %9254 = vmax.xlane.f32.xlu0 %v9253_v2  ;;  %v12028_v63 = vpop.f32.mrf.mxu0 }
0x247d   :  { %v15887_v7 = vpop.f32.mrf.mxu0 }
0x247e   :  { %v9256_v33 = vsel %vm428_vm7, %v15887_v7, -inf }
0x247f   :  { %v12031_v21 = vpop.f32.mrf.mxu0 }
0x2488   :  { %9051 = vrot.lane.b32.xlu1 %v15760_v12, %s12786_s9 }
0x248c   :  { %9049 = vrot.lane.b32.xlu1 %v15771_v41, %s12786_s9 }
0x2491   :  { %8795 = vrot.lane.b32.xlu0 %v15747_v10, %s12794_s16 }
0x24b0   :  { %9257 = vmax.xlane.f32.xlu1 %v9256_v33 }
0x24c1   :  { %9047 = vrot.lane.b32.xlu1 %v15767_v29, %s12786_s9 }
0x24dc   :  { %v8528_v27 = vpop.xlane.xlu0 %8527 }
0x24dd   :  { %v8535_v30 = vsub.f32 %v8512_v22, %v8528_v27 }
0x24df   :  { %v8538_v53 = vmul.f32 1.442695, %v8535_v30 }
0x24e0   :  { %v8531_v61 = vpop.xlane.xlu1 %8530 }
0x24e1   :  { %12701 = vpow2.f32 %v8538_v53  ;;  %v8536_v14 = vsub.f32 %v8517_v6, %v8531_v61 }
0x24e3   :  { %v8540_v19 = vmul.f32 1.442695, %v8536_v14 }
0x24e4   :  { %v8534_v57 = vpop.xlane.xlu0 %8533 }
0x24e5   :  { %12703 = vpow2.f32 %v8540_v19  ;;  %v8537_v10 = vsub.f32 %v8522_v48, %v8534_v57 }
0x24e7   :  { %v8542_v60 = vmul.f32 1.442695, %v8537_v10 }
0x24e8   :  { %v8764_v16 = vpop.xlane.xlu0 %8763 }
0x24e9   :  { %12705 = vpow2.f32 %v8542_v60  ;;  %v8771_v20 = vsub.f32 %v8748_v25, %v8764_v16 }
0x24eb   :  { %v8774_v23 = vmul.f32 1.442695, %v8771_v20 }
0x24ec   :  { %v8767_v24 = vpop.xlane.xlu0 %8766 }
0x24ed   :  { %12707 = vpow2.f32 %v8774_v23  ;;  %v8772_v49 = vsub.f32 %v8753_v15, %v8767_v24 }
0x24ee   :  { %v15903_v11 = vpop.eup %12701 }
0x24ef   :  { %v8776_v0 = vmul.f32 1.442695, %v8772_v49  ;;  %v8544_v22 = vsel %vm421_vm6, %v15903_v11, 0.0 }
0x24f0   :  { %v8770_v46 = vpop.xlane.xlu1 %8769  ;;  %8545 = vadd.xlane.f32.xlu0 %v8544_v22 }
0x24f1   :  { %12709 = vpow2.f32 %v8776_v0  ;;  %v8773_v6 = vsub.f32 %v8758_v5, %v8770_v46 }
0x24f2   :  { %v15907_v35 = vpop.eup %12703 }
0x24f3   :  { %v8778_v48 = vmul.f32 1.442695, %v8773_v6  ;;  %v8547_v25 = vsel %vm421_vm6, %v15907_v35, 0.0 }
0x24f4   :  { %v9016_v4 = vpop.xlane.xlu0 %9015  ;;  %8548 = vadd.xlane.f32.xlu1 %v8547_v25 }
0x24f5   :  { %12711 = vpow2.f32 %v8778_v48  ;;  %v9023_v15 = vsub.f32 %v15867_v54, %v9016_v4 }
0x24f6   :  { %v15912_v59 = vpop.eup %12705 }
0x24f7   :  { %v9026_v8 = vmul.f32 1.442695, %v9023_v15  ;;  %v8550_v32 = vsel %vm428_vm7, %v15912_v59, 0.0 }
0x24f8   :  { %8551 = vadd.xlane.f32.xlu0 %v8550_v32  ;;  %v9019_v3 = vpop.xlane.xlu1 %9018 }
0x24f9   :  { %12713 = vpow2.f32 %v9026_v8  ;;  %v9024_v10 = vsub.f32 %v15871_v26, %v9019_v3 }
0x24fa   :  { %v15916_v5 = vpop.eup %12707 }
0x24fb   :  { %v8780_v51 = vsel %vm421_vm6, %v15916_v5, 0.0  ;;  %v9028_v16 = vmul.f32 1.442695, %v9024_v10 }
0x24fc   :  { %v9022_v37 = vpop.xlane.xlu0 %9021  ;;  %8781 = vadd.xlane.f32.xlu1 %v8780_v51 }
0x24fd   :  { %v9025_v42 = vsub.f32 %v15875_v28, %v9022_v37 }
0x24fe   :  { %v15921_v2 = vpop.eup %12709 }
0x24ff   :  { %v9030_v54 = vmul.f32 1.442695, %v9025_v42  ;;  %v8783_v63 = vsel %vm421_vm6, %v15921_v2, 0.0 }
0x2500   :  { %v9252_v21 = vpop.xlane.xlu1 %9251  ;;  %8784 = vadd.xlane.f32.xlu0 %v8783_v63 }
0x2501   :  { %12715 = vpow2.f32 %v9030_v54  ;;  %v9259_v33 = vsub.f32 %v15879_v58, %v9252_v21 }
0x2502   :  { %v15926_v27 = vpop.eup %12711 }
0x2503   :  { %v9262_v30 = vmul.f32 1.442695, %v9259_v33  ;;  %v8786_v53 = vsel %vm428_vm7, %v15926_v27, 0.0 }
0x2504   :  { %8787 = vadd.xlane.f32.xlu1 %v8786_v53  ;;  %v9255_v60 = vpop.xlane.xlu0 %9254  ;;  %v9052_v24 = vpop.permute.xlu1 %9051 }
0x2505   :  { %12717 = vpow2.f32 %v9262_v30  ;;  %v9260_v20 = vsub.f32 %v15883_v44, %v9255_v60 }
0x2506   :  { %v15930_v28 = vpop.eup %12713  ;;  %12719 = vpow2.f32 %v9028_v16 }
0x2507   :  { %v9032_v61 = vsel %vm421_vm6, %v15930_v28, 0.0  ;;  %v9264_v23 = vmul.f32 1.442695, %v9260_v20 }
0x2508   :  { %9033 = vadd.xlane.f32.xlu1 %v9032_v61  ;;  %v9050_v46 = vpop.permute.xlu1 %9049  ;;  %v8796_v4 = vpop.permute.xlu0 %8795 }
0x2509   :  { %12721 = vpow2.f32 %v9264_v23 }
0x250e   :  { %v15934_v14 = vpop.eup %12715 }
0x250f   :  { %v9038_v19 = vsel %vm428_vm7, %v15934_v14, 0.0 }
0x2510   :  { %9039 = vadd.xlane.f32.xlu1 %v9038_v19 }
0x2512   :  { %v15938_v58 = vpop.eup %12717 }
0x2513   :  { %v9268_v57 = vsel %vm421_vm6, %v15938_v58, 0.0  ;;  %v15946_v49 = vpop.eup %12719 }
0x2514   :  { %9269 = vadd.xlane.f32.xlu1 %v9268_v57  ;;  %v9035_v0 = vsel %vm421_vm6, %v15946_v49, 0.0 }
0x2516   :  { %9287 = vrot.lane.b32.xlu0 %v15760_v12, %s12794_s16  ;;  %v15950_v22 = vpop.eup %12721 }
0x2517   :  { %v9271_v12 = vsel %vm421_vm6, %v15950_v22, 0.0 }
0x2535   :  { %9036 = vadd.xlane.f32.xlu0 %v9035_v0 }
0x2539   :  { %9272 = vadd.xlane.f32.xlu0 %v9271_v12  ;;  %v9258_v26 = vpop.xlane.xlu1 %9257 }
0x253a   :  { %v9261_v44 = vsub.f32 %v15887_v7, %v9258_v26  ;;  %v12271_v26 = vld [vmem:[%s16286_s4 + $0x38] sm:$0xff]  }
0x253b   :  { %12048 = vmatpush3.bf16.msra.mxu0 %v12271_v26 }
0x253c   :  { %v9266_v6 = vmul.f32 1.442695, %v9261_v44  ;;  %12049 = vmatprep.subr.bf16.mxu0 %v16310_v18 }
0x253d   :  { %v9048_v15 = vpop.permute.xlu1 %9047 }
0x253e   :  { %12723 = vpow2.f32 %v9266_v6 }
0x254b   :  { %v15955_v48 = vpop.eup %12723 }
0x254c   :  { %v9274_v25 = vsel %vm428_vm7, %v15955_v48, 0.0 }
0x254d   :  { %9275 = vadd.xlane.f32.xlu1 %v9274_v25 }
0x254f   :  { %9283 = vrot.lane.b32.xlu0 %v15767_v29, %s12794_s16 }
0x255e   :  { %9285 = vrot.lane.b32.xlu1 %v15771_v41, %s12794_s16 }
0x2579   :  { %v8546_v8 = vpop.xlane.xlu0 %8545 }
0x257a   :  { %12725 = vrcp.f32 %v8546_v8 }
0x257d   :  { %v8549_v32 = vpop.xlane.xlu1 %8548 }
0x257e   :  { %12727 = vrcp.f32 %v8549_v32 }
0x2581   :  { %v8552_v7 = vpop.xlane.xlu0 %8551 }
0x2582   :  { %12729 = vrcp.f32 %v8552_v7 }
0x2585   :  { %v8782_v51 = vpop.xlane.xlu1 %8781 }
0x2586   :  { %12731 = vrcp.f32 %v8782_v51 }
0x2587   :  { %v12726_v3 = vpop.eup %12725 }
0x2588   :  { %v8556_v37 = vmul.f32 %v12726_v3, %v15903_v11 }
0x2589   :  { %v8785_v42 = vpop.xlane.xlu0 %8784 }
0x258a   :  { %12733 = vrcp.f32 %v8785_v42  ;;  %11949 = vmatmul.mubr.msk.f32.vlgmr.msra.gmra.mxu1 %vm421_vm6, %v8556_v37 }
0x258b   :  { %v12728_v29 = vpop.eup %12727  ;;  %11973 = vmatpush3.msk.msra.mxu1 %vm50_vm3, %v15899_v55  ;;  %11951 = vmatprep.mubr.msk.f32.mxu1 %vm12784_vm0, %v16310_v18 }
0x258c   :  { %11974 = vmatprep.subr.mxu1 %v16310_v18  ;;  %v8557_v41 = vmul.f32 %v12728_v29, %v15907_v35 }
0x258d   :  { %11975 = vmatpush3.msra.mxu1 %v15901_v50  ;;  %v8788_v54 = vpop.xlane.xlu1 %8787  ;;  %v9288_v53 = vpop.permute.xlu0 %9287 }
0x258e   :  { %11976 = vmatprep.subr.mxu1 %v16310_v18  ;;  %12735 = vrcp.f32 %v8788_v54  ;;  %11952 = vmatmul.mubr.msk.f32.gmra.mxu1 %vm421_vm6, %v8557_v41 }
0x258f   :  { %v12730_v11 = vpop.eup %12729  ;;  %11977 = vmatpush3.msra.mxu1 %v8796_v4  ;;  %11954 = vmatprep.mubr.msk.f32.mxu1 %vm12784_vm0, %v16310_v18 }
0x2590   :  { %v8558_v55 = vmul.f32 %v12730_v11, %v15912_v59  ;;  %12002 = vmatprep.subr.mxu1 %v16310_v18 }
0x2591   :  { %v9034_v63 = vpop.xlane.xlu1 %9033 }
0x2592   :  { %12737 = vrcp.f32 %v9034_v63  ;;  %11955 = vmatmul.mubr.msk.f32.gmra.mxu1 %vm421_vm6, %v8558_v55 }
0x2593   :  { %v12732_v50 = vpop.eup %12731  ;;  %11978 = vmatprep.mubr.msk.f32.mxu1 %vm12784_vm0, %v16310_v18 }
0x2594   :  { %v8792_v35 = vmul.f32 %v12732_v50, %v15916_v5 }
0x2596   :  { %11979 = vmatmul.mubr.msk.f32.vlgmr.msra.gmra.mxu1 %vm421_vm6, %v8792_v35 }
0x2597   :  { %v12734_v21 = vpop.eup %12733  ;;  %12003 = vmatpush3.msk.msra.mxu1 %vm50_vm3, %v9052_v24  ;;  %11981 = vmatprep.mubr.msk.f32.mxu1 %vm12784_vm0, %v16310_v18 }
0x2598   :  { %12004 = vmatprep.subr.mxu1 %v16310_v18  ;;  %v8793_v59 = vmul.f32 %v12734_v21, %v15921_v2 }
0x2599   :  { %12005 = vmatpush3.msra.mxu1 %v9050_v46 }
0x259a   :  { %12006 = vmatprep.subr.mxu1 %v16310_v18  ;;  %11982 = vmatmul.mubr.msk.f32.gmra.mxu1 %vm421_vm6, %v8793_v59 }
0x259b   :  { %v12736_v33 = vpop.eup %12735  ;;  %12007 = vmatpush3.msra.mxu1 %v9048_v15  ;;  %11984 = vmatprep.mubr.msk.f32.mxu1 %vm12784_vm0, %v16310_v18 }
0x259c   :  { %v8794_v5 = vmul.f32 %v12736_v33, %v15926_v27  ;;  %12032 = vmatprep.subr.mxu1 %v16310_v18  ;;  %v9040_v27 = vpop.xlane.xlu1 %9039 }
0x259e   :  { %11985 = vmatmul.mubr.msk.f32.gmra.mxu1 %vm421_vm6, %v8794_v5 }
0x259f   :  { %v12738_v30 = vpop.eup %12737  ;;  %12008 = vmatprep.mubr.msk.f32.mxu1 %vm12784_vm0, %v16310_v18 }
0x25a0   :  { %v9044_v2 = vmul.f32 %v12738_v30, %v15930_v28  ;;  %v9270_v19 = vpop.xlane.xlu1 %9269 }
0x25a2   :  { %12009 = vmatmul.mubr.msk.f32.vlgmr.msra.gmra.mxu1 %vm421_vm6, %v9044_v2 }
0x25a3   :  { %12033 = vmatpush3.msk.msra.mxu1 %vm50_vm3, %v9288_v53  ;;  %12011 = vmatprep.mubr.msk.f32.mxu1 %vm12784_vm0, %v16310_v18 }
0x25a4   :  { %12034 = vmatprep.subr.mxu1 %v16310_v18 }
0x25be   :  { %v9037_v61 = vpop.xlane.xlu0 %9036 }
0x25bf   :  { %12739 = vrcp.f32 %v9037_v61 }
0x25c0   :  { %12741 = vrcp.f32 %v9040_v27 }
0x25c1   :  { %12743 = vrcp.f32 %v9270_v19 }
0x25c2   :  { %v9273_v10 = vpop.xlane.xlu0 %9272 }
0x25c3   :  { %12745 = vrcp.f32 %v9273_v10 }
0x25c6   :  { %v9284_v0 = vpop.permute.xlu0 %9283 }
0x25cc   :  { %v12740_v57 = vpop.eup %12739 }
0x25cd   :  { %v9045_v28 = vmul.f32 %v12740_v57, %v15946_v49  ;;  %v12742_v60 = vpop.eup %12741 }
0x25ce   :  { %v9046_v16 = vmul.f32 %v12742_v60, %v15934_v14  ;;  %v12744_v23 = vpop.eup %12743 }
0x25cf   :  { %12012 = vmatmul.mubr.msk.f32.gmra.mxu1 %vm421_vm6, %v9045_v28  ;;  %v9280_v49 = vmul.f32 %v12744_v23, %v15938_v58 }
0x25d0   :  { %12014 = vmatprep.mubr.msk.f32.mxu1 %vm12784_vm0, %v16310_v18  ;;  %v12746_v46 = vpop.eup %12745 }
0x25d1   :  { %v9281_v14 = vmul.f32 %v12746_v46, %v15950_v22 }
0x25d3   :  { %12015 = vmatmul.mubr.msk.f32.gmra.mxu1 %vm421_vm6, %v9046_v16 }
0x25d4   :  { %12038 = vmatprep.mubr.msk.f32.mxu1 %vm12784_vm0, %v16310_v18 }
0x25d6   :  { %v9276_v20 = vpop.xlane.xlu1 %9275 }
0x25d7   :  { %12747 = vrcp.f32 %v9276_v20 }
0x25da   :  { %v9286_v24 = vpop.permute.xlu1 %9285 }
0x25db   :  { %12035 = vmatpush3.msra.mxu1 %v9286_v24 }
0x25dc   :  { %12036 = vmatprep.subr.mxu1 %v16310_v18 }
0x25dd   :  { %12037 = vmatpush3.msra.mxu1 %v9284_v0 }
0x25de   :  { %12039 = vmatmul.mubr.msk.f32.vlgmr.msra.gmra.mxu1 %vm421_vm6, %v9280_v49  ;;  %12063 = vmatprep.subr.bf16.mxu1 %v16310_v18 }
0x25df   :  { %12041 = vmatprep.mubr.msk.f32.mxu1 %vm12784_vm0, %v16310_v18 }
0x25e2   :  { %12042 = vmatmul.mubr.msk.f32.gmra.mxu1 %vm421_vm6, %v9281_v14 }
0x25e3   :  { %12044 = vmatprep.mubr.msk.f32.mxu1 %vm12784_vm0, %v16310_v18 }
0x25e4   :  { %v12748_v58 = vpop.eup %12747 }
0x25e5   :  { %v9282_v12 = vmul.f32 %v12748_v58, %v15955_v48  ;;  %v12272_v48 = vld [vmem:[%s16286_s4 + $0x30] sm:$0xff]  }
0x25e6   :  { %12050 = vmatpush3.bf16.msra.mxu0 %v12272_v48 }
0x25e7   :  { %12045 = vmatmul.mubr.msk.f32.gmra.mxu1 %vm421_vm6, %v9282_v12  ;;  %12079 = vmatprep.subr.bf16.mxu0 %v16310_v18 }
0x25e8   :  { %12067 = vmatprep.mubr.msk.bf16.mxu1 %vm12784_vm0, %v16310_v18 }
0x264a   :  { %v8644_v22 = vpop.f32.mrf.mxu1 }
0x264c   :  { %v11950_v44 = vpop.f32.mrf.mxu1 }
0x264e   :  { %v8649_v6 = vpop.f32.mrf.mxu1 }
0x2650   :  { %v11953_v25 = vpop.f32.mrf.mxu1 }
0x2651   :  { %v9502_v25 = vrot.slane %v15729_v38, %v13705_v62 }
0x2652   :  { %v8654_v4 = vpop.f32.mrf.mxu1 }
0x2654   :  { %v11956_v15 = vpop.f32.mrf.mxu1 }
0x2656   :  { %v8880_v8 = vpop.f32.mrf.mxu1 }
0x2658   :  { %v11980_v32 = vpop.f32.mrf.mxu1 }
0x265a   :  { %v8885_v7 = vpop.f32.mrf.mxu1 }
0x265b   :  { %v12214_v51 = vpack.i.bf16 %v8885_v7, %v8880_v8 }
0x265c   :  { %v11983_v3 = vpop.f32.mrf.mxu1 }
0x265d   :  { %12215 = vrot.lane.b32.xlu0 %v12214_v51, %s12797_s21 }
0x265e   :  { %v8890_v37 = vpop.f32.mrf.mxu1 }
0x2660   :  { %v11986_v42 = vpop.f32.mrf.mxu1 }
0x2662   :  { %v9132_v29 = vpop.f32.mrf.mxu1 }
0x2664   :  { %v12010_v41 = vpop.f32.mrf.mxu1 }
0x268f   :  { %v9137_v54 = vpop.f32.mrf.mxu1 }
0x2691   :  { %v12013_v11 = vpop.f32.mrf.mxu1 }
0x2693   :  { %v9142_v55 = vpop.f32.mrf.mxu1 }
0x2695   :  { %v12016_v63 = vpop.f32.mrf.mxu1 }
0x269e   :  { %v9368_v50 = vpop.f32.mrf.mxu1 }
0x26a0   :  { %v12040_v35 = vpop.f32.mrf.mxu1 }
0x26a2   :  { %v9373_v21 = vpop.f32.mrf.mxu1 }
0x26a3   :  { %v12219_v59 = vpack.i.bf16 %v9373_v21, %v9368_v50 }
0x26a4   :  { %v12043_v33 = vpop.f32.mrf.mxu1 }
0x26a5   :  { %12220 = vrot.lane.b32.xlu0 %v12219_v59, %s12797_s21 }
0x26a7   :  { %v9378_v5 = vpop.f32.mrf.mxu1 }
0x26a8   :  { %9389 = vrot.lane.b32.xlu1 %v9378_v5, %s12797_s21 }
0x26a9   :  { %8901 = vrot.lane.b32.xlu0 %v8890_v37, %s12797_s21  ;;  %v12046_v30 = vpop.f32.mrf.mxu1 }
0x26cf   :  { %v12216_v2 = vpop.permute.xlu0 %12215 }
0x26d0   :  { %v12218_v53 = vunpack.i.h.bf16 %v12216_v2  ;;  %v12217_v27 = vunpack.i.l.bf16 %v12216_v2 }
0x26d2   :  { %v8907_v61 = vsel %vm1302_vm9, %v8649_v6, %v12218_v53  ;;  %v8906_v19 = vsel %vm1302_vm9, %v8644_v22, %v12217_v27 }
0x26d3   :  { %v9409_v57 = vpack.c.bf16 %v8907_v61, %v8906_v19 }
0x26d5   :  { %12052 = vmatmul.mubr.msk.bf16.vlgmr.msra.gmra.mxu0 %vm145_vm2, %v9409_v57 }
0x26d6   :  { %12055 = vmatprep.mubr.msk.bf16.mxu0 %vm12784_vm0, %v16310_v18 }
0x2717   :  { %v12221_v10 = vpop.permute.xlu0 %12220 }
0x2718   :  { %v12223_v28 = vunpack.i.h.bf16 %v12221_v10  ;;  %v12222_v60 = vunpack.i.l.bf16 %v12221_v10 }
0x271a   :  { %v9395_v16 = vsel %vm1302_vm9, %v9137_v54, %v12223_v28  ;;  %v9394_v20 = vsel %vm1302_vm9, %v9132_v29, %v12222_v60  ;;  %v9390_v23 = vpop.permute.xlu1 %9389 }
0x271b   :  { %v9401_v24 = vrot.slane %v9395_v16, 7  ;;  %v9400_v49 = vrot.slane %v9394_v20, 7  ;;  %v8902_v0 = vpop.permute.xlu0 %8901  ;;  %v9396_v46 = vsel %vm1302_vm9, %v9142_v55, %v9390_v23 }
0x271c   :  { %v8908_v14 = vsel %vm1302_vm9, %v8654_v4, %v8902_v0  ;;  %v9403_v22 = vrot.slane %v9396_v46, 7 }
0x271d   :  { %v9402_v58 = vsel %vm50_vm3, %v9400_v49, %v9401_v24  ;;  %v9408_v12 = vsel %vm50_vm3, %v8908_v14, %v9400_v49  ;;  %v12274_v49 = vld [vmem:[%s16287_s5 + $0x30] sm:$0xff]  }
0x271e   :  { %v9410_v26 = vpack.c.bf16 %v9402_v58, %v9408_v12  ;;  %v9404_v44 = vsel %vm50_vm3, %v9401_v24, %v9403_v22  ;;  %v12273_v24 = vld [vmem:[%s16287_s5 + $0x38] sm:$0xff]   ;;  %s12799_s5 = smov 32   ;;  %vm10013_vm3 = vcmask 523264  }
0x271f   :  { %v9411_v6 = vpack.c.bf16 %v9404_v44, %v9404_v44  ;;  %12064 = vmatpush3.bf16.msra.mxu1 %v12273_v24 }
0x2720   :  { %12056 = vmatmul.mubr.msk.bf16.gmra.mxu0 %vm145_vm2, %v9410_v26  ;;  %12065 = vmatprep.subr.bf16.mxu1 %v16310_v18 }
0x2721   :  { %12059 = vmatprep.mubr.msk.bf16.mxu0 %vm12784_vm0, %v16310_v18 }
0x2723   :  { %12066 = vmatpush3.bf16.msra.mxu1 %v12274_v49 }
0x2728   :  { %12060 = vmatmul.mubr.msk.bf16.gmra.mxu0 %vm145_vm2, %v9411_v6 }
0x2729   :  { %12095 = vmatprep.mubr.msk.bf16.mxu0 %vm12784_vm0, %v16310_v18 }
0x2795   :  { %v9472_v48 = vpop.f32.mrf.mxu0 }
0x2796   :  { %v9494_v4 = vadd.f32 %v9472_v48, %v15684_v9 }
0x2797   :  { %v12053_v15 = vpop.f32.mrf.mxu0 }
0x2798   :  { %v16058_v8 = vadd.f32 %v9502_v25, %v9494_v4 }
0x2799   :  { %v9475_v32 = vpop.f32.mrf.mxu0 }
0x279a   :  { %v9495_v7 = vadd.f32 %v9475_v32, %v15689_v43  ;;  %v9508_v51 = vsel %vm145_vm2, %v16058_v8, 0.0 }
0x279b   :  { %9509 = vadd.xlane.f32.xlu0 %v9508_v51  ;;  %v12054_v3 = vpop.f32.mrf.mxu0 }
0x279c   :  { %v16063_v37 = vadd.f32 %v9502_v25, %v9495_v7 }
0x279e   :  { %v9511_v42 = vsel %vm145_vm2, %v16063_v37, 0.0 }
0x279f   :  { %9512 = vadd.xlane.f32.xlu1 %v9511_v42 }
0x27e0   :  { %v9480_v62 = vpop.f32.mrf.mxu0 }
0x27e1   :  { %v9496_v38 = vadd.f32 %v9480_v62, %v15694_v52 }
0x27e2   :  { %v12057_v29 = vpop.f32.mrf.mxu0 }
0x27e3   :  { %v16068_v41 = vadd.f32 %v9502_v25, %v9496_v38 }
0x27e4   :  { %v9483_v54 = vpop.f32.mrf.mxu0 }
0x27e5   :  { %v9497_v11 = vadd.f32 %v9483_v54, %v15699_v45  ;;  %v9514_v55 = vsel %vm145_vm2, %v16068_v41, 0.0 }
0x27e6   :  { %9515 = vadd.xlane.f32.xlu0 %v9514_v55  ;;  %v12058_v63 = vpop.f32.mrf.mxu0 }
0x27e7   :  { %v16073_v50 = vadd.f32 %v9502_v25, %v9497_v11 }
0x27e8   :  { %v9488_v35 = vpop.f32.mrf.mxu0 }
0x27e9   :  { %v9498_v21 = vadd.f32 %v9488_v35, %v15704_v34  ;;  %v9517_v59 = vsel %vm145_vm2, %v16073_v50, 0.0 }
0x27ea   :  { %9518 = vadd.xlane.f32.xlu0 %v9517_v59  ;;  %v12061_v33 = vpop.f32.mrf.mxu0 }
0x27eb   :  { %v16078_v5 = vadd.f32 %v9502_v25, %v9498_v21 }
0x27ec   :  { %v9491_v30 = vpop.f32.mrf.mxu0 }
0x27ed   :  { %v9520_v2 = vsel %vm158_vm4, %v16078_v5, 0.0 }
0x27ee   :  { %9521 = vadd.xlane.f32.xlu0 %v9520_v2  ;;  %v12062_v53 = vpop.f32.mrf.mxu0 }
0x2824   :  { %v9510_v27 = vpop.xlane.xlu0 %9509 }
0x2825   :  { %v9523_v61 = vmul.f32 0.03125, %v9510_v27 }
0x2827   :  { %v9528_v19 = vsub.f32 %v16058_v8, %v9523_v61 }
0x2828   :  { %v9513_v57 = vpop.xlane.xlu1 %9512 }
0x2829   :  { %v9524_v10 = vmul.f32 0.03125, %v9513_v57  ;;  %v9533_v28 = vmul.f32 %v9528_v19, %v9528_v19 }
0x282b   :  { %v9529_v60 = vsub.f32 %v16063_v37, %v9524_v10  ;;  %v9538_v16 = vsel %vm145_vm2, %v9533_v28, 0.0 }
0x282c   :  { %9539 = vadd.xlane.f32.xlu1 %v9538_v16  ;;  %v16316_v16 = vld [vmem:[#allocation8_spill] sm:$0xff] }
0x282d   :  { %v9534_v20 = vmul.f32 %v9529_v60, %v9529_v60 }
0x282f   :  { %v9541_v23 = vsel %vm145_vm2, %v9534_v20, 0.0 }
0x2830   :  { %9542 = vadd.xlane.f32.xlu0 %v9541_v23 }
0x286f   :  { %v9516_v0 = vpop.xlane.xlu0 %9515 }
0x2870   :  { %v9525_v46 = vmul.f32 0.03125, %v9516_v0 }
0x2872   :  { %v16094_v14 = vsub.f32 %v16068_v41, %v9525_v46 }
0x2873   :  { %v9519_v58 = vpop.xlane.xlu0 %9518 }
0x2874   :  { %v9526_v12 = vmul.f32 0.03125, %v9519_v58  ;;  %v9535_v26 = vmul.f32 %v16094_v14, %v16094_v14 }
0x2876   :  { %v16099_v22 = vsub.f32 %v16073_v50, %v9526_v12  ;;  %v9544_v44 = vsel %vm145_vm2, %v9535_v26, 0.0 }
0x2877   :  { %9545 = vadd.xlane.f32.xlu1 %v9544_v44  ;;  %v9522_v6 = vpop.xlane.xlu0 %9521 }
0x2878   :  { %v9527_v25 = vmul.f32 0.03125, %v9522_v6  ;;  %v9536_v48 = vmul.f32 %v16099_v22, %v16099_v22  ;;  %v16317_v6 = vld [vmem:[#allocation7_spill] sm:$0xff] }
0x287a   :  { %v16105_v4 = vsub.f32 %v16078_v5, %v9527_v25  ;;  %v9547_v15 = vsel %vm145_vm2, %v9536_v48, 0.0 }
0x287b   :  { %9548 = vadd.xlane.f32.xlu0 %v9547_v15 }
0x287c   :  { %v9537_v32 = vmul.f32 %v16105_v4, %v16105_v4 }
0x287e   :  { %v9550_v7 = vsel %vm158_vm4, %v9537_v32, 0.0 }
0x287f   :  { %9551 = vadd.xlane.f32.xlu1 %v9550_v7 }
0x2890   :  { %9955 = vrot.lane.b32.xlu1 %v14774_v17, %s12799_s5 }
0x2891   :  { %9953 = vrot.lane.b32.xlu0 %v14769_v31, %s12799_s5 }
0x2894   :  { %9957 = vrot.lane.b32.xlu1 %v14779_v36, %s12799_s5 }
0x2895   :  { %9961 = vrot.lane.b32.xlu0 %v14789_v56, %s12799_s5 }
0x2898   :  { %9959 = vrot.lane.b32.xlu1 %v14784_v47, %s12799_s5 }
0x2899   :  { %9975 = vrot.lane.b32.xlu0 %v15689_v43, %s12786_s9 }
0x289c   :  { %9973 = vrot.lane.b32.xlu1 %v15684_v9, %s12786_s9  ;;  %v16129_v9 = vld [vmem:[%s16285_s7 + $0x18] sm:$0xff] }
0x289d   :  { %9979 = vrot.lane.b32.xlu0 %v15699_v45, %s12786_s9 }
0x28a0   :  { %9977 = vrot.lane.b32.xlu1 %v15694_v52, %s12786_s9  ;;  %v9576_v52 = vrot.slane %v16129_v9, %v13758_v13 }
0x28a4   :  { %9981 = vrot.lane.b32.xlu1 %v15704_v34, %s12786_s9  ;;  %v9585_v34 = vrot.slane %v16129_v9, %v13763_v40 }
0x28b5   :  { %v9540_v31 = vpop.xlane.xlu1 %9539 }
0x28b6   :  { %v9553_v17 = vmul.f32 0.03125, %v9540_v31 }
0x28b8   :  { %v9558_v36 = vadd.f32 1e-05, %v9553_v17 }
0x28b9   :  { %v9543_v56 = vpop.xlane.xlu0 %9542 }
0x28ba   :  { %12749 = vrsqrt.f32 %v9558_v36  ;;  %v9554_v47 = vmul.f32 0.03125, %v9543_v56 }
0x28bc   :  { %v9559_v51 = vadd.f32 1e-05, %v9554_v47  ;;  %v12275_v47 = vld [vmem:[%s16288_s6 + $0xf8] sm:$0xff]  }
0x28bd   :  { %12080 = vmatpush3.bf16.msra.mxu0 %v12275_v47 }
0x28be   :  { %12751 = vrsqrt.f32 %v9559_v51  ;;  %12081 = vmatprep.subr.bf16.mxu0 %v16310_v18  ;;  %v12276_v51 = vld [vmem:[%s16288_s6 + $0xf0] sm:$0xff]  }
0x28c1   :  { %12082 = vmatpush3.bf16.msra.mxu0 %v12276_v51 }
0x28c2   :  { %12083 = vmatprep.subr.bf16.mxu0 %v16310_v18 }
0x28c7   :  { %v12750_v43 = vpop.eup %12749 }
0x28c8   :  { %v9568_v45 = vmul.f32 %v12750_v43, %v9528_v19  ;;  %v12277_v43 = vld [vmem:[%s16288_s6 + $0xe8] sm:$0xff]  }
0x28c9   :  { %12084 = vmatpush3.bf16.msra.mxu0 %v12277_v43 }
0x28ca   :  { %v9577_v42 = vmul.f32 %v9576_v52, %v9568_v45  ;;  %12085 = vmatprep.subr.bf16.mxu0 %v16310_v18  ;;  %v12279_v45 = vld [vmem:[%s16288_s6 + $0xd8] sm:$0xff]  }
0x28cb   :  { %v12752_v3 = vpop.eup %12751 }
0x28cc   :  { %v9569_v62 = vmul.f32 %v12752_v3, %v9529_v60  ;;  %v9586_v29 = vadd.f32 %v9585_v34, %v9577_v42  ;;  %v12280_v3 = vld [vmem:[%s16288_s6 + $0xd0] sm:$0xff]   ;;  %v12282_v42 = vld [vmem:[%s16288_s6 + $0xc0] sm:$0xff]  }
0x28ce   :  { %v9578_v38 = vmul.f32 %v9576_v52, %v9569_v62  ;;  %v16201_v62 = vrot.slane %v16129_v9, %v13809_v1 }
0x28d0   :  { %v9587_v54 = vadd.f32 %v9585_v34, %v9578_v38 }
0x28d2   :  { %v9591_v11 = vpack.c.bf16 %v9587_v54, %v9586_v29 }
0x28d4   :  { %12068 = vmatmul.mubr.msk.bf16.vlgmr.msra.gmra.mxu1 %vm145_vm2, %v9591_v11 }
0x28d5   :  { %12071 = vmatprep.mubr.msk.bf16.mxu1 %vm12784_vm0, %v16310_v18 }
0x2900   :  { %v9546_v55 = vpop.xlane.xlu1 %9545 }
0x2901   :  { %v9555_v63 = vmul.f32 0.03125, %v9546_v55 }
0x2903   :  { %v9560_v35 = vadd.f32 1e-05, %v9555_v63 }
0x2904   :  { %v9549_v13 = vpop.xlane.xlu0 %9548 }
0x2905   :  { %12753 = vrsqrt.f32 %v9560_v35  ;;  %v9556_v21 = vmul.f32 0.03125, %v9549_v13 }
0x2907   :  { %v9561_v59 = vadd.f32 1e-05, %v9556_v21 }
0x2908   :  { %v9552_v33 = vpop.xlane.xlu1 %9551  ;;  %v16138_v40 = vpop.permute.xlu0 %9953 }
0x2909   :  { %12755 = vrsqrt.f32 %v9561_v59  ;;  %v9557_v30 = vmul.f32 0.03125, %v9552_v33 }
0x290b   :  { %v9562_v2 = vadd.f32 1e-05, %v9557_v30 }
0x290c   :  { %v16140_v53 = vpop.permute.xlu1 %9955  ;;  %v9962_v27 = vpop.permute.xlu0 %9961 }
0x290d   :  { %12757 = vrsqrt.f32 %v9562_v2 }
0x2910   :  { %v9958_v61 = vpop.permute.xlu1 %9957  ;;  %v16142_v19 = vpop.permute.xlu0 %9975 }
0x2911   :  { %v10010_v25 = vsel %vm145_vm2, %v16317_v6, %v9958_v61 }
0x2912   :  { %v12754_v57 = vpop.eup %12753 }
0x2913   :  { %v9570_v10 = vmul.f32 %v12754_v57, %v16094_v14 }
0x2914   :  { %v9960_v28 = vpop.permute.xlu1 %9959  ;;  %v9980_v60 = vpop.permute.xlu0 %9979 }
0x2915   :  { %v10011_v20 = vsel %vm145_vm2, %v16316_v16, %v9960_v28  ;;  %v9579_v0 = vmul.f32 %v9576_v52, %v9570_v10 }
0x2916   :  { %v12756_v23 = vpop.eup %12755  ;;  %v16148_v24 = vsel %vm10013_vm3, %v10011_v20, %v9980_v60 }
0x2917   :  { %v9571_v49 = vmul.f32 %v12756_v23, %v16099_v22  ;;  %v9588_v14 = vadd.f32 %v9585_v34, %v9579_v0  ;;  %v16318_v22 = vld [vmem:[#allocation9_spill] sm:$0xff] }
0x2918   :  { %v16151_v46 = vpop.permute.xlu1 %9973  ;;  %v10012_v31 = vsel %vm145_vm2, %v16318_v22, %v9962_v27 }
0x2919   :  { %v9580_v58 = vmul.f32 %v9576_v52, %v9571_v49 }
0x291a   :  { %v12758_v12 = vpop.eup %12757 }
0x291b   :  { %v9572_v26 = vmul.f32 %v12758_v12, %v16105_v4  ;;  %v9589_v44 = vadd.f32 %v9585_v34, %v9580_v58 }
0x291c   :  { %v9978_v48 = vpop.permute.xlu1 %9977 }
0x291d   :  { %v16157_v15 = vsel %vm10013_vm3, %v10010_v25, %v9978_v48  ;;  %v9592_v32 = vpack.c.bf16 %v9589_v44, %v9588_v14  ;;  %v9581_v7 = vmul.f32 %v9576_v52, %v9572_v26  ;;  %v12278_v52 = vld [vmem:[%s16288_s6 + $0xe0] sm:$0xff]  }
0x291e   :  { %12086 = vmatpush3.bf16.msra.mxu0 %v12278_v52 }
0x291f   :  { %12072 = vmatmul.mubr.msk.bf16.gmra.mxu1 %vm145_vm2, %v9592_v32  ;;  %v9590_v36 = vadd.f32 %v9585_v34, %v9581_v7  ;;  %12087 = vmatprep.subr.bf16.mxu0 %v16310_v18  ;;  %v12281_v34 = vld [vmem:[%s16288_s6 + $0xc8] sm:$0xff]  }
0x2920   :  { %v9982_v17 = vpop.permute.xlu1 %9981  ;;  %12075 = vmatprep.mubr.msk.bf16.mxu1 %vm12784_vm0, %v16310_v18 }
0x2921   :  { %v16165_v4 = vsel %vm10013_vm3, %v10012_v31, %v9982_v17  ;;  %v9593_v56 = vpack.c.bf16 %v9590_v36, %v9590_v36 }
0x2922   :  { %12088 = vmatpush3.bf16.msra.mxu0 %v12279_v45 }
0x2923   :  { %12089 = vmatprep.subr.bf16.mxu0 %v16310_v18 }
0x2926   :  { %12090 = vmatpush3.bf16.msra.mxu0 %v12280_v3 }
0x2927   :  { %12076 = vmatmul.mubr.msk.bf16.gmra.mxu1 %vm145_vm2, %v9593_v56  ;;  %12091 = vmatprep.subr.bf16.mxu0 %v16310_v18 }
0x292a   :  { %12092 = vmatpush3.bf16.msra.mxu0 %v12281_v34 }
0x292b   :  { %12093 = vmatprep.subr.bf16.mxu0 %v16310_v18 }
0x292e   :  { %12094 = vmatpush3.bf16.msra.mxu0 %v12282_v42 }
0x2994   :  { %v9658_v38 = vpop.f32.mrf.mxu1 }
0x2995   :  { %v9659_v29 = vadd.f32 %v9658_v38, %v16201_v62 }
0x2996   :  { %v12069_v54 = vpop.f32.mrf.mxu1 }
0x2997   :  { %v9685_v11 = vmul.f32 0.70710677, %v9659_v29 }
0x2998   :  { %v9661_v55 = vpop.f32.mrf.mxu1 }
0x2999   :  { %v9690_v63 = vand.u32 2147483647, %v9685_v11  ;;  %v9662_v35 = vadd.f32 %v9661_v55, %v16201_v62  ;;  %vm9790_vm4 = vcmp.ge.f32.partialorder %v9685_v11, 0.0 }
0x299a   :  { %v12070_v13 = vpop.f32.mrf.mxu1 }
0x299b   :  { %v9695_v21 = vmul.f32 0.3275911, %v9690_v63  ;;  %v9686_v59 = vmul.f32 0.70710677, %v9662_v35  ;;  %v9760_v1 = vmul.f32 %v9690_v63, %v9690_v63  ;;  %v9680_v63 = vmul.f32 0.5, %v9659_v29 }
0x299c   :  { %v9681_v13 = vmul.f32 0.5, %v9662_v35 }
0x299d   :  { %v9700_v33 = vadd.f32 1.0, %v9695_v21  ;;  %v9691_v30 = vand.u32 2147483647, %v9686_v59  ;;  %v9765_v61 = vsub.f32 0.0, %v9760_v1  ;;  %vm9791_vm6 = vcmp.ge.f32.partialorder %v9686_v59, 0.0 }
0x299f   :  { %12759 = vrcp.f32 %v9700_v33  ;;  %v9696_v2 = vmul.f32 0.3275911, %v9691_v30  ;;  %v9761_v57 = vmul.f32 %v9691_v30, %v9691_v30  ;;  %v9770_v60 = vmul.f32 1.442695, %v9765_v61 }
0x29a1   :  { %v9701_v27 = vadd.f32 1.0, %v9696_v2  ;;  %v9766_v16 = vsub.f32 0.0, %v9761_v57 }
0x29a3   :  { %12761 = vrcp.f32 %v9701_v27  ;;  %v9772_v58 = vmul.f32 1.442695, %v9766_v16 }
0x29a4   :  { %12763 = vpow2.f32 %v9770_v60 }
0x29a5   :  { %12765 = vpow2.f32 %v9772_v58 }
0x29ac   :  { %v12760_v10 = vpop.eup %12759 }
0x29ad   :  { %v9715_v28 = vmul.f32 1.0614054, %v12760_v10 }
0x29af   :  { %v9720_v20 = vadd.f32 -1.4531521, %v9715_v28 }
0x29b0   :  { %v12762_v23 = vpop.eup %12761 }
0x29b1   :  { %v9725_v49 = vmul.f32 %v12760_v10, %v9720_v20  ;;  %v9716_v0 = vmul.f32 1.0614054, %v12762_v23  ;;  %v12764_v36 = vpop.eup %12763 }
0x29b2   :  { %v12766_v52 = vpop.eup %12765 }
0x29b3   :  { %v9730_v12 = vadd.f32 1.4214138, %v9725_v49  ;;  %v9721_v26 = vadd.f32 -1.4531521, %v9716_v0 }
0x29b5   :  { %v9735_v14 = vmul.f32 %v12760_v10, %v9730_v12  ;;  %v9726_v44 = vmul.f32 %v12762_v23, %v9721_v26 }
0x29b7   :  { %v9740_v6 = vadd.f32 -0.28449672, %v9735_v14  ;;  %v9731_v25 = vadd.f32 1.4214138, %v9726_v44 }
0x29b9   :  { %v9745_v48 = vmul.f32 %v12760_v10, %v9740_v6  ;;  %v9736_v32 = vmul.f32 %v12762_v23, %v9731_v25 }
0x29bb   :  { %v9750_v7 = vadd.f32 0.2548296, %v9745_v48  ;;  %v9741_v22 = vadd.f32 -0.28449672, %v9736_v32 }
0x29bd   :  { %v9755_v31 = vmul.f32 %v12760_v10, %v9750_v7  ;;  %v9746_v17 = vmul.f32 %v12762_v23, %v9741_v22 }
0x29bf   :  { %v9780_v56 = vmul.f32 %v12764_v36, %v9755_v31  ;;  %v9751_v47 = vadd.f32 0.2548296, %v9746_v17 }
0x29c1   :  { %v9785_v51 = vsub.f32 1.0, %v9780_v56  ;;  %v9756_v43 = vmul.f32 %v12762_v23, %v9751_v47 }
0x29c3   :  { %v9795_v45 = vsub.f32 0.0, %v9785_v51  ;;  %v9781_v3 = vmul.f32 %v12766_v52, %v9756_v43 }
0x29c5   :  { %v9800_v34 = vsel %vm9790_vm4, %v9785_v51, %v9795_v45  ;;  %v9786_v42 = vsub.f32 1.0, %v9781_v3 }
0x29c6   :  { %v9805_v54 = vadd.f32 1.0, %v9800_v34 }
0x29c7   :  { %v9796_v38 = vsub.f32 0.0, %v9786_v42 }
0x29c8   :  { %v9810_v33 = vmul.f32 %v9805_v54, %v9680_v63 }
0x29c9   :  { %v9801_v55 = vsel %vm9791_vm6, %v9786_v42, %v9796_v38 }
0x29ca   :  { %v9806_v21 = vadd.f32 1.0, %v9801_v55 }
0x29cc   :  { %v9811_v30 = vmul.f32 %v9806_v21, %v9681_v13 }
0x29ce   :  { %v9815_v2 = vpack.c.bf16 %v9811_v30, %v9810_v33 }
0x29d0   :  { %12096 = vmatmul.mubr.bf16.vlgmr.msra.gmra.mxu0 %v9815_v2 }
0x29d1   :  { %12099 = vmatprep.mubr.msk.bf16.mxu0 %vm12784_vm0, %v16310_v18 }
0x29df   :  { %v9666_v27 = vpop.f32.mrf.mxu1 }
0x29e0   :  { %v16208_v1 = vadd.f32 %v9666_v27, %v16201_v62 }
0x29e1   :  { %v12073_v11 = vpop.f32.mrf.mxu1 }
0x29e2   :  { %v16211_v61 = vmul.f32 0.70710677, %v16208_v1 }
0x29e3   :  { %v9669_v59 = vpop.f32.mrf.mxu1 }
0x29e4   :  { %v9692_v29 = vand.u32 2147483647, %v16211_v61  ;;  %v16215_v35 = vadd.f32 %v9669_v59, %v16201_v62  ;;  %vm9792_vm7 = vcmp.ge.f32.partialorder %v16211_v61, 0.0 }
0x29e5   :  { %v12074_v57 = vpop.f32.mrf.mxu1 }
0x29e6   :  { %v9697_v10 = vmul.f32 0.3275911, %v9692_v29  ;;  %v16218_v28 = vmul.f32 0.70710677, %v16215_v35  ;;  %v9762_v25 = vmul.f32 %v9692_v29, %v9692_v29 }
0x29e7   :  { %v9674_v60 = vpop.f32.mrf.mxu1 }
0x29e8   :  { %v9702_v16 = vadd.f32 1.0, %v9697_v10  ;;  %v9693_v20 = vand.u32 2147483647, %v16218_v28  ;;  %v16222_v23 = vadd.f32 %v9674_v60, %v16201_v62  ;;  %v9767_v32 = vsub.f32 0.0, %v9762_v25 }
0x29e9   :  { %v12077_v49 = vpop.f32.mrf.mxu1  ;;  %vm9793_vm8 = vcmp.ge.f32.partialorder %v16218_v28, 0.0 }
0x29ea   :  { %12767 = vrcp.f32 %v9702_v16  ;;  %v9698_v0 = vmul.f32 0.3275911, %v9693_v20  ;;  %v16225_v58 = vmul.f32 0.70710677, %v16222_v23  ;;  %v9763_v7 = vmul.f32 %v9693_v20, %v9693_v20 }
0x29eb   :  { %v9677_v12 = vpop.f32.mrf.mxu1  ;;  %v9774_v31 = vmul.f32 1.442695, %v9767_v32 }
0x29ec   :  { %v9703_v26 = vadd.f32 1.0, %v9698_v0  ;;  %v9694_v14 = vand.u32 2147483647, %v16225_v58  ;;  %v9768_v17 = vsub.f32 0.0, %v9763_v7  ;;  %vm9794_vm9 = vcmp.ge.f32.partialorder %v16225_v58, 0.0 }
0x29ed   :  { %v12078_v44 = vpop.f32.mrf.mxu1 }
0x29ee   :  { %12769 = vrcp.f32 %v9703_v26  ;;  %v9699_v6 = vmul.f32 0.3275911, %v9694_v14  ;;  %v9764_v36 = vmul.f32 %v9694_v14, %v9694_v14  ;;  %v9776_v52 = vmul.f32 1.442695, %v9768_v17 }
0x29f0   :  { %v9704_v48 = vadd.f32 1.0, %v9699_v6  ;;  %v9769_v45 = vsub.f32 0.0, %v9764_v36 }
0x29f2   :  { %12771 = vrcp.f32 %v9704_v48  ;;  %v9778_v63 = vmul.f32 1.442695, %v9769_v45 }
0x29f3   :  { %12773 = vpow2.f32 %v9774_v31 }
0x29f4   :  { %12775 = vpow2.f32 %v9776_v52 }
0x29f5   :  { %12777 = vpow2.f32 %v9778_v63 }
0x29f7   :  { %v12768_v62 = vpop.eup %12767 }
0x29f8   :  { %v9717_v22 = vmul.f32 1.0614054, %v12768_v62 }
0x29fa   :  { %v9722_v56 = vadd.f32 -1.4531521, %v9717_v22 }
0x29fb   :  { %v12770_v47 = vpop.eup %12769 }
0x29fc   :  { %v9727_v51 = vmul.f32 %v12768_v62, %v9722_v56  ;;  %v9718_v43 = vmul.f32 1.0614054, %v12770_v47 }
0x29fe   :  { %v9732_v3 = vadd.f32 1.4214138, %v9727_v51  ;;  %v9723_v34 = vadd.f32 -1.4531521, %v9718_v43  ;;  %v9682_v51 = vmul.f32 0.5, %v16208_v1 }
0x29ff   :  { %v12772_v42 = vpop.eup %12771 }
0x2a00   :  { %v9737_v38 = vmul.f32 %v12768_v62, %v9732_v3  ;;  %v9728_v54 = vmul.f32 %v12770_v47, %v9723_v34  ;;  %v9719_v55 = vmul.f32 1.0614054, %v12772_v42  ;;  %v12774_v60 = vpop.eup %12773 }
0x2a01   :  { %v12776_v14 = vpop.eup %12775 }
0x2a02   :  { %v9742_v13 = vadd.f32 -0.28449672, %v9737_v38  ;;  %v9733_v21 = vadd.f32 1.4214138, %v9728_v54  ;;  %v9724_v33 = vadd.f32 -1.4531521, %v9719_v55  ;;  %v12778_v31 = vpop.eup %12777 }
0x2a03   :  { %v9684_v54 = vmul.f32 0.5, %v16222_v23 }
0x2a04   :  { %v9747_v30 = vmul.f32 %v12768_v62, %v9742_v13  ;;  %v9738_v2 = vmul.f32 %v12770_v47, %v9733_v21  ;;  %v9729_v27 = vmul.f32 %v12772_v42, %v9724_v33 }
0x2a06   :  { %v9752_v11 = vadd.f32 0.2548296, %v9747_v30  ;;  %v9743_v59 = vadd.f32 -0.28449672, %v9738_v2  ;;  %v9734_v29 = vadd.f32 1.4214138, %v9729_v27 }
0x2a08   :  { %v9757_v57 = vmul.f32 %v12768_v62, %v9752_v11  ;;  %v9748_v10 = vmul.f32 %v12770_v47, %v9743_v59  ;;  %v9739_v16 = vmul.f32 %v12772_v42, %v9734_v29 }
0x2a0a   :  { %v9782_v20 = vmul.f32 %v12774_v60, %v9757_v57  ;;  %v9753_v49 = vadd.f32 0.2548296, %v9748_v10  ;;  %v9744_v0 = vadd.f32 -0.28449672, %v9739_v16 }
0x2a0c   :  { %v9787_v12 = vsub.f32 1.0, %v9782_v20  ;;  %v9758_v26 = vmul.f32 %v12770_v47, %v9753_v49  ;;  %v9749_v44 = vmul.f32 %v12772_v42, %v9744_v0  ;;  %v9683_v47 = vmul.f32 0.5, %v16215_v35 }
0x2a0d   :  { %v9838_v35 = vrot.slane %v16129_v9, %v13851_v39 }
0x2a0e   :  { %v9797_v6 = vsub.f32 0.0, %v9787_v12  ;;  %v9783_v25 = vmul.f32 %v12776_v14, %v9758_v26  ;;  %v9754_v48 = vadd.f32 0.2548296, %v9749_v44 }
0x2a10   :  { %v9802_v32 = vsel %vm9792_vm7, %v9787_v12, %v9797_v6  ;;  %v9788_v7 = vsub.f32 1.0, %v9783_v25  ;;  %v9759_v22 = vmul.f32 %v12772_v42, %v9754_v48 }
0x2a11   :  { %v9807_v17 = vadd.f32 1.0, %v9802_v32 }
0x2a12   :  { %v9798_v62 = vsub.f32 0.0, %v9788_v7  ;;  %v9784_v36 = vmul.f32 %v12778_v31, %v9759_v22 }
0x2a13   :  { %v9812_v45 = vmul.f32 %v9807_v17, %v9682_v51 }
0x2a14   :  { %v9803_v56 = vsel %vm9793_vm8, %v9788_v7, %v9798_v62  ;;  %v9789_v52 = vsub.f32 1.0, %v9784_v36 }
0x2a15   :  { %v9808_v43 = vadd.f32 1.0, %v9803_v56 }
0x2a16   :  { %v9799_v61 = vsub.f32 0.0, %v9789_v52 }
0x2a17   :  { %v9813_v3 = vmul.f32 %v9808_v43, %v9683_v47 }
0x2a18   :  { %v9804_v42 = vsel %vm9794_vm9, %v9789_v52, %v9799_v61 }
0x2a19   :  { %v9816_v34 = vpack.c.bf16 %v9813_v3, %v9812_v45  ;;  %v9809_v38 = vadd.f32 1.0, %v9804_v42 }
0x2a1b   :  { %12100 = vmatmul.mubr.bf16.gmra.mxu0 %v9816_v34  ;;  %v9814_v28 = vmul.f32 %v9809_v38, %v9684_v54 }
0x2a1c   :  { %12103 = vmatprep.mubr.msk.bf16.mxu0 %vm12784_vm0, %v16310_v18  ;;  %vm10019_vm0 = vcmask 785408  }
0x2a1d   :  { %v9817_v1 = vpack.c.bf16 %v9814_v28, %v9814_v28 }
0x2a23   :  { %12104 = vmatmul.mubr.bf16.gmra.mxu0 %v9817_v1 }
0x2a90   :  { %v9921_v55 = vpop.f32.mrf.mxu0 }
0x2a91   :  { %v9922_v63 = vadd.f32 %v9921_v55, %v9838_v35 }
0x2a92   :  { %v12097_v13 = vpop.f32.mrf.mxu0 }
0x2a93   :  { %v9943_v58 = vadd.f32 %v9922_v63, %v16058_v8 }
0x2a94   :  { %v9924_v21 = vpop.f32.mrf.mxu0 }
0x2a95   :  { %v9925_v33 = vadd.f32 %v9924_v21, %v9838_v35  ;;  %9993 = vrot.lane.b32.xlu0 %v9943_v58, %s12785_s30 }
0x2a96   :  { %v12098_v23 = vpop.f32.mrf.mxu0 }
0x2a97   :  { %v9944_v30 = vadd.f32 %v9925_v33, %v16063_v37 }
0x2a99   :  { %9995 = vrot.lane.b32.xlu1 %v9944_v30, %s12785_s30 }
0x2adb   :  { %v9929_v18 = vpop.f32.mrf.mxu0 }
0x2adc   :  { %v9930_v2 = vadd.f32 %v9929_v18, %v9838_v35 }
0x2add   :  { %v12101_v27 = vpop.f32.mrf.mxu0 }
0x2ade   :  { %v9945_v11 = vadd.f32 %v9930_v2, %v16068_v41  ;;  %v16319_v41 = vld [vmem:[#allocation5_spill] sm:$0xff] }
0x2adf   :  { %v9932_v39 = vpop.f32.mrf.mxu0  ;;  %v10008_v20 = vsel %vm145_vm2, %v16319_v41, %v16138_v40 }
0x2ae0   :  { %v9933_v9 = vadd.f32 %v9932_v39, %v9838_v35  ;;  %9997 = vrot.lane.b32.xlu0 %v9945_v11, %s12785_s30  ;;  %v10014_v49 = vsel %vm10013_vm3, %v10008_v20, %v16151_v46 }
0x2ae1   :  { %v12102_v59 = vpop.f32.mrf.mxu0 }
0x2ae2   :  { %v9946_v8 = vadd.f32 %v9933_v9, %v16073_v50 }
0x2ae3   :  { %v9937_v29 = vpop.f32.mrf.mxu0 }
0x2ae4   :  { %v9938_v57 = vadd.f32 %v9937_v29, %v9838_v35  ;;  %9999 = vrot.lane.b32.xlu1 %v9946_v8, %s12785_s30 }
0x2ae5   :  { %v12105_v10 = vpop.f32.mrf.mxu0 }
0x2ae6   :  { %v9947_v37 = vadd.f32 %v9938_v57, %v16078_v5  ;;  %v16320_v5 = vld [vmem:[#allocation6_spill] sm:$0xff] }
0x2ae7   :  { %v9940_v60 = vpop.f32.mrf.mxu0  ;;  %v10009_v12 = vsel %vm145_vm2, %v16320_v5, %v16140_v53 }
0x2ae8   :  { %10001 = vrot.lane.b32.xlu0 %v9947_v37, %s12785_s30  ;;  %v10015_v26 = vsel %vm10013_vm3, %v10009_v12, %v16142_v19 }
0x2ae9   :  { %v12106_v16 = vpop.f32.mrf.mxu0 }
0x2b07   :  { %v9994_v50 = vpop.permute.xlu0 %9993 }
0x2b08   :  { %v10020_v0 = vsel %vm10019_vm0, %v10014_v49, %v9994_v50 }
0x2b09   :  { %10025 = vst [vmem:[%s16289_s8] sm:$0xff] %v10020_v0 }
0x2b0b   :  { %v9996_v14 = vpop.permute.xlu1 %9995 }
0x2b0c   :  { %v10021_v40 = vsel %vm10019_vm0, %v10015_v26, %v9996_v14 }
0x2b0d   :  { %10026 = vst [vmem:[%s16289_s8 + $0x8] sm:$0xff] %v10021_v40 }
0x2b52   :  { %v9998_v46 = vpop.permute.xlu0 %9997 }
0x2b53   :  { %v10022_v44 = vsel %vm10019_vm0, %v16157_v15, %v9998_v46 }
0x2b54   :  { %10027 = vst [vmem:[%s16289_s8 + $0x10] sm:$0xff] %v10022_v44 }
0x2b56   :  { %v10000_v6 = vpop.permute.xlu1 %9999 }
0x2b57   :  { %v10023_v53 = vsel %vm10019_vm0, %v16148_v24, %v10000_v6 }
0x2b58   :  { %10028 = vst [vmem:[%s16289_s8 + $0x18] sm:$0xff] %v10023_v53 }
0x2b5a   :  { %v10002_v19 = vpop.permute.xlu0 %10001 }
0x2b5b   :  { %v10024_v25 = vsel %vm10019_vm0, %v16165_v4, %v10002_v19 }
0x2b5c   :  { %10029 = vst [vmem:[%s16289_s8 + $0x20] sm:$0x3] %v10024_v25 }

</bundles_post_ra>
